<compile_context>
chip_gen: v5e
topology: v5e:2x2
jax: 0.10.0
libtpu: 0.0.40
codegen_flags: <defaults>
</compile_context>

<pallas_src>
import functools

import jax
import jax.numpy as jnp
import numpy as np
from jax import lax
from jax.experimental import pallas as pl
from jax.experimental.pallas import tpu as pltpu

EPS = 1e-5                       # nn.BatchNorm2d default eps
SLOPE = 0.01                     # nn.LeakyReLU default negative_slope
VMEM_LIMIT = 48 * 1024 * 1024    # explicit scoped-VMEM ceiling (safe on v5e/v6e/v7x)


def _leaky(x):
    return jnp.where(x >= 0, x, SLOPE * x)


# ---------------------------------------------------------------------------
# In-kernel helpers
# ---------------------------------------------------------------------------
def _zero_halo(pad_ref, H, W):
    """Zero only the 1-pixel halo border of the (H+2, W+2, C) scratch.

    Done every grid step (cheap: 2 rows + 2 columns) so the kernel stays correct when
    the grid is sharded across TensorCores with "parallel" semantics (each core owns
    its own scratch and may start at any program_id).
    """
    C = pad_ref.shape[-1]
    dt = pad_ref.dtype
    pad_ref[0:1, :, :] = jnp.zeros((1, W + 2, C), dt)
    pad_ref[H + 1:H + 2, :, :] = jnp.zeros((1, W + 2, C), dt)
    pad_ref[1:H + 1, 0:1, :] = jnp.zeros((H, 1, C), dt)
    pad_ref[1:H + 1, W + 1:W + 2, :] = jnp.zeros((H, 1, C), dt)


def _conv3x3_from_pad(pad_ref, w_ref, H, W):
    """3x3 'same' conv from a zero-bordered VMEM scratch via 9 per-tap MXU dots.

    No im2col patch buffer is materialized: each tap is a (shifted-window) READ of the
    padded scratch, so the 9x patch store traffic and the H*W*9*C scratch are gone.

    pad_ref : (H+2, W+2, Cin)  zero-border scratch (compute dtype), interior filled by caller
    w_ref   : (9, Cin, Cout)   weights, tap k = 3*dy + dx (compute dtype)
    returns : (H*W, Cout) float32 (MXU accumulation stays f32)
    """
    Cin = pad_ref.shape[-1]
    Cout = w_ref.shape[-1]
    acc = jnp.zeros((H * W, Cout), jnp.float32)
    for k in range(9):                                   # static unroll
        dy, dx = divmod(k, 3)
        tap = pad_ref[dy:dy + H, dx:dx + W, :].reshape(H * W, Cin)
        acc = acc + lax.dot_general(
            tap, w_ref[k],
            dimension_numbers=(((1,), (0,)), ((), ())),
            preferred_element_type=jnp.float32)
    return acc


def _stats(y2d, Cout):
    """Per-channel sum / sum-of-squares of an (H*W, Cout) f32 tile -> (1,1,Cout) each."""
    s = jnp.sum(y2d, axis=0).reshape(1, 1, Cout)
    q = jnp.sum(y2d * y2d, axis=0).reshape(1, 1, Cout)
    return s, q


# ---------------------------------------------------------------------------
# Pallas kernels
# ---------------------------------------------------------------------------
def conv1_shortcut_stats_kernel(x_ref, w1_ref, ws_ref,
                                y1_ref, ys_ref, s1_ref, q1_ref, ss_ref, qs_ref,
                                xpad_ref):
    """conv1 (3x3, no bias) + 1x1 projection shortcut conv + per-image BN partial stats."""
    _, H, W, Cout = y1_ref.shape
    Cin = x_ref.shape[-1]
    _zero_halo(xpad_ref, H, W)
    x = x_ref[0]                                          # (H, W, Cin), compute dtype
    xpad_ref[1:H + 1, 1:W + 1, :] = x

    y1 = _conv3x3_from_pad(xpad_ref, w1_ref, H, W)        # (H*W, Cout) f32
    y1_ref[0] = y1.reshape(H, W, Cout).astype(y1_ref.dtype)
    s, q = _stats(y1, Cout)
    s1_ref[...] = s
    q1_ref[...] = q

    ys = lax.dot_general(x.reshape(H * W, Cin), ws_ref[...],   # 1x1 shortcut conv, no bias
                         dimension_numbers=(((1,), (0,)), ((), ())),
                         preferred_element_type=jnp.float32)
    ys_ref[0] = ys.reshape(H, W, Cout).astype(ys_ref.dtype)
    s, q = _stats(ys, Cout)
    ss_ref[...] = s
    qs_ref[...] = q


def conv1_stats_kernel(x_ref, w1_ref, y1_ref, s1_ref, q1_ref, xpad_ref):
    """conv1 (3x3, no bias) + per-image BN partial stats (identity-shortcut case)."""
    _, H, W, Cout = y1_ref.shape
    _zero_halo(xpad_ref, H, W)
    xpad_ref[1:H + 1, 1:W + 1, :] = x_ref[0]
    y1 = _conv3x3_from_pad(xpad_ref, w1_ref, H, W)
    y1_ref[0] = y1.reshape(H, W, Cout).astype(y1_ref.dtype)
    s, q = _stats(y1, Cout)
    s1_ref[...] = s
    q1_ref[...] = q


def bn_act_conv2_stats_kernel(y1_ref, sc1_ref, sh1_ref, w2_ref,
                              y2_ref, s2_ref, q2_ref, apad_ref):
    """bn1 (folded scale/shift, f32 math) + LeakyReLU + conv2 (3x3, no bias) + partial stats."""
    _, H, W, Cout = y2_ref.shape
    _zero_halo(apad_ref, H, W)
    a1 = _leaky(y1_ref[0].astype(jnp.float32) * sc1_ref[0][None, None, :]
                + sh1_ref[0][None, None, :])
    apad_ref[1:H + 1, 1:W + 1, :] = a1.astype(apad_ref.dtype)   # conv2's zero pad after act
    y2 = _conv3x3_from_pad(apad_ref, w2_ref, H, W)
    y2_ref[0] = y2.reshape(H, W, Cout).astype(y2_ref.dtype)
    s, q = _stats(y2, Cout)
    s2_ref[...] = s
    q2_ref[...] = q


def bn_add_act_shortcut_kernel(y2_ref, ys_ref, sc2_ref, sh2_ref, scs_ref, shs_ref, o_ref):
    """out = LeakyReLU(bn2(y2) + bn_s(shortcut_conv_out)); all BN math in f32."""
    bn2 = y2_ref[0].astype(jnp.float32) * sc2_ref[0][None, None, :] + sh2_ref[0][None, None, :]
    res = ys_ref[0].astype(jnp.float32) * scs_ref[0][None, None, :] + shs_ref[0][None, None, :]
    o_ref[0] = _leaky(bn2 + res).astype(o_ref.dtype)


def bn_add_act_identity_kernel(y2_ref, x_ref, sc2_ref, sh2_ref, o_ref):
    """out = LeakyReLU(bn2(y2) + x) (identity shortcut, residual kept in f32)."""
    bn2 = y2_ref[0].astype(jnp.float32) * sc2_ref[0][None, None, :] + sh2_ref[0][None, None, :]
    o_ref[0] = _leaky(bn2 + x_ref[0].astype(jnp.float32)).astype(o_ref.dtype)


# ---------------------------------------------------------------------------
# Wrapper
# ---------------------------------------------------------------------------
def _bn_scale_shift(s, q, count, gamma, beta):
    """Reduce per-image partial sums and fold batch mean/var + affine into scale/shift."""
    s = jnp.sum(s, axis=(0, 1))                           # (Cout,)
    q = jnp.sum(q, axis=(0, 1))
    mean = s / count
    var = jnp.maximum(q / count - mean * mean, 0.0)       # clamp >= 0 before rsqrt
    scale = gamma * lax.rsqrt(var + EPS)
    shift = beta - mean * scale
    return scale.reshape(1, -1), shift.reshape(1, -1)


def res_block_forward_nhwc(x, params, *, has_shortcut, compute_dtype=jnp.bfloat16):
    """NHWC core (no layout transposes). x: (N,H,W,Cin) float32; returns (N,H,W,Cout) f32."""
    N, H, W, Cin = x.shape
    Cout = params["w1"].shape[-1]
    count = N * H * W
    cdt = compute_dtype
    esz = jnp.dtype(cdt).itemsize

    x_c = x.astype(cdt)
    w1 = params["w1"].astype(cdt)                         # (9, Cin, Cout)
    w2 = params["w2"].astype(cdt)                         # (9, Cout, Cout)

    img_in = pl.BlockSpec((1, H, W, Cin), lambda n: (n, 0, 0, 0))
    img_io = pl.BlockSpec((1, H, W, Cout), lambda n: (n, 0, 0, 0))
    chan_in = pl.BlockSpec((1, Cout), lambda n: (0, 0))
    stat_spec = pl.BlockSpec((1, 1, Cout), lambda n: (n, 0, 0))
    stat_shape = jax.ShapeDtypeStruct((N, 1, Cout), jnp.float32)
    img_shape_c = jax.ShapeDtypeStruct((N, H, W, Cout), cdt)

    cparams = pltpu.CompilerParams(dimension_semantics=("parallel",),
                                   vmem_limit_bytes=VMEM_LIMIT)

    conv1_flops = 2 * count * 9 * Cin * Cout
    conv2_flops = 2 * count * 9 * Cout * Cout
    img_bytes_in = count * Cin * esz
    img_bytes_out = count * Cout * esz

    # ---- kernel A: conv1 (+ 1x1 shortcut conv) + per-image BN partial stats ---------------
    if has_shortcut:
        ws = params["ws"].astype(cdt)                     # (Cin, Cout)
        y1, ys, s1, q1, ss, qs = pl.pallas_call(
            conv1_shortcut_stats_kernel,
            out_shape=(img_shape_c, img_shape_c,
                       stat_shape, stat_shape, stat_shape, stat_shape),
            grid=(N,),
            in_specs=[img_in,
                      pl.BlockSpec((9, Cin, Cout), lambda n: (0, 0, 0)),
                      pl.BlockSpec((Cin, Cout), lambda n: (0, 0))],
            out_specs=(img_io, img_io, stat_spec, stat_spec, stat_spec, stat_spec),
            scratch_shapes=[pltpu.VMEM((H + 2, W + 2, Cin), cdt)],
            compiler_params=cparams,
            cost_estimate=pl.CostEstimate(
                flops=int(conv1_flops + 2 * count * Cin * Cout), transcendentals=0,
                bytes_accessed=int(img_bytes_in + 2 * img_bytes_out)),
        )(x_c, w1, ws)
        scs, shs = _bn_scale_shift(ss, qs, count, params["gs"], params["bes"])
    else:
        assert Cin == Cout, "identity shortcut requires in_channels == out_channels"
        y1, s1, q1 = pl.pallas_call(
            conv1_stats_kernel,
            out_shape=(img_shape_c, stat_shape, stat_shape),
            grid=(N,),
            in_specs=[img_in,
                      pl.BlockSpec((9, Cin, Cout), lambda n: (0, 0, 0))],
            out_specs=(img_io, stat_spec, stat_spec),
            scratch_shapes=[pltpu.VMEM((H + 2, W + 2, Cin), cdt)],
            compiler_params=cparams,
            cost_estimate=pl.CostEstimate(
                flops=int(conv1_flops), transcendentals=0,
                bytes_accessed=int(img_bytes_in + img_bytes_out)),
        )(x_c, w1)

    sc1, sh1 = _bn_scale_shift(s1, q1, count, params["g1"], params["be1"])

    # ---- kernel B: bn1 + LeakyReLU + conv2 + per-image BN partial stats -------------------
    y2, s2, q2 = pl.pallas_call(
        bn_act_conv2_stats_kernel,
        out_shape=(img_shape_c, stat_shape, stat_shape),
        grid=(N,),
        in_specs=[img_io, chan_in, chan_in,
                  pl.BlockSpec((9, Cout, Cout), lambda n: (0, 0, 0))],
        out_specs=(img_io, stat_spec, stat_spec),
        scratch_shapes=[pltpu.VMEM((H + 2, W + 2, Cout), cdt)],
        compiler_params=cparams,
        cost_estimate=pl.CostEstimate(
            flops=int(conv2_flops), transcendentals=0,
            bytes_accessed=int(2 * img_bytes_out)),
    )(y1, sc1, sh1, w2)

    sc2, sh2 = _bn_scale_shift(s2, q2, count, params["g2"], params["be2"])

    # ---- kernel C: bn2 (+ shortcut bn) + residual add + LeakyReLU -------------------------
    out_shape = jax.ShapeDtypeStruct((N, H, W, Cout), jnp.float32)
    ew_cost = pl.CostEstimate(flops=int(8 * count * Cout), transcendentals=0,
                              bytes_accessed=int(2 * img_bytes_out + count * Cout * 4))
    if has_shortcut:
        out = pl.pallas_call(
            bn_add_act_shortcut_kernel,
            out_shape=out_shape,
            grid=(N,),
            in_specs=[img_io, img_io, chan_in, chan_in, chan_in, chan_in],
            out_specs=pl.BlockSpec((1, H, W, Cout), lambda n: (n, 0, 0, 0)),
            compiler_params=cparams,
            cost_estimate=ew_cost,
        )(y2, ys, sc2, sh2, scs, shs)
    else:
        out = pl.pallas_call(
            bn_add_act_identity_kernel,
            out_shape=out_shape,
            grid=(N,),
            in_specs=[img_io, img_in, chan_in, chan_in],
            out_specs=pl.BlockSpec((1, H, W, Cout), lambda n: (n, 0, 0, 0)),
            compiler_params=cparams,
            cost_estimate=ew_cost,
        )(y2, x, sc2, sh2)

    return out


@functools.partial(jax.jit, static_argnames=("has_shortcut", "compute_dtype"))
def res_block_forward(x_nchw, params, *, has_shortcut, compute_dtype=jnp.bfloat16):
    """NCHW-in / NCHW-out wrapper matching the PyTorch module interface (stride=1).

    When embedding in an NHWC model, call res_block_forward_nhwc directly to avoid the
    two image-sized transpose passes through HBM.
    """
    x = jnp.transpose(x_nchw, (0, 2, 3, 1))               # NCHW -> NHWC (C on the lane axis)
    out = res_block_forward_nhwc(x, params, has_shortcut=has_shortcut,
                                 compute_dtype=compute_dtype)
    return jnp.transpose(out, (0, 3, 1, 2))               # NHWC -> NCHW


# ---------------------------------------------------------------------------
# Pure-JAX reference (mirrors the PyTorch Res_block in training mode, f32)
# ---------------------------------------------------------------------------
def res_block_reference(x_nchw, p, has_shortcut):
    def conv(x, w_oihw, b, pad):
        y = lax.conv_general_dilated(
            x, w_oihw, window_strides=(1, 1), padding=pad,
            dimension_numbers=("NCHW", "OIHW", "NCHW"),
            precision=lax.Precision.HIGHEST)
        return y + b[None, :, None, None]

    def bn(y, g, b):
        mean = jnp.mean(y, axis=(0, 2, 3), keepdims=True)
        var = jnp.mean((y - mean) ** 2, axis=(0, 2, 3), keepdims=True)
        return (y - mean) * lax.rsqrt(var + EPS) * g[None, :, None, None] + b[None, :, None, None]

    if has_shortcut:
        residual = bn(conv(x_nchw, p["ws_oihw"], p["bsc"], [(0, 0), (0, 0)]),
                      p["gs"], p["bes"])
    else:
        residual = x_nchw
    out = _leaky(bn(conv(x_nchw, p["w1_oihw"], p["b1"], [(1, 1), (1, 1)]),
                    p["g1"], p["be1"]))
    out = bn(conv(out, p["w2_oihw"], p["b2"], [(1, 1), (1, 1)]), p["g2"], p["be2"])
    return _leaky(out + residual)


# ---------------------------------------------------------------------------
if __name__ == "__main__":
    key = jax.random.PRNGKey(0)
    ks = jax.random.split(key, 24)

    def conv3_to_taps(w_oihw):
        co, ci = w_oihw.shape[0], w_oihw.shape[1]
        # OIHW -> (tap k = 3*dy+dx, Cin, Cout), matching the per-tap dot layout.
        return jnp.transpose(w_oihw, (2, 3, 1, 0)).reshape(9, ci, co)

    def check(got, want, what, *, max_tol, mean_tol):
        got = np.asarray(got, np.float64)
        want = np.asarray(want, np.float64)
        max_err = float(np.max(np.abs(got - want)))
        mean_err = float(np.mean(np.abs(got - want)))
        assert max_err < max_tol and mean_err < mean_tol, (what, max_err, mean_err)

    # ---- projection-shortcut path: in_channels=4 != out_channels=8, stride=1 ----
    N, Cin, H, W = 2, 4, 16, 16
    Cout = 8
    x = jax.random.normal(ks[0], (N, Cin, H, W), jnp.float32)

    w1_oihw = 0.1 * jax.random.normal(ks[1], (Cout, Cin, 3, 3), jnp.float32)
    b1 = 0.05 * jax.random.normal(ks[2], (Cout,), jnp.float32)
    w2_oihw = 0.1 * jax.random.normal(ks[3], (Cout, Cout, 3, 3), jnp.float32)
    b2 = 0.05 * jax.random.normal(ks[4], (Cout,), jnp.float32)
    ws_oihw = 0.1 * jax.random.normal(ks[5], (Cout, Cin, 1, 1), jnp.float32)
    bsc = 0.05 * jax.random.normal(ks[6], (Cout,), jnp.float32)
    g1 = 1.0 + 0.1 * jax.random.normal(ks[7], (Cout,), jnp.float32)
    be1 = 0.1 * jax.random.normal(ks[8], (Cout,), jnp.float32)
    g2 = 1.0 + 0.1 * jax.random.normal(ks[9], (Cout,), jnp.float32)
    be2 = 0.1 * jax.random.normal(ks[10], (Cout,), jnp.float32)
    gs = 1.0 + 0.1 * jax.random.normal(ks[11], (Cout,), jnp.float32)
    bes = 0.1 * jax.random.normal(ks[12], (Cout,), jnp.float32)

    # Conv biases b1/b2/bsc are intentionally NOT given to the Pallas path:
    # under train-mode BatchNorm they cancel exactly (dead work removed).
    params = dict(w1=conv3_to_taps(w1_oihw), w2=conv3_to_taps(w2_oihw),
                  ws=jnp.transpose(ws_oihw[:, :, 0, 0], (1, 0)),
                  g1=g1, be1=be1, g2=g2, be2=be2, gs=gs, bes=bes)
    ref = res_block_reference(
        x, dict(w1_oihw=w1_oihw, b1=b1, w2_oihw=w2_oihw, b2=b2,
                ws_oihw=ws_oihw, bsc=bsc,
                g1=g1, be1=be1, g2=g2, be2=be2, gs=gs, bes=bes),
        has_shortcut=True)

    out_f32 = jax.block_until_ready(
        res_block_forward(x, params, has_shortcut=True, compute_dtype=jnp.float32))
    check(out_f32, ref, "shortcut/f32", max_tol=2e-3, mean_tol=2e-4)

    out_bf16 = jax.block_until_ready(
        res_block_forward(x, params, has_shortcut=True, compute_dtype=jnp.bfloat16))
    # bf16 matmul operands + bf16 HBM intermediates: BatchNorm rescaling amplifies the
    # ~2^-8 rounding, so use bf16-appropriate tolerances (stats stay f32-accumulated).
    check(out_bf16, ref, "shortcut/bf16", max_tol=2e-1, mean_tol=4e-2)

    # ---- identity-shortcut path: in_channels == out_channels == 8, stride=1 ----
    Cid = Cout
    x2 = jax.random.normal(ks[13], (N, Cid, H, W), jnp.float32)
    w1b = 0.1 * jax.random.normal(ks[14], (Cid, Cid, 3, 3), jnp.float32)
    b1b = 0.05 * jax.random.normal(ks[15], (Cid,), jnp.float32)
    w2b = 0.1 * jax.random.normal(ks[16], (Cid, Cid, 3, 3), jnp.float32)
    b2b = 0.05 * jax.random.normal(ks[17], (Cid,), jnp.float32)
    g1b = 1.0 + 0.1 * jax.random.normal(ks[18], (Cid,), jnp.float32)
    be1b = 0.1 * jax.random.normal(ks[19], (Cid,), jnp.float32)
    g2b = 1.0 + 0.1 * jax.random.normal(ks[20], (Cid,), jnp.float32)
    be2b = 0.1 * jax.random.normal(ks[21], (Cid,), jnp.float32)

    params2 = dict(w1=conv3_to_taps(w1b), w2=conv3_to_taps(w2b),
                   g1=g1b, be1=be1b, g2=g2b, be2=be2b)
    ref2 = res_block_reference(
        x2, dict(w1_oihw=w1b, b1=b1b, w2_oihw=w2b, b2=b2b,
                 g1=g1b, be1=be1b, g2=g2b, be2=be2b),
        has_shortcut=False)

    out2_f32 = jax.block_until_ready(
        res_block_forward(x2, params2, has_shortcut=False, compute_dtype=jnp.float32))
    check(out2_f32, ref2, "identity/f32", max_tol=2e-3, mean_tol=2e-4)

    out2_bf16 = jax.block_until_ready(
        res_block_forward(x2, params2, has_shortcut=False, compute_dtype=jnp.bfloat16))
    check(out2_bf16, ref2, "identity/bf16", max_tol=2e-1, mean_tol=4e-2)

    print("KERNEL_OK")
</pallas_src>

<mosaic_0001>
module attributes {stable_mosaic.version = 11 : i64} {
  func.func @conv1_shortcut_stats_kernel(%arg0: i32, %arg1: memref<1x16x16x4xf32, #tpu.memory_space<vmem>>, %arg2: memref<9x4x8xf32, #tpu.memory_space<vmem>>, %arg3: memref<4x8xf32, #tpu.memory_space<vmem>>, %arg4: memref<1x16x16x8xf32, #tpu.memory_space<vmem>>, %arg5: memref<1x16x16x8xf32, #tpu.memory_space<vmem>>, %arg6: memref<1x1x8xf32, #tpu.memory_space<vmem>>, %arg7: memref<1x1x8xf32, #tpu.memory_space<vmem>>, %arg8: memref<1x1x8xf32, #tpu.memory_space<vmem>>, %arg9: memref<1x1x8xf32, #tpu.memory_space<vmem>>, %arg10: memref<18x18x4xf32, #tpu.memory_space<vmem>>) attributes {dimension_semantics = [#tpu.dimension_semantics<parallel>], iteration_bounds = array<i64: 2>, scalar_prefetch = 0 : i64, scratch_operands = 1 : i64, tpu.core_type = #tpu.core_type<tc>, window_params = [{transform_indices = @transform_0, window_bounds = array<i64: 1, 16, 16, 4>}, {pipeline_mode = #tpu.pipeline_mode<synchronous>, transform_indices = @transform_1, window_bounds = array<i64: 9, 4, 8>}, {pipeline_mode = #tpu.pipeline_mode<synchronous>, transform_indices = @transform_2, window_bounds = array<i64: 4, 8>}, {transform_indices = @transform_3, window_bounds = array<i64: 1, 16, 16, 8>}, {transform_indices = @transform_4, window_bounds = array<i64: 1, 16, 16, 8>}, {transform_indices = @transform_5, window_bounds = array<i64: 1, 1, 8>}, {transform_indices = @transform_6, window_bounds = array<i64: 1, 1, 8>}, {transform_indices = @transform_7, window_bounds = array<i64: 1, 1, 8>}, {transform_indices = @transform_8, window_bounds = array<i64: 1, 1, 8>}]} {
    %cst = arith.constant 0.000000e+00 : f32
    %0 = vector.broadcast %cst : f32 to vector<1x18x4xf32>
    %c0 = arith.constant 0 : index
    %c0_0 = arith.constant 0 : index
    %c0_1 = arith.constant 0 : index
    %1 = vector.load %arg10[%c0, %c0_0, %c0_1] : memref<18x18x4xf32, #tpu.memory_space<vmem>>, vector<1x18x4xf32>
    tpu.vector_store %arg10[%c0, %c0_0, %c0_1], %0 {strides = array<i32>} : memref<18x18x4xf32, #tpu.memory_space<vmem>>, vector<1x18x4xf32>,
    %cst_2 = arith.constant 0.000000e+00 : f32
    %2 = vector.broadcast %cst_2 : f32 to vector<1x18x4xf32>
    %c17 = arith.constant 17 : index
    %c0_3 = arith.constant 0 : index
    %c0_4 = arith.constant 0 : index
    %3 = vector.load %arg10[%c17, %c0_3, %c0_4] : memref<18x18x4xf32, #tpu.memory_space<vmem>>, vector<1x18x4xf32>
    tpu.vector_store %arg10[%c17, %c0_3, %c0_4], %2 {strides = array<i32>} : memref<18x18x4xf32, #tpu.memory_space<vmem>>, vector<1x18x4xf32>,
    %cst_5 = arith.constant 0.000000e+00 : f32
    %4 = vector.broadcast %cst_5 : f32 to vector<16x1x4xf32>
    %c1 = arith.constant 1 : index
    %c0_6 = arith.constant 0 : index
    %c0_7 = arith.constant 0 : index
    %5 = vector.load %arg10[%c1, %c0_6, %c0_7] : memref<18x18x4xf32, #tpu.memory_space<vmem>>, vector<16x1x4xf32>
    tpu.vector_store %arg10[%c1, %c0_6, %c0_7], %4 {strides = array<i32>} : memref<18x18x4xf32, #tpu.memory_space<vmem>>, vector<16x1x4xf32>,
    %cst_8 = arith.constant 0.000000e+00 : f32
    %6 = vector.broadcast %cst_8 : f32 to vector<16x1x4xf32>
    %c1_9 = arith.constant 1 : index
    %c17_10 = arith.constant 17 : index
    %c0_11 = arith.constant 0 : index
    %7 = vector.load %arg10[%c1_9, %c17_10, %c0_11] : memref<18x18x4xf32, #tpu.memory_space<vmem>>, vector<16x1x4xf32>
    tpu.vector_store %arg10[%c1_9, %c17_10, %c0_11], %6 {strides = array<i32>} : memref<18x18x4xf32, #tpu.memory_space<vmem>>, vector<16x1x4xf32>,
    %c0_12 = arith.constant 0 : index
    %c0_13 = arith.constant 0 : index
    %c0_14 = arith.constant 0 : index
    %c0_15 = arith.constant 0 : index
    %8 = vector.load %arg1[%c0_12, %c0_13, %c0_14, %c0_15] : memref<1x16x16x4xf32, #tpu.memory_space<vmem>>, vector<1x16x16x4xf32>
    %9 = vector.shape_cast %8 : vector<1x16x16x4xf32> to vector<16x16x4xf32>
    %c1_16 = arith.constant 1 : index
    %c1_17 = arith.constant 1 : index
    %c0_18 = arith.constant 0 : index
    %10 = vector.load %arg10[%c1_16, %c1_17, %c0_18] : memref<18x18x4xf32, #tpu.memory_space<vmem>>, vector<16x16x4xf32>
    tpu.vector_store %arg10[%c1_16, %c1_17, %c0_18], %9 {strides = array<i32>} : memref<18x18x4xf32, #tpu.memory_space<vmem>>, vector<16x16x4xf32>,
    %cst_19 = arith.constant 0.000000e+00 : f32
    %11 = vector.broadcast %cst_19 : f32 to vector<256x8xf32>
    %c0_20 = arith.constant 0 : index
    %c0_21 = arith.constant 0 : index
    %c0_22 = arith.constant 0 : index
    %12 = vector.load %arg10[%c0_20, %c0_21, %c0_22] : memref<18x18x4xf32, #tpu.memory_space<vmem>>, vector<16x16x4xf32>
    %13 = vector.shape_cast %12 : vector<16x16x4xf32> to vector<256x4xf32>
    %c0_23 = arith.constant 0 : index
    %c0_24 = arith.constant 0 : index
    %c0_25 = arith.constant 0 : index
    %14 = vector.load %arg2[%c0_23, %c0_24, %c0_25] : memref<9x4x8xf32, #tpu.memory_space<vmem>>, vector<1x4x8xf32>
    %15 = vector.shape_cast %14 : vector<1x4x8xf32> to vector<4x8xf32>
    %cst_26 = arith.constant dense<0.000000e+00> : vector<256x8xf32>
    %16 = tpu.matmul %13, %15, %cst_26 {dimension_numbers = #tpu.dot_dimension_numbers<[1], [0], [0], [1], [0, 0, 1, 1], [], []>} : vector<256x4xf32>, vector<4x8xf32>, vector<256x8xf32> -> vector<256x8xf32>
    %17 = arith.addf %11, %16 : vector<256x8xf32>
    %c0_27 = arith.constant 0 : index
    %c1_28 = arith.constant 1 : index
    %c0_29 = arith.constant 0 : index
    %18 = vector.load %arg10[%c0_27, %c1_28, %c0_29] : memref<18x18x4xf32, #tpu.memory_space<vmem>>, vector<16x16x4xf32>
    %19 = vector.shape_cast %18 : vector<16x16x4xf32> to vector<256x4xf32>
    %c1_30 = arith.constant 1 : index
    %c0_31 = arith.constant 0 : index
    %c0_32 = arith.constant 0 : index
    %20 = vector.load %arg2[%c1_30, %c0_31, %c0_32] : memref<9x4x8xf32, #tpu.memory_space<vmem>>, vector<1x4x8xf32>
    %21 = vector.shape_cast %20 : vector<1x4x8xf32> to vector<4x8xf32>
    %cst_33 = arith.constant dense<0.000000e+00> : vector<256x8xf32>
    %22 = tpu.matmul %19, %21, %cst_33 {dimension_numbers = #tpu.dot_dimension_numbers<[1], [0], [0], [1], [0, 0, 1, 1], [], []>} : vector<256x4xf32>, vector<4x8xf32>, vector<256x8xf32> -> vector<256x8xf32>
    %23 = arith.addf %17, %22 : vector<256x8xf32>
    %c0_34 = arith.constant 0 : index
    %c2 = arith.constant 2 : index
    %c0_35 = arith.constant 0 : index
    %24 = vector.load %arg10[%c0_34, %c2, %c0_35] : memref<18x18x4xf32, #tpu.memory_space<vmem>>, vector<16x16x4xf32>
    %25 = vector.shape_cast %24 : vector<16x16x4xf32> to vector<256x4xf32>
    %c2_36 = arith.constant 2 : index
    %c0_37 = arith.constant 0 : index
    %c0_38 = arith.constant 0 : index
    %26 = vector.load %arg2[%c2_36, %c0_37, %c0_38] : memref<9x4x8xf32, #tpu.memory_space<vmem>>, vector<1x4x8xf32>
    %27 = vector.shape_cast %26 : vector<1x4x8xf32> to vector<4x8xf32>
    %cst_39 = arith.constant dense<0.000000e+00> : vector<256x8xf32>
    %28 = tpu.matmul %25, %27, %cst_39 {dimension_numbers = #tpu.dot_dimension_numbers<[1], [0], [0], [1], [0, 0, 1, 1], [], []>} : vector<256x4xf32>, vector<4x8xf32>, vector<256x8xf32> -> vector<256x8xf32>
    %29 = arith.addf %23, %28 : vector<256x8xf32>
    %c1_40 = arith.constant 1 : index
    %c0_41 = arith.constant 0 : index
    %c0_42 = arith.constant 0 : index
    %30 = vector.load %arg10[%c1_40, %c0_41, %c0_42] : memref<18x18x4xf32, #tpu.memory_space<vmem>>, vector<16x16x4xf32>
    %31 = vector.shape_cast %30 : vector<16x16x4xf32> to vector<256x4xf32>
    %c3 = arith.constant 3 : index
    %c0_43 = arith.constant 0 : index
    %c0_44 = arith.constant 0 : index
    %32 = vector.load %arg2[%c3, %c0_43, %c0_44] : memref<9x4x8xf32, #tpu.memory_space<vmem>>, vector<1x4x8xf32>
    %33 = vector.shape_cast %32 : vector<1x4x8xf32> to vector<4x8xf32>
    %cst_45 = arith.constant dense<0.000000e+00> : vector<256x8xf32>
    %34 = tpu.matmul %31, %33, %cst_45 {dimension_numbers = #tpu.dot_dimension_numbers<[1], [0], [0], [1], [0, 0, 1, 1], [], []>} : vector<256x4xf32>, vector<4x8xf32>, vector<256x8xf32> -> vector<256x8xf32>
    %35 = arith.addf %29, %34 : vector<256x8xf32>
    %c1_46 = arith.constant 1 : index
    %c1_47 = arith.constant 1 : index
    %c0_48 = arith.constant 0 : index
    %36 = vector.load %arg10[%c1_46, %c1_47, %c0_48] : memref<18x18x4xf32, #tpu.memory_space<vmem>>, vector<16x16x4xf32>
    %37 = vector.shape_cast %36 : vector<16x16x4xf32> to vector<256x4xf32>
    %c4 = arith.constant 4 : index
    %c0_49 = arith.constant 0 : index
    %c0_50 = arith.constant 0 : index
    %38 = vector.load %arg2[%c4, %c0_49, %c0_50] : memref<9x4x8xf32, #tpu.memory_space<vmem>>, vector<1x4x8xf32>
    %39 = vector.shape_cast %38 : vector<1x4x8xf32> to vector<4x8xf32>
    %cst_51 = arith.constant dense<0.000000e+00> : vector<256x8xf32>
    %40 = tpu.matmul %37, %39, %cst_51 {dimension_numbers = #tpu.dot_dimension_numbers<[1], [0], [0], [1], [0, 0, 1, 1], [], []>} : vector<256x4xf32>, vector<4x8xf32>, vector<256x8xf32> -> vector<256x8xf32>
    %41 = arith.addf %35, %40 : vector<256x8xf32>
    %c1_52 = arith.constant 1 : index
    %c2_53 = arith.constant 2 : index
    %c0_54 = arith.constant 0 : index
    %42 = vector.load %arg10[%c1_52, %c2_53, %c0_54] : memref<18x18x4xf32, #tpu.memory_space<vmem>>, vector<16x16x4xf32>
    %43 = vector.shape_cast %42 : vector<16x16x4xf32> to vector<256x4xf32>
    %c5 = arith.constant 5 : index
    %c0_55 = arith.constant 0 : index
    %c0_56 = arith.constant 0 : index
    %44 = vector.load %arg2[%c5, %c0_55, %c0_56] : memref<9x4x8xf32, #tpu.memory_space<vmem>>, vector<1x4x8xf32>
    %45 = vector.shape_cast %44 : vector<1x4x8xf32> to vector<4x8xf32>
    %cst_57 = arith.constant dense<0.000000e+00> : vector<256x8xf32>
    %46 = tpu.matmul %43, %45, %cst_57 {dimension_numbers = #tpu.dot_dimension_numbers<[1], [0], [0], [1], [0, 0, 1, 1], [], []>} : vector<256x4xf32>, vector<4x8xf32>, vector<256x8xf32> -> vector<256x8xf32>
    %47 = arith.addf %41, %46 : vector<256x8xf32>
    %c2_58 = arith.constant 2 : index
    %c0_59 = arith.constant 0 : index
    %c0_60 = arith.constant 0 : index
    %48 = vector.load %arg10[%c2_58, %c0_59, %c0_60] : memref<18x18x4xf32, #tpu.memory_space<vmem>>, vector<16x16x4xf32>
    %49 = vector.shape_cast %48 : vector<16x16x4xf32> to vector<256x4xf32>
    %c6 = arith.constant 6 : index
    %c0_61 = arith.constant 0 : index
    %c0_62 = arith.constant 0 : index
    %50 = vector.load %arg2[%c6, %c0_61, %c0_62] : memref<9x4x8xf32, #tpu.memory_space<vmem>>, vector<1x4x8xf32>
    %51 = vector.shape_cast %50 : vector<1x4x8xf32> to vector<4x8xf32>
    %cst_63 = arith.constant dense<0.000000e+00> : vector<256x8xf32>
    %52 = tpu.matmul %49, %51, %cst_63 {dimension_numbers = #tpu.dot_dimension_numbers<[1], [0], [0], [1], [0, 0, 1, 1], [], []>} : vector<256x4xf32>, vector<4x8xf32>, vector<256x8xf32> -> vector<256x8xf32>
    %53 = arith.addf %47, %52 : vector<256x8xf32>
    %c2_64 = arith.constant 2 : index
    %c1_65 = arith.constant 1 : index
    %c0_66 = arith.constant 0 : index
    %54 = vector.load %arg10[%c2_64, %c1_65, %c0_66] : memref<18x18x4xf32, #tpu.memory_space<vmem>>, vector<16x16x4xf32>
    %55 = vector.shape_cast %54 : vector<16x16x4xf32> to vector<256x4xf32>
    %c7 = arith.constant 7 : index
    %c0_67 = arith.constant 0 : index
    %c0_68 = arith.constant 0 : index
    %56 = vector.load %arg2[%c7, %c0_67, %c0_68] : memref<9x4x8xf32, #tpu.memory_space<vmem>>, vector<1x4x8xf32>
    %57 = vector.shape_cast %56 : vector<1x4x8xf32> to vector<4x8xf32>
    %cst_69 = arith.constant dense<0.000000e+00> : vector<256x8xf32>
    %58 = tpu.matmul %55, %57, %cst_69 {dimension_numbers = #tpu.dot_dimension_numbers<[1], [0], [0], [1], [0, 0, 1, 1], [], []>} : vector<256x4xf32>, vector<4x8xf32>, vector<256x8xf32> -> vector<256x8xf32>
    %59 = arith.addf %53, %58 : vector<256x8xf32>
    %c2_70 = arith.constant 2 : index
    %c2_71 = arith.constant 2 : index
    %c0_72 = arith.constant 0 : index
    %60 = vector.load %arg10[%c2_70, %c2_71, %c0_72] : memref<18x18x4xf32, #tpu.memory_space<vmem>>, vector<16x16x4xf32>
    %61 = vector.shape_cast %60 : vector<16x16x4xf32> to vector<256x4xf32>
    %c8 = arith.constant 8 : index
    %c0_73 = arith.constant 0 : index
    %c0_74 = arith.constant 0 : index
    %62 = vector.load %arg2[%c8, %c0_73, %c0_74] : memref<9x4x8xf32, #tpu.memory_space<vmem>>, vector<1x4x8xf32>
    %63 = vector.shape_cast %62 : vector<1x4x8xf32> to vector<4x8xf32>
    %cst_75 = arith.constant dense<0.000000e+00> : vector<256x8xf32>
    %64 = tpu.matmul %61, %63, %cst_75 {dimension_numbers = #tpu.dot_dimension_numbers<[1], [0], [0], [1], [0, 0, 1, 1], [], []>} : vector<256x4xf32>, vector<4x8xf32>, vector<256x8xf32> -> vector<256x8xf32>
    %65 = arith.addf %59, %64 : vector<256x8xf32>
    %66 = vector.shape_cast %65 : vector<256x8xf32> to vector<16x16x8xf32>
    %c0_76 = arith.constant 0 : index
    %c0_77 = arith.constant 0 : index
    %c0_78 = arith.constant 0 : index
    %c0_79 = arith.constant 0 : index
    %67 = vector.load %arg4[%c0_76, %c0_77, %c0_78, %c0_79] : memref<1x16x16x8xf32, #tpu.memory_space<vmem>>, vector<1x16x16x8xf32>
    %68 = vector.shape_cast %67 : vector<1x16x16x8xf32> to vector<16x16x8xf32>
    %69 = vector.shape_cast %66 : vector<16x16x8xf32> to vector<1x16x16x8xf32>
    tpu.vector_store %arg4[%c0_76, %c0_77, %c0_78, %c0_79], %69 {strides = array<i32>} : memref<1x16x16x8xf32, #tpu.memory_space<vmem>>, vector<1x16x16x8xf32>,
    %cst_80 = arith.constant dense<0.000000e+00> : vector<8xf32>
    %70 = vector.multi_reduction <add>, %65, %cst_80 [0] : vector<256x8xf32> to vector<8xf32>
    %71 = vector.shape_cast %70 : vector<8xf32> to vector<1x1x8xf32>
    %72 = arith.mulf %65, %65 : vector<256x8xf32>
    %cst_81 = arith.constant dense<0.000000e+00> : vector<8xf32>
    %73 = vector.multi_reduction <add>, %72, %cst_81 [0] : vector<256x8xf32> to vector<8xf32>
    %74 = vector.shape_cast %73 : vector<8xf32> to vector<1x1x8xf32>
    %c0_82 = arith.constant 0 : index
    %c0_83 = arith.constant 0 : index
    %c0_84 = arith.constant 0 : index
    %75 = vector.load %arg6[%c0_82, %c0_83, %c0_84] : memref<1x1x8xf32, #tpu.memory_space<vmem>>, vector<1x1x8xf32>
    tpu.vector_store %arg6[%c0_82, %c0_83, %c0_84], %71 {strides = array<i32>} : memref<1x1x8xf32, #tpu.memory_space<vmem>>, vector<1x1x8xf32>,
    %c0_85 = arith.constant 0 : index
    %c0_86 = arith.constant 0 : index
    %c0_87 = arith.constant 0 : index
    %76 = vector.load %arg7[%c0_85, %c0_86, %c0_87] : memref<1x1x8xf32, #tpu.memory_space<vmem>>, vector<1x1x8xf32>
    tpu.vector_store %arg7[%c0_85, %c0_86, %c0_87], %74 {strides = array<i32>} : memref<1x1x8xf32, #tpu.memory_space<vmem>>, vector<1x1x8xf32>,
    %77 = vector.shape_cast %9 : vector<16x16x4xf32> to vector<256x4xf32>
    %c0_88 = arith.constant 0 : index
    %c0_89 = arith.constant 0 : index
    %78 = vector.load %arg3[%c0_88, %c0_89] : memref<4x8xf32, #tpu.memory_space<vmem>>, vector<4x8xf32>
    %cst_90 = arith.constant dense<0.000000e+00> : vector<256x8xf32>
    %79 = tpu.matmul %77, %78, %cst_90 {dimension_numbers = #tpu.dot_dimension_numbers<[1], [0], [0], [1], [0, 0, 1, 1], [], []>} : vector<256x4xf32>, vector<4x8xf32>, vector<256x8xf32> -> vector<256x8xf32>
    %80 = vector.shape_cast %79 : vector<256x8xf32> to vector<16x16x8xf32>
    %c0_91 = arith.constant 0 : index
    %c0_92 = arith.constant 0 : index
    %c0_93 = arith.constant 0 : index
    %c0_94 = arith.constant 0 : index
    %81 = vector.load %arg5[%c0_91, %c0_92, %c0_93, %c0_94] : memref<1x16x16x8xf32, #tpu.memory_space<vmem>>, vector<1x16x16x8xf32>
    %82 = vector.shape_cast %81 : vector<1x16x16x8xf32> to vector<16x16x8xf32>
    %83 = vector.shape_cast %80 : vector<16x16x8xf32> to vector<1x16x16x8xf32>
    tpu.vector_store %arg5[%c0_91, %c0_92, %c0_93, %c0_94], %83 {strides = array<i32>} : memref<1x16x16x8xf32, #tpu.memory_space<vmem>>, vector<1x16x16x8xf32>,
    %cst_95 = arith.constant dense<0.000000e+00> : vector<8xf32>
    %84 = vector.multi_reduction <add>, %79, %cst_95 [0] : vector<256x8xf32> to vector<8xf32>
    %85 = vector.shape_cast %84 : vector<8xf32> to vector<1x1x8xf32>
    %86 = arith.mulf %79, %79 : vector<256x8xf32>
    %cst_96 = arith.constant dense<0.000000e+00> : vector<8xf32>
    %87 = vector.multi_reduction <add>, %86, %cst_96 [0] : vector<256x8xf32> to vector<8xf32>
    %88 = vector.shape_cast %87 : vector<8xf32> to vector<1x1x8xf32>
    %c0_97 = arith.constant 0 : index
    %c0_98 = arith.constant 0 : index
    %c0_99 = arith.constant 0 : index
    %89 = vector.load %arg8[%c0_97, %c0_98, %c0_99] : memref<1x1x8xf32, #tpu.memory_space<vmem>>, vector<1x1x8xf32>
    tpu.vector_store %arg8[%c0_97, %c0_98, %c0_99], %85 {strides = array<i32>} : memref<1x1x8xf32, #tpu.memory_space<vmem>>, vector<1x1x8xf32>,
    %c0_100 = arith.constant 0 : index
    %c0_101 = arith.constant 0 : index
    %c0_102 = arith.constant 0 : index
    %90 = vector.load %arg9[%c0_100, %c0_101, %c0_102] : memref<1x1x8xf32, #tpu.memory_space<vmem>>, vector<1x1x8xf32>
    tpu.vector_store %arg9[%c0_100, %c0_101, %c0_102], %88 {strides = array<i32>} : memref<1x1x8xf32, #tpu.memory_space<vmem>>, vector<1x1x8xf32>,
    return
  }
  func.func @transform_0(%arg0: i32) -> (i32, i32, i32, i32) {
    %c0_i32 = arith.constant 0 : i32
    %c0_i32_0 = arith.constant 0 : i32
    %c0_i32_1 = arith.constant 0 : i32
    %c0_i32_2 = arith.constant 0 : i32
    return %arg0, %c0_i32, %c0_i32_0, %c0_i32_1 : i32, i32, i32, i32
  }
  func.func @transform_1(%arg0: i32) -> (i32, i32, i32) {
    %c0_i32 = arith.constant 0 : i32
    %c0_i32_0 = arith.constant 0 : i32
    %c0_i32_1 = arith.constant 0 : i32
    %c0_i32_2 = arith.constant 0 : i32
    return %c0_i32, %c0_i32_0, %c0_i32_1 : i32, i32, i32
  }
  func.func @transform_2(%arg0: i32) -> (i32, i32) {
    %c0_i32 = arith.constant 0 : i32
    %c0_i32_0 = arith.constant 0 : i32
    %c0_i32_1 = arith.constant 0 : i32
    return %c0_i32, %c0_i32_0 : i32, i32
  }
  func.func @transform_3(%arg0: i32) -> (i32, i32, i32, i32) {
    %c0_i32 = arith.constant 0 : i32
    %c0_i32_0 = arith.constant 0 : i32
    %c0_i32_1 = arith.constant 0 : i32
    %c0_i32_2 = arith.constant 0 : i32
    return %arg0, %c0_i32, %c0_i32_0, %c0_i32_1 : i32, i32, i32, i32
  }
  func.func @transform_4(%arg0: i32) -> (i32, i32, i32, i32) {
    %c0_i32 = arith.constant 0 : i32
    %c0_i32_0 = arith.constant 0 : i32
    %c0_i32_1 = arith.constant 0 : i32
    %c0_i32_2 = arith.constant 0 : i32
    return %arg0, %c0_i32, %c0_i32_0, %c0_i32_1 : i32, i32, i32, i32
  }
  func.func @transform_5(%arg0: i32) -> (i32, i32, i32) {
    %c0_i32 = arith.constant 0 : i32
    %c0_i32_0 = arith.constant 0 : i32
    %c0_i32_1 = arith.constant 0 : i32
    return %arg0, %c0_i32, %c0_i32_0 : i32, i32, i32
  }
  func.func @transform_6(%arg0: i32) -> (i32, i32, i32) {
    %c0_i32 = arith.constant 0 : i32
    %c0_i32_0 = arith.constant 0 : i32
    %c0_i32_1 = arith.constant 0 : i32
    return %arg0, %c0_i32, %c0_i32_0 : i32, i32, i32
  }
  func.func @transform_7(%arg0: i32) -> (i32, i32, i32) {
    %c0_i32 = arith.constant 0 : i32
    %c0_i32_0 = arith.constant 0 : i32
    %c0_i32_1 = arith.constant 0 : i32
    return %arg0, %c0_i32, %c0_i32_0 : i32, i32, i32
  }
  func.func @transform_8(%arg0: i32) -> (i32, i32, i32) {
    %c0_i32 = arith.constant 0 : i32
    %c0_i32_0 = arith.constant 0 : i32
    %c0_i32_1 = arith.constant 0 : i32
    return %arg0, %c0_i32, %c0_i32_0 : i32, i32, i32
  }
}

module attributes {stable_mosaic.version = 11 : i64} {
  func.func @bn_add_act_shortcut_kernel(%arg0: i32, %arg1: memref<1x16x16x8xf32, #tpu.memory_space<vmem>>, %arg2: memref<1x16x16x8xf32, #tpu.memory_space<vmem>>, %arg3: memref<1x8xf32, #tpu.memory_space<vmem>>, %arg4: memref<1x8xf32, #tpu.memory_space<vmem>>, %arg5: memref<1x8xf32, #tpu.memory_space<vmem>>, %arg6: memref<1x8xf32, #tpu.memory_space<vmem>>, %arg7: memref<1x16x16x8xf32, #tpu.memory_space<vmem>>) attributes {dimension_semantics = [#tpu.dimension_semantics<parallel>], iteration_bounds = array<i64: 2>, scalar_prefetch = 0 : i64, scratch_operands = 0 : i64, tpu.core_type = #tpu.core_type<tc>, window_params = [{transform_indices = @transform_0, window_bounds = array<i64: 1, 16, 16, 8>}, {transform_indices = @transform_1, window_bounds = array<i64: 1, 16, 16, 8>}, {pipeline_mode = #tpu.pipeline_mode<synchronous>, transform_indices = @transform_2, window_bounds = array<i64: 1, 8>}, {pipeline_mode = #tpu.pipeline_mode<synchronous>, transform_indices = @transform_3, window_bounds = array<i64: 1, 8>}, {pipeline_mode = #tpu.pipeline_mode<synchronous>, transform_indices = @transform_4, window_bounds = array<i64: 1, 8>}, {pipeline_mode = #tpu.pipeline_mode<synchronous>, transform_indices = @transform_5, window_bounds = array<i64: 1, 8>}, {transform_indices = @transform_6, window_bounds = array<i64: 1, 16, 16, 8>}]} {
    %c0 = arith.constant 0 : index
    %c0_0 = arith.constant 0 : index
    %c0_1 = arith.constant 0 : index
    %c0_2 = arith.constant 0 : index
    %0 = vector.load %arg1[%c0, %c0_0, %c0_1, %c0_2] : memref<1x16x16x8xf32, #tpu.memory_space<vmem>>, vector<1x16x16x8xf32>
    %1 = vector.shape_cast %0 : vector<1x16x16x8xf32> to vector<16x16x8xf32>
    %c0_3 = arith.constant 0 : index
    %c0_4 = arith.constant 0 : index
    %2 = vector.load %arg3[%c0_3, %c0_4] : memref<1x8xf32, #tpu.memory_space<vmem>>, vector<1x8xf32>
    %3 = vector.shape_cast %2 : vector<1x8xf32> to vector<8xf32>
    %4 = vector.shape_cast %3 : vector<8xf32> to vector<1x1x8xf32>
    %5 = vector.broadcast %4 : vector<1x1x8xf32> to vector<16x16x8xf32>
    %6 = arith.mulf %1, %5 : vector<16x16x8xf32>
    %c0_5 = arith.constant 0 : index
    %c0_6 = arith.constant 0 : index
    %7 = vector.load %arg4[%c0_5, %c0_6] : memref<1x8xf32, #tpu.memory_space<vmem>>, vector<1x8xf32>
    %8 = vector.shape_cast %7 : vector<1x8xf32> to vector<8xf32>
    %9 = vector.shape_cast %8 : vector<8xf32> to vector<1x1x8xf32>
    %10 = vector.broadcast %9 : vector<1x1x8xf32> to vector<16x16x8xf32>
    %11 = arith.addf %6, %10 : vector<16x16x8xf32>
    %c0_7 = arith.constant 0 : index
    %c0_8 = arith.constant 0 : index
    %c0_9 = arith.constant 0 : index
    %c0_10 = arith.constant 0 : index
    %12 = vector.load %arg2[%c0_7, %c0_8, %c0_9, %c0_10] : memref<1x16x16x8xf32, #tpu.memory_space<vmem>>, vector<1x16x16x8xf32>
    %13 = vector.shape_cast %12 : vector<1x16x16x8xf32> to vector<16x16x8xf32>
    %c0_11 = arith.constant 0 : index
    %c0_12 = arith.constant 0 : index
    %14 = vector.load %arg5[%c0_11, %c0_12] : memref<1x8xf32, #tpu.memory_space<vmem>>, vector<1x8xf32>
    %15 = vector.shape_cast %14 : vector<1x8xf32> to vector<8xf32>
    %16 = vector.shape_cast %15 : vector<8xf32> to vector<1x1x8xf32>
    %17 = vector.broadcast %16 : vector<1x1x8xf32> to vector<16x16x8xf32>
    %18 = arith.mulf %13, %17 : vector<16x16x8xf32>
    %c0_13 = arith.constant 0 : index
    %c0_14 = arith.constant 0 : index
    %19 = vector.load %arg6[%c0_13, %c0_14] : memref<1x8xf32, #tpu.memory_space<vmem>>, vector<1x8xf32>
    %20 = vector.shape_cast %19 : vector<1x8xf32> to vector<8xf32>
    %21 = vector.shape_cast %20 : vector<8xf32> to vector<1x1x8xf32>
    %22 = vector.broadcast %21 : vector<1x1x8xf32> to vector<16x16x8xf32>
    %23 = arith.addf %18, %22 : vector<16x16x8xf32>
    %24 = arith.addf %11, %23 : vector<16x16x8xf32>
    %cst = arith.constant 0.000000e+00 : f32
    %25 = vector.broadcast %cst : f32 to vector<16x16x8xf32>
    %26 = arith.cmpf oge, %24, %25 : vector<16x16x8xf32>
    %cst_15 = arith.constant 0.00999999977 : f32
    %27 = vector.broadcast %cst_15 : f32 to vector<16x16x8xf32>
    %28 = arith.mulf %27, %24 : vector<16x16x8xf32>
    %29 = arith.select %26, %24, %28 : vector<16x16x8xi1>, vector<16x16x8xf32>
    %c0_16 = arith.constant 0 : index
    %c0_17 = arith.constant 0 : index
    %c0_18 = arith.constant 0 : index
    %c0_19 = arith.constant 0 : index
    %30 = vector.load %arg7[%c0_16, %c0_17, %c0_18, %c0_19] : memref<1x16x16x8xf32, #tpu.memory_space<vmem>>, vector<1x16x16x8xf32>
    %31 = vector.shape_cast %30 : vector<1x16x16x8xf32> to vector<16x16x8xf32>
    %32 = vector.shape_cast %29 : vector<16x16x8xf32> to vector<1x16x16x8xf32>
    tpu.vector_store %arg7[%c0_16, %c0_17, %c0_18, %c0_19], %32 {strides = array<i32>} : memref<1x16x16x8xf32, #tpu.memory_space<vmem>>, vector<1x16x16x8xf32>,
    return
  }
  func.func @transform_0(%arg0: i32) -> (i32, i32, i32, i32) {
    %c0_i32 = arith.constant 0 : i32
    %c0_i32_0 = arith.constant 0 : i32
    %c0_i32_1 = arith.constant 0 : i32
    %c0_i32_2 = arith.constant 0 : i32
    return %arg0, %c0_i32, %c0_i32_0, %c0_i32_1 : i32, i32, i32, i32
  }
  func.func @transform_1(%arg0: i32) -> (i32, i32, i32, i32) {
    %c0_i32 = arith.constant 0 : i32
    %c0_i32_0 = arith.constant 0 : i32
    %c0_i32_1 = arith.constant 0 : i32
    %c0_i32_2 = arith.constant 0 : i32
    return %arg0, %c0_i32, %c0_i32_0, %c0_i32_1 : i32, i32, i32, i32
  }
  func.func @transform_2(%arg0: i32) -> (i32, i32) {
    %c0_i32 = arith.constant 0 : i32
    %c0_i32_0 = arith.constant 0 : i32
    %c0_i32_1 = arith.constant 0 : i32
    return %c0_i32, %c0_i32_0 : i32, i32
  }
  func.func @transform_3(%arg0: i32) -> (i32, i32) {
    %c0_i32 = arith.constant 0 : i32
    %c0_i32_0 = arith.constant 0 : i32
    %c0_i32_1 = arith.constant 0 : i32
    return %c0_i32, %c0_i32_0 : i32, i32
  }
  func.func @transform_4(%arg0: i32) -> (i32, i32) {
    %c0_i32 = arith.constant 0 : i32
    %c0_i32_0 = arith.constant 0 : i32
    %c0_i32_1 = arith.constant 0 : i32
    return %c0_i32, %c0_i32_0 : i32, i32
  }
  func.func @transform_5(%arg0: i32) -> (i32, i32) {
    %c0_i32 = arith.constant 0 : i32
    %c0_i32_0 = arith.constant 0 : i32
    %c0_i32_1 = arith.constant 0 : i32
    return %c0_i32, %c0_i32_0 : i32, i32
  }
  func.func @transform_6(%arg0: i32) -> (i32, i32, i32, i32) {
    %c0_i32 = arith.constant 0 : i32
    %c0_i32_0 = arith.constant 0 : i32
    %c0_i32_1 = arith.constant 0 : i32
    %c0_i32_2 = arith.constant 0 : i32
    return %arg0, %c0_i32, %c0_i32_0, %c0_i32_1 : i32, i32, i32, i32
  }
}

module attributes {stable_mosaic.version = 11 : i64} {
  func.func @bn_act_conv2_stats_kernel(%arg0: i32, %arg1: memref<1x16x16x8xf32, #tpu.memory_space<vmem>>, %arg2: memref<1x8xf32, #tpu.memory_space<vmem>>, %arg3: memref<1x8xf32, #tpu.memory_space<vmem>>, %arg4: memref<9x8x8xf32, #tpu.memory_space<vmem>>, %arg5: memref<1x16x16x8xf32, #tpu.memory_space<vmem>>, %arg6: memref<1x1x8xf32, #tpu.memory_space<vmem>>, %arg7: memref<1x1x8xf32, #tpu.memory_space<vmem>>, %arg8: memref<18x18x8xf32, #tpu.memory_space<vmem>>) attributes {dimension_semantics = [#tpu.dimension_semantics<parallel>], iteration_bounds = array<i64: 2>, scalar_prefetch = 0 : i64, scratch_operands = 1 : i64, tpu.core_type = #tpu.core_type<tc>, window_params = [{transform_indices = @transform_0, window_bounds = array<i64: 1, 16, 16, 8>}, {pipeline_mode = #tpu.pipeline_mode<synchronous>, transform_indices = @transform_1, window_bounds = array<i64: 1, 8>}, {pipeline_mode = #tpu.pipeline_mode<synchronous>, transform_indices = @transform_2, window_bounds = array<i64: 1, 8>}, {pipeline_mode = #tpu.pipeline_mode<synchronous>, transform_indices = @transform_3, window_bounds = array<i64: 9, 8, 8>}, {transform_indices = @transform_4, window_bounds = array<i64: 1, 16, 16, 8>}, {transform_indices = @transform_5, window_bounds = array<i64: 1, 1, 8>}, {transform_indices = @transform_6, window_bounds = array<i64: 1, 1, 8>}]} {
    %cst = arith.constant 0.000000e+00 : f32
    %0 = vector.broadcast %cst : f32 to vector<1x18x8xf32>
    %c0 = arith.constant 0 : index
    %c0_0 = arith.constant 0 : index
    %c0_1 = arith.constant 0 : index
    %1 = vector.load %arg8[%c0, %c0_0, %c0_1] : memref<18x18x8xf32, #tpu.memory_space<vmem>>, vector<1x18x8xf32>
    tpu.vector_store %arg8[%c0, %c0_0, %c0_1], %0 {strides = array<i32>} : memref<18x18x8xf32, #tpu.memory_space<vmem>>, vector<1x18x8xf32>,
    %cst_2 = arith.constant 0.000000e+00 : f32
    %2 = vector.broadcast %cst_2 : f32 to vector<1x18x8xf32>
    %c17 = arith.constant 17 : index
    %c0_3 = arith.constant 0 : index
    %c0_4 = arith.constant 0 : index
    %3 = vector.load %arg8[%c17, %c0_3, %c0_4] : memref<18x18x8xf32, #tpu.memory_space<vmem>>, vector<1x18x8xf32>
    tpu.vector_store %arg8[%c17, %c0_3, %c0_4], %2 {strides = array<i32>} : memref<18x18x8xf32, #tpu.memory_space<vmem>>, vector<1x18x8xf32>,
    %cst_5 = arith.constant 0.000000e+00 : f32
    %4 = vector.broadcast %cst_5 : f32 to vector<16x1x8xf32>
    %c1 = arith.constant 1 : index
    %c0_6 = arith.constant 0 : index
    %c0_7 = arith.constant 0 : index
    %5 = vector.load %arg8[%c1, %c0_6, %c0_7] : memref<18x18x8xf32, #tpu.memory_space<vmem>>, vector<16x1x8xf32>
    tpu.vector_store %arg8[%c1, %c0_6, %c0_7], %4 {strides = array<i32>} : memref<18x18x8xf32, #tpu.memory_space<vmem>>, vector<16x1x8xf32>,
    %cst_8 = arith.constant 0.000000e+00 : f32
    %6 = vector.broadcast %cst_8 : f32 to vector<16x1x8xf32>
    %c1_9 = arith.constant 1 : index
    %c17_10 = arith.constant 17 : index
    %c0_11 = arith.constant 0 : index
    %7 = vector.load %arg8[%c1_9, %c17_10, %c0_11] : memref<18x18x8xf32, #tpu.memory_space<vmem>>, vector<16x1x8xf32>
    tpu.vector_store %arg8[%c1_9, %c17_10, %c0_11], %6 {strides = array<i32>} : memref<18x18x8xf32, #tpu.memory_space<vmem>>, vector<16x1x8xf32>,
    %c0_12 = arith.constant 0 : index
    %c0_13 = arith.constant 0 : index
    %c0_14 = arith.constant 0 : index
    %c0_15 = arith.constant 0 : index
    %8 = vector.load %arg1[%c0_12, %c0_13, %c0_14, %c0_15] : memref<1x16x16x8xf32, #tpu.memory_space<vmem>>, vector<1x16x16x8xf32>
    %9 = vector.shape_cast %8 : vector<1x16x16x8xf32> to vector<16x16x8xf32>
    %c0_16 = arith.constant 0 : index
    %c0_17 = arith.constant 0 : index
    %10 = vector.load %arg2[%c0_16, %c0_17] : memref<1x8xf32, #tpu.memory_space<vmem>>, vector<1x8xf32>
    %11 = vector.shape_cast %10 : vector<1x8xf32> to vector<8xf32>
    %12 = vector.shape_cast %11 : vector<8xf32> to vector<1x1x8xf32>
    %13 = vector.broadcast %12 : vector<1x1x8xf32> to vector<16x16x8xf32>
    %14 = arith.mulf %9, %13 : vector<16x16x8xf32>
    %c0_18 = arith.constant 0 : index
    %c0_19 = arith.constant 0 : index
    %15 = vector.load %arg3[%c0_18, %c0_19] : memref<1x8xf32, #tpu.memory_space<vmem>>, vector<1x8xf32>
    %16 = vector.shape_cast %15 : vector<1x8xf32> to vector<8xf32>
    %17 = vector.shape_cast %16 : vector<8xf32> to vector<1x1x8xf32>
    %18 = vector.broadcast %17 : vector<1x1x8xf32> to vector<16x16x8xf32>
    %19 = arith.addf %14, %18 : vector<16x16x8xf32>
    %cst_20 = arith.constant 0.000000e+00 : f32
    %20 = vector.broadcast %cst_20 : f32 to vector<16x16x8xf32>
    %21 = arith.cmpf oge, %19, %20 : vector<16x16x8xf32>
    %cst_21 = arith.constant 0.00999999977 : f32
    %22 = vector.broadcast %cst_21 : f32 to vector<16x16x8xf32>
    %23 = arith.mulf %22, %19 : vector<16x16x8xf32>
    %24 = arith.select %21, %19, %23 : vector<16x16x8xi1>, vector<16x16x8xf32>
    %c1_22 = arith.constant 1 : index
    %c1_23 = arith.constant 1 : index
    %c0_24 = arith.constant 0 : index
    %25 = vector.load %arg8[%c1_22, %c1_23, %c0_24] : memref<18x18x8xf32, #tpu.memory_space<vmem>>, vector<16x16x8xf32>
    tpu.vector_store %arg8[%c1_22, %c1_23, %c0_24], %24 {strides = array<i32>} : memref<18x18x8xf32, #tpu.memory_space<vmem>>, vector<16x16x8xf32>,
    %cst_25 = arith.constant 0.000000e+00 : f32
    %26 = vector.broadcast %cst_25 : f32 to vector<256x8xf32>
    %c0_26 = arith.constant 0 : index
    %c0_27 = arith.constant 0 : index
    %c0_28 = arith.constant 0 : index
    %27 = vector.load %arg8[%c0_26, %c0_27, %c0_28] : memref<18x18x8xf32, #tpu.memory_space<vmem>>, vector<16x16x8xf32>
    %28 = vector.shape_cast %27 : vector<16x16x8xf32> to vector<256x8xf32>
    %c0_29 = arith.constant 0 : index
    %c0_30 = arith.constant 0 : index
    %c0_31 = arith.constant 0 : index
    %29 = vector.load %arg4[%c0_29, %c0_30, %c0_31] : memref<9x8x8xf32, #tpu.memory_space<vmem>>, vector<1x8x8xf32>
    %30 = vector.shape_cast %29 : vector<1x8x8xf32> to vector<8x8xf32>
    %cst_32 = arith.constant dense<0.000000e+00> : vector<256x8xf32>
    %31 = tpu.matmul %28, %30, %cst_32 {dimension_numbers = #tpu.dot_dimension_numbers<[1], [0], [0], [1], [0, 0, 1, 1], [], []>} : vector<256x8xf32>, vector<8x8xf32>, vector<256x8xf32> -> vector<256x8xf32>
    %32 = arith.addf %26, %31 : vector<256x8xf32>
    %c0_33 = arith.constant 0 : index
    %c1_34 = arith.constant 1 : index
    %c0_35 = arith.constant 0 : index
    %33 = vector.load %arg8[%c0_33, %c1_34, %c0_35] : memref<18x18x8xf32, #tpu.memory_space<vmem>>, vector<16x16x8xf32>
    %34 = vector.shape_cast %33 : vector<16x16x8xf32> to vector<256x8xf32>
    %c1_36 = arith.constant 1 : index
    %c0_37 = arith.constant 0 : index
    %c0_38 = arith.constant 0 : index
    %35 = vector.load %arg4[%c1_36, %c0_37, %c0_38] : memref<9x8x8xf32, #tpu.memory_space<vmem>>, vector<1x8x8xf32>
    %36 = vector.shape_cast %35 : vector<1x8x8xf32> to vector<8x8xf32>
    %cst_39 = arith.constant dense<0.000000e+00> : vector<256x8xf32>
    %37 = tpu.matmul %34, %36, %cst_39 {dimension_numbers = #tpu.dot_dimension_numbers<[1], [0], [0], [1], [0, 0, 1, 1], [], []>} : vector<256x8xf32>, vector<8x8xf32>, vector<256x8xf32> -> vector<256x8xf32>
    %38 = arith.addf %32, %37 : vector<256x8xf32>
    %c0_40 = arith.constant 0 : index
    %c2 = arith.constant 2 : index
    %c0_41 = arith.constant 0 : index
    %39 = vector.load %arg8[%c0_40, %c2, %c0_41] : memref<18x18x8xf32, #tpu.memory_space<vmem>>, vector<16x16x8xf32>
    %40 = vector.shape_cast %39 : vector<16x16x8xf32> to vector<256x8xf32>
    %c2_42 = arith.constant 2 : index
    %c0_43 = arith.constant 0 : index
    %c0_44 = arith.constant 0 : index
    %41 = vector.load %arg4[%c2_42, %c0_43, %c0_44] : memref<9x8x8xf32, #tpu.memory_space<vmem>>, vector<1x8x8xf32>
    %42 = vector.shape_cast %41 : vector<1x8x8xf32> to vector<8x8xf32>
    %cst_45 = arith.constant dense<0.000000e+00> : vector<256x8xf32>
    %43 = tpu.matmul %40, %42, %cst_45 {dimension_numbers = #tpu.dot_dimension_numbers<[1], [0], [0], [1], [0, 0, 1, 1], [], []>} : vector<256x8xf32>, vector<8x8xf32>, vector<256x8xf32> -> vector<256x8xf32>
    %44 = arith.addf %38, %43 : vector<256x8xf32>
    %c1_46 = arith.constant 1 : index
    %c0_47 = arith.constant 0 : index
    %c0_48 = arith.constant 0 : index
    %45 = vector.load %arg8[%c1_46, %c0_47, %c0_48] : memref<18x18x8xf32, #tpu.memory_space<vmem>>, vector<16x16x8xf32>
    %46 = vector.shape_cast %45 : vector<16x16x8xf32> to vector<256x8xf32>
    %c3 = arith.constant 3 : index
    %c0_49 = arith.constant 0 : index
    %c0_50 = arith.constant 0 : index
    %47 = vector.load %arg4[%c3, %c0_49, %c0_50] : memref<9x8x8xf32, #tpu.memory_space<vmem>>, vector<1x8x8xf32>
    %48 = vector.shape_cast %47 : vector<1x8x8xf32> to vector<8x8xf32>
    %cst_51 = arith.constant dense<0.000000e+00> : vector<256x8xf32>
    %49 = tpu.matmul %46, %48, %cst_51 {dimension_numbers = #tpu.dot_dimension_numbers<[1], [0], [0], [1], [0, 0, 1, 1], [], []>} : vector<256x8xf32>, vector<8x8xf32>, vector<256x8xf32> -> vector<256x8xf32>
    %50 = arith.addf %44, %49 : vector<256x8xf32>
    %c1_52 = arith.constant 1 : index
    %c1_53 = arith.constant 1 : index
    %c0_54 = arith.constant 0 : index
    %51 = vector.load %arg8[%c1_52, %c1_53, %c0_54] : memref<18x18x8xf32, #tpu.memory_space<vmem>>, vector<16x16x8xf32>
    %52 = vector.shape_cast %51 : vector<16x16x8xf32> to vector<256x8xf32>
    %c4 = arith.constant 4 : index
    %c0_55 = arith.constant 0 : index
    %c0_56 = arith.constant 0 : index
    %53 = vector.load %arg4[%c4, %c0_55, %c0_56] : memref<9x8x8xf32, #tpu.memory_space<vmem>>, vector<1x8x8xf32>
    %54 = vector.shape_cast %53 : vector<1x8x8xf32> to vector<8x8xf32>
    %cst_57 = arith.constant dense<0.000000e+00> : vector<256x8xf32>
    %55 = tpu.matmul %52, %54, %cst_57 {dimension_numbers = #tpu.dot_dimension_numbers<[1], [0], [0], [1], [0, 0, 1, 1], [], []>} : vector<256x8xf32>, vector<8x8xf32>, vector<256x8xf32> -> vector<256x8xf32>
    %56 = arith.addf %50, %55 : vector<256x8xf32>
    %c1_58 = arith.constant 1 : index
    %c2_59 = arith.constant 2 : index
    %c0_60 = arith.constant 0 : index
    %57 = vector.load %arg8[%c1_58, %c2_59, %c0_60] : memref<18x18x8xf32, #tpu.memory_space<vmem>>, vector<16x16x8xf32>
    %58 = vector.shape_cast %57 : vector<16x16x8xf32> to vector<256x8xf32>
    %c5 = arith.constant 5 : index
    %c0_61 = arith.constant 0 : index
    %c0_62 = arith.constant 0 : index
    %59 = vector.load %arg4[%c5, %c0_61, %c0_62] : memref<9x8x8xf32, #tpu.memory_space<vmem>>, vector<1x8x8xf32>
    %60 = vector.shape_cast %59 : vector<1x8x8xf32> to vector<8x8xf32>
    %cst_63 = arith.constant dense<0.000000e+00> : vector<256x8xf32>
    %61 = tpu.matmul %58, %60, %cst_63 {dimension_numbers = #tpu.dot_dimension_numbers<[1], [0], [0], [1], [0, 0, 1, 1], [], []>} : vector<256x8xf32>, vector<8x8xf32>, vector<256x8xf32> -> vector<256x8xf32>
    %62 = arith.addf %56, %61 : vector<256x8xf32>
    %c2_64 = arith.constant 2 : index
    %c0_65 = arith.constant 0 : index
    %c0_66 = arith.constant 0 : index
    %63 = vector.load %arg8[%c2_64, %c0_65, %c0_66] : memref<18x18x8xf32, #tpu.memory_space<vmem>>, vector<16x16x8xf32>
    %64 = vector.shape_cast %63 : vector<16x16x8xf32> to vector<256x8xf32>
    %c6 = arith.constant 6 : index
    %c0_67 = arith.constant 0 : index
    %c0_68 = arith.constant 0 : index
    %65 = vector.load %arg4[%c6, %c0_67, %c0_68] : memref<9x8x8xf32, #tpu.memory_space<vmem>>, vector<1x8x8xf32>
    %66 = vector.shape_cast %65 : vector<1x8x8xf32> to vector<8x8xf32>
    %cst_69 = arith.constant dense<0.000000e+00> : vector<256x8xf32>
    %67 = tpu.matmul %64, %66, %cst_69 {dimension_numbers = #tpu.dot_dimension_numbers<[1], [0], [0], [1], [0, 0, 1, 1], [], []>} : vector<256x8xf32>, vector<8x8xf32>, vector<256x8xf32> -> vector<256x8xf32>
    %68 = arith.addf %62, %67 : vector<256x8xf32>
    %c2_70 = arith.constant 2 : index
    %c1_71 = arith.constant 1 : index
    %c0_72 = arith.constant 0 : index
    %69 = vector.load %arg8[%c2_70, %c1_71, %c0_72] : memref<18x18x8xf32, #tpu.memory_space<vmem>>, vector<16x16x8xf32>
    %70 = vector.shape_cast %69 : vector<16x16x8xf32> to vector<256x8xf32>
    %c7 = arith.constant 7 : index
    %c0_73 = arith.constant 0 : index
    %c0_74 = arith.constant 0 : index
    %71 = vector.load %arg4[%c7, %c0_73, %c0_74] : memref<9x8x8xf32, #tpu.memory_space<vmem>>, vector<1x8x8xf32>
    %72 = vector.shape_cast %71 : vector<1x8x8xf32> to vector<8x8xf32>
    %cst_75 = arith.constant dense<0.000000e+00> : vector<256x8xf32>
    %73 = tpu.matmul %70, %72, %cst_75 {dimension_numbers = #tpu.dot_dimension_numbers<[1], [0], [0], [1], [0, 0, 1, 1], [], []>} : vector<256x8xf32>, vector<8x8xf32>, vector<256x8xf32> -> vector<256x8xf32>
    %74 = arith.addf %68, %73 : vector<256x8xf32>
    %c2_76 = arith.constant 2 : index
    %c2_77 = arith.constant 2 : index
    %c0_78 = arith.constant 0 : index
    %75 = vector.load %arg8[%c2_76, %c2_77, %c0_78] : memref<18x18x8xf32, #tpu.memory_space<vmem>>, vector<16x16x8xf32>
    %76 = vector.shape_cast %75 : vector<16x16x8xf32> to vector<256x8xf32>
    %c8 = arith.constant 8 : index
    %c0_79 = arith.constant 0 : index
    %c0_80 = arith.constant 0 : index
    %77 = vector.load %arg4[%c8, %c0_79, %c0_80] : memref<9x8x8xf32, #tpu.memory_space<vmem>>, vector<1x8x8xf32>
    %78 = vector.shape_cast %77 : vector<1x8x8xf32> to vector<8x8xf32>
    %cst_81 = arith.constant dense<0.000000e+00> : vector<256x8xf32>
    %79 = tpu.matmul %76, %78, %cst_81 {dimension_numbers = #tpu.dot_dimension_numbers<[1], [0], [0], [1], [0, 0, 1, 1], [], []>} : vector<256x8xf32>, vector<8x8xf32>, vector<256x8xf32> -> vector<256x8xf32>
    %80 = arith.addf %74, %79 : vector<256x8xf32>
    %81 = vector.shape_cast %80 : vector<256x8xf32> to vector<16x16x8xf32>
    %c0_82 = arith.constant 0 : index
    %c0_83 = arith.constant 0 : index
    %c0_84 = arith.constant 0 : index
    %c0_85 = arith.constant 0 : index
    %82 = vector.load %arg5[%c0_82, %c0_83, %c0_84, %c0_85] : memref<1x16x16x8xf32, #tpu.memory_space<vmem>>, vector<1x16x16x8xf32>
    %83 = vector.shape_cast %82 : vector<1x16x16x8xf32> to vector<16x16x8xf32>
    %84 = vector.shape_cast %81 : vector<16x16x8xf32> to vector<1x16x16x8xf32>
    tpu.vector_store %arg5[%c0_82, %c0_83, %c0_84, %c0_85], %84 {strides = array<i32>} : memref<1x16x16x8xf32, #tpu.memory_space<vmem>>, vector<1x16x16x8xf32>,
    %cst_86 = arith.constant dense<0.000000e+00> : vector<8xf32>
    %85 = vector.multi_reduction <add>, %80, %cst_86 [0] : vector<256x8xf32> to vector<8xf32>
    %86 = vector.shape_cast %85 : vector<8xf32> to vector<1x1x8xf32>
    %87 = arith.mulf %80, %80 : vector<256x8xf32>
    %cst_87 = arith.constant dense<0.000000e+00> : vector<8xf32>
    %88 = vector.multi_reduction <add>, %87, %cst_87 [0] : vector<256x8xf32> to vector<8xf32>
    %89 = vector.shape_cast %88 : vector<8xf32> to vector<1x1x8xf32>
    %c0_88 = arith.constant 0 : index
    %c0_89 = arith.constant 0 : index
    %c0_90 = arith.constant 0 : index
    %90 = vector.load %arg6[%c0_88, %c0_89, %c0_90] : memref<1x1x8xf32, #tpu.memory_space<vmem>>, vector<1x1x8xf32>
    tpu.vector_store %arg6[%c0_88, %c0_89, %c0_90], %86 {strides = array<i32>} : memref<1x1x8xf32, #tpu.memory_space<vmem>>, vector<1x1x8xf32>,
    %c0_91 = arith.constant 0 : index
    %c0_92 = arith.constant 0 : index
    %c0_93 = arith.constant 0 : index
    %91 = vector.load %arg7[%c0_91, %c0_92, %c0_93] : memref<1x1x8xf32, #tpu.memory_space<vmem>>, vector<1x1x8xf32>
    tpu.vector_store %arg7[%c0_91, %c0_92, %c0_93], %89 {strides = array<i32>} : memref<1x1x8xf32, #tpu.memory_space<vmem>>, vector<1x1x8xf32>,
    return
  }
  func.func @transform_0(%arg0: i32) -> (i32, i32, i32, i32) {
    %c0_i32 = arith.constant 0 : i32
    %c0_i32_0 = arith.constant 0 : i32
    %c0_i32_1 = arith.constant 0 : i32
    %c0_i32_2 = arith.constant 0 : i32
    return %arg0, %c0_i32, %c0_i32_0, %c0_i32_1 : i32, i32, i32, i32
  }
  func.func @transform_1(%arg0: i32) -> (i32, i32) {
    %c0_i32 = arith.constant 0 : i32
    %c0_i32_0 = arith.constant 0 : i32
    %c0_i32_1 = arith.constant 0 : i32
    return %c0_i32, %c0_i32_0 : i32, i32
  }
  func.func @transform_2(%arg0: i32) -> (i32, i32) {
    %c0_i32 = arith.constant 0 : i32
    %c0_i32_0 = arith.constant 0 : i32
    %c0_i32_1 = arith.constant 0 : i32
    return %c0_i32, %c0_i32_0 : i32, i32
  }
  func.func @transform_3(%arg0: i32) -> (i32, i32, i32) {
    %c0_i32 = arith.constant 0 : i32
    %c0_i32_0 = arith.constant 0 : i32
    %c0_i32_1 = arith.constant 0 : i32
    %c0_i32_2 = arith.constant 0 : i32
    return %c0_i32, %c0_i32_0, %c0_i32_1 : i32, i32, i32
  }
  func.func @transform_4(%arg0: i32) -> (i32, i32, i32, i32) {
    %c0_i32 = arith.constant 0 : i32
    %c0_i32_0 = arith.constant 0 : i32
    %c0_i32_1 = arith.constant 0 : i32
    %c0_i32_2 = arith.constant 0 : i32
    return %arg0, %c0_i32, %c0_i32_0, %c0_i32_1 : i32, i32, i32, i32
  }
  func.func @transform_5(%arg0: i32) -> (i32, i32, i32) {
    %c0_i32 = arith.constant 0 : i32
    %c0_i32_0 = arith.constant 0 : i32
    %c0_i32_1 = arith.constant 0 : i32
    return %arg0, %c0_i32, %c0_i32_0 : i32, i32, i32
  }
  func.func @transform_6(%arg0: i32) -> (i32, i32, i32) {
    %c0_i32 = arith.constant 0 : i32
    %c0_i32_0 = arith.constant 0 : i32
    %c0_i32_1 = arith.constant 0 : i32
    return %arg0, %c0_i32, %c0_i32_0 : i32, i32, i32
  }
}

</mosaic_0001>

<bundles_post_ra>
// kernel: res_block_forward.5
= control target key start
LH: loop header
LB: loop body
LE: loop exit
PB: predicated region body
PF: predicated region fallthrough
CT: control target
= control target key end

     0   :  { %s779_s21 = smov 0   ;;  %s1086_s0 = inlined_call_operand.vmem [shape: f32[2,16,16,8], index: 0, kind: input, shape index: {}]   ;;  %s1087_s1 = inlined_call_operand.vmem [shape: f32[2,16,16,8], index: 1, kind: input, shape index: {}]   ;;  %s1088_s2 = inlined_call_operand.vmem [shape: f32[1,8], index: 2, kind: input, shape index: {}]   ;;  %s1089_s3 = inlined_call_operand.vmem [shape: f32[1,8], index: 3, kind: input, shape index: {}]   ;;  %s1090_s4 = inlined_call_operand.vmem [shape: f32[1,8], index: 4, kind: input, shape index: {}]   ;;  %s1091_s5 = inlined_call_operand.vmem [shape: f32[1,8], index: 5, kind: input, shape index: {}]   ;;  %s1092_s6 = inlined_call_operand.vmem [shape: f32[2,16,16,8], index: 6, kind: output, shape index: {}]  }
   0x1 LB: > { %s708_s22 = sadd.s32 4294967295, %s742_s21   ;;  %p712_p0 = scmp.ge.s32.totalorder %s742_s21, 1  ;;  %s742_s21 = sphi %s779_s21, %s16_s21  }
   0x2   : > { %p222_p1 = scmp.lt.s32.totalorder %s742_s21, 3 }
   0x4   : > { %p223_p2 = pnand %p712_p0, %p222_p1 }
   0x5   : > { %p257_p3 = scmp.lt.s32.totalorder (!%p223_p2), %s708_s22, 1 }
   0x6   : > { %226 = sbr.rel (%p223_p2) target bundleno = 86 (0x56), region = 44 }
   0xb   : > { %s1094_s22 = smov (!%p257_p3, %s708_s22), 1  ;;  %v790_v0 = vld [vmem:[%s1088_s2] ss:$0 sm:$0xff]  ;;  %vm608_vm0 = vcmask 64512  }
   0xc   : > { %v795_v1 = vld [vmem:[%s1090_s4] ss:$0 sm:$0xff]  ;;  %s797_s27 = sshll.u32 %s1094_s22, 8 }
   0xd   : > { %s803_s30 = scalar_lea.vmem %s1086_s0, %s797_s27  ;;  %s809_s9 = scalar_lea.vmem %s1087_s1, %s797_s27  ;;  %v814_v2 = vld [vmem:[%s1089_s3] ss:$0 sm:$0xff] }
   0xe   : > { %v819_v3 = vld [vmem:[%s1091_s5] ss:$0 sm:$0xff]  ;;  %v273_v6 = vld [vmem:[%s803_s30 + $0x8] sm:$0xff]  ;;  %v274_v11 = vld [vmem:[%s803_s30 + $0x10] sm:$0xff]  ;;  %s855_s16 = scalar_lea.vmem %s1092_s6, %s797_s27 }
   0xf   : > { %v272_v4 = vld [vmem:[%s803_s30] sm:$0xff]  ;;  %v309_v9 = vmul.f32 %v790_v0, %v273_v6  ;;  %v377_v10 = vld [vmem:[%s809_s9 + $0x8] sm:$0xff]  ;;  %v378_v12 = vld [vmem:[%s809_s9 + $0x10] sm:$0xff]  ;;  %v310_v14 = vmul.f32 %v790_v0, %v274_v11 }
  0x10   : > { %v376_v5 = vld [vmem:[%s809_s9] sm:$0xff]  ;;  %v308_v7 = vmul.f32 %v790_v0, %v272_v4  ;;  %v413_v13 = vmul.f32 %v795_v1, %v377_v10  ;;  %v414_v15 = vmul.f32 %v795_v1, %v378_v12  ;;  %v275_v16 = vld [vmem:[%s803_s30 + $0x18] sm:$0xff]  ;;  %v277_v24 = vld [vmem:[%s803_s30 + $0x28] sm:$0xff] }
  0x11   : > { %v412_v8 = vmul.f32 %v795_v1, %v376_v5  ;;  %v379_v17 = vld [vmem:[%s809_s9 + $0x18] sm:$0xff]  ;;  %v276_v18 = vld [vmem:[%s803_s30 + $0x20] sm:$0xff]  ;;  %v345_v21 = vadd.f32 %v814_v2, %v309_v9  ;;  %v311_v22 = vmul.f32 %v790_v0, %v275_v16  ;;  %v346_v26 = vadd.f32 %v814_v2, %v310_v14  ;;  %v381_v40 = vld [vmem:[%s809_s9 + $0x28] sm:$0xff] }
  0x12   : > { %v344_v19 = vadd.f32 %v814_v2, %v308_v7  ;;  %v380_v23 = vld [vmem:[%s809_s9 + $0x20] sm:$0xff]  ;;  %v449_v25 = vadd.f32 %v819_v3, %v413_v13  ;;  %v450_v27 = vadd.f32 %v819_v3, %v414_v15  ;;  %v415_v28 = vmul.f32 %v795_v1, %v379_v17  ;;  %v278_v41 = vld [vmem:[%s803_s30 + $0x30] sm:$0xff]  ;;  %v279_v49 = vld [vmem:[%s803_s30 + $0x38] sm:$0xff] }
  0x13   : > { %v448_v20 = vadd.f32 %v819_v3, %v412_v8  ;;  %v347_v30 = vadd.f32 %v814_v2, %v311_v22  ;;  %v312_v31 = vmul.f32 %v790_v0, %v276_v18  ;;  %v416_v32 = vmul.f32 %v795_v1, %v380_v23  ;;  %v382_v42 = vld [vmem:[%s809_s9 + $0x30] sm:$0xff]  ;;  %v383_v54 = vld [vmem:[%s809_s9 + $0x38] sm:$0xff]  ;;  %v280_v55 = vld [vmem:[%s803_s30 + $0x40] sm:$0xff] }
  0x14   : > { %v481_v33 = vadd.f32 %v449_v25, %v345_v21  ;;  %v482_v34 = vadd.f32 %v450_v27, %v346_v26  ;;  %v451_v35 = vadd.f32 %v819_v3, %v415_v28  ;;  %v313_v36 = vmul.f32 %v790_v0, %v277_v24  ;;  %v384_v58 = vld [vmem:[%s809_s9 + $0x40] sm:$0xff]  ;;  %v281_v63 = vld [vmem:[%s803_s30 + $0x48] sm:$0xff]  ;;  %v282_v17 = vld [vmem:[%s803_s30 + $0x50] sm:$0xff] }
  0x15   : > { %v480_v29 = vadd.f32 %v448_v20, %v344_v19  ;;  %v348_v38 = vadd.f32 %v814_v2, %v312_v31  ;;  %v452_v39 = vadd.f32 %v819_v3, %v416_v32  ;;  %v417_v52 = vmul.f32 %v795_v1, %v381_v40  ;;  %v385_v8 = vld [vmem:[%s809_s9 + $0x48] sm:$0xff]  ;;  %v386_v21 = vld [vmem:[%s809_s9 + $0x50] sm:$0xff] }
  0x16   : > { %vm513_vm2 = vcmp.ge.f32.partialorder %v481_v33, 0.0  ;;  %v545_v43 = vmul.f32 0.01, %v481_v33  ;;  %vm514_vm3 = vcmp.ge.f32.partialorder %v482_v34, 0.0  ;;  %v546_v44 = vmul.f32 0.01, %v482_v34 }
  0x17   : > { %vm512_vm1 = vcmp.ge.f32.partialorder %v480_v29, 0.0  ;;  %v544_v37 = vmul.f32 0.01, %v480_v29  ;;  %v483_v46 = vadd.f32 %v451_v35, %v347_v30  ;;  %v484_v47 = vadd.f32 %v452_v39, %v348_v38  ;;  %v387_v30 = vld [vmem:[%s809_s9 + $0x58] sm:$0xff]  ;;  %v388_v38 = vld [vmem:[%s809_s9 + $0x60] sm:$0xff] }
  0x18   : > { %v349_v48 = vadd.f32 %v814_v2, %v313_v36  ;;  %v577_v50 = vsel %vm513_vm2, %v481_v33, %v545_v43  ;;  %v578_v51 = vsel %vm514_vm3, %v482_v34, %v546_v44  ;;  %v314_v53 = vmul.f32 %v790_v0, %v278_v41  ;;  %v284_v34 = vld [vmem:[%s803_s30 + $0x60] sm:$0xff]  ;;  %v285_v43 = vld [vmem:[%s803_s30 + $0x68] sm:$0xff] }
  0x19   : > { %v576_v45 = vsel %vm512_vm1, %v480_v29, %v544_v37  ;;  %610 = vst.msk [vmem:[%s855_s16 + $0x8] sm:$0xff] %vm608_vm0, %v577_v50  ;;  %vm515_vm4 = vcmp.ge.f32.partialorder %v483_v46, 0.0  ;;  %v547_v56 = vmul.f32 0.01, %v483_v46  ;;  %vm516_vm5 = vcmp.ge.f32.partialorder %v484_v47, 0.0  ;;  %v283_v29 = vld [vmem:[%s803_s30 + $0x58] sm:$0xff] }
  0x1a   : > { %609 = vst.msk [vmem:[%s855_s16] sm:$0xff] %vm608_vm0, %v576_v45  ;;  %v418_v57 = vmul.f32 %v795_v1, %v382_v42  ;;  %v548_v59 = vmul.f32 0.01, %v484_v47  ;;  %v453_v60 = vadd.f32 %v819_v3, %v417_v52  ;;  %v350_v61 = vadd.f32 %v814_v2, %v314_v53  ;;  %v389_v44 = vld [vmem:[%s809_s9 + $0x68] sm:$0xff]  ;;  %v286_v52 = vld [vmem:[%s803_s30 + $0x70] sm:$0xff] }
  0x1b   : > { %611 = vst.msk [vmem:[%s855_s16 + $0x10] sm:$0xff] %vm608_vm0, %v578_v51  ;;  %v315_v62 = vmul.f32 %v790_v0, %v279_v49  ;;  %v579_v4 = vsel %vm515_vm4, %v483_v46, %v547_v56  ;;  %v419_v6 = vmul.f32 %v795_v1, %v383_v54  ;;  %v316_v7 = vmul.f32 %v790_v0, %v280_v55  ;;  %v390_v53 = vld [vmem:[%s809_s9 + $0x70] sm:$0xff] }
  0x1c   : > { %v454_v5 = vadd.f32 %v819_v3, %v418_v57  ;;  %612 = vst.msk [vmem:[%s855_s16 + $0x18] sm:$0xff] %vm608_vm0, %v579_v4  ;;  %v580_v9 = vsel %vm516_vm5, %v484_v47, %v548_v59  ;;  %v485_v10 = vadd.f32 %v453_v60, %v349_v48  ;;  %v420_v12 = vmul.f32 %v795_v1, %v384_v58 }
  0x1d   : > { %v351_v11 = vadd.f32 %v814_v2, %v315_v62  ;;  %613 = vst.msk [vmem:[%s855_s16 + $0x20] sm:$0xff] %vm608_vm0, %v580_v9  ;;  %v455_v14 = vadd.f32 %v819_v3, %v419_v6  ;;  %v352_v15 = vadd.f32 %v814_v2, %v316_v7  ;;  %v317_v16 = vmul.f32 %v790_v0, %v281_v63  ;;  %v391_v6 = vld [vmem:[%s809_s9 + $0x78] sm:$0xff] }
  0x1e   : > { %v486_v13 = vadd.f32 %v454_v5, %v350_v61  ;;  %vm517_vm6 = vcmp.ge.f32.partialorder %v485_v10, 0.0  ;;  %v549_v18 = vmul.f32 0.01, %v485_v10  ;;  %v456_v19 = vadd.f32 %v819_v3, %v420_v12  ;;  %v287_v61 = vld [vmem:[%s803_s30 + $0x78] sm:$0xff] }
  0x1f   : > { %v421_v20 = vmul.f32 %v795_v1, %v385_v8  ;;  %v487_v23 = vadd.f32 %v455_v14, %v351_v11  ;;  %v353_v24 = vadd.f32 %v814_v2, %v317_v16  ;;  %v318_v28 = vmul.f32 %v790_v0, %v282_v17  ;;  %v288_v14 = vld [vmem:[%s803_s30 + $0x80] sm:$0xff] }
  0x20   : > { %vm518_vm7 = vcmp.ge.f32.partialorder %v486_v13, 0.0  ;;  %v550_v22 = vmul.f32 0.01, %v486_v13  ;;  %v581_v25 = vsel %vm517_vm6, %v485_v10, %v549_v18  ;;  %v488_v26 = vadd.f32 %v456_v19, %v352_v15  ;;  %v392_v15 = vld [vmem:[%s809_s9 + $0x80] sm:$0xff]  ;;  %v289_v19 = vld [vmem:[%s803_s30 + $0x88] sm:$0xff] }
  0x21   : > { %v457_v27 = vadd.f32 %v819_v3, %v421_v20  ;;  %614 = vst.msk [vmem:[%s855_s16 + $0x28] sm:$0xff] %vm608_vm0, %v581_v25  ;;  %vm519_vm8 = vcmp.ge.f32.partialorder %v487_v23, 0.0  ;;  %v551_v32 = vmul.f32 0.01, %v487_v23  ;;  %v422_v33 = vmul.f32 %v795_v1, %v386_v21 }
  0x22   : > { %v582_v31 = vsel %vm518_vm7, %v486_v13, %v550_v22  ;;  %vm520_vm9 = vcmp.ge.f32.partialorder %v488_v26, 0.0  ;;  %v552_v35 = vmul.f32 0.01, %v488_v26  ;;  %v354_v37 = vadd.f32 %v814_v2, %v318_v28  ;;  %v290_v28 = vld [vmem:[%s803_s30 + $0x90] sm:$0xff] }
  0x23   : > { %615 = vst.msk [vmem:[%s855_s16 + $0x30] sm:$0xff] %vm608_vm0, %v582_v31  ;;  %v489_v36 = vadd.f32 %v457_v27, %v353_v24  ;;  %v583_v39 = vsel %vm519_vm8, %v487_v23, %v551_v32  ;;  %v458_v40 = vadd.f32 %v819_v3, %v422_v33  ;;  %v319_v41 = vmul.f32 %v790_v0, %v283_v29  ;;  %v393_v23 = vld [vmem:[%s809_s9 + $0x88] sm:$0xff]  ;;  %v394_v29 = vld [vmem:[%s809_s9 + $0x90] sm:$0xff] }
  0x24   : > { %v423_v42 = vmul.f32 %v795_v1, %v387_v30  ;;  %616 = vst.msk [vmem:[%s855_s16 + $0x38] sm:$0xff] %vm608_vm0, %v583_v39  ;;  %v584_v45 = vsel %vm520_vm9, %v488_v26, %v552_v35  ;;  %v320_v47 = vmul.f32 %v790_v0, %v284_v34  ;;  %v424_v51 = vmul.f32 %v795_v1, %v388_v38  ;;  %v395_v38 = vld [vmem:[%s809_s9 + $0x98] sm:$0xff] }
  0x25   : > { %vm521_vm10 = vcmp.ge.f32.partialorder %v489_v36, 0.0  ;;  %v553_v46 = vmul.f32 0.01, %v489_v36  ;;  %617 = vst.msk [vmem:[%s855_s16 + $0x40] sm:$0xff] %vm608_vm0, %v584_v45  ;;  %v490_v48 = vadd.f32 %v458_v40, %v354_v37  ;;  %v355_v49 = vadd.f32 %v814_v2, %v319_v41  ;;  %v291_v37 = vld [vmem:[%s803_s30 + $0x98] sm:$0xff] }
  0x26   : > { %v459_v50 = vadd.f32 %v819_v3, %v423_v42  ;;  %v356_v55 = vadd.f32 %v814_v2, %v320_v47  ;;  %v321_v56 = vmul.f32 %v790_v0, %v285_v43  ;;  %v425_v57 = vmul.f32 %v795_v1, %v389_v44 }
  0x27   : > { %v585_v54 = vsel %vm521_vm10, %v489_v36, %v553_v46  ;;  %vm522_vm11 = vcmp.ge.f32.partialorder %v490_v48, 0.0  ;;  %v554_v58 = vmul.f32 0.01, %v490_v48  ;;  %v460_v60 = vadd.f32 %v819_v3, %v424_v51  ;;  %v292_v46 = vld [vmem:[%s803_s30 + $0xa0] sm:$0xff] }
  0x28   : > { %618 = vst.msk [vmem:[%s855_s16 + $0x48] sm:$0xff] %vm608_vm0, %v585_v54  ;;  %v491_v59 = vadd.f32 %v459_v50, %v355_v49  ;;  %v357_v62 = vadd.f32 %v814_v2, %v321_v56  ;;  %v461_v63 = vadd.f32 %v819_v3, %v425_v57  ;;  %v322_v4 = vmul.f32 %v790_v0, %v286_v52  ;;  %v396_v51 = vld [vmem:[%s809_s9 + $0xa0] sm:$0xff] }
  0x29   : > { %v426_v5 = vmul.f32 %v795_v1, %v390_v53  ;;  %v586_v7 = vsel %vm522_vm11, %v490_v48, %v554_v58  ;;  %v492_v9 = vadd.f32 %v460_v60, %v356_v55  ;;  %v323_v13 = vmul.f32 %v790_v0, %v287_v61  ;;  %v397_v60 = vld [vmem:[%s809_s9 + $0xa8] sm:$0xff] }
  0x2a   : > { %vm523_vm12 = vcmp.ge.f32.partialorder %v491_v59, 0.0  ;;  %v555_v8 = vmul.f32 0.01, %v491_v59  ;;  %619 = vst.msk [vmem:[%s855_s16 + $0x50] sm:$0xff] %vm608_vm0, %v586_v7  ;;  %v493_v10 = vadd.f32 %v461_v63, %v357_v62  ;;  %v358_v11 = vadd.f32 %v814_v2, %v322_v4  ;;  %v294_v4 = vld [vmem:[%s803_s30 + $0xb0] sm:$0xff] }
  0x2b   : > { %v462_v12 = vadd.f32 %v819_v3, %v426_v5  ;;  %vm524_vm13 = vcmp.ge.f32.partialorder %v492_v9, 0.0  ;;  %v556_v17 = vmul.f32 0.01, %v492_v9  ;;  %v427_v18 = vmul.f32 %v795_v1, %v391_v6 }
  0x2c   : > { %v587_v16 = vsel %vm523_vm12, %v491_v59, %v555_v8  ;;  %vm525_vm14 = vcmp.ge.f32.partialorder %v493_v10, 0.0  ;;  %v557_v20 = vmul.f32 0.01, %v493_v10  ;;  %v359_v22 = vadd.f32 %v814_v2, %v323_v13  ;;  %v293_v59 = vld [vmem:[%s803_s30 + $0xa8] sm:$0xff]  ;;  %v398_v8 = vld [vmem:[%s809_s9 + $0xb0] sm:$0xff]  ;;  %v295_v13 = vld [vmem:[%s803_s30 + $0xb8] sm:$0xff] }
  0x2d   : > { %620 = vst.msk [vmem:[%s855_s16 + $0x58] sm:$0xff] %vm608_vm0, %v587_v16  ;;  %v494_v21 = vadd.f32 %v462_v12, %v358_v11  ;;  %v588_v24 = vsel %vm524_vm13, %v492_v9, %v556_v17  ;;  %v463_v25 = vadd.f32 %v819_v3, %v427_v18  ;;  %v324_v26 = vmul.f32 %v790_v0, %v288_v14  ;;  %v399_v14 = vld [vmem:[%s809_s9 + $0xb8] sm:$0xff] }
  0x2e   : > { %v428_v27 = vmul.f32 %v795_v1, %v392_v15  ;;  %621 = vst.msk [vmem:[%s855_s16 + $0x60] sm:$0xff] %vm608_vm0, %v588_v24  ;;  %v589_v30 = vsel %vm525_vm14, %v493_v10, %v557_v20  ;;  %v325_v32 = vmul.f32 %v790_v0, %v289_v19  ;;  %v429_v36 = vmul.f32 %v795_v1, %v393_v23  ;;  %v400_v23 = vld [vmem:[%s809_s9 + $0xc0] sm:$0xff] }
  0x2f   : > { %vm526_vm15 = vcmp.ge.f32.partialorder %v494_v21, 0.0  ;;  %v558_v31 = vmul.f32 0.01, %v494_v21  ;;  %622 = vst.msk [vmem:[%s855_s16 + $0x68] sm:$0xff] %vm608_vm0, %v589_v30  ;;  %v495_v33 = vadd.f32 %v463_v25, %v359_v22  ;;  %v360_v34 = vadd.f32 %v814_v2, %v324_v26  ;;  %v296_v22 = vld [vmem:[%s803_s30 + $0xc0] sm:$0xff] }
  0x30   : > { %v464_v35 = vadd.f32 %v819_v3, %v428_v27  ;;  %v361_v40 = vadd.f32 %v814_v2, %v325_v32  ;;  %v326_v41 = vmul.f32 %v790_v0, %v290_v28  ;;  %v430_v42 = vmul.f32 %v795_v1, %v394_v29 }
  0x31   : > { %v590_v39 = vsel %vm526_vm15, %v494_v21, %v558_v31  ;;  %vm527_vm1 = vcmp.ge.f32.partialorder %v495_v33, 0.0  ;;  %v559_v43 = vmul.f32 0.01, %v495_v33  ;;  %v465_v45 = vadd.f32 %v819_v3, %v429_v36  ;;  %v297_v31 = vld [vmem:[%s803_s30 + $0xc8] sm:$0xff] }
  0x32   : > { %623 = vst.msk [vmem:[%s855_s16 + $0x70] sm:$0xff] %vm608_vm0, %v590_v39  ;;  %v496_v44 = vadd.f32 %v464_v35, %v360_v34  ;;  %v362_v47 = vadd.f32 %v814_v2, %v326_v41  ;;  %v466_v48 = vadd.f32 %v819_v3, %v430_v42  ;;  %v327_v49 = vmul.f32 %v790_v0, %v291_v37  ;;  %v401_v36 = vld [vmem:[%s809_s9 + $0xc8] sm:$0xff] }
  0x33   : > { %v431_v50 = vmul.f32 %v795_v1, %v395_v38  ;;  %v591_v52 = vsel %vm527_vm1, %v495_v33, %v559_v43  ;;  %v497_v54 = vadd.f32 %v465_v45, %v361_v40  ;;  %v328_v58 = vmul.f32 %v790_v0, %v292_v46  ;;  %v402_v45 = vld [vmem:[%s809_s9 + $0xd0] sm:$0xff] }
  0x34   : > { %vm528_vm2 = vcmp.ge.f32.partialorder %v496_v44, 0.0  ;;  %v560_v53 = vmul.f32 0.01, %v496_v44  ;;  %624 = vst.msk [vmem:[%s855_s16 + $0x78] sm:$0xff] %vm608_vm0, %v591_v52  ;;  %v498_v55 = vadd.f32 %v466_v48, %v362_v47  ;;  %v363_v56 = vadd.f32 %v814_v2, %v327_v49  ;;  %v299_v49 = vld [vmem:[%s803_s30 + $0xd8] sm:$0xff] }
  0x35   : > { %v467_v57 = vadd.f32 %v819_v3, %v431_v50  ;;  %vm529_vm3 = vcmp.ge.f32.partialorder %v497_v54, 0.0  ;;  %v561_v62 = vmul.f32 0.01, %v497_v54  ;;  %v432_v63 = vmul.f32 %v795_v1, %v396_v51 }
  0x36   : > { %v592_v61 = vsel %vm528_vm2, %v496_v44, %v560_v53  ;;  %vm530_vm4 = vcmp.ge.f32.partialorder %v498_v55, 0.0  ;;  %v562_v5 = vmul.f32 0.01, %v498_v55  ;;  %v364_v7 = vadd.f32 %v814_v2, %v328_v58  ;;  %v298_v44 = vld [vmem:[%s803_s30 + $0xd0] sm:$0xff]  ;;  %v403_v53 = vld [vmem:[%s809_s9 + $0xd8] sm:$0xff]  ;;  %v300_v58 = vld [vmem:[%s803_s30 + $0xe0] sm:$0xff] }
  0x37   : > { %625 = vst.msk [vmem:[%s855_s16 + $0x80] sm:$0xff] %vm608_vm0, %v592_v61  ;;  %v499_v6 = vadd.f32 %v467_v57, %v363_v56  ;;  %v593_v9 = vsel %vm529_vm3, %v497_v54, %v561_v62  ;;  %v468_v10 = vadd.f32 %v819_v3, %v432_v63  ;;  %v329_v11 = vmul.f32 %v790_v0, %v293_v59  ;;  %v404_v59 = vld [vmem:[%s809_s9 + $0xe0] sm:$0xff] }
  0x38   : > { %v433_v12 = vmul.f32 %v795_v1, %v397_v60  ;;  %626 = vst.msk [vmem:[%s855_s16 + $0x88] sm:$0xff] %vm608_vm0, %v593_v9  ;;  %v594_v15 = vsel %vm530_vm4, %v498_v55, %v562_v5  ;;  %v330_v17 = vmul.f32 %v790_v0, %v294_v4  ;;  %v434_v21 = vmul.f32 %v795_v1, %v398_v8  ;;  %v405_v8 = vld [vmem:[%s809_s9 + $0xe8] sm:$0xff] }
  0x39   : > { %vm531_vm5 = vcmp.ge.f32.partialorder %v499_v6, 0.0  ;;  %v563_v16 = vmul.f32 0.01, %v499_v6  ;;  %627 = vst.msk [vmem:[%s855_s16 + $0x90] sm:$0xff] %vm608_vm0, %v594_v15  ;;  %v500_v18 = vadd.f32 %v468_v10, %v364_v7  ;;  %v365_v19 = vadd.f32 %v814_v2, %v329_v11  ;;  %v301_v7 = vld [vmem:[%s803_s30 + $0xe8] sm:$0xff] }
  0x3a   : > { %v469_v20 = vadd.f32 %v819_v3, %v433_v12  ;;  %v366_v25 = vadd.f32 %v814_v2, %v330_v17  ;;  %v331_v26 = vmul.f32 %v790_v0, %v295_v13  ;;  %v435_v27 = vmul.f32 %v795_v1, %v399_v14 }
  0x3b   : > { %v595_v24 = vsel %vm531_vm5, %v499_v6, %v563_v16  ;;  %vm532_vm6 = vcmp.ge.f32.partialorder %v500_v18, 0.0  ;;  %v564_v28 = vmul.f32 0.01, %v500_v18  ;;  %v470_v30 = vadd.f32 %v819_v3, %v434_v21  ;;  %v302_v16 = vld [vmem:[%s803_s30 + $0xf0] sm:$0xff] }
  0x3c   : > { %628 = vst.msk [vmem:[%s855_s16 + $0x98] sm:$0xff] %vm608_vm0, %v595_v24  ;;  %v501_v29 = vadd.f32 %v469_v20, %v365_v19  ;;  %v367_v32 = vadd.f32 %v814_v2, %v331_v26  ;;  %v471_v33 = vadd.f32 %v819_v3, %v435_v27  ;;  %v332_v34 = vmul.f32 %v790_v0, %v296_v22  ;;  %v406_v21 = vld [vmem:[%s809_s9 + $0xf0] sm:$0xff] }
  0x3d   : > { %v436_v35 = vmul.f32 %v795_v1, %v400_v23  ;;  %v596_v37 = vsel %vm532_vm6, %v500_v18, %v564_v28  ;;  %v502_v39 = vadd.f32 %v470_v30, %v366_v25  ;;  %v333_v43 = vmul.f32 %v790_v0, %v297_v31  ;;  %v407_v30 = vld [vmem:[%s809_s9 + $0xf8] sm:$0xff] }
  0x3e   : > { %vm533_vm7 = vcmp.ge.f32.partialorder %v501_v29, 0.0  ;;  %v565_v38 = vmul.f32 0.01, %v501_v29  ;;  %629 = vst.msk [vmem:[%s855_s16 + $0xa0] sm:$0xff] %vm608_vm0, %v596_v37  ;;  %v503_v40 = vadd.f32 %v471_v33, %v367_v32  ;;  %v368_v41 = vadd.f32 %v814_v2, %v332_v34 }
  0x3f   : > { %v472_v42 = vadd.f32 %v819_v3, %v436_v35  ;;  %vm534_vm8 = vcmp.ge.f32.partialorder %v502_v39, 0.0  ;;  %v566_v47 = vmul.f32 0.01, %v502_v39  ;;  %v437_v48 = vmul.f32 %v795_v1, %v401_v36 }
  0x40   : > { %v597_v46 = vsel %vm533_vm7, %v501_v29, %v565_v38  ;;  %vm535_vm9 = vcmp.ge.f32.partialorder %v503_v40, 0.0  ;;  %v567_v50 = vmul.f32 0.01, %v503_v40  ;;  %v369_v52 = vadd.f32 %v814_v2, %v333_v43  ;;  %v303_v29 = vld [vmem:[%s803_s30 + $0xf8] sm:$0xff] }
  0x41   : > { %630 = vst.msk [vmem:[%s855_s16 + $0xa8] sm:$0xff] %vm608_vm0, %v597_v46  ;;  %v504_v51 = vadd.f32 %v472_v42, %v368_v41  ;;  %v598_v54 = vsel %vm534_vm8, %v502_v39, %v566_v47  ;;  %v473_v55 = vadd.f32 %v819_v3, %v437_v48  ;;  %v334_v56 = vmul.f32 %v790_v0, %v298_v44 }
  0x42   : > { %v438_v57 = vmul.f32 %v795_v1, %v402_v45  ;;  %631 = vst.msk [vmem:[%s855_s16 + $0xb0] sm:$0xff] %vm608_vm0, %v598_v54  ;;  %v599_v60 = vsel %vm535_vm9, %v503_v40, %v567_v50  ;;  %v335_v62 = vmul.f32 %v790_v0, %v299_v49  ;;  %v439_v6 = vmul.f32 %v795_v1, %v403_v53 }
  0x43   : > { %vm536_vm10 = vcmp.ge.f32.partialorder %v504_v51, 0.0  ;;  %v568_v61 = vmul.f32 0.01, %v504_v51  ;;  %632 = vst.msk [vmem:[%s855_s16 + $0xb8] sm:$0xff] %vm608_vm0, %v599_v60  ;;  %v505_v63 = vadd.f32 %v473_v55, %v369_v52  ;;  %v370_v4 = vadd.f32 %v814_v2, %v334_v56 }
  0x44   : > { %v474_v5 = vadd.f32 %v819_v3, %v438_v57  ;;  %v371_v10 = vadd.f32 %v814_v2, %v335_v62  ;;  %v336_v11 = vmul.f32 %v790_v0, %v300_v58  ;;  %v440_v12 = vmul.f32 %v795_v1, %v404_v59 }
  0x45   : > { %v600_v9 = vsel %vm536_vm10, %v504_v51, %v568_v61  ;;  %vm537_vm11 = vcmp.ge.f32.partialorder %v505_v63, 0.0  ;;  %v569_v13 = vmul.f32 0.01, %v505_v63  ;;  %v475_v15 = vadd.f32 %v819_v3, %v439_v6 }
  0x46   : > { %633 = vst.msk [vmem:[%s855_s16 + $0xc0] sm:$0xff] %vm608_vm0, %v600_v9  ;;  %v506_v14 = vadd.f32 %v474_v5, %v370_v4  ;;  %v372_v17 = vadd.f32 %v814_v2, %v336_v11  ;;  %v476_v18 = vadd.f32 %v819_v3, %v440_v12  ;;  %v337_v19 = vmul.f32 %v790_v0, %v301_v7 }
  0x47   : > { %v441_v20 = vmul.f32 %v795_v1, %v405_v8  ;;  %v601_v22 = vsel %vm537_vm11, %v505_v63, %v569_v13  ;;  %v507_v24 = vadd.f32 %v475_v15, %v371_v10  ;;  %v338_v28 = vmul.f32 %v790_v0, %v302_v16 }
  0x48   : > { %vm538_vm12 = vcmp.ge.f32.partialorder %v506_v14, 0.0  ;;  %v570_v23 = vmul.f32 0.01, %v506_v14  ;;  %634 = vst.msk [vmem:[%s855_s16 + $0xc8] sm:$0xff] %vm608_vm0, %v601_v22  ;;  %v508_v25 = vadd.f32 %v476_v18, %v372_v17  ;;  %v373_v26 = vadd.f32 %v814_v2, %v337_v19 }
  0x49   : > { %v477_v27 = vadd.f32 %v819_v3, %v441_v20  ;;  %vm539_vm13 = vcmp.ge.f32.partialorder %v507_v24, 0.0  ;;  %v571_v32 = vmul.f32 0.01, %v507_v24  ;;  %v442_v33 = vmul.f32 %v795_v1, %v406_v21 }
  0x4a   : > { %v602_v31 = vsel %vm538_vm12, %v506_v14, %v570_v23  ;;  %vm540_vm14 = vcmp.ge.f32.partialorder %v508_v25, 0.0  ;;  %v572_v34 = vmul.f32 0.01, %v508_v25  ;;  %v374_v36 = vadd.f32 %v814_v2, %v338_v28 }
  0x4b   : > { %635 = vst.msk [vmem:[%s855_s16 + $0xd0] sm:$0xff] %vm608_vm0, %v602_v31  ;;  %v509_v35 = vadd.f32 %v477_v27, %v373_v26  ;;  %v603_v37 = vsel %vm539_vm13, %v507_v24, %v571_v32  ;;  %v478_v38 = vadd.f32 %v819_v3, %v442_v33  ;;  %v339_v39 = vmul.f32 %v790_v0, %v303_v29 }
  0x4c   : > { %v443_v40 = vmul.f32 %v795_v1, %v407_v30  ;;  %636 = vst.msk [vmem:[%s855_s16 + $0xd8] sm:$0xff] %vm608_vm0, %v603_v37  ;;  %v604_v41 = vsel %vm540_vm14, %v508_v25, %v572_v34 }
  0x4d   : > { %vm541_vm15 = vcmp.ge.f32.partialorder %v509_v35, 0.0  ;;  %v573_v42 = vmul.f32 0.01, %v509_v35  ;;  %637 = vst.msk [vmem:[%s855_s16 + $0xe0] sm:$0xff] %vm608_vm0, %v604_v41  ;;  %v510_v43 = vadd.f32 %v478_v38, %v374_v36  ;;  %v375_v44 = vadd.f32 %v814_v2, %v339_v39 }
  0x4e   : > { %v479_v45 = vadd.f32 %v819_v3, %v443_v40 }
  0x4f   : > { %v605_v46 = vsel %vm541_vm15, %v509_v35, %v573_v42  ;;  %vm542_vm1 = vcmp.ge.f32.partialorder %v510_v43, 0.0  ;;  %v574_v0 = vmul.f32 0.01, %v510_v43 }
  0x50   : > { %638 = vst.msk [vmem:[%s855_s16 + $0xe8] sm:$0xff] %vm608_vm0, %v605_v46  ;;  %v511_v1 = vadd.f32 %v479_v45, %v375_v44 }
  0x51   : > { %v606_v47 = vsel %vm542_vm1, %v510_v43, %v574_v0 }
  0x52   : > { %vm543_vm2 = vcmp.ge.f32.partialorder %v511_v1, 0.0  ;;  %v575_v48 = vmul.f32 0.01, %v511_v1  ;;  %639 = vst.msk [vmem:[%s855_s16 + $0xf0] sm:$0xff] %vm608_vm0, %v606_v47 }
  0x54   : > { %v607_v49 = vsel %vm543_vm2, %v511_v1, %v575_v48 }
  0x55   : > { %640 = vst.msk [vmem:[%s855_s16 + $0xf8] sm:$0xff] %vm608_vm0, %v607_v49 }
  0x56 PF: > { %s16_s21 = sadd.s32 1, %s742_s21  }
  0x57   : > { %p13_p4 = scmp.ge.s32.totalorder %s16_s21, 4  }
  0x59   :  { %15 = sbr.rel (!%p13_p4) target bundleno = 1 (0x1), region = 77 }

// kernel: res_block_forward.4
= control target key start
LH: loop header
LB: loop body
LE: loop exit
PB: predicated region body
PF: predicated region fallthrough
CT: control target
= control target key end

     0   :  { %s3633_s21 = smov 0   ;;  %s4848_s0 = inlined_call_operand.vmem [shape: f32[2,16,16,8], index: 0, kind: input, shape index: {}]   ;;  %s4849_s1 = inlined_call_operand.vmem [shape: f32[1,8], index: 1, kind: input, shape index: {}]   ;;  %s4850_s2 = inlined_call_operand.vmem [shape: f32[1,8], index: 2, kind: input, shape index: {}]   ;;  %s4851_s3 = inlined_call_operand.vmem [shape: f32[9,8,8], index: 3, kind: input, shape index: {}]   ;;  %s4852_s4 = inlined_call_operand.vmem [shape: f32[2,16,16,8], index: 4, kind: output, shape index: {0}]   ;;  %s4853_s5 = inlined_call_operand.vmem [shape: f32[2,1,8], index: 5, kind: output, shape index: {1}]   ;;  %s4854_s6 = inlined_call_operand.vmem [shape: f32[2,1,8], index: 6, kind: output, shape index: {2}]  }
   0x1 LB: > { %s3264_s22 = sadd.s32 4294967295, %s3595_s21   ;;  %p3268_p0 = scmp.ge.s32.totalorder %s3595_s21, 1  ;;  %s3595_s21 = sphi %s3633_s21, %s17_s21  }
   0x2   : > { %p217_p1 = scmp.lt.s32.totalorder %s3595_s21, 3 }
   0x4   : > { %p218_p2 = pnand %p3268_p0, %p217_p1 }
   0x6   : > { %221 = sbr.rel (%p218_p2) target bundleno = 757 (0x2f5), region = 36 }
   0xb   : > { %v3273_v0 = vld [vmem:[%s4851_s3 + $0x8] sm:$0xff]  ;;  %p253_p3 = scmp.lt.s32.totalorder %s3264_s22, 1  ;;  %v3338_v1 = vld [vmem:[%s4851_s3 + $0x10] sm:$0xff]  ;;  %vm269_vm0 = vcmask 64512   ;;  %v3371_v2 = vld [vmem:[%s4851_s3 + $0x18] sm:$0xff]  ;;  %v3597_v6 = vmov 0.0  }
   0xc   : > { %3573 = vmatpush.msra.mxu1 %v3273_v0  ;;  %3574 = vmatpush.msra.mxu2 %v3273_v0  ;;  %v576_v3 = vld [vmem:[%s4851_s3] sm:$0xff]  ;;  %270 = vst.msk [vmem:[#allocation2] sm:$0xff] %vm269_vm0, %v3597_v6  ;;  %vm272_vm1 = vcmask 58368  }
   0xd   : > { %s4960_s22 = smov (!%p253_p3, %s3264_s22), 1  ;;  %3575 = vmatpush.msra.mxu3 %v3273_v0  ;;  %v3404_v4 = vld [vmem:[%s4851_s3 + $0x20] sm:$0xff]  ;;  %722 = vmatpush.msra.mxu0 %v3273_v0  ;;  %271 = vst.msk [vmem:[#allocation2 + $0x8] sm:$0xff] %vm269_vm0, %v3597_v6 }
   0xe   : > { %1174 = vmatpush.msrb.mxu2 %v3338_v1  ;;  %v3661_v5 = vld [vmem:[%s4849_s1] ss:$0 sm:$0xff]  ;;  %931 = vmatpush.msrb.mxu1 %v576_v3  ;;  %s3571_s11 = sshll.u32 %s4960_s22, 8  ;;  %275 = vst.msk [vmem:[#allocation2 + $0x198] sm:$0xff] %vm269_vm0, %v3597_v6  ;;  %s265_s12 = scalar_lea.vmem %s4853_s5, %s4960_s22 }
   0xf   : > { %1449 = vmatpush.msrb.mxu3 %v3371_v2  ;;  %s3673_s14 = scalar_lea.vmem %s4848_s0, %s3571_s11  ;;  %v3678_v7 = vld [vmem:[%s4850_s2] ss:$0 sm:$0xff]  ;;  %1724 = vmatpush.msrb.mxu0 %v3404_v4  ;;  %276 = vst.msk [vmem:[#allocation2 + $0x1a0] sm:$0xff] %vm269_vm0, %v3597_v6  ;;  %s4603_s9 = scalar_lea.vmem %s4852_s4, %s3571_s11 }
  0x10   : > { %v318_v8 = vld [vmem:[%s3673_s14 + $0x30] sm:$0xff]  ;;  %v319_v14 = vld [vmem:[%s3673_s14 + $0x38] sm:$0xff]  ;;  %273 = vst.msk [vmem:[#allocation2 + $0x10] sm:$0x3] %vm272_vm1, %v3597_v6  ;;  %v320_v20 = vld [vmem:[%s3673_s14 + $0x40] sm:$0xff]  ;;  %s268_s15 = scalar_lea.vmem %s4854_s6, %s4960_s22 }
  0x11   : > { %v326_v9 = vld [vmem:[%s3673_s14 + $0x70] sm:$0xff]  ;;  %v354_v11 = vmul.f32 %v3661_v5, %v318_v8  ;;  %v327_v15 = vld [vmem:[%s3673_s14 + $0x78] sm:$0xff]  ;;  %v355_v17 = vmul.f32 %v3661_v5, %v319_v14  ;;  %v328_v21 = vld [vmem:[%s3673_s14 + $0x80] sm:$0xff]  ;;  %277 = vst.msk [vmem:[#allocation2 + $0x1a8] sm:$0x3] %vm272_vm1, %v3597_v6  ;;  %v356_v25 = vmul.f32 %v3661_v5, %v320_v20 }
  0x12   : > { %v334_v10 = vld [vmem:[%s3673_s14 + $0xb0] sm:$0xff]  ;;  %v362_v12 = vmul.f32 %v3661_v5, %v326_v9  ;;  %v335_v16 = vld [vmem:[%s3673_s14 + $0xb8] sm:$0xff]  ;;  %v363_v18 = vmul.f32 %v3661_v5, %v327_v15  ;;  %v364_v29 = vmul.f32 %v3661_v5, %v328_v21  ;;  %v336_v30 = vld [vmem:[%s3673_s14 + $0xc0] sm:$0xff] }
  0x13   : > { %v370_v13 = vmul.f32 %v3661_v5, %v334_v10  ;;  %v371_v19 = vmul.f32 %v3661_v5, %v335_v16  ;;  %v390_v22 = vadd.f32 %v3678_v7, %v354_v11  ;;  %v391_v26 = vadd.f32 %v3678_v7, %v355_v17  ;;  %v321_v33 = vld [vmem:[%s3673_s14 + $0x48] sm:$0xff]  ;;  %v312_v41 = vld [vmem:[%s3673_s14] sm:$0xff]  ;;  %v322_v0 = vld [vmem:[%s3673_s14 + $0x50] sm:$0xff] }
  0x14   : > { %v398_v23 = vadd.f32 %v3678_v7, %v362_v12  ;;  %v399_v27 = vadd.f32 %v3678_v7, %v363_v18  ;;  %v577_v39 = vld [vmem:[#allocation2 + $0x1] sm:$0xff]  ;;  %v392_v46 = vadd.f32 %v3678_v7, %v356_v25  ;;  %v400_v47 = vadd.f32 %v3678_v7, %v364_v29  ;;  %v330_v3 = vld [vmem:[%s3673_s14 + $0x90] sm:$0xff]  ;;  %v323_v17 = vld [vmem:[%s3673_s14 + $0x58] sm:$0xff] }
  0x15   : > { %v406_v24 = vadd.f32 %v3678_v7, %v370_v13  ;;  %v407_v28 = vadd.f32 %v3678_v7, %v371_v19  ;;  %vm422_vm2 = vcmp.ge.f32.partialorder %v390_v22, 0.0  ;;  %v454_v31 = vmul.f32 0.01, %v390_v22  ;;  %v329_v40 = vld [vmem:[%s3673_s14 + $0x88] sm:$0xff]  ;;  %3274 = vmatmul.msk.f32.vlgmr.msra.gmra.mxu0 %vm269_vm0, %v577_v39  ;;  %v338_v16 = vld [vmem:[%s3673_s14 + $0xd0] sm:$0xff] }
  0x16   : > { %vm430_vm3 = vcmp.ge.f32.partialorder %v398_v23, 0.0  ;;  %v462_v32 = vmul.f32 0.01, %v398_v23  ;;  %vm423_vm5 = vcmp.ge.f32.partialorder %v391_v26, 0.0  ;;  %v455_v35 = vmul.f32 0.01, %v391_v26 }
  0x17   : > { %vm438_vm4 = vcmp.ge.f32.partialorder %v406_v24, 0.0  ;;  %v470_v34 = vmul.f32 0.01, %v406_v24  ;;  %v486_v36 = vsel %vm422_vm2, %v390_v22, %v454_v31  ;;  %vm431_vm6 = vcmp.ge.f32.partialorder %v399_v27, 0.0  ;;  %v337_v53 = vld [vmem:[%s3673_s14 + $0xc8] sm:$0xff]  ;;  %v331_v22 = vld [vmem:[%s3673_s14 + $0x98] sm:$0xff] }
  0x18   : > { %v494_v37 = vsel %vm430_vm3, %v398_v23, %v462_v32  ;;  %v463_v38 = vmul.f32 0.01, %v399_v27  ;;  %518 = vst.msk [vmem:[#allocation2 + $0x61] sm:$0xff] %vm269_vm0, %v486_v36  ;;  %v487_v43 = vsel %vm423_vm5, %v391_v26, %v455_v35  ;;  %vm439_vm7 = vcmp.ge.f32.partialorder %v407_v28, 0.0  ;;  %v578_v61 = vld [vmem:[#allocation2 + $0x9] sm:$0xff] }
  0x19   : > { %v502_v42 = vsel %vm438_vm4, %v406_v24, %v470_v34  ;;  %v471_v44 = vmul.f32 0.01, %v407_v28  ;;  %526 = vst.msk [vmem:[#allocation2 + $0xc1] sm:$0xff] %vm269_vm0, %v494_v37  ;;  %v372_v48 = vmul.f32 %v3661_v5, %v336_v30  ;;  %v357_v50 = vmul.f32 %v3661_v5, %v321_v33  ;;  %v313_v11 = vld [vmem:[%s3673_s14 + $0x8] sm:$0xff]  ;;  %v314_v37 = vld [vmem:[%s3673_s14 + $0x10] sm:$0xff] }
  0x1a   : > { %v495_v45 = vsel %vm431_vm6, %v399_v27, %v463_v38  ;;  %534 = vst.msk [vmem:[#allocation2 + $0x121] sm:$0xff] %vm269_vm0, %v502_v42  ;;  %v365_v51 = vmul.f32 %v3661_v5, %v329_v40  ;;  %v348_v52 = vmul.f32 %v3661_v5, %v312_v41  ;;  %vm424_vm8 = vcmp.ge.f32.partialorder %v392_v46, 0.0  ;;  %v339_v38 = vld [vmem:[%s3673_s14 + $0xd8] sm:$0xff] }
  0x1b   : > { %v503_v49 = vsel %vm439_vm7, %v407_v28, %v471_v44  ;;  %519 = vst.msk [vmem:[#allocation2 + $0x69] sm:$0xff] %vm269_vm0, %v487_v43  ;;  %v456_v54 = vmul.f32 0.01, %v392_v46  ;;  %vm432_vm9 = vcmp.ge.f32.partialorder %v400_v47, 0.0  ;;  %v408_v55 = vadd.f32 %v3678_v7, %v372_v48  ;;  %v324_v43 = vld [vmem:[%s3673_s14 + $0x60] sm:$0xff] }
  0x1c   : > { %527 = vst.msk [vmem:[#allocation2 + $0xc9] sm:$0xff] %vm269_vm0, %v495_v45  ;;  %v464_v56 = vmul.f32 0.01, %v400_v47  ;;  %v393_v57 = vadd.f32 %v3678_v7, %v357_v50  ;;  %v401_v58 = vadd.f32 %v3678_v7, %v365_v51  ;;  %v384_v59 = vadd.f32 %v3678_v7, %v348_v52  ;;  %v332_v44 = vld [vmem:[%s3673_s14 + $0xa0] sm:$0xff] }
  0x1d   : > { %535 = vst.msk [vmem:[#allocation2 + $0x129] sm:$0xff] %vm269_vm0, %v503_v49  ;;  %v488_v60 = vsel %vm424_vm8, %v392_v46, %v456_v54  ;;  %vm440_vm10 = vcmp.ge.f32.partialorder %v408_v55, 0.0  ;;  %v472_v62 = vmul.f32 0.01, %v408_v55  ;;  %v373_v63 = vmul.f32 %v3661_v5, %v337_v53  ;;  %3275 = vmatmul.msk.f32.gmra.mxu0 %vm269_vm0, %v578_v61 }
  0x1e   : > { %520 = vst.msk [vmem:[#allocation2 + $0x79] sm:$0xff] %vm269_vm0, %v488_v60  ;;  %v496_v1 = vsel %vm432_vm9, %v400_v47, %v464_v56  ;;  %vm425_vm11 = vcmp.ge.f32.partialorder %v393_v57, 0.0  ;;  %v457_v2 = vmul.f32 0.01, %v393_v57  ;;  %vm433_vm12 = vcmp.ge.f32.partialorder %v401_v58, 0.0 }
  0x1f   : > { %v3736_v4 = vld [vmem:[#allocation2 + $0x61] sm:$0xff]  ;;  %528 = vst.msk [vmem:[#allocation2 + $0xd9] sm:$0xff] %vm269_vm0, %v496_v1  ;;  %v504_v8 = vsel %vm440_vm10, %v408_v55, %v472_v62  ;;  %v465_v9 = vmul.f32 0.01, %v401_v58  ;;  %vm416_vm13 = vcmp.ge.f32.partialorder %v384_v59, 0.0  ;;  %v409_v10 = vadd.f32 %v3678_v7, %v373_v63  ;;  %v315_v55 = vld [vmem:[%s3673_s14 + $0x18] sm:$0xff] }
  0x20   : > { %3282 = vmatmul.msk.f32.vlgmr.msra.gmra.mxu1 %vm269_vm0, %v3736_v4  ;;  %v3743_v12 = vld [vmem:[#allocation2 + $0xc1] sm:$0xff]  ;;  %536 = vst.msk [vmem:[#allocation2 + $0x139] sm:$0xff] %vm269_vm0, %v504_v8  ;;  %v489_v13 = vsel %vm425_vm11, %v393_v57, %v457_v2  ;;  %v448_v14 = vmul.f32 0.01, %v384_v59  ;;  %v358_v15 = vmul.f32 %v3661_v5, %v322_v0  ;;  %v366_v21 = vmul.f32 %v3661_v5, %v330_v3 }
  0x21   : > { %3290 = vmatmul.msk.f32.vlgmr.msra.gmra.mxu2 %vm269_vm0, %v3743_v12  ;;  %v601_v18 = vld [vmem:[#allocation2 + $0x121] sm:$0xff]  ;;  %521 = vst.msk [vmem:[#allocation2 + $0x81] sm:$0xff] %vm269_vm0, %v489_v13  ;;  %v497_v19 = vsel %vm433_vm12, %v401_v58, %v465_v9  ;;  %vm441_vm14 = vcmp.ge.f32.partialorder %v409_v10, 0.0  ;;  %v473_v20 = vmul.f32 0.01, %v409_v10  ;;  %v349_v25 = vmul.f32 %v3661_v5, %v313_v11 }
  0x22   : > { %3298 = vmatmul.msk.f32.vlgmr.msra.gmra.mxu3 %vm269_vm0, %v601_v18  ;;  %529 = vst.msk [vmem:[#allocation2 + $0xe1] sm:$0xff] %vm269_vm0, %v497_v19  ;;  %v480_v23 = vsel %vm416_vm13, %v384_v59, %v448_v14  ;;  %v394_v24 = vadd.f32 %v3678_v7, %v358_v15  ;;  %v402_v27 = vadd.f32 %v3678_v7, %v366_v21  ;;  %v3768_v33 = vld [vmem:[#allocation2 + $0x69] sm:$0xff]  ;;  %v340_v0 = vld [vmem:[%s3673_s14 + $0xe0] sm:$0xff] }
  0x23   : > { %512 = vst.msk [vmem:[#allocation2 + $0x19] sm:$0xff] %vm269_vm0, %v480_v23  ;;  %v505_v26 = vsel %vm441_vm14, %v409_v10, %v473_v20  ;;  %v374_v28 = vmul.f32 %v3661_v5, %v338_v16  ;;  %v359_v29 = vmul.f32 %v3661_v5, %v323_v17  ;;  %v385_v31 = vadd.f32 %v3678_v7, %v349_v25  ;;  %v3774_v39 = vld [vmem:[#allocation2 + $0xc9] sm:$0xff]  ;;  %v316_v17 = vld [vmem:[%s3673_s14 + $0x20] sm:$0xff] }
  0x24   : > { %537 = vst.msk [vmem:[#allocation2 + $0x141] sm:$0xff] %vm269_vm0, %v505_v26  ;;  %vm426_vm15 = vcmp.ge.f32.partialorder %v394_v24, 0.0  ;;  %v458_v30 = vmul.f32 0.01, %v394_v24  ;;  %v367_v32 = vmul.f32 %v3661_v5, %v331_v22  ;;  %vm434_vm1 = vcmp.ge.f32.partialorder %v402_v27, 0.0  ;;  %v602_v45 = vld [vmem:[#allocation2 + $0x129] sm:$0xff] }
  0x25   : > { %v466_v34 = vmul.f32 0.01, %v402_v27  ;;  %v410_v35 = vadd.f32 %v3678_v7, %v374_v28  ;;  %v395_v36 = vadd.f32 %v3678_v7, %v359_v29  ;;  %vm417_vm2 = vcmp.ge.f32.partialorder %v385_v31, 0.0  ;;  %v3797_v60 = vld [vmem:[#allocation2 + $0x79] sm:$0xff]  ;;  %v325_v8 = vld [vmem:[%s3673_s14 + $0x68] sm:$0xff] }
  0x26   : > { %v490_v40 = vsel %vm426_vm15, %v394_v24, %v458_v30  ;;  %v449_v41 = vmul.f32 0.01, %v385_v31  ;;  %v403_v42 = vadd.f32 %v3678_v7, %v367_v32  ;;  %v350_v50 = vmul.f32 %v3661_v5, %v314_v37  ;;  %v333_v9 = vld [vmem:[%s3673_s14 + $0xa8] sm:$0xff]  ;;  %v3811_v13 = vld [vmem:[#allocation2 + $0xd9] sm:$0xff] }
  0x27   : > { %522 = vst.msk [vmem:[#allocation2 + $0x91] sm:$0xff] %vm269_vm0, %v490_v40  ;;  %v498_v46 = vsel %vm434_vm1, %v402_v27, %v466_v34  ;;  %vm442_vm3 = vcmp.ge.f32.partialorder %v410_v35, 0.0  ;;  %v474_v47 = vmul.f32 0.01, %v410_v35  ;;  %vm427_vm4 = vcmp.ge.f32.partialorder %v395_v36, 0.0  ;;  %v603_v18 = vld [vmem:[#allocation2 + $0x139] sm:$0xff] }
  0x28   : > { %3283 = vmatmul.msk.f32.gmra.mxu1 %vm269_vm0, %v3768_v33  ;;  %530 = vst.msk [vmem:[#allocation2 + $0xf1] sm:$0xff] %vm269_vm0, %v498_v46  ;;  %v481_v48 = vsel %vm417_vm2, %v385_v31, %v449_v41  ;;  %v459_v49 = vmul.f32 0.01, %v395_v36  ;;  %vm435_vm5 = vcmp.ge.f32.partialorder %v403_v42, 0.0  ;;  %v467_v52 = vmul.f32 0.01, %v403_v42 }
  0x29   : > { %3291 = vmatmul.msk.f32.gmra.mxu2 %vm269_vm0, %v3774_v39  ;;  %513 = vst.msk [vmem:[#allocation2 + $0x21] sm:$0xff] %vm269_vm0, %v481_v48  ;;  %v506_v51 = vsel %vm442_vm3, %v410_v35, %v474_v47  ;;  %v375_v53 = vmul.f32 %v3661_v5, %v339_v38  ;;  %v360_v54 = vmul.f32 %v3661_v5, %v324_v43  ;;  %v341_v23 = vld [vmem:[%s3673_s14 + $0xe8] sm:$0xff]  ;;  %vm279_vm2 = vcmask 57344  }
  0x2a   : > { %3299 = vmatmul.msk.f32.gmra.mxu3 %vm269_vm0, %v602_v45  ;;  %v3791_v56 = vld [vmem:[#allocation2 + $0x19] sm:$0xff]  ;;  %538 = vst.msk [vmem:[#allocation2 + $0x151] sm:$0xff] %vm269_vm0, %v506_v51  ;;  %v491_v57 = vsel %vm427_vm4, %v395_v36, %v459_v49  ;;  %v386_v58 = vadd.f32 %v3678_v7, %v350_v50  ;;  %v368_v59 = vmul.f32 %v3661_v5, %v332_v44  ;;  %v317_v41 = vld [vmem:[%s3673_s14 + $0x28] sm:$0xff] }
  0x2b   : > { %3276 = vmatmul.msk.f32.gmra.mxu0 %vm269_vm0, %v3791_v56  ;;  %523 = vst.msk [vmem:[#allocation2 + $0x99] sm:$0xff] %vm269_vm0, %v491_v57  ;;  %v499_v61 = vsel %vm435_vm5, %v403_v42, %v467_v52  ;;  %v411_v62 = vadd.f32 %v3678_v7, %v375_v53  ;;  %v396_v63 = vadd.f32 %v3678_v7, %v360_v54  ;;  %v3841_v42 = vld [vmem:[#allocation2 + $0x81] sm:$0xff] }
  0x2c   : > { %531 = vst.msk [vmem:[#allocation2 + $0xf9] sm:$0xff] %vm269_vm0, %v499_v61  ;;  %vm418_vm6 = vcmp.ge.f32.partialorder %v386_v58, 0.0  ;;  %v450_v1 = vmul.f32 0.01, %v386_v58  ;;  %v404_v2 = vadd.f32 %v3678_v7, %v368_v59  ;;  %v351_v3 = vmul.f32 %v3661_v5, %v315_v55  ;;  %v3844_v46 = vld [vmem:[#allocation2 + $0xe1] sm:$0xff]  ;;  %v3470_v61 = vld [vmem:[%s4851_s3 + $0x30] sm:$0xff] }
  0x2d   : > { %vm443_vm7 = vcmp.ge.f32.partialorder %v411_v62, 0.0  ;;  %v475_v10 = vmul.f32 0.01, %v411_v62  ;;  %vm428_vm8 = vcmp.ge.f32.partialorder %v396_v63, 0.0  ;;  %v460_v11 = vmul.f32 0.01, %v396_v63  ;;  %2275 = vmatpush.msra.mxu2 %v3470_v61 }
  0x2e   : > { %v482_v14 = vsel %vm418_vm6, %v386_v58, %v450_v1  ;;  %vm436_vm9 = vcmp.ge.f32.partialorder %v404_v2, 0.0  ;;  %v468_v15 = vmul.f32 0.01, %v404_v2  ;;  %v387_v16 = vadd.f32 %v3678_v7, %v351_v3  ;;  %v604_v50 = vld [vmem:[#allocation2 + $0x141] sm:$0xff]  ;;  %280 = vst.msk [vmem:[#allocation2 + $0x18] sm:$0x1] %vm279_vm2, %v3597_v6 }
  0x2f   : > { %514 = vst.msk [vmem:[#allocation2 + $0x31] sm:$0xff] %vm269_vm0, %v482_v14  ;;  %v507_v19 = vsel %vm443_vm7, %v411_v62, %v475_v10  ;;  %v492_v20 = vsel %vm428_vm8, %v396_v63, %v460_v11  ;;  %v376_v21 = vmul.f32 %v3661_v5, %v340_v0  ;;  %v361_v22 = vmul.f32 %v3661_v5, %v325_v8  ;;  %v3864_v55 = vld [vmem:[#allocation2 + $0x91] sm:$0xff]  ;;  %v3437_v63 = vld [vmem:[%s4851_s3 + $0x28] sm:$0xff]  ;;  %v3536_v8 = vld [vmem:[%s4851_s3 + $0x40] sm:$0xff] }
  0x30   : > { %3284 = vmatmul.msk.f32.gmra.mxu1 %vm269_vm0, %v3797_v60  ;;  %v3821_v24 = vld [vmem:[#allocation2 + $0x21] sm:$0xff]  ;;  %539 = vst.msk [vmem:[#allocation2 + $0x159] sm:$0xff] %vm269_vm0, %v507_v19  ;;  %v500_v25 = vsel %vm436_vm9, %v404_v2, %v468_v15  ;;  %vm419_vm10 = vcmp.ge.f32.partialorder %v387_v16, 0.0  ;;  %v451_v26 = vmul.f32 0.01, %v387_v16  ;;  %v369_v27 = vmul.f32 %v3661_v5, %v333_v9  ;;  %v3868_v57 = vld [vmem:[#allocation2 + $0xf1] sm:$0xff]  ;;  %2825 = vmatpush.msra.mxu0 %v3536_v8 }
  0x31   : > { %3292 = vmatmul.msk.f32.gmra.mxu2 %vm269_vm0, %v3811_v13  ;;  %524 = vst.msk [vmem:[#allocation2 + $0xa9] sm:$0xff] %vm269_vm0, %v492_v20  ;;  %v412_v28 = vadd.f32 %v3678_v7, %v376_v21  ;;  %v397_v29 = vadd.f32 %v3678_v7, %v361_v22  ;;  %v352_v30 = vmul.f32 %v3661_v5, %v316_v17  ;;  %v3872_v58 = vld [vmem:[#allocation2 + $0x151] sm:$0xff]  ;;  %v1029_v19 = vld [vmem:[#allocation2 + $0x2] sm:$0xff] }
  0x32   : > { %3300 = vmatmul.msk.f32.gmra.mxu3 %vm269_vm0, %v603_v18  ;;  %532 = vst.msk [vmem:[#allocation2 + $0x109] sm:$0xff] %vm269_vm0, %v500_v25  ;;  %v483_v31 = vsel %vm419_vm10, %v387_v16, %v451_v26  ;;  %v405_v32 = vadd.f32 %v3678_v7, %v369_v27  ;;  %v377_v34 = vmul.f32 %v3661_v5, %v341_v23  ;;  %v3503_v62 = vld [vmem:[%s4851_s3 + $0x38] sm:$0xff]  ;;  %v544_v18 = vld [vmem:[#allocation2] sm:$0xff]  ;;  %v545_v21 = vld [vmem:[#allocation2 + $0x8] sm:$0xff] }
  0x33   : > { %3277 = vmatmul.msk.f32.gmra.mxu0 %vm269_vm0, %v3821_v24  ;;  %515 = vst.msk [vmem:[#allocation2 + $0x39] sm:$0xff] %vm269_vm0, %v483_v31  ;;  %vm444_vm11 = vcmp.ge.f32.partialorder %v412_v28, 0.0  ;;  %v476_v35 = vmul.f32 0.01, %v412_v28  ;;  %vm429_vm12 = vcmp.ge.f32.partialorder %v397_v29, 0.0  ;;  %v388_v36 = vadd.f32 %v3678_v7, %v352_v30  ;;  %2550 = vmatpush.msra.mxu3 %v3503_v62  ;;  %v3905_v0 = vld [vmem:[#allocation2 + $0x99] sm:$0xff] }
  0x34   : > { %v461_v37 = vmul.f32 0.01, %v397_v29  ;;  %vm437_vm13 = vcmp.ge.f32.partialorder %v405_v32, 0.0  ;;  %v469_v38 = vmul.f32 0.01, %v405_v32  ;;  %v413_v40 = vadd.f32 %v3678_v7, %v377_v34  ;;  %1999 = vmatpush.msra.mxu1 %v3437_v63  ;;  %v3909_v1 = vld [vmem:[#allocation2 + $0xf9] sm:$0xff] }
  0x35   : > { %v508_v43 = vsel %vm444_vm11, %v412_v28, %v476_v35  ;;  %vm420_vm14 = vcmp.ge.f32.partialorder %v388_v36, 0.0  ;;  %v452_v44 = vmul.f32 0.01, %v388_v36  ;;  %v353_v45 = vmul.f32 %v3661_v5, %v317_v41  ;;  %281 = vst.msk [vmem:[#allocation2 + $0x30] sm:$0x1] %vm279_vm2, %v3597_v6  ;;  %v1304_v20 = vld [vmem:[#allocation2 + $0x18] sm:$0xff] }
  0x36   : > { %540 = vst.msk [vmem:[#allocation2 + $0x169] sm:$0xff] %vm269_vm0, %v508_v43  ;;  %v493_v47 = vsel %vm429_vm12, %v397_v29, %v461_v37  ;;  %v501_v48 = vsel %vm437_vm13, %v405_v32, %v469_v38  ;;  %vm445_vm15 = vcmp.ge.f32.partialorder %v413_v40, 0.0  ;;  %v477_v49 = vmul.f32 0.01, %v413_v40  ;;  %v3851_v53 = vld [vmem:[#allocation2 + $0x31] sm:$0xff]  ;;  %v1305_v23 = vld [vmem:[#allocation2 + $0x20] sm:$0xff] }
  0x37   : > { %525 = vst.msk [vmem:[#allocation2 + $0xb1] sm:$0xff] %vm269_vm0, %v493_v47  ;;  %v484_v51 = vsel %vm420_vm14, %v388_v36, %v452_v44  ;;  %v389_v52 = vadd.f32 %v3678_v7, %v353_v45  ;;  %v3913_v2 = vld [vmem:[#allocation2 + $0x159] sm:$0xff]  ;;  %v1030_v22 = vld [vmem:[#allocation2 + $0xa] sm:$0xff] }
  0x38   : > { %3285 = vmatmul.msk.f32.gmra.mxu1 %vm269_vm0, %v3841_v42  ;;  %533 = vst.msk [vmem:[#allocation2 + $0x111] sm:$0xff] %vm269_vm0, %v501_v48  ;;  %v509_v5 = vsel %vm445_vm15, %v413_v40, %v477_v49  ;;  %v3940_v9 = vld [vmem:[#allocation2 + $0xa9] sm:$0xff]  ;;  %v4102_v43 = vld [vmem:[#allocation2 + $0x80] sm:$0xff]  ;;  %v4160_v62 = vld [vmem:[#allocation2 + $0x92] sm:$0xff] }
  0x39   : > { %3293 = vmatmul.msk.f32.gmra.mxu2 %vm269_vm0, %v3844_v46  ;;  %516 = vst.msk [vmem:[#allocation2 + $0x49] sm:$0xff] %vm269_vm0, %v484_v51  ;;  %vm421_vm1 = vcmp.ge.f32.partialorder %v389_v52, 0.0  ;;  %v453_v54 = vmul.f32 0.01, %v389_v52  ;;  %v3944_v10 = vld [vmem:[#allocation2 + $0x109] sm:$0xff]  ;;  %v4120_v48 = vld [vmem:[#allocation2 + $0x7a] sm:$0xff] }
  0x3a   : > { %3301 = vmatmul.msk.f32.gmra.mxu3 %vm269_vm0, %v604_v50  ;;  %541 = vst.msk [vmem:[#allocation2 + $0x171] sm:$0xff] %vm269_vm0, %v509_v5  ;;  %v3878_v59 = vld [vmem:[#allocation2 + $0x39] sm:$0xff] }
  0x3b   : > { %3278 = vmatmul.msk.f32.gmra.mxu0 %vm269_vm0, %v3851_v53  ;;  %v485_v7 = vsel %vm421_vm1, %v389_v52, %v453_v54  ;;  %282 = vst.msk [vmem:[#allocation2 + $0x48] sm:$0x1] %vm279_vm2, %v3597_v6  ;;  %v4020_v25 = vld [vmem:[#allocation2 + $0x38] sm:$0xff] }
  0x3c   : > { %517 = vst.msk [vmem:[#allocation2 + $0x51] sm:$0xff] %vm269_vm0, %v485_v7  ;;  %v4029_v26 = vld [vmem:[#allocation2 + $0x32] sm:$0xff] }
  0x3d   : > { %283 = vst.msk [vmem:[#allocation2 + $0x60] sm:$0x1] %vm279_vm2, %v3597_v6  ;;  %v3948_v11 = vld [vmem:[#allocation2 + $0x169] sm:$0xff]  ;;  %v4142_v54 = vld [vmem:[#allocation2 + $0x98] sm:$0xff] }
  0x3e   : > { %284 = vst.msk [vmem:[#allocation2 + $0x78] sm:$0x1] %vm279_vm2, %v3597_v6  ;;  %v3969_v15 = vld [vmem:[#allocation2 + $0xb1] sm:$0xff] }
  0x3f   : > { %285 = vst.msk [vmem:[#allocation2 + $0x90] sm:$0x1] %vm279_vm2, %v3597_v6  ;;  %v3973_v16 = vld [vmem:[#allocation2 + $0x111] sm:$0xff] }
  0x40   : > { %3286 = vmatmul.msk.f32.gmra.mxu1 %vm269_vm0, %v3864_v55  ;;  %286 = vst.msk [vmem:[#allocation2 + $0xa8] sm:$0x1] %vm279_vm2, %v3597_v6  ;;  %v3919_v3 = vld [vmem:[#allocation2 + $0x49] sm:$0xff] }
  0x41   : > { %3294 = vmatmul.msk.f32.gmra.mxu2 %vm269_vm0, %v3868_v57  ;;  %287 = vst.msk [vmem:[#allocation2 + $0xc0] sm:$0x1] %vm279_vm2, %v3597_v6  ;;  %v3977_v17 = vld [vmem:[#allocation2 + $0x171] sm:$0xff] }
  0x42   : > { %3302 = vmatmul.msk.f32.gmra.mxu3 %vm269_vm0, %v3872_v58  ;;  %288 = vst.msk [vmem:[#allocation2 + $0xd8] sm:$0x1] %vm279_vm2, %v3597_v6  ;;  %v4031_v27 = vld [vmem:[#allocation2 + $0x48] sm:$0xff] }
  0x43   : > { %3279 = vmatmul.msk.f32.gmra.mxu0 %vm269_vm0, %v3878_v59  ;;  %289 = vst.msk [vmem:[#allocation2 + $0xf0] sm:$0x1] %vm279_vm2, %v3597_v6  ;;  %v584_v14 = vld [vmem:[#allocation2 + $0x51] sm:$0xff] }
  0x44   : > { %290 = vst.msk [vmem:[#allocation2 + $0x108] sm:$0x1] %vm279_vm2, %v3597_v6  ;;  %v4042_v29 = vld [vmem:[#allocation2 + $0x50] sm:$0xff]  ;;  %v4054_v31 = vld [vmem:[#allocation2 + $0x60] sm:$0xff] }
  0x45   : > { %291 = vst.msk [vmem:[#allocation2 + $0x120] sm:$0x1] %vm279_vm2, %v3597_v6  ;;  %v4052_v30 = vld [vmem:[#allocation2 + $0x4a] sm:$0xff]  ;;  %v4084_v37 = vld [vmem:[#allocation2 + $0x78] sm:$0xff] }
  0x46   : > { %292 = vst.msk [vmem:[#allocation2 + $0x138] sm:$0x1] %vm279_vm2, %v3597_v6  ;;  %v4122_v49 = vld [vmem:[#allocation2 + $0x90] sm:$0xff] }
  0x47   : > { %293 = vst.msk [vmem:[#allocation2 + $0x150] sm:$0x1] %vm279_vm2, %v3597_v6  ;;  %v4162_v63 = vld [vmem:[#allocation2 + $0xa8] sm:$0xff] }
  0x48   : > { %3287 = vmatmul.msk.f32.gmra.mxu1 %vm269_vm0, %v3905_v0  ;;  %294 = vst.msk [vmem:[#allocation2 + $0x168] sm:$0x1] %vm279_vm2, %v3597_v6 }
  0x49   : > { %3295 = vmatmul.msk.f32.gmra.mxu2 %vm269_vm0, %v3909_v1  ;;  %295 = vst.msk [vmem:[#allocation2 + $0x180] sm:$0x1] %vm279_vm2, %v3597_v6 }
  0x4a   : > { %3303 = vmatmul.msk.f32.gmra.mxu3 %vm269_vm0, %v3913_v2  ;;  %296 = vst.msk [vmem:[#allocation2 + $0x29] sm:$0x1] %vm279_vm2, %v3597_v6 }
  0x4b   : > { %3280 = vmatmul.msk.f32.gmra.mxu0 %vm269_vm0, %v3919_v3  ;;  %297 = vst.msk [vmem:[#allocation2 + $0x41] sm:$0x1] %vm279_vm2, %v3597_v6 }
  0x4c   : > { %298 = vst.msk [vmem:[#allocation2 + $0x59] sm:$0x1] %vm279_vm2, %v3597_v6 }
  0x4d   : > { %299 = vst.msk [vmem:[#allocation2 + $0x71] sm:$0x1] %vm279_vm2, %v3597_v6 }
  0x4e   : > { %300 = vst.msk [vmem:[#allocation2 + $0x89] sm:$0x1] %vm279_vm2, %v3597_v6 }
  0x4f   : > { %301 = vst.msk [vmem:[#allocation2 + $0xa1] sm:$0x1] %vm279_vm2, %v3597_v6 }
  0x50   : > { %3288 = vmatmul.msk.f32.gmra.mxu1 %vm269_vm0, %v3940_v9  ;;  %302 = vst.msk [vmem:[#allocation2 + $0xb9] sm:$0x1] %vm279_vm2, %v3597_v6 }
  0x51   : > { %3296 = vmatmul.msk.f32.gmra.mxu2 %vm269_vm0, %v3944_v10  ;;  %303 = vst.msk [vmem:[#allocation2 + $0xd1] sm:$0x1] %vm279_vm2, %v3597_v6 }
  0x52   : > { %3304 = vmatmul.msk.f32.gmra.mxu3 %vm269_vm0, %v3948_v11  ;;  %304 = vst.msk [vmem:[#allocation2 + $0xe9] sm:$0x1] %vm279_vm2, %v3597_v6  ;;  %v4040_v28 = vld [vmem:[#allocation2 + $0x3a] sm:$0xff] }
  0x53   : > { %3281 = vmatmul.msk.f32.gmra.mxu0 %vm269_vm0, %v584_v14  ;;  %305 = vst.msk [vmem:[#allocation2 + $0x101] sm:$0x1] %vm279_vm2, %v3597_v6  ;;  %v4066_v34 = vld [vmem:[#allocation2 + $0x52] sm:$0xff] }
  0x54   : > { %306 = vst.msk [vmem:[#allocation2 + $0x119] sm:$0x1] %vm279_vm2, %v3597_v6  ;;  %v4100_v41 = vld [vmem:[#allocation2 + $0x6a] sm:$0xff] }
  0x55   : > { %307 = vst.msk [vmem:[#allocation2 + $0x131] sm:$0x1] %vm279_vm2, %v3597_v6  ;;  %v4140_v5 = vld [vmem:[#allocation2 + $0x82] sm:$0xff] }
  0x56   : > { %308 = vst.msk [vmem:[#allocation2 + $0x149] sm:$0x1] %vm279_vm2, %v3597_v6 }
  0x57   : > { %309 = vst.msk [vmem:[#allocation2 + $0x161] sm:$0x1] %vm279_vm2, %v3597_v6 }
  0x58   : > { %3289 = vmatmul.msk.f32.gmra.mxu1 %vm269_vm0, %v3969_v15  ;;  %310 = vst.msk [vmem:[#allocation2 + $0x179] sm:$0x1] %vm279_vm2, %v3597_v6 }
  0x59   : > { %3297 = vmatmul.msk.f32.gmra.mxu2 %vm269_vm0, %v3973_v16  ;;  %311 = vst.msk [vmem:[#allocation2 + $0x191] sm:$0x1] %vm279_vm2, %v3597_v6  ;;  %v4007_v6 = vld [vmem:[#allocation2 + $0x1a] sm:$0xff] }
  0x5a   : > { %3305 = vmatmul.msk.f32.gmra.mxu3 %vm269_vm0, %v3977_v17  ;;  %4882 = vst [vmem:[#allocation4_spill] sm:$0xff] %v4102_v43 }
  0x5b   : > { %3405 = vmatmul.msk.f32.vlgmr.msrb.gmra.mxu0 %vm269_vm0, %v3791_v56  ;;  %v4009_v56 = vld [vmem:[#allocation2 + $0x30] sm:$0xff]  ;;  %4884 = vst [vmem:[#allocation6_spill] sm:$0xff] %v4122_v49 }
  0x5c   : > { %4886 = vst [vmem:[#allocation8_spill] sm:$0xff] %v4142_v54 }
  0x5d   : > { %4888 = vst [vmem:[#allocation10_spill] sm:$0xff] %v4160_v62 }
  0x5e   : > { %4889 = vst [vmem:[#allocation11_spill] sm:$0xff] %v4162_v63 }
  0x60   : > { %3306 = vmatmul.msk.f32.vlgmr.msrb.gmra.mxu1 %vm269_vm0, %v544_v18  ;;  %v4182_v18 = vld [vmem:[#allocation2 + $0xb0] sm:$0xff] }
  0x61   : > { %3339 = vmatmul.msk.f32.vlgmr.msrb.gmra.mxu2 %vm269_vm0, %v1029_v19  ;;  %4892 = vst [vmem:[#allocation14_spill] sm:$0xff] %v4182_v18 }
  0x62   : > { %3372 = vmatmul.msk.f32.vlgmr.msrb.gmra.mxu3 %vm269_vm0, %v1304_v20 }
  0x63   : > { %3406 = vmatmul.msk.f32.gmra.mxu0 %vm269_vm0, %v3821_v24  ;;  %v4018_v24 = vld [vmem:[#allocation2 + $0x22] sm:$0xff] }
  0x68   : > { %3307 = vmatmul.msk.f32.gmra.mxu1 %vm269_vm0, %v545_v21 }
  0x69   : > { %3340 = vmatmul.msk.f32.gmra.mxu2 %vm269_vm0, %v1030_v22  ;;  %v4200_v22 = vld [vmem:[#allocation2 + $0xaa] sm:$0xff] }
  0x6a   : > { %3373 = vmatmul.msk.f32.gmra.mxu3 %vm269_vm0, %v1305_v23  ;;  %4894 = vst [vmem:[#allocation16_spill] sm:$0xff] %v4200_v22 }
  0x6b   : > { %3407 = vmatmul.msk.f32.gmra.mxu0 %vm269_vm0, %v3851_v53 }
  0x70   : > { %3308 = vmatmul.msk.f32.gmra.mxu1 %vm269_vm0, %v1304_v20 }
  0x71   : > { %3341 = vmatmul.msk.f32.gmra.mxu2 %vm269_vm0, %v4007_v6 }
  0x72   : > { %3374 = vmatmul.msk.f32.gmra.mxu3 %vm269_vm0, %v4009_v56 }
  0x73   : > { %3408 = vmatmul.msk.f32.gmra.mxu0 %vm269_vm0, %v3878_v59 }
  0x78   : > { %3309 = vmatmul.msk.f32.gmra.mxu1 %vm269_vm0, %v1305_v23  ;;  %v4202_v23 = vld [vmem:[#allocation2 + $0xc0] sm:$0xff] }
  0x79   : > { %3342 = vmatmul.msk.f32.gmra.mxu2 %vm269_vm0, %v4018_v24  ;;  %4895 = vst [vmem:[#allocation17_spill] sm:$0xff] %v4202_v23 }
  0x7a   : > { %3375 = vmatmul.msk.f32.gmra.mxu3 %vm269_vm0, %v4020_v25 }
  0x7b   : > { %3409 = vmatmul.msk.f32.gmra.mxu0 %vm269_vm0, %v3919_v3 }
  0x80   : > { %3310 = vmatmul.msk.f32.gmra.mxu1 %vm269_vm0, %v4009_v56 }
  0x81   : > { %3343 = vmatmul.msk.f32.gmra.mxu2 %vm269_vm0, %v4029_v26 }
  0x82   : > { %3376 = vmatmul.msk.f32.gmra.mxu3 %vm269_vm0, %v4031_v27 }
  0x83   : > { %3410 = vmatmul.msk.f32.gmra.mxu0 %vm269_vm0, %v584_v14  ;;  %v4180_v14 = vld [vmem:[#allocation2 + $0x9a] sm:$0xff] }
  0x84   : > { %4891 = vst [vmem:[#allocation13_spill] sm:$0xff] %v4180_v14 }
  0x88   : > { %3311 = vmatmul.msk.f32.gmra.mxu1 %vm269_vm0, %v4020_v25 }
  0x89   : > { %3344 = vmatmul.msk.f32.gmra.mxu2 %vm269_vm0, %v4040_v28 }
  0x8a   : > { %3377 = vmatmul.msk.f32.gmra.mxu3 %vm269_vm0, %v4042_v29 }
  0x8b   : > { %3411 = vmatmul.msk.f32.gmra.mxu0 %vm269_vm0, %v3736_v4  ;;  %v4068_v4 = vld [vmem:[#allocation2 + $0x68] sm:$0xff] }
  0x90   : > { %3312 = vmatmul.msk.f32.gmra.mxu1 %vm269_vm0, %v4031_v27 }
  0x91   : > { %3345 = vmatmul.msk.f32.gmra.mxu2 %vm269_vm0, %v4052_v30 }
  0x92   : > { %3378 = vmatmul.msk.f32.gmra.mxu3 %vm269_vm0, %v4054_v31  ;;  %v4064_v32 = vpop.f32.mrf.mxu0 }
  0x93   : > { %3412 = vmatmul.msk.f32.gmra.mxu0 %vm269_vm0, %v3768_v33  ;;  %v4080_v33 = vld [vmem:[#allocation2 + $0x62] sm:$0xff] }
  0x98   : > { %3313 = vmatmul.msk.f32.gmra.mxu1 %vm269_vm0, %v4042_v29 }
  0x99   : > { %3346 = vmatmul.msk.f32.gmra.mxu2 %vm269_vm0, %v4066_v34 }
  0x9a   : > { %3379 = vmatmul.msk.f32.gmra.mxu3 %vm269_vm0, %v4068_v4  ;;  %v4082_v36 = vpop.f32.mrf.mxu0 }
  0x9b   : > { %3413 = vmatmul.msk.f32.gmra.mxu0 %vm269_vm0, %v3797_v60 }
  0x9d   : > { %v4078_v35 = vpop.f32.mrf.mxu1 }
  0xa0   : > { %3314 = vmatmul.msk.f32.gmra.mxu1 %vm269_vm0, %v4054_v31 }
  0xa1   : > { %3347 = vmatmul.msk.f32.gmra.mxu2 %vm269_vm0, %v4080_v33 }
  0xa2   : > { %3380 = vmatmul.msk.f32.gmra.mxu3 %vm269_vm0, %v4084_v37 }
  0xa3   : > { %3414 = vmatmul.msk.f32.gmra.mxu0 %vm269_vm0, %v3841_v42 }
  0xa4   : > { %v4094_v60 = vpop.f32.mrf.mxu2 }
  0xa5   : > { %v4096_v38 = vpop.f32.mrf.mxu1  ;;  %v4098_v40 = vpop.f32.mrf.mxu3 }
  0xa6   : > { %4881 = vst [vmem:[#allocation3_spill] sm:$0xff] %v4098_v40 }
  0xa8   : > { %3315 = vmatmul.msk.f32.gmra.mxu1 %vm269_vm0, %v4068_v4  ;;  %v4106_v44 = vpop.f32.mrf.mxu0 }
  0xa9   : > { %3348 = vmatmul.msk.f32.gmra.mxu2 %vm269_vm0, %v4100_v41 }
  0xaa   : > { %3381 = vmatmul.msk.f32.gmra.mxu3 %vm269_vm0, %v4102_v43 }
  0xab   : > { %3415 = vmatmul.msk.f32.gmra.mxu0 %vm269_vm0, %v3864_v55 }
  0xac   : > { %v4114_v42 = vpop.f32.mrf.mxu2 }
  0xad   : > { %v4116_v45 = vpop.f32.mrf.mxu1  ;;  %v4118_v47 = vpop.f32.mrf.mxu3 }
  0xae   : > { %4883 = vst [vmem:[#allocation5_spill] sm:$0xff] %v4118_v47 }
  0xb0   : > { %3316 = vmatmul.msk.f32.gmra.mxu1 %vm269_vm0, %v4084_v37  ;;  %v4126_v50 = vpop.f32.mrf.mxu0 }
  0xb1   : > { %3349 = vmatmul.msk.f32.gmra.mxu2 %vm269_vm0, %v4120_v48 }
  0xb2   : > { %3382 = vmatmul.msk.f32.gmra.mxu3 %vm269_vm0, %v4122_v49 }
  0xb3   : > { %3416 = vmatmul.msk.f32.gmra.mxu0 %vm269_vm0, %v3905_v0 }
  0xb4   : > { %v4134_v51 = vpop.f32.mrf.mxu2 }
  0xb5   : > { %v4136_v52 = vpop.f32.mrf.mxu1  ;;  %v4138_v53 = vpop.f32.mrf.mxu3 }
  0xb6   : > { %4885 = vst [vmem:[#allocation7_spill] sm:$0xff] %v4138_v53  ;;  %v4220_v53 = vld [vmem:[#allocation2 + $0xb2] sm:$0xff] }
  0xb7   : > { %4897 = vst [vmem:[#allocation19_spill] sm:$0xff] %v4220_v53 }
  0xb8   : > { %3317 = vmatmul.msk.f32.gmra.mxu1 %vm269_vm0, %v4102_v43  ;;  %v4146_v7 = vpop.f32.mrf.mxu0 }
  0xb9   : > { %3350 = vmatmul.msk.f32.gmra.mxu2 %vm269_vm0, %v4140_v5 }
  0xba   : > { %3383 = vmatmul.msk.f32.gmra.mxu3 %vm269_vm0, %v4142_v54 }
  0xbb   : > { %3417 = vmatmul.msk.f32.gmra.mxu0 %vm269_vm0, %v3940_v9 }
  0xbc   : > { %v4154_v55 = vpop.f32.mrf.mxu2 }
  0xbd   : > { %v4156_v59 = vpop.f32.mrf.mxu1  ;;  %v4158_v61 = vpop.f32.mrf.mxu3 }
  0xbe   : > { %4887 = vst [vmem:[#allocation9_spill] sm:$0xff] %v4158_v61 }
  0xc0   : > { %3318 = vmatmul.msk.f32.gmra.mxu1 %vm269_vm0, %v4122_v49  ;;  %v4166_v0 = vpop.f32.mrf.mxu0 }
  0xc1   : > { %3351 = vmatmul.msk.f32.gmra.mxu2 %vm269_vm0, %v4160_v62  ;;  %v4249_v62 = vld [vmem:[#allocation2 + $0xca] sm:$0xff] }
  0xc2   : > { %3384 = vmatmul.msk.f32.gmra.mxu3 %vm269_vm0, %v4162_v63 }
  0xc3   : > { %3418 = vmatmul.msk.f32.gmra.mxu0 %vm269_vm0, %v3969_v15 }
  0xc4   : > { %v4174_v3 = vpop.f32.mrf.mxu2 }
  0xc5   : > { %v4176_v8 = vpop.f32.mrf.mxu1  ;;  %v4178_v9 = vpop.f32.mrf.mxu3 }
  0xc6   : > { %4890 = vst [vmem:[#allocation12_spill] sm:$0xff] %v4178_v9 }
  0xc8   : > { %3319 = vmatmul.msk.f32.gmra.mxu1 %vm269_vm0, %v4142_v54  ;;  %v4186_v19 = vpop.f32.mrf.mxu0  ;;  %v4236_v54 = vld [vmem:[#allocation2 + $0xc2] sm:$0xff] }
  0xc9   : > { %3352 = vmatmul.msk.f32.gmra.mxu2 %vm269_vm0, %v4180_v14  ;;  %4900 = vst [vmem:[#allocation22_spill] sm:$0xff] %v4236_v54  ;;  %v4238_v14 = vld [vmem:[#allocation2 + $0xd8] sm:$0xff] }
  0xca   : > { %3385 = vmatmul.msk.f32.gmra.mxu3 %vm269_vm0, %v4182_v18 }
  0xcb   : > { %3419 = vmatmul.msk.f32.gmra.mxu0 %vm269_vm0, %v3743_v12 }
  0xcc   : > { %v4194_v15 = vpop.f32.mrf.mxu2 }
  0xcd   : > { %v4196_v20 = vpop.f32.mrf.mxu1  ;;  %v4198_v21 = vpop.f32.mrf.mxu3 }
  0xce   : > { %4893 = vst [vmem:[#allocation15_spill] sm:$0xff] %v4198_v21 }
  0xd0   : > { %3320 = vmatmul.msk.f32.gmra.mxu1 %vm269_vm0, %v4162_v63  ;;  %v4206_v9 = vpop.f32.mrf.mxu0  ;;  %v4222_v63 = vld [vmem:[#allocation2 + $0xc8] sm:$0xff] }
  0xd1   : > { %3353 = vmatmul.msk.f32.gmra.mxu2 %vm269_vm0, %v4200_v22 }
  0xd2   : > { %3386 = vmatmul.msk.f32.gmra.mxu3 %vm269_vm0, %v4202_v23 }
  0xd3   : > { %3420 = vmatmul.msk.f32.gmra.mxu0 %vm269_vm0, %v3774_v39 }
  0xd4   : > { %v4214_v12 = vpop.f32.mrf.mxu2 }
  0xd5   : > { %v4216_v21 = vpop.f32.mrf.mxu1  ;;  %v4218_v61 = vpop.f32.mrf.mxu3 }
  0xd6   : > { %4896 = vst [vmem:[#allocation18_spill] sm:$0xff] %v4218_v61 }
  0xd8   : > { %3321 = vmatmul.msk.f32.gmra.mxu1 %vm269_vm0, %v4182_v18  ;;  %v1726_v22 = vpop.f32.mrf.mxu0 }
  0xd9   : > { %3354 = vmatmul.msk.f32.gmra.mxu2 %vm269_vm0, %v4220_v53 }
  0xda   : > { %3387 = vmatmul.msk.f32.gmra.mxu3 %vm269_vm0, %v4222_v63 }
  0xdb   : > { %3421 = vmatmul.msk.f32.gmra.mxu0 %vm269_vm0, %v3811_v13 }
  0xdc   : > { %v4232_v39 = vpop.f32.mrf.mxu2 }
  0xdd   : > { %4898 = vst [vmem:[#allocation20_spill] sm:$0xff] %v4232_v39  ;;  %v4234_v61 = vpop.f32.mrf.mxu3  ;;  %v933_v47 = vpop.f32.mrf.mxu1 }
  0xde   : > { %4899 = vst [vmem:[#allocation21_spill] sm:$0xff] %v4234_v61  ;;  %v934_v13 = vadd.f32 %v933_v47, %v4064_v32 }
  0xe0   : > { %3322 = vmatmul.msk.f32.gmra.mxu1 %vm269_vm0, %v4202_v23  ;;  %v1729_v18 = vpop.f32.mrf.mxu0  ;;  %v4251_v23 = vld [vmem:[#allocation2 + $0xe0] sm:$0xff] }
  0xe1   : > { %3355 = vmatmul.msk.f32.gmra.mxu2 %vm269_vm0, %v4236_v54 }
  0xe2   : > { %3388 = vmatmul.msk.f32.gmra.mxu3 %vm269_vm0, %v4238_v14 }
  0xe3   : > { %3422 = vmatmul.msk.f32.gmra.mxu0 %vm269_vm0, %v3844_v46 }
  0xe4   : > { %v1176_v61 = vpop.f32.mrf.mxu2 }
  0xe5   : > { %v1272_v53 = vadd.f32 %v1176_v61, %v934_v13  ;;  %v936_v40 = vpop.f32.mrf.mxu1  ;;  %v1451_v49 = vpop.f32.mrf.mxu3  ;;  %v4264_v61 = vld [vmem:[#allocation2 + $0xda] sm:$0xff] }
  0xe6   : > { %v937_v46 = vadd.f32 %v936_v40, %v4082_v36 }
  0xe7   : > { %v1547_v39 = vadd.f32 %v1451_v49, %v1272_v53 }
  0xe8   : > { %3323 = vmatmul.msk.f32.gmra.mxu1 %vm269_vm0, %v4222_v63  ;;  %v1732_v54 = vpop.f32.mrf.mxu0 }
  0xe9   : > { %v4255_v43 = vadd.f32 %v1726_v22, %v1547_v39  ;;  %3356 = vmatmul.msk.f32.gmra.mxu2 %vm269_vm0, %v4249_v62  ;;  %v4266_v22 = vld [vmem:[#allocation2 + $0xf0] sm:$0xff] }
  0xea   : > { %3389 = vmatmul.msk.f32.gmra.mxu3 %vm269_vm0, %v4251_v23  ;;  %4902 = vst [vmem:[#allocation24_spill] sm:$0xff] %v4266_v22 }
  0xeb   : > { %4901 = vst [vmem:[#allocation23_spill] sm:$0xff] %v4255_v43  ;;  %3423 = vmatmul.msk.f32.gmra.mxu0 %vm269_vm0, %v3868_v57 }
  0xec   : > { %v1179_v32 = vpop.f32.mrf.mxu2 }
  0xed   : > { %v1273_v47 = vadd.f32 %v1179_v32, %v937_v46  ;;  %v939_v49 = vpop.f32.mrf.mxu1  ;;  %v1454_v53 = vpop.f32.mrf.mxu3 }
  0xee   : > { %v940_v57 = vadd.f32 %v939_v49, %v4106_v44 }
  0xef   : > { %v1548_v13 = vadd.f32 %v1454_v53, %v1273_v47  ;;  %v4279_v47 = vld [vmem:[#allocation2 + $0xe2] sm:$0xff] }
  0xf0   : > { %3324 = vmatmul.msk.f32.gmra.mxu1 %vm269_vm0, %v4238_v14  ;;  %v1735_v39 = vpop.f32.mrf.mxu0 }
  0xf1   : > { %v4270_v43 = vadd.f32 %v1729_v18, %v1548_v13  ;;  %3357 = vmatmul.msk.f32.gmra.mxu2 %vm269_vm0, %v4264_v61  ;;  %v4281_v18 = vld [vmem:[#allocation2 + $0xf8] sm:$0xff] }
  0xf2   : > { %3390 = vmatmul.msk.f32.gmra.mxu3 %vm269_vm0, %v4266_v22  ;;  %4904 = vst [vmem:[#allocation26_spill] sm:$0xff] %v4281_v18 }
  0xf3   : > { %4903 = vst [vmem:[#allocation25_spill] sm:$0xff] %v4270_v43  ;;  %3424 = vmatmul.msk.f32.gmra.mxu0 %vm269_vm0, %v3909_v1 }
  0xf4   : > { %v1182_v36 = vpop.f32.mrf.mxu2 }
  0xf5   : > { %v1274_v40 = vadd.f32 %v1182_v36, %v940_v57  ;;  %v942_v46 = vpop.f32.mrf.mxu1  ;;  %v1457_v32 = vpop.f32.mrf.mxu3 }
  0xf6   : > { %v943_v1 = vadd.f32 %v942_v46, %v4126_v50 }
  0xf7   : > { %v1549_v53 = vadd.f32 %v1457_v32, %v1274_v40  ;;  %v4294_v40 = vld [vmem:[#allocation2 + $0xf2] sm:$0xff] }
  0xf8   : > { %3325 = vmatmul.msk.f32.gmra.mxu1 %vm269_vm0, %v4251_v23  ;;  %v1738_v13 = vpop.f32.mrf.mxu0 }
  0xf9   : > { %v4285_v43 = vadd.f32 %v1732_v54, %v1549_v53  ;;  %3358 = vmatmul.msk.f32.gmra.mxu2 %vm269_vm0, %v4279_v47  ;;  %v4296_v54 = vld [vmem:[#allocation2 + $0x108] sm:$0xff] }
  0xfa   : > { %3391 = vmatmul.msk.f32.gmra.mxu3 %vm269_vm0, %v4281_v18  ;;  %4906 = vst [vmem:[#allocation28_spill] sm:$0xff] %v4296_v54 }
  0xfb   : > { %4905 = vst [vmem:[#allocation27_spill] sm:$0xff] %v4285_v43  ;;  %3425 = vmatmul.msk.f32.gmra.mxu0 %vm269_vm0, %v3944_v10 }
  0xfc   : > { %v1185_v44 = vpop.f32.mrf.mxu2 }
  0xfd   : > { %v1275_v49 = vadd.f32 %v1185_v44, %v943_v1  ;;  %v945_v57 = vpop.f32.mrf.mxu1  ;;  %v1460_v36 = vpop.f32.mrf.mxu3 }
  0xfe   : > { %v946_v10 = vadd.f32 %v945_v57, %v4146_v7 }
  0xff   : > { %v1550_v32 = vadd.f32 %v1460_v36, %v1275_v49  ;;  %v4309_v49 = vld [vmem:[#allocation2 + $0xfa] sm:$0xff] }
 0x100   : > { %3326 = vmatmul.msk.f32.gmra.mxu1 %vm269_vm0, %v4266_v22  ;;  %v1741_v53 = vpop.f32.mrf.mxu0 }
 0x101   : > { %v4300_v43 = vadd.f32 %v1735_v39, %v1550_v32  ;;  %3359 = vmatmul.msk.f32.gmra.mxu2 %vm269_vm0, %v4294_v40  ;;  %v4311_v39 = vld [vmem:[#allocation2 + $0x110] sm:$0xff] }
 0x102   : > { %3392 = vmatmul.msk.f32.gmra.mxu3 %vm269_vm0, %v4296_v54  ;;  %4908 = vst [vmem:[#allocation30_spill] sm:$0xff] %v4311_v39 }
 0x103   : > { %4907 = vst [vmem:[#allocation29_spill] sm:$0xff] %v4300_v43  ;;  %3426 = vmatmul.msk.f32.gmra.mxu0 %vm269_vm0, %v3973_v16  ;;  %v4315_v43 = vld [vmem:[#allocation2 + $0x121] sm:$0xff] }
 0x104   : > { %v1188_v50 = vpop.f32.mrf.mxu2  ;;  %4909 = vst [vmem:[#allocation31_spill] sm:$0xff] %v4315_v43 }
 0x105   : > { %v1276_v46 = vadd.f32 %v1188_v50, %v946_v10  ;;  %v948_v1 = vpop.f32.mrf.mxu1  ;;  %v1463_v44 = vpop.f32.mrf.mxu3 }
 0x106   : > { %v949_v16 = vadd.f32 %v948_v1, %v4166_v0 }
 0x107   : > { %v1551_v36 = vadd.f32 %v1463_v44, %v1276_v46  ;;  %v4326_v46 = vld [vmem:[#allocation2 + $0x10a] sm:$0xff] }
 0x108   : > { %3327 = vmatmul.msk.f32.gmra.mxu1 %vm269_vm0, %v4281_v18  ;;  %v1744_v32 = vpop.f32.mrf.mxu0  ;;  %4911 = vst [vmem:[#allocation33_spill] sm:$0xff] %v4326_v46 }
 0x109   : > { %v4317_v22 = vadd.f32 %v1738_v13, %v1551_v36  ;;  %3360 = vmatmul.msk.f32.gmra.mxu2 %vm269_vm0, %v4309_v49  ;;  %v1326_v13 = vld [vmem:[#allocation2 + $0x120] sm:$0xff] }
 0x10a   : > { %3393 = vmatmul.msk.f32.gmra.mxu3 %vm269_vm0, %v4311_v39 }
 0x10b   : > { %4910 = vst [vmem:[#allocation32_spill] sm:$0xff] %v4317_v22  ;;  %3427 = vmatmul.msk.f32.gmra.mxu0 %vm269_vm0, %v4315_v43  ;;  %v4330_v22 = vld [vmem:[#allocation2 + $0x129] sm:$0xff] }
 0x10c   : > { %v1191_v7 = vpop.f32.mrf.mxu2  ;;  %4912 = vst [vmem:[#allocation34_spill] sm:$0xff] %v4330_v22 }
 0x10d   : > { %v1277_v57 = vadd.f32 %v1191_v7, %v949_v16  ;;  %v951_v10 = vpop.f32.mrf.mxu1  ;;  %v1466_v50 = vpop.f32.mrf.mxu3 }
 0x10e   : > { %v952_v0 = vadd.f32 %v951_v10, %v4186_v19 }
 0x10f   : > { %v1552_v44 = vadd.f32 %v1466_v50, %v1277_v57  ;;  %v4340_v50 = vld [vmem:[#allocation2 + $0x112] sm:$0xff] }
 0x110   : > { %3328 = vmatmul.msk.f32.gmra.mxu1 %vm269_vm0, %v4296_v54  ;;  %v1747_v36 = vpop.f32.mrf.mxu0  ;;  %4914 = vst [vmem:[#allocation36_spill] sm:$0xff] %v4340_v50  ;;  %v1327_v54 = vld [vmem:[#allocation2 + $0x128] sm:$0xff] }
 0x111   : > { %v4332_v18 = vadd.f32 %v1741_v53, %v1552_v44  ;;  %3361 = vmatmul.msk.f32.gmra.mxu2 %vm269_vm0, %v4326_v46  ;;  %v4344_v44 = vld [vmem:[#allocation2 + $0x139] sm:$0xff]  ;;  %v1330_v46 = vld [vmem:[#allocation2 + $0x150] sm:$0xff] }
 0x112   : > { %3394 = vmatmul.msk.f32.gmra.mxu3 %vm269_vm0, %v1326_v13  ;;  %4915 = vst [vmem:[#allocation37_spill] sm:$0xff] %v4344_v44 }
 0x113   : > { %4913 = vst [vmem:[#allocation35_spill] sm:$0xff] %v4332_v18  ;;  %3428 = vmatmul.msk.f32.gmra.mxu0 %vm269_vm0, %v4330_v22 }
 0x114   : > { %v1194_v1 = vpop.f32.mrf.mxu2 }
 0x115   : > { %v1278_v16 = vadd.f32 %v1194_v1, %v952_v0  ;;  %v954_v7 = vpop.f32.mrf.mxu1  ;;  %v1469_v57 = vpop.f32.mrf.mxu3 }
 0x116   : > { %v955_v19 = vadd.f32 %v954_v7, %v4206_v9  ;;  %v342_v7 = vld [vmem:[%s3673_s14 + $0xf0] sm:$0xff] }
 0x117   : > { %v1553_v43 = vadd.f32 %v1469_v57, %v1278_v16  ;;  %v4354_v57 = vld [vmem:[#allocation2 + $0x122] sm:$0xff] }
 0x118   : > { %3329 = vmatmul.msk.f32.gmra.mxu1 %vm269_vm0, %v4311_v39  ;;  %v1750_v53 = vpop.f32.mrf.mxu0  ;;  %4917 = vst [vmem:[#allocation39_spill] sm:$0xff] %v4354_v57 }
 0x119   : > { %v4346_v18 = vadd.f32 %v1744_v32, %v1553_v43  ;;  %3362 = vmatmul.msk.f32.gmra.mxu2 %vm269_vm0, %v4340_v50  ;;  %v1328_v43 = vld [vmem:[#allocation2 + $0x138] sm:$0xff] }
 0x11a   : > { %3395 = vmatmul.msk.f32.gmra.mxu3 %vm269_vm0, %v1327_v54 }
 0x11b   : > { %4916 = vst [vmem:[#allocation38_spill] sm:$0xff] %v4346_v18  ;;  %3429 = vmatmul.msk.f32.gmra.mxu0 %vm269_vm0, %v4344_v44  ;;  %v1604_v18 = vld [vmem:[#allocation2 + $0x141] sm:$0xff] }
 0x11c   : > { %v1197_v10 = vpop.f32.mrf.mxu2 }
 0x11d   : > { %v1279_v0 = vadd.f32 %v1197_v10, %v955_v19  ;;  %v957_v1 = vpop.f32.mrf.mxu1  ;;  %v1472_v16 = vpop.f32.mrf.mxu3  ;;  %v3587_v10 = vld [vmem:[%s4849_s1] ss:$0 sm:$0xff] }
 0x11e   : > { %v958_v9 = vadd.f32 %v957_v1, %v4078_v35  ;;  %v1329_v1 = vld [vmem:[#allocation2 + $0x140] sm:$0xff] }
 0x11f   : > { %v1554_v22 = vadd.f32 %v1472_v16, %v1279_v0 }
 0x120   : > { %3330 = vmatmul.msk.f32.gmra.mxu1 %vm269_vm0, %v1326_v13  ;;  %v1753_v32 = vpop.f32.mrf.mxu0  ;;  %v378_v13 = vmul.f32 %v3587_v10, %v342_v7 }
 0x121   : > { %v4357_v39 = vadd.f32 %v1747_v36, %v1554_v22  ;;  %3363 = vmatmul.msk.f32.gmra.mxu2 %vm269_vm0, %v4354_v57  ;;  %v1054_v36 = vld [vmem:[#allocation2 + $0x12a] sm:$0xff] }
 0x122   : > { %3396 = vmatmul.msk.f32.gmra.mxu3 %vm269_vm0, %v1328_v43 }
 0x123   : > { %4918 = vst [vmem:[#allocation40_spill] sm:$0xff] %v4357_v39  ;;  %3430 = vmatmul.msk.f32.gmra.mxu0 %vm269_vm0, %v1604_v18  ;;  %v3588_v39 = vld [vmem:[%s4850_s2] ss:$0 sm:$0xff] }
 0x124   : > { %v1200_v19 = vpop.f32.mrf.mxu2  ;;  %v414_v44 = vadd.f32 %v3588_v39, %v378_v13 }
 0x125   : > { %v1280_v0 = vadd.f32 %v1200_v19, %v958_v9  ;;  %v960_v16 = vpop.f32.mrf.mxu1  ;;  %v1475_v22 = vpop.f32.mrf.mxu3  ;;  %v343_v19 = vld [vmem:[%s3673_s14 + $0xf8] sm:$0xff] }
 0x126   : > { %v478_v57 = vmul.f32 0.01, %v414_v44  ;;  %vm446_vm3 = vcmp.ge.f32.partialorder %v414_v44, 0.0  ;;  %v961_v7 = vadd.f32 %v960_v16, %v4096_v38 }
 0x127   : > { %v1555_v35 = vadd.f32 %v1475_v22, %v1280_v0 }
 0x128   : > { %3331 = vmatmul.msk.f32.gmra.mxu1 %vm269_vm0, %v1327_v54  ;;  %v1756_v18 = vpop.f32.mrf.mxu0  ;;  %v510_v9 = vsel %vm446_vm3, %v414_v44, %v478_v57  ;;  %v379_v54 = vmul.f32 %v3587_v10, %v343_v19  ;;  %v1331_v19 = vld [vmem:[#allocation2 + $0x158] sm:$0xff] }
 0x129   : > { %v4372_v50 = vadd.f32 %v1750_v53, %v1555_v35  ;;  %3364 = vmatmul.msk.f32.gmra.mxu2 %vm269_vm0, %v1054_v36  ;;  %542 = vst.msk [vmem:[#allocation2 + $0x181] sm:$0xff] %vm269_vm0, %v510_v9  ;;  %v1055_v35 = vld [vmem:[#allocation2 + $0x13a] sm:$0xff] }
 0x12a   : > { %3397 = vmatmul.msk.f32.gmra.mxu3 %vm269_vm0, %v1329_v1 }
 0x12b   : > { %4919 = vst [vmem:[#allocation41_spill] sm:$0xff] %v4372_v50  ;;  %3431 = vmatmul.msk.f32.gmra.mxu0 %vm269_vm0, %v3872_v58  ;;  %v415_v50 = vadd.f32 %v3588_v39, %v379_v54 }
 0x12c   : > { %v1203_v13 = vpop.f32.mrf.mxu2 }
 0x12d   : > { %v1281_v0 = vadd.f32 %v1203_v13, %v961_v7  ;;  %v963_v22 = vpop.f32.mrf.mxu1  ;;  %v1478_v53 = vpop.f32.mrf.mxu3  ;;  %v479_v57 = vmul.f32 0.01, %v415_v50  ;;  %vm447_vm4 = vcmp.ge.f32.partialorder %v415_v50, 0.0  ;;  %v1056_v7 = vld [vmem:[#allocation2 + $0x142] sm:$0xff] }
 0x12e   : > { %v964_v10 = vadd.f32 %v963_v22, %v4116_v45 }
 0x12f   : > { %v1556_v36 = vadd.f32 %v1478_v53, %v1281_v0  ;;  %v511_v58 = vsel %vm447_vm4, %v415_v50, %v479_v57  ;;  %v1057_v53 = vld [vmem:[#allocation2 + $0x152] sm:$0xff] }
 0x130   : > { %3332 = vmatmul.msk.f32.gmra.mxu1 %vm269_vm0, %v1328_v43  ;;  %v1759_v44 = vpop.f32.mrf.mxu0  ;;  %543 = vst.msk [vmem:[#allocation2 + $0x189] sm:$0xff] %vm269_vm0, %v511_v58 }
 0x131   : > { %v4382_v38 = vadd.f32 %v1753_v32, %v1556_v36  ;;  %3365 = vmatmul.msk.f32.gmra.mxu2 %vm269_vm0, %v1055_v35  ;;  %v1332_v36 = vld [vmem:[#allocation2 + $0x168] sm:$0xff] }
 0x132   : > { %3398 = vmatmul.msk.f32.gmra.mxu3 %vm269_vm0, %v1330_v46 }
 0x133   : > { %3432 = vmatmul.msk.f32.gmra.mxu0 %vm269_vm0, %v3913_v2 }
 0x134   : > { %v1206_v39 = vpop.f32.mrf.mxu2 }
 0x135   : > { %v1282_v16 = vadd.f32 %v1206_v39, %v964_v10  ;;  %v966_v43 = vpop.f32.mrf.mxu1  ;;  %v1481_v9 = vpop.f32.mrf.mxu3  ;;  %v1058_v39 = vld [vmem:[#allocation2 + $0x15a] sm:$0xff] }
 0x136   : > { %v967_v2 = vadd.f32 %v966_v43, %v4136_v52  ;;  %v1333_v43 = vld [vmem:[#allocation2 + $0x170] sm:$0xff] }
 0x137   : > { %v1557_v32 = vadd.f32 %v1481_v9, %v1282_v16 }
 0x138   : > { %3333 = vmatmul.msk.f32.gmra.mxu1 %vm269_vm0, %v1329_v1  ;;  %v1762_v13 = vpop.f32.mrf.mxu0 }
 0x139   : > { %v4391_v54 = vadd.f32 %v1756_v18, %v1557_v32  ;;  %3366 = vmatmul.msk.f32.gmra.mxu2 %vm269_vm0, %v1056_v7 }
 0x13a   : > { %3399 = vmatmul.msk.f32.gmra.mxu3 %vm269_vm0, %v1331_v19 }
 0x13b   : > { %3433 = vmatmul.msk.f32.gmra.mxu0 %vm269_vm0, %v3948_v11 }
 0x13c   : > { %v1209_v45 = vpop.f32.mrf.mxu2 }
 0x13d   : > { %v1283_v50 = vadd.f32 %v1209_v45, %v967_v2  ;;  %v969_v0 = vpop.f32.mrf.mxu1  ;;  %v1484_v22 = vpop.f32.mrf.mxu3  ;;  %v1059_v45 = vld [vmem:[#allocation2 + $0x16a] sm:$0xff] }
 0x13e   : > { %v970_v52 = vadd.f32 %v969_v0, %v4156_v59  ;;  %v1334_v0 = vld [vmem:[#allocation2 + $0x180] sm:$0xff] }
 0x13f   : > { %v1558_v35 = vadd.f32 %v1484_v22, %v1283_v50 }
 0x140   : > { %3334 = vmatmul.msk.f32.gmra.mxu1 %vm269_vm0, %v1330_v46  ;;  %v1765_v1 = vpop.f32.mrf.mxu0 }
 0x141   : > { %v4399_v18 = vadd.f32 %v1759_v44, %v1558_v35  ;;  %3367 = vmatmul.msk.f32.gmra.mxu2 %vm269_vm0, %v1057_v53  ;;  %v1609_v44 = vld [vmem:[#allocation2 + $0x181] sm:$0xff] }
 0x142   : > { %3400 = vmatmul.msk.f32.gmra.mxu3 %vm269_vm0, %v1332_v36 }
 0x143   : > { %3434 = vmatmul.msk.f32.gmra.mxu0 %vm269_vm0, %v3977_v17 }
 0x144   : > { %v1212_v11 = vpop.f32.mrf.mxu2 }
 0x145   : > { %v1284_v57 = vadd.f32 %v1212_v11, %v970_v52  ;;  %v972_v58 = vpop.f32.mrf.mxu1  ;;  %v1487_v10 = vpop.f32.mrf.mxu3 }
 0x146   : > { %v973_v59 = vadd.f32 %v972_v58, %v4176_v8 }
 0x147   : > { %v1559_v16 = vadd.f32 %v1487_v10, %v1284_v57  ;;  %v1060_v57 = vld [vmem:[#allocation2 + $0x172] sm:$0xff]  ;;  %v1335_v10 = vld [vmem:[#allocation2 + $0x188] sm:$0xff] }
 0x148   : > { %3335 = vmatmul.msk.f32.gmra.mxu1 %vm269_vm0, %v1331_v19  ;;  %v1768_v46 = vpop.f32.mrf.mxu0 }
 0x149   : > { %v4407_v9 = vadd.f32 %v1762_v13, %v1559_v16  ;;  %3368 = vmatmul.msk.f32.gmra.mxu2 %vm269_vm0, %v1058_v39  ;;  %v1610_v13 = vld [vmem:[#allocation2 + $0x189] sm:$0xff] }
 0x14a   : > { %3401 = vmatmul.msk.f32.gmra.mxu3 %vm269_vm0, %v1333_v43 }
 0x14b   : > { %3435 = vmatmul.msk.f32.gmra.mxu0 %vm269_vm0, %v1609_v44 }
 0x14c   : > { %v1215_v17 = vpop.f32.mrf.mxu2 }
 0x14d   : > { %v1285_v7 = vadd.f32 %v1215_v17, %v973_v59  ;;  %v975_v32 = vpop.f32.mrf.mxu1  ;;  %v1490_v2 = vpop.f32.mrf.mxu3 }
 0x14e   : > { %v976_v8 = vadd.f32 %v975_v32, %v4196_v20 }
 0x14f   : > { %v1560_v50 = vadd.f32 %v1490_v2, %v1285_v7  ;;  %v2405_v7 = vld [vmem:[#allocation2 + $0x31] sm:$0xff] }
 0x150   : > { %3336 = vmatmul.msk.f32.gmra.mxu1 %vm269_vm0, %v1332_v36  ;;  %v1771_v19 = vpop.f32.mrf.mxu0 }
 0x151   : > { %v4414_v22 = vadd.f32 %v1765_v1, %v1560_v50  ;;  %3369 = vmatmul.msk.f32.gmra.mxu2 %vm269_vm0, %v1059_v45 }
 0x152   : > { %3402 = vmatmul.msk.f32.gmra.mxu3 %vm269_vm0, %v1334_v0 }
 0x153   : > { %3436 = vmatmul.msk.f32.gmra.mxu0 %vm269_vm0, %v1610_v13  ;;  %v2406_v13 = vld [vmem:[#allocation2 + $0x39] sm:$0xff] }
 0x154   : > { %v1218_v53 = vpop.f32.mrf.mxu2 }
 0x155   : > { %v1286_v35 = vadd.f32 %v1218_v53, %v976_v8  ;;  %v978_v52 = vpop.f32.mrf.mxu1  ;;  %v1493_v11 = vpop.f32.mrf.mxu3 }
 0x156   : > { %v979_v20 = vadd.f32 %v978_v52, %v4216_v21 }
 0x157   : > { %v1561_v58 = vadd.f32 %v1493_v11, %v1286_v35  ;;  %v2407_v11 = vld [vmem:[#allocation2 + $0x49] sm:$0xff] }
 0x158   : > { %3337 = vmatmul.msk.f32.gmra.mxu1 %vm269_vm0, %v1333_v43  ;;  %v1774_v36 = vpop.f32.mrf.mxu0 }
 0x159   : > { %v4421_v1 = vadd.f32 %v1768_v46, %v1561_v58  ;;  %3370 = vmatmul.msk.f32.gmra.mxu2 %vm269_vm0, %v1060_v57 }
 0x15a   : > { %3403 = vmatmul.msk.f32.gmra.mxu3 %vm269_vm0, %v1335_v10 }
 0x15b   : > { %3537 = vmatmul.msk.f32.vlgmr.msra.gmra.mxu0 %vm269_vm0, %v4029_v26 }
 0x15c   : > { %v1221_v39 = vpop.f32.mrf.mxu2 }
 0x15d   : > { %v1287_v16 = vadd.f32 %v1221_v39, %v979_v20  ;;  %v981_v44 = vpop.f32.mrf.mxu1  ;;  %v1496_v59 = vpop.f32.mrf.mxu3  ;;  %v2408_v39 = vld [vmem:[#allocation2 + $0x51] sm:$0xff] }
 0x15e   : > { %v982_v21 = vadd.f32 %v981_v44, %v4094_v60 }
 0x15f   : > { %v1562_v17 = vadd.f32 %v1496_v59, %v1287_v16 }
 0x160   : > { %3438 = vmatmul.msk.f32.vlgmr.msra.gmra.mxu1 %vm269_vm0, %v4007_v6  ;;  %v1777_v43 = vpop.f32.mrf.mxu0 }
 0x161   : > { %v4430_v46 = vadd.f32 %v1771_v19, %v1562_v17  ;;  %3471 = vmatmul.msk.f32.vlgmr.msra.gmra.mxu2 %vm269_vm0, %v4009_v56 }
 0x162   : > { %3504 = vmatmul.msk.f32.vlgmr.msra.gmra.mxu3 %vm269_vm0, %v2405_v7 }
 0x163   : > { %3538 = vmatmul.msk.f32.gmra.mxu0 %vm269_vm0, %v4040_v28 }
 0x164   : > { %v1224_v32 = vpop.f32.mrf.mxu2 }
 0x165   : > { %v1288_v2 = vadd.f32 %v1224_v32, %v982_v21  ;;  %v984_v45 = vpop.f32.mrf.mxu1  ;;  %v1499_v50 = vpop.f32.mrf.mxu3 }
 0x166   : > { %v985_v56 = vadd.f32 %v984_v45, %v4114_v42 }
 0x167   : > { %v1563_v0 = vadd.f32 %v1499_v50, %v1288_v2 }
 0x168   : > { %3439 = vmatmul.msk.f32.gmra.mxu1 %vm269_vm0, %v4018_v24  ;;  %v1780_v6 = vpop.f32.mrf.mxu0 }
 0x169   : > { %v4440_v19 = vadd.f32 %v1774_v36, %v1563_v0  ;;  %3472 = vmatmul.msk.f32.gmra.mxu2 %vm269_vm0, %v4020_v25  ;;  %v2410_v0 = vld [vmem:[#allocation2 + $0x69] sm:$0xff] }
 0x16a   : > { %3505 = vmatmul.msk.f32.gmra.mxu3 %vm269_vm0, %v2406_v13 }
 0x16b   : > { %3539 = vmatmul.msk.f32.gmra.mxu0 %vm269_vm0, %v4052_v30 }
 0x16c   : > { %v1227_v60 = vpop.f32.mrf.mxu2 }
 0x16d   : > { %v1289_v8 = vadd.f32 %v1227_v60, %v985_v56  ;;  %v987_v53 = vpop.f32.mrf.mxu1  ;;  %v1502_v35 = vpop.f32.mrf.mxu3 }
 0x16e   : > { %v988_v25 = vadd.f32 %v987_v53, %v4134_v51  ;;  %v2411_v53 = vld [vmem:[#allocation2 + $0x79] sm:$0xff] }
 0x16f   : > { %v1564_v52 = vadd.f32 %v1502_v35, %v1289_v8 }
 0x170   : > { %3440 = vmatmul.msk.f32.gmra.mxu1 %vm269_vm0, %v4029_v26  ;;  %v1783_v24 = vpop.f32.mrf.mxu0 }
 0x171   : > { %v4450_v57 = vadd.f32 %v1777_v43, %v1564_v52  ;;  %3473 = vmatmul.msk.f32.gmra.mxu2 %vm269_vm0, %v4031_v27  ;;  %v2409_v43 = vld [vmem:[#allocation2 + $0x61] sm:$0xff] }
 0x172   : > { %3506 = vmatmul.msk.f32.gmra.mxu3 %vm269_vm0, %v2407_v11 }
 0x173   : > { %3540 = vmatmul.msk.f32.gmra.mxu0 %vm269_vm0, %v4066_v34 }
 0x174   : > { %v1230_v42 = vpop.f32.mrf.mxu2 }
 0x175   : > { %v1290_v58 = vadd.f32 %v1230_v42, %v988_v25  ;;  %v990_v10 = vpop.f32.mrf.mxu1  ;;  %v1505_v36 = vpop.f32.mrf.mxu3  ;;  %v2412_v42 = vld [vmem:[#allocation2 + $0x81] sm:$0xff] }
 0x176   : > { %v991_v27 = vadd.f32 %v990_v10, %v4154_v55 }
 0x177   : > { %v1565_v20 = vadd.f32 %v1505_v36, %v1290_v58  ;;  %v4922_v36 = vld [vmem:[#allocation10_spill] sm:$0xff] }
 0x178   : > { %3441 = vmatmul.msk.f32.gmra.mxu1 %vm269_vm0, %v4040_v28  ;;  %v1786_v26 = vpop.f32.mrf.mxu0 }
 0x179   : > { %v4460_v16 = vadd.f32 %v1780_v6, %v1565_v20  ;;  %3474 = vmatmul.msk.f32.gmra.mxu2 %vm269_vm0, %v4042_v29 }
 0x17a   : > { %3507 = vmatmul.msk.f32.gmra.mxu3 %vm269_vm0, %v2408_v39 }
 0x17b   : > { %3541 = vmatmul.msk.f32.gmra.mxu0 %vm269_vm0, %v4080_v33 }
 0x17c   : > { %v1233_v51 = vpop.f32.mrf.mxu2 }
 0x17d   : > { %v1291_v44 = vadd.f32 %v1233_v51, %v991_v27  ;;  %v993_v59 = vpop.f32.mrf.mxu1  ;;  %v1508_v17 = vpop.f32.mrf.mxu3 }
 0x17e   : > { %v994_v29 = vadd.f32 %v993_v59, %v4174_v3 }
 0x17f   : > { %v1566_v7 = vadd.f32 %v1508_v17, %v1291_v44  ;;  %v2413_v44 = vld [vmem:[#allocation2 + $0x91] sm:$0xff]  ;;  %v4923_v17 = vld [vmem:[#allocation6_spill] sm:$0xff] }
 0x180   : > { %3442 = vmatmul.msk.f32.gmra.mxu1 %vm269_vm0, %v4052_v30  ;;  %v1789_v28 = vpop.f32.mrf.mxu0 }
 0x181   : > { %v4470_v21 = vadd.f32 %v1783_v24, %v1566_v7  ;;  %3475 = vmatmul.msk.f32.gmra.mxu2 %vm269_vm0, %v4054_v31  ;;  %v4924_v7 = vld [vmem:[#allocation3_spill] sm:$0xff] }
 0x182   : > { %3508 = vmatmul.msk.f32.gmra.mxu3 %vm269_vm0, %v2409_v43 }
 0x183   : > { %3542 = vmatmul.msk.f32.gmra.mxu0 %vm269_vm0, %v4100_v41 }
 0x184   : > { %v1236_v55 = vpop.f32.mrf.mxu2 }
 0x185   : > { %v1292_v32 = vadd.f32 %v1236_v55, %v994_v29  ;;  %v996_v2 = vpop.f32.mrf.mxu1  ;;  %v1511_v45 = vpop.f32.mrf.mxu3 }
 0x186   : > { %v997_v31 = vadd.f32 %v996_v2, %v4194_v15 }
 0x187   : > { %v1567_v50 = vadd.f32 %v1511_v45, %v1292_v32 }
 0x188   : > { %3443 = vmatmul.msk.f32.gmra.mxu1 %vm269_vm0, %v4066_v34  ;;  %v1792_v30 = vpop.f32.mrf.mxu0 }
 0x189   : > { %v4480_v13 = vadd.f32 %v1786_v26, %v1567_v50  ;;  %3476 = vmatmul.msk.f32.gmra.mxu2 %vm269_vm0, %v4068_v4  ;;  %v2414_v50 = vld [vmem:[#allocation2 + $0x99] sm:$0xff] }
 0x18a   : > { %3509 = vmatmul.msk.f32.gmra.mxu3 %vm269_vm0, %v2410_v0 }
 0x18b   : > { %3543 = vmatmul.msk.f32.gmra.mxu0 %vm269_vm0, %v4120_v48 }
 0x18c   : > { %v1239_v3 = vpop.f32.mrf.mxu2 }
 0x18d   : > { %v1293_v6 = vadd.f32 %v1239_v3, %v997_v31  ;;  %v999_v56 = vpop.f32.mrf.mxu1  ;;  %v1514_v60 = vpop.f32.mrf.mxu3  ;;  %v4927_v31 = vld [vmem:[#allocation5_spill] sm:$0xff] }
 0x18e   : > { %v1000_v4 = vadd.f32 %v999_v56, %v4214_v12  ;;  %v4921_v12 = vld [vmem:[#allocation20_spill] sm:$0xff] }
 0x18f   : > { %v1568_v8 = vadd.f32 %v1514_v60, %v1293_v6  ;;  %v4928_v6 = vld [vmem:[#allocation16_spill] sm:$0xff] }
 0x190   : > { %3444 = vmatmul.msk.f32.gmra.mxu1 %vm269_vm0, %v4080_v33  ;;  %v1795_v34 = vpop.f32.mrf.mxu0 }
 0x191   : > { %v4490_v35 = vadd.f32 %v1789_v28, %v1568_v8  ;;  %3477 = vmatmul.msk.f32.gmra.mxu2 %vm269_vm0, %v4084_v37  ;;  %v4920_v37 = vld [vmem:[#allocation4_spill] sm:$0xff]  ;;  %v4925_v28 = vld [vmem:[#allocation13_spill] sm:$0xff] }
 0x192   : > { %3510 = vmatmul.msk.f32.gmra.mxu3 %vm269_vm0, %v2411_v53 }
 0x193   : > { %3544 = vmatmul.msk.f32.gmra.mxu0 %vm269_vm0, %v4140_v5 }
 0x194   : > { %v1242_v15 = vpop.f32.mrf.mxu2 }
 0x195   : > { %v1294_v52 = vadd.f32 %v1242_v15, %v1000_v4  ;;  %v1002_v11 = vpop.f32.mrf.mxu1  ;;  %v1517_v24 = vpop.f32.mrf.mxu3  ;;  %v2415_v4 = vld [vmem:[#allocation2 + $0xa9] sm:$0xff] }
 0x196   : > { %v1003_v10 = vadd.f32 %v1002_v11, %v4921_v12  ;;  %v4930_v11 = vld [vmem:[#allocation7_spill] sm:$0xff] }
 0x197   : > { %v1569_v25 = vadd.f32 %v1517_v24, %v1294_v52  ;;  %v4929_v52 = vld [vmem:[#allocation11_spill] sm:$0xff] }
 0x198   : > { %3445 = vmatmul.msk.f32.gmra.mxu1 %vm269_vm0, %v4100_v41  ;;  %v1798_v33 = vpop.f32.mrf.mxu0 }
 0x199   : > { %v4500_v58 = vadd.f32 %v1792_v30, %v1569_v25  ;;  %3478 = vmatmul.msk.f32.gmra.mxu2 %vm269_vm0, %v4920_v37  ;;  %v4926_v30 = vld [vmem:[#allocation8_spill] sm:$0xff]  ;;  %v4931_v25 = vld [vmem:[#allocation19_spill] sm:$0xff] }
 0x19a   : > { %3511 = vmatmul.msk.f32.gmra.mxu3 %vm269_vm0, %v2412_v42 }
 0x19b   : > { %3545 = vmatmul.msk.f32.gmra.mxu0 %vm269_vm0, %v4922_v36 }
 0x19c   : > { %v1245_v20 = vpop.f32.mrf.mxu2 }
 0x19d   : > { %v1295_v39 = vadd.f32 %v1245_v20, %v1003_v10  ;;  %v1005_v26 = vpop.f32.mrf.mxu1  ;;  %v1520_v27 = vpop.f32.mrf.mxu3  ;;  %v2416_v20 = vld [vmem:[#allocation2 + $0xb1] sm:$0xff] }
 0x19e   : > { %v1006_v43 = vadd.f32 %v1005_v26, %v4924_v7  ;;  %v4932_v26 = vld [vmem:[#allocation14_spill] sm:$0xff] }
 0x19f   : > { %v1570_v51 = vadd.f32 %v1520_v27, %v1295_v39  ;;  %v4933_v27 = vld [vmem:[#allocation9_spill] sm:$0xff] }
 0x1a0   : > { %3446 = vmatmul.msk.f32.gmra.mxu1 %vm269_vm0, %v4120_v48  ;;  %v1801_v41 = vpop.f32.mrf.mxu0 }
 0x1a1   : > { %v4510_v59 = vadd.f32 %v1795_v34, %v1570_v51  ;;  %3479 = vmatmul.msk.f32.gmra.mxu2 %vm269_vm0, %v4923_v17 }
 0x1a2   : > { %3512 = vmatmul.msk.f32.gmra.mxu3 %vm269_vm0, %v2413_v44  ;;  %v4934_v44 = vld [vmem:[#allocation22_spill] sm:$0xff] }
 0x1a3   : > { %3546 = vmatmul.msk.f32.gmra.mxu0 %vm269_vm0, %v4925_v28 }
 0x1a4   : > { %v1248_v29 = vpop.f32.mrf.mxu2 }
 0x1a5   : > { %v1296_v55 = vadd.f32 %v1248_v29, %v1006_v43  ;;  %v1008_v32 = vpop.f32.mrf.mxu1  ;;  %v1523_v2 = vpop.f32.mrf.mxu3 }
 0x1a6   : > { %v1009_v3 = vadd.f32 %v1008_v32, %v4927_v31 }
 0x1a7   : > { %v1571_v45 = vadd.f32 %v1523_v2, %v1296_v55  ;;  %v2417_v55 = vld [vmem:[#allocation2 + $0xc1] sm:$0xff] }
 0x1a8   : > { %3447 = vmatmul.msk.f32.gmra.mxu1 %vm269_vm0, %v4140_v5  ;;  %v1804_v48 = vpop.f32.mrf.mxu0  ;;  %v4935_v2 = vld [vmem:[#allocation17_spill] sm:$0xff] }
 0x1a9   : > { %v4520_v0 = vadd.f32 %v1798_v33, %v1571_v45  ;;  %3480 = vmatmul.msk.f32.gmra.mxu2 %vm269_vm0, %v4926_v30  ;;  %v4936_v45 = vld [vmem:[#allocation12_spill] sm:$0xff] }
 0x1aa   : > { %3513 = vmatmul.msk.f32.gmra.mxu3 %vm269_vm0, %v2414_v50 }
 0x1ab   : > { %3547 = vmatmul.msk.f32.gmra.mxu0 %vm269_vm0, %v4928_v6 }
 0x1ac   : > { %v1251_v56 = vpop.f32.mrf.mxu2 }
 0x1ad   : > { %v1297_v60 = vadd.f32 %v1251_v56, %v1009_v3  ;;  %v1011_v8 = vpop.f32.mrf.mxu1  ;;  %v1526_v53 = vpop.f32.mrf.mxu3 }
 0x1ae   : > { %v1012_v24 = vadd.f32 %v1011_v8, %v4930_v11 }
 0x1af   : > { %v1572_v34 = vadd.f32 %v1526_v53, %v1297_v60  ;;  %v2418_v60 = vld [vmem:[#allocation2 + $0xc9] sm:$0xff] }
 0x1b0   : > { %3448 = vmatmul.msk.f32.gmra.mxu1 %vm269_vm0, %v4922_v36  ;;  %v1807_v5 = vpop.f32.mrf.mxu0  ;;  %v4937_v53 = vld [vmem:[#allocation15_spill] sm:$0xff] }
 0x1b1   : > { %v4530_v15 = vadd.f32 %v1801_v41, %v1572_v34  ;;  %3481 = vmatmul.msk.f32.gmra.mxu2 %vm269_vm0, %v4929_v52 }
 0x1b2   : > { %3514 = vmatmul.msk.f32.gmra.mxu3 %vm269_vm0, %v2415_v4 }
 0x1b3   : > { %3548 = vmatmul.msk.f32.gmra.mxu0 %vm269_vm0, %v4931_v25 }
 0x1b4   : > { %v1254_v42 = vpop.f32.mrf.mxu2 }
 0x1b5   : > { %v1298_v33 = vadd.f32 %v1254_v42, %v1012_v24  ;;  %v1014_v37 = vpop.f32.mrf.mxu1  ;;  %v1529_v12 = vpop.f32.mrf.mxu3  ;;  %v2419_v42 = vld [vmem:[#allocation2 + $0xd9] sm:$0xff] }
 0x1b6   : > { %v1015_v51 = vadd.f32 %v1014_v37, %v4933_v27  ;;  %v2420_v27 = vld [vmem:[#allocation2 + $0xe1] sm:$0xff] }
 0x1b7   : > { %v1573_v10 = vadd.f32 %v1529_v12, %v1298_v33 }
 0x1b8   : > { %3449 = vmatmul.msk.f32.gmra.mxu1 %vm269_vm0, %v4925_v28  ;;  %v1810_v36 = vpop.f32.mrf.mxu0 }
 0x1b9   : > { %v4540_v39 = vadd.f32 %v1804_v48, %v1573_v10  ;;  %3482 = vmatmul.msk.f32.gmra.mxu2 %vm269_vm0, %v4932_v26 }
 0x1ba   : > { %3515 = vmatmul.msk.f32.gmra.mxu3 %vm269_vm0, %v2416_v20 }
 0x1bb   : > { %3549 = vmatmul.msk.f32.gmra.mxu0 %vm269_vm0, %v4934_v44 }
 0x1bc   : > { %v1257_v41 = vpop.f32.mrf.mxu2 }
 0x1bd   : > { %v1299_v17 = vadd.f32 %v1257_v41, %v1015_v51  ;;  %v1017_v7 = vpop.f32.mrf.mxu1  ;;  %v1532_v43 = vpop.f32.mrf.mxu3 }
 0x1be   : > { %v1018_v50 = vadd.f32 %v1017_v7, %v4936_v45  ;;  %v4941_v45 = vld [vmem:[#allocation23_spill] sm:$0xff] }
 0x1bf   : > { %v1574_v29 = vadd.f32 %v1532_v43, %v1299_v17 }
 0x1c0   : > { %3450 = vmatmul.msk.f32.gmra.mxu1 %vm269_vm0, %v4928_v6  ;;  %v1813_v28 = vpop.f32.mrf.mxu0 }
 0x1c1   : > { %v4550_v32 = vadd.f32 %v1807_v5, %v1574_v29  ;;  %3483 = vmatmul.msk.f32.gmra.mxu2 %vm269_vm0, %v4935_v2 }
 0x1c2   : > { %3516 = vmatmul.msk.f32.gmra.mxu3 %vm269_vm0, %v2417_v55 }
 0x1c3   : > { %3550 = vmatmul.msk.f32.gmra.mxu0 %vm269_vm0, %v4249_v62 }
 0x1c4   : > { %v1260_v48 = vpop.f32.mrf.mxu2 }
 0x1c5   : > { %v1300_v30 = vadd.f32 %v1260_v48, %v1018_v50  ;;  %v1020_v31 = vpop.f32.mrf.mxu1  ;;  %v1535_v3 = vpop.f32.mrf.mxu3 }
 0x1c6   : > { %v1021_v34 = vadd.f32 %v1020_v31, %v4937_v53  ;;  %v4942_v53 = vld [vmem:[#allocation26_spill] sm:$0xff] }
 0x1c7   : > { %v1575_v56 = vadd.f32 %v1535_v3, %v1300_v30 }
 0x1c8   : > { %3451 = vmatmul.msk.f32.gmra.mxu1 %vm269_vm0, %v4931_v25  ;;  %v1816_v6 = vpop.f32.mrf.mxu0 }
 0x1c9   : > { %v4560_v8 = vadd.f32 %v1810_v36, %v1575_v56  ;;  %3484 = vmatmul.msk.f32.gmra.mxu2 %vm269_vm0, %v4222_v63  ;;  %v4938_v63 = vld [vmem:[#allocation18_spill] sm:$0xff] }
 0x1ca   : > { %3517 = vmatmul.msk.f32.gmra.mxu3 %vm269_vm0, %v2418_v60  ;;  %v2422_v60 = vld [vmem:[#allocation2 + $0xf9] sm:$0xff] }
 0x1cb   : > { %3551 = vmatmul.msk.f32.gmra.mxu0 %vm269_vm0, %v4264_v61 }
 0x1cc   : > { %v1263_v4 = vpop.f32.mrf.mxu2 }
 0x1cd   : > { %v1301_v5 = vadd.f32 %v1263_v4, %v1021_v34  ;;  %v1023_v52 = vpop.f32.mrf.mxu1  ;;  %v1538_v11 = vpop.f32.mrf.mxu3  ;;  %v4943_v34 = vld [vmem:[#allocation25_spill] sm:$0xff] }
 0x1ce   : > { %v1024_v37 = vadd.f32 %v1023_v52, %v4938_v63 }
 0x1cf   : > { %v1576_v24 = vadd.f32 %v1538_v11, %v1301_v5  ;;  %v4944_v5 = vld [vmem:[#allocation33_spill] sm:$0xff] }
 0x1d0   : > { %3452 = vmatmul.msk.f32.gmra.mxu1 %vm269_vm0, %v4934_v44  ;;  %v1819_v25 = vpop.f32.mrf.mxu0 }
 0x1d1   : > { %v4570_v33 = vadd.f32 %v1813_v28, %v1576_v24  ;;  %3485 = vmatmul.msk.f32.gmra.mxu2 %vm269_vm0, %v4238_v14  ;;  %v4939_v14 = vld [vmem:[#allocation21_spill] sm:$0xff] }
 0x1d2   : > { %3518 = vmatmul.msk.f32.gmra.mxu3 %vm269_vm0, %v2419_v42 }
 0x1d3   : > { %3552 = vmatmul.msk.f32.gmra.mxu0 %vm269_vm0, %v4279_v47 }
 0x1d4   : > { %v1266_v12 = vpop.f32.mrf.mxu2 }
 0x1d5   : > { %v1302_v10 = vadd.f32 %v1266_v12, %v1024_v37  ;;  %v1026_v20 = vpop.f32.mrf.mxu1  ;;  %v1541_v36 = vpop.f32.mrf.mxu3 }
 0x1d6   : > { %v1027_v41 = vadd.f32 %v1026_v20, %v4939_v14  ;;  %v4947_v14 = vld [vmem:[#allocation36_spill] sm:$0xff] }
 0x1d7   : > { %v1577_v26 = vadd.f32 %v1541_v36, %v1302_v10  ;;  %v4945_v10 = vld [vmem:[#allocation28_spill] sm:$0xff]  ;;  %v4946_v36 = vld [vmem:[#allocation27_spill] sm:$0xff] }
 0x1d8   : > { %3453 = vmatmul.msk.f32.gmra.mxu1 %vm269_vm0, %v4249_v62  ;;  %v2827_v51 = vpop.f32.mrf.mxu0  ;;  %v2421_v62 = vld [vmem:[#allocation2 + $0xf1] sm:$0xff] }
 0x1d9   : > { %v4580_v44 = vadd.f32 %v1816_v6, %v1577_v26  ;;  %3486 = vmatmul.msk.f32.gmra.mxu2 %vm269_vm0, %v4251_v23  ;;  %v4940_v23 = vld [vmem:[#allocation24_spill] sm:$0xff] }
 0x1da   : > { %3519 = vmatmul.msk.f32.gmra.mxu3 %vm269_vm0, %v2420_v27 }
 0x1db   : > { %3553 = vmatmul.msk.f32.gmra.mxu0 %vm269_vm0, %v4294_v40 }
 0x1dc   : > { %v1269_v17 = vpop.f32.mrf.mxu2 }
 0x1dd   : > { %v1303_v7 = vadd.f32 %v1269_v17, %v1027_v41  ;;  %v1544_v43 = vpop.f32.mrf.mxu3  ;;  %v2001_v29 = vpop.f32.mrf.mxu1 }
 0x1de   : > { %v2097_v50 = vadd.f32 %v2001_v29, %v4941_v45 }
 0x1df   : > { %v1578_v55 = vadd.f32 %v1544_v43, %v1303_v7 }
 0x1e0   : > { %3454 = vmatmul.msk.f32.gmra.mxu1 %vm269_vm0, %v4264_v61  ;;  %v2830_v28 = vpop.f32.mrf.mxu0 }
 0x1e1   : > { %v4590_v2 = vadd.f32 %v1819_v25, %v1578_v55  ;;  %3487 = vmatmul.msk.f32.gmra.mxu2 %vm269_vm0, %v4940_v23  ;;  %v2423_v25 = vld [vmem:[#allocation2 + $0x109] sm:$0xff]  ;;  %v2424_v23 = vld [vmem:[#allocation2 + $0x111] sm:$0xff] }
 0x1e2   : > { %3520 = vmatmul.msk.f32.gmra.mxu3 %vm269_vm0, %v2421_v62 }
 0x1e3   : > { %3554 = vmatmul.msk.f32.gmra.mxu0 %vm269_vm0, %v4309_v49 }
 0x1e4   : > { %v2277_v48 = vpop.f32.mrf.mxu2 }
 0x1e5   : > { %v2373_v30 = vadd.f32 %v2277_v48, %v2097_v50  ;;  %v2004_v31 = vpop.f32.mrf.mxu1  ;;  %v2552_v3 = vpop.f32.mrf.mxu3  ;;  %v4948_v48 = vld [vmem:[#allocation30_spill] sm:$0xff] }
 0x1e6   : > { %v2098_v4 = vadd.f32 %v2004_v31, %v4943_v34 }
 0x1e7   : > { %v2648_v56 = vadd.f32 %v2552_v3, %v2373_v30  ;;  %v4949_v30 = vld [vmem:[#allocation29_spill] sm:$0xff] }
 0x1e8   : > { %3455 = vmatmul.msk.f32.gmra.mxu1 %vm269_vm0, %v4279_v47  ;;  %v2833_v61 = vpop.f32.mrf.mxu0 }
 0x1e9   : > { %v2923_v6 = vadd.f32 %v2827_v51, %v2648_v56  ;;  %3488 = vmatmul.msk.f32.gmra.mxu2 %vm269_vm0, %v4942_v53 }
 0x1ea   : > { %3521 = vmatmul.msk.f32.gmra.mxu3 %vm269_vm0, %v2422_v60  ;;  %v4950_v60 = vld [vmem:[#allocation39_spill] sm:$0xff] }
 0x1eb   : > { %2955 = vst.msk [vmem:[%s4603_s9] sm:$0xff] %vm269_vm0, %v2923_v6  ;;  %3555 = vmatmul.msk.f32.gmra.mxu0 %vm269_vm0, %v4944_v5  ;;  %v3056_v37 = vmul.f32 %v2923_v6, %v2923_v6  ;;  %v2987_v20 = vsel %vm269_vm0, %v2923_v6, 0.0  ;;  %v1874_v5 = vld [vmem:[#allocation2 + $0x10a] sm:$0xff] }
 0x1ec   : > { %v2280_v52 = vpop.f32.mrf.mxu2 }
 0x1ed   : > { %v2374_v11 = vadd.f32 %v2280_v52, %v2098_v4  ;;  %v2007_v24 = vpop.f32.mrf.mxu1  ;;  %v2555_v42 = vpop.f32.mrf.mxu3  ;;  %v3088_v17 = vsel %vm269_vm0, %v3056_v37, 0.0  ;;  %v4951_v37 = vld [vmem:[#allocation31_spill] sm:$0xff] }
 0x1ee   : > { %v2099_v26 = vadd.f32 %v2007_v24, %v4946_v36 }
 0x1ef   : > { %v2649_v47 = vadd.f32 %v2555_v42, %v2374_v11  ;;  %v2150_v11 = vld [vmem:[#allocation2 + $0x120] sm:$0xff] }
 0x1f0   : > { %3456 = vmatmul.msk.f32.gmra.mxu1 %vm269_vm0, %v4294_v40  ;;  %v2836_v63 = vpop.f32.mrf.mxu0 }
 0x1f1   : > { %v2924_v12 = vadd.f32 %v2830_v28, %v2649_v47  ;;  %3489 = vmatmul.msk.f32.gmra.mxu2 %vm269_vm0, %v4945_v10  ;;  %v2701_v47 = vld [vmem:[#allocation2 + $0x12a] sm:$0xff] }
 0x1f2   : > { %3522 = vmatmul.msk.f32.gmra.mxu3 %vm269_vm0, %v2423_v25 }
 0x1f3   : > { %2956 = vst.msk [vmem:[%s4603_s9 + $0x8] sm:$0xff] %vm269_vm0, %v2924_v12  ;;  %v2988_v27 = vsel %vm269_vm0, %v2924_v12, 0.0  ;;  %v3057_v51 = vmul.f32 %v2924_v12, %v2924_v12  ;;  %3556 = vmatmul.msk.f32.gmra.mxu0 %vm269_vm0, %v4947_v14  ;;  %v4952_v12 = vld [vmem:[#allocation32_spill] sm:$0xff] }
 0x1f4   : > { %v2989_v40 = vadd.f32 %v2988_v27, %v2987_v20  ;;  %v2283_v41 = vpop.f32.mrf.mxu2 }
 0x1f5   : > { %v3089_v7 = vsel %vm269_vm0, %v3057_v51, 0.0  ;;  %v2375_v43 = vadd.f32 %v2283_v41, %v2099_v26  ;;  %v2010_v29 = vpop.f32.mrf.mxu1  ;;  %v2558_v55 = vpop.f32.mrf.mxu3  ;;  %v1875_v41 = vld [vmem:[#allocation2 + $0x112] sm:$0xff] }
 0x1f6   : > { %v3090_v62 = vadd.f32 %v3089_v7, %v3088_v17  ;;  %v2100_v31 = vadd.f32 %v2010_v29, %v4949_v30  ;;  %v2151_v7 = vld [vmem:[#allocation2 + $0x128] sm:$0xff] }
 0x1f7   : > { %v2650_v28 = vadd.f32 %v2558_v55, %v2375_v43  ;;  %v2702_v55 = vld [vmem:[#allocation2 + $0x13a] sm:$0xff] }
 0x1f8   : > { %3457 = vmatmul.msk.f32.gmra.mxu1 %vm269_vm0, %v4309_v49  ;;  %v2839_v45 = vpop.f32.mrf.mxu0 }
 0x1f9   : > { %v2925_v50 = vadd.f32 %v2833_v61, %v2650_v28  ;;  %3490 = vmatmul.msk.f32.gmra.mxu2 %vm269_vm0, %v4948_v48  ;;  %v4953_v28 = vld [vmem:[#allocation34_spill] sm:$0xff] }
 0x1fa   : > { %3523 = vmatmul.msk.f32.gmra.mxu3 %vm269_vm0, %v2424_v23  ;;  %v4954_v23 = vld [vmem:[#allocation35_spill] sm:$0xff] }
 0x1fb   : > { %2957 = vst.msk [vmem:[%s4603_s9 + $0x10] sm:$0xff] %vm269_vm0, %v2925_v50  ;;  %v2990_v3 = vsel %vm269_vm0, %v2925_v50, 0.0  ;;  %v3058_v56 = vmul.f32 %v2925_v50, %v2925_v50  ;;  %3557 = vmatmul.msk.f32.gmra.mxu0 %vm269_vm0, %v4950_v60 }
 0x1fc   : > { %v2991_v6 = vadd.f32 %v2990_v3, %v2989_v40  ;;  %v2286_v53 = vpop.f32.mrf.mxu2 }
 0x1fd   : > { %v3091_v49 = vsel %vm269_vm0, %v3058_v56, 0.0  ;;  %v2376_v61 = vadd.f32 %v2286_v53, %v2100_v31  ;;  %v2013_v34 = vpop.f32.mrf.mxu1  ;;  %v2561_v4 = vpop.f32.mrf.mxu3  ;;  %v1876_v53 = vld [vmem:[#allocation2 + $0x122] sm:$0xff] }
 0x1fe   : > { %v3092_v52 = vadd.f32 %v3091_v49, %v3090_v62  ;;  %v2101_v10 = vadd.f32 %v2013_v34, %v4952_v12 }
 0x1ff   : > { %v2651_v24 = vadd.f32 %v2561_v4, %v2376_v61  ;;  %v2152_v61 = vld [vmem:[#allocation2 + $0x138] sm:$0xff] }
 0x200   : > { %3458 = vmatmul.msk.f32.gmra.mxu1 %vm269_vm0, %v1874_v5  ;;  %v2842_v42 = vpop.f32.mrf.mxu0  ;;  %v2703_v5 = vld [vmem:[#allocation2 + $0x142] sm:$0xff] }
 0x201   : > { %v2926_v25 = vadd.f32 %v2836_v63, %v2651_v24  ;;  %3491 = vmatmul.msk.f32.gmra.mxu2 %vm269_vm0, %v2150_v11  ;;  %v4955_v11 = vld [vmem:[#allocation37_spill] sm:$0xff]  ;;  %v4956_v24 = vld [vmem:[#allocation38_spill] sm:$0xff] }
 0x202   : > { %3524 = vmatmul.msk.f32.gmra.mxu3 %vm269_vm0, %v4951_v37 }
 0x203   : > { %2958 = vst.msk [vmem:[%s4603_s9 + $0x18] sm:$0xff] %vm269_vm0, %v2926_v25  ;;  %v2992_v20 = vsel %vm269_vm0, %v2926_v25, 0.0  ;;  %v3059_v36 = vmul.f32 %v2926_v25, %v2926_v25  ;;  %3558 = vmatmul.msk.f32.gmra.mxu0 %vm269_vm0, %v2701_v47 }
 0x204   : > { %v2993_v26 = vadd.f32 %v2992_v20, %v2991_v6  ;;  %v2289_v27 = vpop.f32.mrf.mxu2 }
 0x205   : > { %v3093_v51 = vsel %vm269_vm0, %v3059_v36, 0.0  ;;  %v2377_v63 = vadd.f32 %v2289_v27, %v2101_v10  ;;  %v2016_v14 = vpop.f32.mrf.mxu1  ;;  %v2564_v40 = vpop.f32.mrf.mxu3 }
 0x206   : > { %v3094_v17 = vadd.f32 %v3093_v51, %v3092_v52  ;;  %v2102_v50 = vadd.f32 %v2016_v14, %v4954_v23 }
 0x207   : > { %v2652_v43 = vadd.f32 %v2564_v40, %v2377_v63  ;;  %v2153_v63 = vld [vmem:[#allocation2 + $0x140] sm:$0xff] }
 0x208   : > { %3459 = vmatmul.msk.f32.gmra.mxu1 %vm269_vm0, %v1875_v41  ;;  %v2845_v29 = vpop.f32.mrf.mxu0  ;;  %v2428_v40 = vld [vmem:[#allocation2 + $0x141] sm:$0xff] }
 0x209   : > { %v2927_v62 = vadd.f32 %v2839_v45, %v2652_v43  ;;  %3492 = vmatmul.msk.f32.gmra.mxu2 %vm269_vm0, %v2151_v7  ;;  %v4957_v43 = vld [vmem:[#allocation40_spill] sm:$0xff] }
 0x20a   : > { %3525 = vmatmul.msk.f32.gmra.mxu3 %vm269_vm0, %v4953_v28 }
 0x20b   : > { %2959 = vst.msk [vmem:[%s4603_s9 + $0x20] sm:$0xff] %vm269_vm0, %v2927_v62  ;;  %v2994_v48 = vsel %vm269_vm0, %v2927_v62, 0.0  ;;  %v3060_v30 = vmul.f32 %v2927_v62, %v2927_v62  ;;  %3559 = vmatmul.msk.f32.gmra.mxu0 %vm269_vm0, %v2702_v55 }
 0x20c   : > { %v2995_v31 = vadd.f32 %v2994_v48, %v2993_v26  ;;  %v2292_v3 = vpop.f32.mrf.mxu2 }
 0x20d   : > { %v3095_v56 = vsel %vm269_vm0, %v3060_v30, 0.0  ;;  %v2378_v45 = vadd.f32 %v2292_v3, %v2102_v50  ;;  %v2019_v60 = vpop.f32.mrf.mxu1  ;;  %v2567_v6 = vpop.f32.mrf.mxu3 }
 0x20e   : > { %v3096_v49 = vadd.f32 %v3095_v56, %v3094_v17  ;;  %v2103_v25 = vadd.f32 %v2019_v60, %v4956_v24  ;;  %v2704_v17 = vld [vmem:[#allocation2 + $0x152] sm:$0xff] }
 0x20f   : > { %v2653_v34 = vadd.f32 %v2567_v6, %v2378_v45  ;;  %v2154_v56 = vld [vmem:[#allocation2 + $0x150] sm:$0xff] }
 0x210   : > { %3460 = vmatmul.msk.f32.gmra.mxu1 %vm269_vm0, %v1876_v53  ;;  %v2848_v4 = vpop.f32.mrf.mxu0  ;;  %v2429_v60 = vld [vmem:[#allocation2 + $0x151] sm:$0xff]  ;;  %v2705_v53 = vld [vmem:[#allocation2 + $0x15a] sm:$0xff] }
 0x211   : > { %v2928_v52 = vadd.f32 %v2842_v42, %v2653_v34  ;;  %3493 = vmatmul.msk.f32.gmra.mxu2 %vm269_vm0, %v2152_v61  ;;  %v4958_v61 = vld [vmem:[#allocation41_spill] sm:$0xff] }
 0x212   : > { %3526 = vmatmul.msk.f32.gmra.mxu3 %vm269_vm0, %v4955_v11 }
 0x213   : > { %2960 = vst.msk [vmem:[%s4603_s9 + $0x28] sm:$0xff] %vm269_vm0, %v2928_v52  ;;  %v2996_v37 = vsel %vm269_vm0, %v2928_v52, 0.0  ;;  %v3061_v12 = vmul.f32 %v2928_v52, %v2928_v52  ;;  %3560 = vmatmul.msk.f32.gmra.mxu0 %vm269_vm0, %v2703_v5 }
 0x214   : > { %v2997_v10 = vadd.f32 %v2996_v37, %v2995_v31  ;;  %v2295_v20 = vpop.f32.mrf.mxu2 }
 0x215   : > { %v3097_v36 = vsel %vm269_vm0, %v3061_v12, 0.0  ;;  %v2379_v42 = vadd.f32 %v2295_v20, %v2103_v25  ;;  %v2022_v26 = vpop.f32.mrf.mxu1  ;;  %v2570_v27 = vpop.f32.mrf.mxu3  ;;  %v2155_v20 = vld [vmem:[#allocation2 + $0x158] sm:$0xff] }
 0x216   : > { %v3098_v51 = vadd.f32 %v3097_v36, %v3096_v49  ;;  %v2104_v62 = vadd.f32 %v2022_v26, %v4957_v43 }
 0x217   : > { %v2654_v14 = vadd.f32 %v2570_v27, %v2379_v42  ;;  %v2430_v42 = vld [vmem:[#allocation2 + $0x159] sm:$0xff]  ;;  %v2706_v27 = vld [vmem:[#allocation2 + $0x16a] sm:$0xff] }
 0x218   : > { %3461 = vmatmul.msk.f32.gmra.mxu1 %vm269_vm0, %v2701_v47  ;;  %v2851_v41 = vpop.f32.mrf.mxu0 }
 0x219   : > { %v2929_v7 = vadd.f32 %v2845_v29, %v2654_v14  ;;  %3494 = vmatmul.msk.f32.gmra.mxu2 %vm269_vm0, %v2153_v63 }
 0x21a   : > { %3527 = vmatmul.msk.f32.gmra.mxu3 %vm269_vm0, %v2428_v40 }
 0x21b   : > { %2961 = vst.msk [vmem:[%s4603_s9 + $0x30] sm:$0xff] %vm269_vm0, %v2929_v7  ;;  %v2998_v28 = vsel %vm269_vm0, %v2929_v7, 0.0  ;;  %v3062_v23 = vmul.f32 %v2929_v7, %v2929_v7  ;;  %3561 = vmatmul.msk.f32.gmra.mxu0 %vm269_vm0, %v2704_v17 }
 0x21c   : > { %v2999_v50 = vadd.f32 %v2998_v28, %v2997_v10  ;;  %v2298_v48 = vpop.f32.mrf.mxu2 }
 0x21d   : > { %v3099_v47 = vsel %vm269_vm0, %v3062_v23, 0.0  ;;  %v2380_v30 = vadd.f32 %v2298_v48, %v2104_v62  ;;  %v2025_v29 = vpop.f32.mrf.mxu1  ;;  %v2573_v31 = vpop.f32.mrf.mxu3 }
 0x21e   : > { %v3100_v3 = vadd.f32 %v3099_v47, %v3098_v51  ;;  %v2105_v34 = vadd.f32 %v2025_v29, %v4958_v61  ;;  %v2431_v47 = vld [vmem:[#allocation2 + $0x169] sm:$0xff] }
 0x21f   : > { %v2655_v45 = vadd.f32 %v2573_v31, %v2380_v30  ;;  %v2707_v30 = vld [vmem:[#allocation2 + $0x172] sm:$0xff] }
 0x220   : > { %3462 = vmatmul.msk.f32.gmra.mxu1 %vm269_vm0, %v2702_v55  ;;  %v2854_v6 = vpop.f32.mrf.mxu0 }
 0x221   : > { %v2930_v49 = vadd.f32 %v2848_v4, %v2655_v45  ;;  %3495 = vmatmul.msk.f32.gmra.mxu2 %vm269_vm0, %v2154_v56 }
 0x222   : > { %3528 = vmatmul.msk.f32.gmra.mxu3 %vm269_vm0, %v2429_v60 }
 0x223   : > { %2962 = vst.msk [vmem:[%s4603_s9 + $0x38] sm:$0xff] %vm269_vm0, %v2930_v49  ;;  %v3000_v52 = vsel %vm269_vm0, %v2930_v49, 0.0  ;;  %v3063_v11 = vmul.f32 %v2930_v49, %v2930_v49  ;;  %3562 = vmatmul.msk.f32.gmra.mxu0 %vm269_vm0, %v2705_v53 }
 0x224   : > { %v3001_v24 = vadd.f32 %v3000_v52, %v2999_v50  ;;  %v2301_v25 = vpop.f32.mrf.mxu2  ;;  %v2156_v50 = vld [vmem:[#allocation2 + $0x168] sm:$0xff]  ;;  %v2157_v52 = vld [vmem:[#allocation2 + $0x170] sm:$0xff] }
 0x225   : > { %v3101_v55 = vsel %vm269_vm0, %v3063_v11, 0.0  ;;  %v2381_v37 = vadd.f32 %v2301_v25, %v2105_v34  ;;  %v2028_v4 = vpop.f32.mrf.mxu1  ;;  %v2576_v12 = vpop.f32.mrf.mxu3  ;;  %v2708_v25 = vld [vmem:[#allocation2 + $0x182] sm:$0xff] }
 0x226   : > { %v3102_v10 = vadd.f32 %v3101_v55, %v3100_v3  ;;  %v2106_v63 = vadd.f32 %v2028_v4, %v4382_v38 }
 0x227   : > { %v2656_v36 = vadd.f32 %v2576_v12, %v2381_v37 }
 0x228   : > { %3463 = vmatmul.msk.f32.gmra.mxu1 %vm269_vm0, %v2703_v5  ;;  %v2857_v26 = vpop.f32.mrf.mxu0 }
 0x229   : > { %v2931_v51 = vadd.f32 %v2851_v41, %v2656_v36  ;;  %3496 = vmatmul.msk.f32.gmra.mxu2 %vm269_vm0, %v2155_v20 }
 0x22a   : > { %3529 = vmatmul.msk.f32.gmra.mxu3 %vm269_vm0, %v2430_v42 }
 0x22b   : > { %2963 = vst.msk [vmem:[%s4603_s9 + $0x40] sm:$0xff] %vm269_vm0, %v2931_v51  ;;  %v3002_v14 = vsel %vm269_vm0, %v2931_v51, 0.0  ;;  %v3064_v40 = vmul.f32 %v2931_v51, %v2931_v51  ;;  %3563 = vmatmul.msk.f32.gmra.mxu0 %vm269_vm0, %v2706_v27 }
 0x22c   : > { %v3003_v7 = vadd.f32 %v3002_v14, %v3001_v24  ;;  %v2304_v43 = vpop.f32.mrf.mxu2  ;;  %v2432_v24 = vld [vmem:[#allocation2 + $0x171] sm:$0xff] }
 0x22d   : > { %v3103_v5 = vsel %vm269_vm0, %v3064_v40, 0.0  ;;  %v2382_v62 = vadd.f32 %v2304_v43, %v2106_v63  ;;  %v2031_v41 = vpop.f32.mrf.mxu1  ;;  %v2579_v28 = vpop.f32.mrf.mxu3  ;;  %v2158_v63 = vld [vmem:[#allocation2 + $0x180] sm:$0xff] }
 0x22e   : > { %v3104_v23 = vadd.f32 %v3103_v5, %v3102_v10  ;;  %v2107_v31 = vadd.f32 %v2031_v41, %v4391_v54  ;;  %v2433_v40 = vld [vmem:[#allocation2 + $0x181] sm:$0xff] }
 0x22f   : > { %v2657_v48 = vadd.f32 %v2579_v28, %v2382_v62 }
 0x230   : > { %3464 = vmatmul.msk.f32.gmra.mxu1 %vm269_vm0, %v2704_v17  ;;  %v2860_v38 = vpop.f32.mrf.mxu0 }
 0x231   : > { %v2932_v29 = vadd.f32 %v2854_v6, %v2657_v48  ;;  %3497 = vmatmul.msk.f32.gmra.mxu2 %vm269_vm0, %v2156_v50 }
 0x232   : > { %3530 = vmatmul.msk.f32.gmra.mxu3 %vm269_vm0, %v2431_v47 }
 0x233   : > { %2964 = vst.msk [vmem:[%s4603_s9 + $0x48] sm:$0xff] %vm269_vm0, %v2932_v29  ;;  %v3004_v3 = vsel %vm269_vm0, %v2932_v29, 0.0  ;;  %v3065_v56 = vmul.f32 %v2932_v29, %v2932_v29  ;;  %3564 = vmatmul.msk.f32.gmra.mxu0 %vm269_vm0, %v2707_v30  ;;  %v2159_v29 = vld [vmem:[#allocation2 + $0x188] sm:$0xff] }
 0x234   : > { %v3005_v45 = vadd.f32 %v3004_v3, %v3003_v7  ;;  %v2307_v60 = vpop.f32.mrf.mxu2  ;;  %v2709_v7 = vld [vmem:[#allocation2 + $0x18a] sm:$0xff] }
 0x235   : > { %v3105_v17 = vsel %vm269_vm0, %v3065_v56, 0.0  ;;  %v2383_v49 = vadd.f32 %v2307_v60, %v2107_v31  ;;  %v2034_v6 = vpop.f32.mrf.mxu1  ;;  %v2582_v61 = vpop.f32.mrf.mxu3  ;;  %v2434_v3 = vld [vmem:[#allocation2 + $0x189] sm:$0xff]  ;;  %v2710_v56 = vld [vmem:[#allocation2 + $0x19a] sm:$0xff] }
 0x236   : > { %v3106_v34 = vadd.f32 %v3105_v17, %v3104_v23  ;;  %v2108_v37 = vadd.f32 %v2034_v6, %v4399_v18 }
 0x237   : > { %v2658_v11 = vadd.f32 %v2582_v61, %v2383_v49 }
 0x238   : > { %3465 = vmatmul.msk.f32.gmra.mxu1 %vm269_vm0, %v2705_v53  ;;  %v2863_v54 = vpop.f32.mrf.mxu0 }
 0x239   : > { %v2933_v55 = vadd.f32 %v2857_v26, %v2658_v11  ;;  %3498 = vmatmul.msk.f32.gmra.mxu2 %vm269_vm0, %v2157_v52 }
 0x23a   : > { %3531 = vmatmul.msk.f32.gmra.mxu3 %vm269_vm0, %v2432_v24 }
 0x23b   : > { %2965 = vst.msk [vmem:[%s4603_s9 + $0x50] sm:$0xff] %vm269_vm0, %v2933_v55  ;;  %v3006_v4 = vsel %vm269_vm0, %v2933_v55, 0.0  ;;  %v3066_v12 = vmul.f32 %v2933_v55, %v2933_v55  ;;  %3565 = vmatmul.msk.f32.gmra.mxu0 %vm269_vm0, %v2708_v25 }
 0x23c   : > { %v3007_v10 = vadd.f32 %v3006_v4, %v3005_v45  ;;  %v2310_v20 = vpop.f32.mrf.mxu2  ;;  %v2711_v4 = vld [vmem:[#allocation2 + $0x1a2] sm:$0xff] }
 0x23d   : > { %v3107_v53 = vsel %vm269_vm0, %v3066_v12, 0.0  ;;  %v2384_v36 = vadd.f32 %v2310_v20, %v2108_v37  ;;  %v2037_v42 = vpop.f32.mrf.mxu1  ;;  %v2585_v26 = vpop.f32.mrf.mxu3  ;;  %v2435_v37 = vld [vmem:[#allocation2 + $0x199] sm:$0xff] }
 0x23e   : > { %v3108_v51 = vadd.f32 %v3107_v53, %v3106_v34  ;;  %v2109_v5 = vadd.f32 %v2037_v42, %v4407_v9 }
 0x23f   : > { %v2659_v14 = vadd.f32 %v2585_v26, %v2384_v36 }
 0x240   : > { %3466 = vmatmul.msk.f32.gmra.mxu1 %vm269_vm0, %v2706_v27  ;;  %v2866_v18 = vpop.f32.mrf.mxu0 }
 0x241   : > { %v2934_v43 = vadd.f32 %v2860_v38, %v2659_v14  ;;  %3499 = vmatmul.msk.f32.gmra.mxu2 %vm269_vm0, %v2158_v63 }
 0x242   : > { %3532 = vmatmul.msk.f32.gmra.mxu3 %vm269_vm0, %v2433_v40  ;;  %v2161_v40 = vld [vmem:[#allocation2 + $0x1a0] sm:$0xff] }
 0x243   : > { %2966 = vst.msk [vmem:[%s4603_s9 + $0x58] sm:$0xff] %vm269_vm0, %v2934_v43  ;;  %v3008_v62 = vsel %vm269_vm0, %v2934_v43, 0.0  ;;  %v3067_v41 = vmul.f32 %v2934_v43, %v2934_v43  ;;  %3566 = vmatmul.msk.f32.gmra.mxu0 %vm269_vm0, %v2709_v7  ;;  %v2436_v43 = vld [vmem:[#allocation2 + $0x1a1] sm:$0xff] }
 0x244   : > { %v3009_v28 = vadd.f32 %v3008_v62, %v3007_v10  ;;  %v2313_v23 = vpop.f32.mrf.mxu2 }
 0x245   : > { %v3109_v27 = vsel %vm269_vm0, %v3067_v41, 0.0  ;;  %v2385_v50 = vadd.f32 %v2313_v23, %v2109_v5  ;;  %v2040_v48 = vpop.f32.mrf.mxu1  ;;  %v2588_v47 = vpop.f32.mrf.mxu3 }
 0x246   : > { %v3110_v38 = vadd.f32 %v3109_v27, %v3108_v51  ;;  %v2110_v60 = vadd.f32 %v2040_v48, %v4414_v22 }
 0x247   : > { %v2660_v31 = vadd.f32 %v2588_v47, %v2385_v50 }
 0x248   : > { %3467 = vmatmul.msk.f32.gmra.mxu1 %vm269_vm0, %v2707_v30  ;;  %v2869_v9 = vpop.f32.mrf.mxu0 }
 0x249   : > { %v2935_v45 = vadd.f32 %v2863_v54, %v2660_v31  ;;  %3500 = vmatmul.msk.f32.gmra.mxu2 %vm269_vm0, %v2159_v29  ;;  %v2160_v54 = vld [vmem:[#allocation2 + $0x198] sm:$0xff] }
 0x24a   : > { %3533 = vmatmul.msk.f32.gmra.mxu3 %vm269_vm0, %v2434_v3 }
 0x24b   : > { %2967 = vst.msk [vmem:[%s4603_s9 + $0x60] sm:$0xff] %vm269_vm0, %v2935_v45  ;;  %v3010_v17 = vsel %vm269_vm0, %v2935_v45, 0.0  ;;  %v3068_v49 = vmul.f32 %v2935_v45, %v2935_v45  ;;  %3567 = vmatmul.msk.f32.gmra.mxu0 %vm269_vm0, %v2710_v56 }
 0x24c   : > { %v3011_v6 = vadd.f32 %v3010_v17, %v3009_v28  ;;  %v2316_v61 = vpop.f32.mrf.mxu2 }
 0x24d   : > { %v3111_v30 = vsel %vm269_vm0, %v3068_v49, 0.0  ;;  %v2386_v34 = vadd.f32 %v2316_v61, %v2110_v60  ;;  %v2043_v52 = vpop.f32.mrf.mxu1  ;;  %v2591_v11 = vpop.f32.mrf.mxu3 }
 0x24e   : > { %v3112_v24 = vadd.f32 %v3111_v30, %v3110_v38  ;;  %v2111_v10 = vadd.f32 %v2043_v52, %v4421_v1 }
 0x24f   : > { %v2661_v55 = vadd.f32 %v2591_v11, %v2386_v34 }
 0x250   : > { %3468 = vmatmul.msk.f32.gmra.mxu1 %vm269_vm0, %v2708_v25  ;;  %v2872_v22 = vpop.f32.mrf.mxu0 }
 0x251   : > { %v2936_v12 = vadd.f32 %v2866_v18, %v2661_v55  ;;  %3501 = vmatmul.msk.f32.gmra.mxu2 %vm269_vm0, %v2160_v54 }
 0x252   : > { %3534 = vmatmul.msk.f32.gmra.mxu3 %vm269_vm0, %v2435_v37 }
 0x253   : > { %2968 = vst.msk [vmem:[%s4603_s9 + $0x68] sm:$0xff] %vm269_vm0, %v2936_v12  ;;  %v3012_v20 = vsel %vm269_vm0, %v2936_v12, 0.0  ;;  %v3069_v53 = vmul.f32 %v2936_v12, %v2936_v12  ;;  %3568 = vmatmul.msk.f32.gmra.mxu0 %vm269_vm0, %v2711_v4 }
 0x254   : > { %v3013_v36 = vadd.f32 %v3012_v20, %v3011_v6  ;;  %v2319_v42 = vpop.f32.mrf.mxu2 }
 0x255   : > { %v3113_v25 = vsel %vm269_vm0, %v3069_v53, 0.0  ;;  %v2387_v26 = vadd.f32 %v2319_v42, %v2111_v10  ;;  %v2046_v51 = vpop.f32.mrf.mxu1  ;;  %v2594_v63 = vpop.f32.mrf.mxu3 }
 0x256   : > { %v3114_v14 = vadd.f32 %v3113_v25, %v3112_v24  ;;  %v2112_v62 = vadd.f32 %v2046_v51, %v4430_v46 }
 0x257   : > { %v2662_v18 = vadd.f32 %v2594_v63, %v2387_v26 }
 0x258   : > { %3469 = vmatmul.msk.f32.gmra.mxu1 %vm269_vm0, %v2709_v7  ;;  %v2875_v1 = vpop.f32.mrf.mxu0 }
 0x259   : > { %v2937_v5 = vadd.f32 %v2869_v9, %v2662_v18  ;;  %3502 = vmatmul.msk.f32.gmra.mxu2 %vm269_vm0, %v2161_v40 }
 0x25a   : > { %3535 = vmatmul.msk.f32.gmra.mxu3 %vm269_vm0, %v2436_v43 }
 0x25b   : > { %2969 = vst.msk [vmem:[%s4603_s9 + $0x70] sm:$0xff] %vm269_vm0, %v2937_v5  ;;  %v3014_v41 = vsel %vm269_vm0, %v2937_v5, 0.0  ;;  %v3070_v28 = vmul.f32 %v2937_v5, %v2937_v5 }
 0x25c   : > { %v3015_v23 = vadd.f32 %v3014_v41, %v3013_v36  ;;  %v2322_v27 = vpop.f32.mrf.mxu2 }
 0x25d   : > { %v3115_v50 = vsel %vm269_vm0, %v3070_v28, 0.0  ;;  %v2388_v48 = vadd.f32 %v2322_v27, %v2112_v62  ;;  %v2049_v7 = vpop.f32.mrf.mxu1  ;;  %v2597_v47 = vpop.f32.mrf.mxu3 }
 0x25e   : > { %v3116_v38 = vadd.f32 %v3115_v50, %v3114_v14  ;;  %v2113_v9 = vadd.f32 %v2049_v7, %v4440_v19 }
 0x25f   : > { %v2663_v29 = vadd.f32 %v2597_v47, %v2388_v48 }
 0x260   : > { %v2878_v31 = vpop.f32.mrf.mxu0 }
 0x261   : > { %v2938_v3 = vadd.f32 %v2872_v22, %v2663_v29 }
 0x263   : > { %2970 = vst.msk [vmem:[%s4603_s9 + $0x78] sm:$0xff] %vm269_vm0, %v2938_v3  ;;  %v3016_v46 = vsel %vm269_vm0, %v2938_v3, 0.0  ;;  %v3071_v56 = vmul.f32 %v2938_v3, %v2938_v3 }
 0x264   : > { %v3017_v45 = vadd.f32 %v3016_v46, %v3015_v23  ;;  %v2325_v60 = vpop.f32.mrf.mxu2 }
 0x265   : > { %v3117_v17 = vsel %vm269_vm0, %v3071_v56, 0.0  ;;  %v2389_v49 = vadd.f32 %v2325_v60, %v2113_v9  ;;  %v2052_v6 = vpop.f32.mrf.mxu1  ;;  %v2600_v61 = vpop.f32.mrf.mxu3 }
 0x266   : > { %v3118_v30 = vadd.f32 %v3117_v17, %v3116_v38  ;;  %v2114_v24 = vadd.f32 %v2052_v6, %v4450_v57 }
 0x267   : > { %v2664_v34 = vadd.f32 %v2600_v61, %v2389_v49 }
 0x268   : > { %v2881_v52 = vpop.f32.mrf.mxu0 }
 0x269   : > { %v2939_v11 = vadd.f32 %v2875_v1, %v2664_v34 }
 0x26b   : > { %2971 = vst.msk [vmem:[%s4603_s9 + $0x80] sm:$0xff] %vm269_vm0, %v2939_v11  ;;  %v3018_v19 = vsel %vm269_vm0, %v2939_v11, 0.0  ;;  %v3072_v54 = vmul.f32 %v2939_v11, %v2939_v11 }
 0x26c   : > { %v3019_v55 = vadd.f32 %v3018_v19, %v3017_v45  ;;  %v2328_v37 = vpop.f32.mrf.mxu2 }
 0x26d   : > { %v3119_v22 = vsel %vm269_vm0, %v3072_v54, 0.0  ;;  %v2390_v4 = vadd.f32 %v2328_v37, %v2114_v24  ;;  %v2055_v12 = vpop.f32.mrf.mxu1  ;;  %v2603_v10 = vpop.f32.mrf.mxu3 }
 0x26e   : > { %v3120_v20 = vadd.f32 %v3119_v22, %v3118_v30  ;;  %v2115_v25 = vadd.f32 %v2055_v12, %v4460_v16 }
 0x26f   : > { %v2665_v53 = vadd.f32 %v2603_v10, %v2390_v4 }
 0x270   : > { %v2884_v36 = vpop.f32.mrf.mxu0 }
 0x271   : > { %v2940_v42 = vadd.f32 %v2878_v31, %v2665_v53 }
 0x273   : > { %2972 = vst.msk [vmem:[%s4603_s9 + $0x88] sm:$0xff] %vm269_vm0, %v2940_v42  ;;  %v3020_v57 = vsel %vm269_vm0, %v2940_v42, 0.0  ;;  %v3073_v26 = vmul.f32 %v2940_v42, %v2940_v42 }
 0x274   : > { %v3021_v51 = vadd.f32 %v3020_v57, %v3019_v55  ;;  %v2331_v63 = vpop.f32.mrf.mxu2 }
 0x275   : > { %v3121_v14 = vsel %vm269_vm0, %v3073_v26, 0.0  ;;  %v2391_v40 = vadd.f32 %v2331_v63, %v2115_v25  ;;  %v2058_v18 = vpop.f32.mrf.mxu1  ;;  %v2606_v43 = vpop.f32.mrf.mxu3 }
 0x276   : > { %v3122_v1 = vadd.f32 %v3121_v14, %v3120_v20  ;;  %v2116_v28 = vadd.f32 %v2058_v18, %v4470_v21 }
 0x277   : > { %v2666_v5 = vadd.f32 %v2606_v43, %v2391_v40 }
 0x278   : > { %v2887_v62 = vpop.f32.mrf.mxu0 }
 0x279   : > { %v2941_v41 = vadd.f32 %v2881_v52, %v2666_v5 }
 0x27b   : > { %2973 = vst.msk [vmem:[%s4603_s9 + $0x90] sm:$0xff] %vm269_vm0, %v2941_v41  ;;  %v3022_v16 = vsel %vm269_vm0, %v2941_v41, 0.0  ;;  %v3074_v23 = vmul.f32 %v2941_v41, %v2941_v41 }
 0x27c   : > { %v3023_v27 = vadd.f32 %v3022_v16, %v3021_v51  ;;  %v2334_v50 = vpop.f32.mrf.mxu2 }
 0x27d   : > { %v3123_v48 = vsel %vm269_vm0, %v3074_v23, 0.0  ;;  %v2392_v7 = vadd.f32 %v2334_v50, %v2116_v28  ;;  %v2061_v47 = vpop.f32.mrf.mxu1  ;;  %v2609_v38 = vpop.f32.mrf.mxu3 }
 0x27e   : > { %v3124_v29 = vadd.f32 %v3123_v48, %v3122_v1  ;;  %v2117_v46 = vadd.f32 %v2061_v47, %v4480_v13 }
 0x27f   : > { %v2667_v31 = vadd.f32 %v2609_v38, %v2392_v7 }
 0x280   : > { %v2890_v3 = vpop.f32.mrf.mxu0 }
 0x281   : > { %v2942_v9 = vadd.f32 %v2884_v36, %v2667_v31 }
 0x283   : > { %2974 = vst.msk [vmem:[%s4603_s9 + $0x98] sm:$0xff] %vm269_vm0, %v2942_v9  ;;  %v3024_v21 = vsel %vm269_vm0, %v2942_v9, 0.0  ;;  %v3075_v56 = vmul.f32 %v2942_v9, %v2942_v9 }
 0x284   : > { %v3025_v45 = vadd.f32 %v3024_v21, %v3023_v27  ;;  %v2337_v60 = vpop.f32.mrf.mxu2 }
 0x285   : > { %v3125_v17 = vsel %vm269_vm0, %v3075_v56, 0.0  ;;  %v2393_v49 = vadd.f32 %v2337_v60, %v2117_v46  ;;  %v2064_v6 = vpop.f32.mrf.mxu1  ;;  %v2612_v61 = vpop.f32.mrf.mxu3 }
 0x286   : > { %v3126_v30 = vadd.f32 %v3125_v17, %v3124_v29  ;;  %v2118_v24 = vadd.f32 %v2064_v6, %v4490_v35 }
 0x287   : > { %v2668_v34 = vadd.f32 %v2612_v61, %v2393_v49 }
 0x288   : > { %v2893_v52 = vpop.f32.mrf.mxu0 }
 0x289   : > { %v2943_v11 = vadd.f32 %v2887_v62, %v2668_v34 }
 0x28b   : > { %2975 = vst.msk [vmem:[%s4603_s9 + $0xa0] sm:$0xff] %vm269_vm0, %v2943_v11  ;;  %v3026_v13 = vsel %vm269_vm0, %v2943_v11, 0.0  ;;  %v3076_v19 = vmul.f32 %v2943_v11, %v2943_v11 }
 0x28c   : > { %v3027_v54 = vadd.f32 %v3026_v13, %v3025_v45  ;;  %v2340_v55 = vpop.f32.mrf.mxu2 }
 0x28d   : > { %v3127_v37 = vsel %vm269_vm0, %v3076_v19, 0.0  ;;  %v2394_v22 = vadd.f32 %v2340_v55, %v2118_v24  ;;  %v2067_v4 = vpop.f32.mrf.mxu1  ;;  %v2615_v12 = vpop.f32.mrf.mxu3 }
 0x28e   : > { %v3128_v10 = vadd.f32 %v3127_v37, %v3126_v30  ;;  %v2119_v42 = vadd.f32 %v2067_v4, %v4500_v58 }
 0x28f   : > { %v2669_v20 = vadd.f32 %v2615_v12, %v2394_v22 }
 0x290   : > { %v2896_v53 = vpop.f32.mrf.mxu0 }
 0x291   : > { %v2944_v36 = vadd.f32 %v2890_v3, %v2669_v20 }
 0x293   : > { %2976 = vst.msk [vmem:[%s4603_s9 + $0xa8] sm:$0xff] %vm269_vm0, %v2944_v36  ;;  %v3028_v35 = vsel %vm269_vm0, %v2944_v36, 0.0  ;;  %v3077_v25 = vmul.f32 %v2944_v36, %v2944_v36 }
 0x294   : > { %v3029_v57 = vadd.f32 %v3028_v35, %v3027_v54  ;;  %v2343_v26 = vpop.f32.mrf.mxu2 }
 0x295   : > { %v3129_v51 = vsel %vm269_vm0, %v3077_v25, 0.0  ;;  %v2395_v63 = vadd.f32 %v2343_v26, %v2119_v42  ;;  %v2070_v14 = vpop.f32.mrf.mxu1  ;;  %v2618_v40 = vpop.f32.mrf.mxu3 }
 0x296   : > { %v3130_v18 = vadd.f32 %v3129_v51, %v3128_v10  ;;  %v2120_v62 = vadd.f32 %v2070_v14, %v4510_v59 }
 0x297   : > { %v2670_v43 = vadd.f32 %v2618_v40, %v2395_v63 }
 0x298   : > { %v2899_v1 = vpop.f32.mrf.mxu0 }
 0x299   : > { %v2945_v5 = vadd.f32 %v2893_v52, %v2670_v43 }
 0x29b   : > { %2977 = vst.msk [vmem:[%s4603_s9 + $0xb0] sm:$0xff] %vm269_vm0, %v2945_v5  ;;  %v3030_v58 = vsel %vm269_vm0, %v2945_v5, 0.0  ;;  %v3078_v41 = vmul.f32 %v2945_v5, %v2945_v5 }
 0x29c   : > { %v3031_v28 = vadd.f32 %v3030_v58, %v3029_v57  ;;  %v2346_v16 = vpop.f32.mrf.mxu2 }
 0x29d   : > { %v3131_v23 = vsel %vm269_vm0, %v3078_v41, 0.0  ;;  %v2396_v27 = vadd.f32 %v2346_v16, %v2120_v62  ;;  %v2073_v50 = vpop.f32.mrf.mxu1  ;;  %v2621_v48 = vpop.f32.mrf.mxu3 }
 0x29e   : > { %v3132_v7 = vadd.f32 %v3131_v23, %v3130_v18  ;;  %v2121_v31 = vadd.f32 %v2073_v50, %v4520_v0 }
 0x29f   : > { %v2671_v47 = vadd.f32 %v2621_v48, %v2396_v27 }
 0x2a0   : > { %v2902_v29 = vpop.f32.mrf.mxu0 }
 0x2a1   : > { %v2946_v38 = vadd.f32 %v2896_v53, %v2671_v47 }
 0x2a3   : > { %2978 = vst.msk [vmem:[%s4603_s9 + $0xb8] sm:$0xff] %vm269_vm0, %v2946_v38  ;;  %v3032_v59 = vsel %vm269_vm0, %v2946_v38, 0.0  ;;  %v3079_v3 = vmul.f32 %v2946_v38, %v2946_v38 }
 0x2a4   : > { %v3033_v9 = vadd.f32 %v3032_v59, %v3031_v28  ;;  %v2349_v46 = vpop.f32.mrf.mxu2 }
 0x2a5   : > { %v3133_v21 = vsel %vm269_vm0, %v3079_v3, 0.0  ;;  %v2397_v56 = vadd.f32 %v2349_v46, %v2121_v31  ;;  %v2076_v45 = vpop.f32.mrf.mxu1  ;;  %v2624_v60 = vpop.f32.mrf.mxu3 }
 0x2a6   : > { %v3134_v17 = vadd.f32 %v3133_v21, %v3132_v7  ;;  %v2122_v61 = vadd.f32 %v2076_v45, %v4530_v15 }
 0x2a7   : > { %v2672_v49 = vadd.f32 %v2624_v60, %v2397_v56 }
 0x2a8   : > { %v2905_v11 = vpop.f32.mrf.mxu0 }
 0x2a9   : > { %v2947_v6 = vadd.f32 %v2899_v1, %v2672_v49 }
 0x2ab   : > { %2979 = vst.msk [vmem:[%s4603_s9 + $0xc0] sm:$0xff] %vm269_vm0, %v2947_v6  ;;  %v3034_v0 = vsel %vm269_vm0, %v2947_v6, 0.0  ;;  %v3080_v30 = vmul.f32 %v2947_v6, %v2947_v6 }
 0x2ac   : > { %v3035_v34 = vadd.f32 %v3034_v0, %v3033_v9  ;;  %v2352_v52 = vpop.f32.mrf.mxu2 }
 0x2ad   : > { %v3135_v24 = vsel %vm269_vm0, %v3080_v30, 0.0  ;;  %v2398_v13 = vadd.f32 %v2352_v52, %v2122_v61  ;;  %v2079_v19 = vpop.f32.mrf.mxu1  ;;  %v2627_v54 = vpop.f32.mrf.mxu3 }
 0x2ae   : > { %v3136_v55 = vadd.f32 %v3135_v24, %v3134_v17  ;;  %v2123_v4 = vadd.f32 %v2079_v19, %v4540_v39 }
 0x2af   : > { %v2673_v37 = vadd.f32 %v2627_v54, %v2398_v13 }
 0x2b0   : > { %v2908_v57 = vpop.f32.mrf.mxu0 }
 0x2b1   : > { %v2948_v22 = vadd.f32 %v2902_v29, %v2673_v37 }
 0x2b3   : > { %2980 = vst.msk [vmem:[%s4603_s9 + $0xc8] sm:$0xff] %vm269_vm0, %v2948_v22  ;;  %v3036_v15 = vsel %vm269_vm0, %v2948_v22, 0.0  ;;  %v3081_v12 = vmul.f32 %v2948_v22, %v2948_v22 }
 0x2b4   : > { %v3037_v10 = vadd.f32 %v3036_v15, %v3035_v34  ;;  %v2355_v20 = vpop.f32.mrf.mxu2 }
 0x2b5   : > { %v3137_v53 = vsel %vm269_vm0, %v3081_v12, 0.0  ;;  %v2399_v36 = vadd.f32 %v2355_v20, %v2123_v4  ;;  %v2082_v42 = vpop.f32.mrf.mxu1  ;;  %v2630_v35 = vpop.f32.mrf.mxu3 }
 0x2b6   : > { %v3138_v25 = vadd.f32 %v3137_v53, %v3136_v55  ;;  %v2124_v63 = vadd.f32 %v2082_v42, %v4550_v32 }
 0x2b7   : > { %v2674_v26 = vadd.f32 %v2630_v35, %v2399_v36 }
 0x2b8   : > { %v2911_v28 = vpop.f32.mrf.mxu0 }
 0x2b9   : > { %v2949_v51 = vadd.f32 %v2905_v11, %v2674_v26 }
 0x2bb   : > { %2981 = vst.msk [vmem:[%s4603_s9 + $0xd0] sm:$0xff] %vm269_vm0, %v2949_v51  ;;  %v3038_v39 = vsel %vm269_vm0, %v2949_v51, 0.0  ;;  %v3082_v14 = vmul.f32 %v2949_v51, %v2949_v51 }
 0x2bc   : > { %v3039_v40 = vadd.f32 %v3038_v39, %v3037_v10  ;;  %v2358_v18 = vpop.f32.mrf.mxu2 }
 0x2bd   : > { %v3139_v43 = vsel %vm269_vm0, %v3082_v14, 0.0  ;;  %v2400_v1 = vadd.f32 %v2358_v18, %v2124_v63  ;;  %v2085_v5 = vpop.f32.mrf.mxu1  ;;  %v2633_v62 = vpop.f32.mrf.mxu3 }
 0x2be   : > { %v3140_v58 = vadd.f32 %v3139_v43, %v3138_v25  ;;  %v2125_v23 = vadd.f32 %v2085_v5, %v4560_v8 }
 0x2bf   : > { %v2675_v41 = vadd.f32 %v2633_v62, %v2400_v1 }
 0x2c0   : > { %v2914_v9 = vpop.f32.mrf.mxu0 }
 0x2c1   : > { %v2950_v16 = vadd.f32 %v2908_v57, %v2675_v41 }
 0x2c3   : > { %2982 = vst.msk [vmem:[%s4603_s9 + $0xd8] sm:$0xff] %vm269_vm0, %v2950_v16  ;;  %v3040_v32 = vsel %vm269_vm0, %v2950_v16, 0.0  ;;  %v3083_v27 = vmul.f32 %v2950_v16, %v2950_v16 }
 0x2c4   : > { %v3041_v50 = vadd.f32 %v3040_v32, %v3039_v40  ;;  %v2361_v48 = vpop.f32.mrf.mxu2 }
 0x2c5   : > { %v3141_v7 = vsel %vm269_vm0, %v3083_v27, 0.0  ;;  %v2401_v47 = vadd.f32 %v2361_v48, %v2125_v23  ;;  %v2088_v38 = vpop.f32.mrf.mxu1  ;;  %v2636_v29 = vpop.f32.mrf.mxu3 }
 0x2c6   : > { %v3142_v31 = vadd.f32 %v3141_v7, %v3140_v58  ;;  %v2126_v46 = vadd.f32 %v2088_v38, %v4570_v33 }
 0x2c7   : > { %v2676_v59 = vadd.f32 %v2636_v29, %v2401_v47 }
 0x2c8   : > { %v2917_v13 = vpop.f32.mrf.mxu0 }
 0x2c9   : > { %v2951_v3 = vadd.f32 %v2911_v28, %v2676_v59 }
 0x2cb   : > { %2983 = vst.msk [vmem:[%s4603_s9 + $0xe0] sm:$0xff] %vm269_vm0, %v2951_v3  ;;  %v3042_v8 = vsel %vm269_vm0, %v2951_v3, 0.0  ;;  %v3084_v21 = vmul.f32 %v2951_v3, %v2951_v3 }
 0x2cc   : > { %v3043_v56 = vadd.f32 %v3042_v8, %v3041_v50  ;;  %v2364_v45 = vpop.f32.mrf.mxu2 }
 0x2cd   : > { %v3143_v60 = vsel %vm269_vm0, %v3084_v21, 0.0  ;;  %v2402_v17 = vadd.f32 %v2364_v45, %v2126_v46  ;;  %v2639_v49 = vpop.f32.mrf.mxu3  ;;  %v2091_v61 = vpop.f32.mrf.mxu1 }
 0x2ce   : > { %v3144_v6 = vadd.f32 %v3143_v60, %v3142_v31  ;;  %v2127_v34 = vadd.f32 %v2091_v61, %v4580_v44 }
 0x2cf   : > { %v2677_v0 = vadd.f32 %v2639_v49, %v2402_v17 }
 0x2d0   : > { %v2920_v57 = vpop.f32.mrf.mxu0 }
 0x2d1   : > { %v2952_v30 = vadd.f32 %v2914_v9, %v2677_v0 }
 0x2d3   : > { %2984 = vst.msk [vmem:[%s4603_s9 + $0xe8] sm:$0xff] %vm269_vm0, %v2952_v30  ;;  %v3044_v33 = vsel %vm269_vm0, %v2952_v30, 0.0  ;;  %v3085_v52 = vmul.f32 %v2952_v30, %v2952_v30 }
 0x2d4   : > { %v3045_v11 = vadd.f32 %v3044_v33, %v3043_v56  ;;  %v2367_v24 = vpop.f32.mrf.mxu2 }
 0x2d5   : > { %v3145_v19 = vsel %vm269_vm0, %v3085_v52, 0.0  ;;  %v2403_v54 = vadd.f32 %v2367_v24, %v2127_v34  ;;  %v2642_v55 = vpop.f32.mrf.mxu3  ;;  %v2094_v4 = vpop.f32.mrf.mxu1 }
 0x2d6   : > { %v3146_v37 = vadd.f32 %v3145_v19, %v3144_v6  ;;  %v2128_v12 = vadd.f32 %v2094_v4, %v4590_v2 }
 0x2d7   : > { %v2678_v22 = vadd.f32 %v2642_v55, %v2403_v54 }
 0x2d9   : > { %v2953_v15 = vadd.f32 %v2917_v13, %v2678_v22 }
 0x2db   : > { %2985 = vst.msk [vmem:[%s4603_s9 + $0xf0] sm:$0xff] %vm269_vm0, %v2953_v15  ;;  %v3046_v44 = vsel %vm269_vm0, %v2953_v15, 0.0  ;;  %v3086_v10 = vmul.f32 %v2953_v15, %v2953_v15 }
 0x2dc   : > { %v3047_v20 = vadd.f32 %v3046_v44, %v3045_v11  ;;  %v2370_v53 = vpop.f32.mrf.mxu2 }
 0x2dd   : > { %v3147_v36 = vsel %vm269_vm0, %v3086_v10, 0.0  ;;  %v2404_v42 = vadd.f32 %v2370_v53, %v2128_v12  ;;  %v2645_v35 = vpop.f32.mrf.mxu3 }
 0x2de   : > { %v3148_v25 = vadd.f32 %v3147_v36, %v3146_v37 }
 0x2df   : > { %v2679_v26 = vadd.f32 %v2645_v35, %v2404_v42 }
 0x2e1   : > { %v2954_v51 = vadd.f32 %v2920_v57, %v2679_v26 }
 0x2e3   : > { %2986 = vst.msk [vmem:[%s4603_s9 + $0xf8] sm:$0xff] %vm269_vm0, %v2954_v51  ;;  %v3048_v2 = vsel %vm269_vm0, %v2954_v51, 0.0  ;;  %v3087_v63 = vmul.f32 %v2954_v51, %v2954_v51 }
 0x2e4   : > { %v3049_v39 = vadd.f32 %v3048_v2, %v3047_v20 }
 0x2e5   : > { %v3149_v14 = vsel %vm269_vm0, %v3087_v63, 0.0 }
 0x2e6   : > { %v3050_v40 = vrot.slane %v3049_v39, 4  ;;  %v3150_v18 = vadd.f32 %v3149_v14, %v3148_v25 }
 0x2e8   : > { %v3051_v43 = vadd.f32 %v3050_v40, %v3049_v39  ;;  %v3151_v1 = vrot.slane %v3150_v18, 4 }
 0x2ea   : > { %v3052_v5 = vrot.slane %v3051_v43, 2  ;;  %v3152_v62 = vadd.f32 %v3151_v1, %v3150_v18 }
 0x2ec   : > { %v3053_v58 = vadd.f32 %v3052_v5, %v3051_v43  ;;  %v3153_v41 = vrot.slane %v3152_v62, 2 }
 0x2ee   : > { %v3054_v28 = vrot.slane %v3053_v58, 1  ;;  %v3154_v16 = vadd.f32 %v3153_v41, %v3152_v62 }
 0x2f0   : > { %v3055_v23 = vadd.f32 %v3054_v28, %v3053_v58  ;;  %v3155_v32 = vrot.slane %v3154_v16, 1 }
 0x2f2   : > { %v3156_v27 = vadd.f32 %v3155_v32, %v3154_v16  ;;  %3157 = vst.msk [vmem:[%s265_s12] sm:$0x1] %vm279_vm2, %v3055_v23 }
 0x2f4   : > { %3158 = vst.msk [vmem:[%s268_s15] sm:$0x1] %vm279_vm2, %v3156_v27 }
 0x2f5 PF: > { %s17_s21 = sadd.s32 1, %s3595_s21  }
 0x2f6   : > { %p14_p4 = scmp.ge.s32.totalorder %s17_s21, 4  }
 0x2f8   :  { %16 = sbr.rel (!%p14_p4) target bundleno = 1 (0x1), region = 101 }

// kernel: res_block_forward.3
= control target key start
LH: loop header
LB: loop body
LE: loop exit
PB: predicated region body
PF: predicated region fallthrough
CT: control target
= control target key end

     0   :  { %s4127_s27 = smov 0   ;;  %s5733_s0 = inlined_call_operand.vmem [shape: f32[2,16,16,4], index: 0, kind: input, shape index: {}]   ;;  %s5734_s1 = inlined_call_operand.vmem [shape: f32[9,4,8], index: 1, kind: input, shape index: {}]   ;;  %s5735_s2 = inlined_call_operand.vmem [shape: f32[4,8], index: 2, kind: input, shape index: {}]   ;;  %s5736_s3 = inlined_call_operand.vmem [shape: f32[2,16,16,8], index: 3, kind: output, shape index: {0}]   ;;  %s5737_s4 = inlined_call_operand.vmem [shape: f32[2,16,16,8], index: 4, kind: output, shape index: {1}]   ;;  %s5738_s5 = inlined_call_operand.vmem [shape: f32[2,1,8], index: 5, kind: output, shape index: {2}]   ;;  %s5739_s6 = inlined_call_operand.vmem [shape: f32[2,1,8], index: 6, kind: output, shape index: {3}]   ;;  %s5740_s7 = inlined_call_operand.vmem [shape: f32[2,1,8], index: 7, kind: output, shape index: {4}]   ;;  %s5741_s8 = inlined_call_operand.vmem [shape: f32[2,1,8], index: 8, kind: output, shape index: {5}]  }
   0x1 LB: > { %s3708_s28 = sadd.s32 4294967295, %s4079_s27   ;;  %p3712_p0 = scmp.ge.s32.totalorder %s4079_s27, 1  ;;  %s4079_s27 = sphi %s4127_s27, %s19_s27  }
   0x2   : > { %p273_p1 = scmp.lt.s32.totalorder %s4079_s27, 3 }
   0x4   : > { %p274_p2 = pnand %p3712_p0, %p273_p1 }
   0x6   : > { %277 = sbr.rel (%p274_p2) target bundleno = 841 (0x349), region = 32 }
   0xb   : > { %v490_v0 = vld [vmem:[%s5734_s1] sm:$0xf]  ;;  %vm621_vm0 = vcmask 1043456   ;;  %vm351_vm1 = vcmask 31744   ;;  %p324_p3 = scmp.lt.s32.totalorder %s3708_s28, 1  ;;  %v4081_v1 = vmov 0.0  }
   0xc   : > { %3753 = vmatpush.msk.msra.mxu1 %vm621_vm0, %v490_v0  ;;  %352 = vst.msk [vmem:[#allocation2] sm:$0xff] %vm351_vm1, %v4081_v1  ;;  %v3719_v2 = vld [vmem:[%s5734_s1 + $0x4] sm:$0xf]  ;;  %4063 = vmatpush.msk.msra.mxu3 %vm621_vm0, %v490_v0  ;;  %vm361_vm2 = vcmask 24576   ;;  %v3786_v3 = vld [vmem:[%s5734_s1 + $0x8] sm:$0xf] }
   0xd   : > { %353 = vst.msk [vmem:[#allocation2 + $0x8] sm:$0xff] %vm351_vm1, %v4081_v1  ;;  %4062 = vmatpush.msk.msra.mxu2 %vm621_vm0, %v3719_v2  ;;  %s5935_s28 = smov (!%p324_p3, %s3708_s28), 1  ;;  %3720 = vmatpush.msk.msra.mxu0 %vm621_vm0, %v3719_v2  ;;  %v3820_v4 = vld [vmem:[%s5734_s1 + $0xc] sm:$0xf]  ;;  %v3854_v11 = vld [vmem:[%s5734_s1 + $0x10] sm:$0xf] }
   0xe   : > { %357 = vst.msk [vmem:[#allocation2 + $0x198] sm:$0xff] %vm351_vm1, %v4081_v1  ;;  %s4156_s11 = sshll.u32 %s5935_s28, 8  ;;  %3821 = vmatpush.msk.msrb.mxu3 %vm621_vm0, %v3820_v4  ;;  %v3888_v12 = vld [vmem:[%s5734_s1 + $0x14] sm:$0xf]  ;;  %vm354_vm3 = vcmask 25600   ;;  %vm2897_vm4 = vcmask 64512   ;;  %s347_s19 = scalar_lea.vmem %s5740_s7, %s5935_s28 }
   0xf   : > { %358 = vst.msk [vmem:[#allocation2 + $0x1a0] sm:$0xff] %vm351_vm1, %v4081_v1  ;;  %s4162_s14 = scalar_lea.vmem %s5733_s0, %s4156_s11  ;;  %3787 = vmatpush.msk.msrb.mxu2 %vm621_vm0, %v3786_v3  ;;  %3889 = vmatpush.msk.msrb.mxu1 %vm621_vm0, %v3888_v12  ;;  %s5268_s17 = scalar_lea.vmem %s5736_s3, %s4156_s11  ;;  %vm3100_vm5 = vcmask 57344  }
  0x10   : > { %369 = vst.msk [vmem:[#allocation2 + $0xc0] sm:$0x1] %vm361_vm2, %v4081_v1  ;;  %v4173_v5 = vld [vmem:[%s4162_s14 + $0x70] sm:$0xff]  ;;  %3855 = vmatpush.msk.msrb.mxu0 %vm621_vm0, %v3854_v11  ;;  %v4257_v13 = vld [vmem:[%s4162_s14 + $0x78] sm:$0xff]  ;;  %v4262_v14 = vld [vmem:[%s4162_s14] sm:$0xff]  ;;  %s350_s22 = scalar_lea.vmem %s5741_s8, %s5935_s28  ;;  %s341_s25 = scalar_lea.vmem %s5738_s5, %s5935_s28 }
  0x11   : > { %5794 = vst [vmem:[#allocation3_spill] sm:$0xff] %v4173_v5  ;;  %v4267_v15 = vld [vmem:[%s4162_s14 + $0x80] sm:$0xff]  ;;  %v4276_v16 = vld [vmem:[%s4162_s14 + $0x8] sm:$0xff]  ;;  %v4284_v18 = vld [vmem:[%s4162_s14 + $0x10] sm:$0xff]  ;;  %s344_s30 = scalar_lea.vmem %s5739_s6, %s5935_s28 }
  0x12   : > { %362 = vst.msk [vmem:[#allocation2 + $0x18] sm:$0x1] %vm361_vm2, %v4081_v1  ;;  %v4280_v17 = vld [vmem:[%s4162_s14 + $0x88] sm:$0xff]  ;;  %v4289_v19 = vld [vmem:[%s4162_s14 + $0x90] sm:$0xff]  ;;  %v4294_v20 = vld [vmem:[%s4162_s14 + $0x18] sm:$0xff] }
  0x13   : > { %440 = vst.msk [vmem:[#allocation2 + $0xc1] sm:$0xff] %vm351_vm1, %v4173_v5  ;;  %v458_v6 = vld [vmem:[#allocation2] sm:$0xff]  ;;  %v4303_v23 = vld [vmem:[%s4162_s14 + $0x98] sm:$0xff]  ;;  %v4326_v28 = vld [vmem:[%s4162_s14 + $0x28] sm:$0xff] }
  0x14   : > { %363 = vst.msk [vmem:[#allocation2 + $0x30] sm:$0x1] %vm361_vm2, %v4081_v1  ;;  %3754 = vmatmul.msk.f32.vlgmr.msra.gmra.mxu1 %vm351_vm1, %v458_v6  ;;  %v459_v7 = vld [vmem:[#allocation2 + $0x8] sm:$0xff]  ;;  %v4314_v25 = vld [vmem:[%s4162_s14 + $0x20] sm:$0xff]  ;;  %v4355_v34 = vld [vmem:[%s4162_s14 + $0x30] sm:$0xff] }
  0x15   : > { %364 = vst.msk [vmem:[#allocation2 + $0x48] sm:$0x1] %vm361_vm2, %v4081_v1  ;;  %v491_v10 = vld [vmem:[#allocation2 + $0x1] sm:$0xff]  ;;  %v4368_v38 = vld [vmem:[%s4162_s14 + $0xb0] sm:$0xff]  ;;  %v4381_v40 = vld [vmem:[%s4162_s14 + $0x38] sm:$0xff] }
  0x16   : > { %365 = vst.msk [vmem:[#allocation2 + $0x60] sm:$0x1] %vm361_vm2, %v4081_v1  ;;  %3721 = vmatmul.msk.f32.vlgmr.msra.gmra.mxu0 %vm351_vm1, %v491_v10  ;;  %v4321_v26 = vld [vmem:[%s4162_s14 + $0xa0] sm:$0xff]  ;;  %v4342_v32 = vld [vmem:[%s4162_s14 + $0xa8] sm:$0xff]  ;;  %v4394_v44 = vld [vmem:[%s4162_s14 + $0xb8] sm:$0xff] }
  0x17   : > { %366 = vst.msk [vmem:[#allocation2 + $0x78] sm:$0x1] %vm361_vm2, %v4081_v1  ;;  %v4407_v46 = vld [vmem:[%s4162_s14 + $0x40] sm:$0xff]  ;;  %v4433_v52 = vld [vmem:[%s4162_s14 + $0x48] sm:$0xff]  ;;  %v4459_v58 = vld [vmem:[%s4162_s14 + $0x50] sm:$0xff] }
  0x18   : > { %367 = vst.msk [vmem:[#allocation2 + $0x90] sm:$0x1] %vm361_vm2, %v4081_v1  ;;  %v4420_v50 = vld [vmem:[%s4162_s14 + $0xc0] sm:$0xff]  ;;  %v4446_v56 = vld [vmem:[%s4162_s14 + $0xc8] sm:$0xff]  ;;  %v4472_v62 = vld [vmem:[%s4162_s14 + $0xd0] sm:$0xff] }
  0x19   : > { %368 = vst.msk [vmem:[#allocation2 + $0xa8] sm:$0x1] %vm361_vm2, %v4081_v1  ;;  %v4485_v0 = vld [vmem:[%s4162_s14 + $0x58] sm:$0xff] }
  0x1a   : > { %v4194_v8 = vld [vmem:[#allocation2 + $0xc1] sm:$0xff]  ;;  %370 = vst.msk [vmem:[#allocation2 + $0xd8] sm:$0x1] %vm361_vm2, %v4081_v1  ;;  %v4498_v4 = vld [vmem:[%s4162_s14 + $0xd8] sm:$0xff] }
  0x1b   : > { %v4196_v9 = vld [vmem:[#allocation2 + $0xc0] sm:$0xff]  ;;  %3737 = vmatmul.msk.f32.vlgmr.msra.gmra.mxu2 %vm351_vm1, %v4194_v8  ;;  %371 = vst.msk [vmem:[#allocation2 + $0xf0] sm:$0x1] %vm361_vm2, %v4081_v1  ;;  %v3922_v5 = vld [vmem:[%s5734_s1 + $0x18] sm:$0xf] }
  0x1c   : > { %3770 = vmatmul.msk.f32.vlgmr.msra.gmra.mxu3 %vm351_vm1, %v4196_v9  ;;  %372 = vst.msk [vmem:[#allocation2 + $0x108] sm:$0x1] %vm361_vm2, %v4081_v1  ;;  %3755 = vmatmul.msk.f32.gmra.mxu1 %vm351_vm1, %v459_v7  ;;  %v4511_v7 = vld [vmem:[%s4162_s14 + $0x60] sm:$0xff] }
  0x1d   : > { %373 = vst.msk [vmem:[#allocation2 + $0x120] sm:$0x1] %vm361_vm2, %v4081_v1  ;;  %3923 = vmatpush.msk.msra.mxu2 %vm621_vm0, %v3922_v5 }
  0x1e   : > { %374 = vst.msk [vmem:[#allocation2 + $0x138] sm:$0x1] %vm361_vm2, %v4081_v1 }
  0x1f   : > { %375 = vst.msk [vmem:[#allocation2 + $0x150] sm:$0x1] %vm361_vm2, %v4081_v1 }
  0x20   : > { %376 = vst.msk [vmem:[#allocation2 + $0x168] sm:$0x1] %vm361_vm2, %v4081_v1 }
  0x21   : > { %377 = vst.msk [vmem:[#allocation2 + $0x180] sm:$0x1] %vm361_vm2, %v4081_v1 }
  0x22   : > { %378 = vst.msk [vmem:[#allocation2 + $0x29] sm:$0x1] %vm361_vm2, %v4081_v1 }
  0x23   : > { %379 = vst.msk [vmem:[#allocation2 + $0x41] sm:$0x1] %vm361_vm2, %v4081_v1 }
  0x24   : > { %380 = vst.msk [vmem:[#allocation2 + $0x59] sm:$0x1] %vm361_vm2, %v4081_v1 }
  0x25   : > { %381 = vst.msk [vmem:[#allocation2 + $0x71] sm:$0x1] %vm361_vm2, %v4081_v1 }
  0x26   : > { %382 = vst.msk [vmem:[#allocation2 + $0x89] sm:$0x1] %vm361_vm2, %v4081_v1 }
  0x27   : > { %383 = vst.msk [vmem:[#allocation2 + $0xa1] sm:$0x1] %vm361_vm2, %v4081_v1 }
  0x28   : > { %384 = vst.msk [vmem:[#allocation2 + $0xb9] sm:$0x1] %vm361_vm2, %v4081_v1 }
  0x29   : > { %385 = vst.msk [vmem:[#allocation2 + $0xd1] sm:$0x1] %vm361_vm2, %v4081_v1 }
  0x2a   : > { %386 = vst.msk [vmem:[#allocation2 + $0xe9] sm:$0x1] %vm361_vm2, %v4081_v1 }
  0x2b   : > { %387 = vst.msk [vmem:[#allocation2 + $0x101] sm:$0x1] %vm361_vm2, %v4081_v1 }
  0x2c   : > { %388 = vst.msk [vmem:[#allocation2 + $0x119] sm:$0x1] %vm361_vm2, %v4081_v1 }
  0x2d   : > { %389 = vst.msk [vmem:[#allocation2 + $0x131] sm:$0x1] %vm361_vm2, %v4081_v1 }
  0x2e   : > { %390 = vst.msk [vmem:[#allocation2 + $0x149] sm:$0x1] %vm361_vm2, %v4081_v1 }
  0x2f   : > { %391 = vst.msk [vmem:[#allocation2 + $0x161] sm:$0x1] %vm361_vm2, %v4081_v1 }
  0x30   : > { %5795 = vst [vmem:[#allocation4_spill] sm:$0xff] %v4257_v13 }
  0x31   : > { %392 = vst.msk [vmem:[#allocation2 + $0x179] sm:$0x1] %vm361_vm2, %v4081_v1 }
  0x32   : > { %5796 = vst [vmem:[#allocation5_spill] sm:$0xff] %v4262_v14 }
  0x33   : > { %393 = vst.msk [vmem:[#allocation2 + $0x191] sm:$0x1] %vm361_vm2, %v4081_v1 }
  0x34   : > { %5797 = vst [vmem:[#allocation6_spill] sm:$0xff] %v4267_v15 }
  0x35   : > { %441 = vst.msk [vmem:[#allocation2 + $0xc9] sm:$0xff] %vm351_vm1, %v4257_v13 }
  0x36   : > { %426 = vst.msk [vmem:[#allocation2 + $0x19] sm:$0xff] %vm351_vm1, %v4262_v14  ;;  %v950_v14 = vld [vmem:[#allocation2 + $0x2] sm:$0xff] }
  0x37   : > { %442 = vst.msk [vmem:[#allocation2 + $0xd9] sm:$0xff] %vm351_vm1, %v4267_v15 }
  0x38   : > { %5798 = vst [vmem:[#allocation7_spill] sm:$0xff] %v4276_v16 }
  0x39   : > { %355 = vst.msk [vmem:[#allocation2 + $0x10] sm:$0x3] %vm354_vm3, %v4081_v1 }
  0x3a   : > { %5799 = vst [vmem:[#allocation8_spill] sm:$0xff] %v4280_v17 }
  0x3b   : > { %359 = vst.msk [vmem:[#allocation2 + $0x1a8] sm:$0x3] %vm354_vm3, %v4081_v1 }
  0x3c   : > { %5800 = vst [vmem:[#allocation9_spill] sm:$0xff] %v4284_v18  ;;  %v4296_v21 = vld [vmem:[#allocation2 + $0xc9] sm:$0xff] }
  0x3d   : > { %427 = vst.msk [vmem:[#allocation2 + $0x21] sm:$0xff] %vm351_vm1, %v4276_v16  ;;  %v4298_v22 = vld [vmem:[#allocation2 + $0xc8] sm:$0xff]  ;;  %3738 = vmatmul.msk.f32.gmra.mxu2 %vm351_vm1, %v4296_v21  ;;  %v4309_v24 = vld [vmem:[#allocation2 + $0x18] sm:$0xff] }
  0x3e   : > { %5801 = vst [vmem:[#allocation10_spill] sm:$0xff] %v4289_v19  ;;  %3771 = vmatmul.msk.f32.gmra.mxu3 %vm351_vm1, %v4298_v22  ;;  %3756 = vmatmul.msk.f32.gmra.mxu1 %vm351_vm1, %v4309_v24  ;;  %v4333_v29 = vld [vmem:[#allocation2 + $0xd9] sm:$0xff] }
  0x3f   : > { %443 = vst.msk [vmem:[#allocation2 + $0xe1] sm:$0xff] %vm351_vm1, %v4280_v17  ;;  %v4335_v30 = vld [vmem:[#allocation2 + $0xd8] sm:$0xff] }
  0x40   : > { %5802 = vst [vmem:[#allocation11_spill] sm:$0xff] %v4294_v20  ;;  %v492_v27 = vld [vmem:[#allocation2 + $0x9] sm:$0xff]  ;;  %v4348_v33 = vld [vmem:[#allocation2 + $0x19] sm:$0xff] }
  0x41   : > { %428 = vst.msk [vmem:[#allocation2 + $0x31] sm:$0xff] %vm351_vm1, %v4284_v18  ;;  %3722 = vmatmul.msk.f32.gmra.mxu0 %vm351_vm1, %v492_v27  ;;  %v4524_v27 = vld [vmem:[%s4162_s14 + $0xe0] sm:$0xff] }
  0x42   : > { %5803 = vst [vmem:[#allocation12_spill] sm:$0xff] %v4303_v23 }
  0x43   : > { %444 = vst.msk [vmem:[#allocation2 + $0xf1] sm:$0xff] %vm351_vm1, %v4289_v19 }
  0x44   : > { %5804 = vst [vmem:[#allocation13_spill] sm:$0xff] %v4314_v25  ;;  %v4339_v31 = vld [vmem:[#allocation2 + $0x20] sm:$0xff] }
  0x45   : > { %429 = vst.msk [vmem:[#allocation2 + $0x39] sm:$0xff] %vm351_vm1, %v4294_v20  ;;  %3739 = vmatmul.msk.f32.gmra.mxu2 %vm351_vm1, %v4333_v29  ;;  %v4374_v39 = vld [vmem:[#allocation2 + $0x21] sm:$0xff] }
  0x46   : > { %5805 = vst [vmem:[#allocation14_spill] sm:$0xff] %v4321_v26  ;;  %3772 = vmatmul.msk.f32.gmra.mxu3 %vm351_vm1, %v4335_v30  ;;  %3757 = vmatmul.msk.f32.gmra.mxu1 %vm351_vm1, %v4339_v31  ;;  %v4361_v35 = vld [vmem:[#allocation2 + $0xe1] sm:$0xff] }
  0x47   : > { %445 = vst.msk [vmem:[#allocation2 + $0xf9] sm:$0xff] %vm351_vm1, %v4303_v23  ;;  %v4363_v36 = vld [vmem:[#allocation2 + $0xe0] sm:$0xff] }
  0x48   : > { %5806 = vst [vmem:[#allocation15_spill] sm:$0xff] %v4326_v28  ;;  %v4365_v37 = vld [vmem:[#allocation2 + $0x30] sm:$0xff]  ;;  %v1784_v20 = vld [vmem:[#allocation2 + $0x1a] sm:$0xff] }
  0x49   : > { %430 = vst.msk [vmem:[#allocation2 + $0x49] sm:$0xff] %vm351_vm1, %v4314_v25  ;;  %3723 = vmatmul.msk.f32.gmra.mxu0 %vm351_vm1, %v4348_v33  ;;  %v4400_v45 = vld [vmem:[#allocation2 + $0x31] sm:$0xff] }
  0x4a   : > { %446 = vst.msk [vmem:[#allocation2 + $0x109] sm:$0xff] %vm351_vm1, %v4321_v26  ;;  %v4387_v41 = vld [vmem:[#allocation2 + $0xf1] sm:$0xff] }
  0x4b   : > { %431 = vst.msk [vmem:[#allocation2 + $0x51] sm:$0xff] %vm351_vm1, %v4326_v28  ;;  %v4389_v42 = vld [vmem:[#allocation2 + $0xf0] sm:$0xff] }
  0x4c   : > { %5807 = vst [vmem:[#allocation16_spill] sm:$0xff] %v4342_v32  ;;  %v4391_v43 = vld [vmem:[#allocation2 + $0x38] sm:$0xff] }
  0x4d   : > { %447 = vst.msk [vmem:[#allocation2 + $0x111] sm:$0xff] %vm351_vm1, %v4342_v32  ;;  %3740 = vmatmul.msk.f32.gmra.mxu2 %vm351_vm1, %v4361_v35  ;;  %v4426_v51 = vld [vmem:[#allocation2 + $0x39] sm:$0xff] }
  0x4e   : > { %5808 = vst [vmem:[#allocation17_spill] sm:$0xff] %v4355_v34  ;;  %3773 = vmatmul.msk.f32.gmra.mxu3 %vm351_vm1, %v4363_v36  ;;  %3758 = vmatmul.msk.f32.gmra.mxu1 %vm351_vm1, %v4365_v37  ;;  %v4413_v47 = vld [vmem:[#allocation2 + $0xf9] sm:$0xff] }
  0x4f   : > { %432 = vst.msk [vmem:[#allocation2 + $0x61] sm:$0xff] %vm351_vm1, %v4355_v34  ;;  %v4415_v48 = vld [vmem:[#allocation2 + $0xf8] sm:$0xff] }
  0x50   : > { %5809 = vst [vmem:[#allocation18_spill] sm:$0xff] %v4368_v38  ;;  %v4417_v49 = vld [vmem:[#allocation2 + $0x48] sm:$0xff] }
  0x51   : > { %448 = vst.msk [vmem:[#allocation2 + $0x121] sm:$0xff] %vm351_vm1, %v4368_v38  ;;  %3724 = vmatmul.msk.f32.gmra.mxu0 %vm351_vm1, %v4374_v39  ;;  %v4439_v53 = vld [vmem:[#allocation2 + $0x109] sm:$0xff] }
  0x52   : > { %5810 = vst [vmem:[#allocation19_spill] sm:$0xff] %v4381_v40  ;;  %v4441_v54 = vld [vmem:[#allocation2 + $0x108] sm:$0xff]  ;;  %v4443_v55 = vld [vmem:[#allocation2 + $0x50] sm:$0xff] }
  0x53   : > { %433 = vst.msk [vmem:[#allocation2 + $0x69] sm:$0xff] %vm351_vm1, %v4381_v40  ;;  %v4452_v57 = vld [vmem:[#allocation2 + $0x49] sm:$0xff]  ;;  %v4478_v63 = vld [vmem:[#allocation2 + $0x51] sm:$0xff] }
  0x54   : > { %5811 = vst [vmem:[#allocation20_spill] sm:$0xff] %v4394_v44  ;;  %v4465_v59 = vld [vmem:[#allocation2 + $0x111] sm:$0xff]  ;;  %v4550_v38 = vld [vmem:[%s4162_s14 + $0xe8] sm:$0xff] }
  0x55   : > { %3741 = vmatmul.msk.f32.gmra.mxu2 %vm351_vm1, %v4387_v41  ;;  %449 = vst.msk [vmem:[#allocation2 + $0x129] sm:$0xff] %vm351_vm1, %v4394_v44  ;;  %v4467_v60 = vld [vmem:[#allocation2 + $0x110] sm:$0xff] }
  0x56   : > { %3774 = vmatmul.msk.f32.gmra.mxu3 %vm351_vm1, %v4389_v42  ;;  %3759 = vmatmul.msk.f32.gmra.mxu1 %vm351_vm1, %v4391_v43  ;;  %5812 = vst [vmem:[#allocation21_spill] sm:$0xff] %v4407_v46  ;;  %v4469_v61 = vld [vmem:[#allocation2 + $0x60] sm:$0xff] }
  0x57   : > { %434 = vst.msk [vmem:[#allocation2 + $0x79] sm:$0xff] %vm351_vm1, %v4407_v46  ;;  %v4504_v6 = vld [vmem:[#allocation2 + $0x61] sm:$0xff] }
  0x58   : > { %5813 = vst [vmem:[#allocation22_spill] sm:$0xff] %v4420_v50  ;;  %v4491_v1 = vld [vmem:[#allocation2 + $0x121] sm:$0xff] }
  0x59   : > { %3725 = vmatmul.msk.f32.gmra.mxu0 %vm351_vm1, %v4400_v45  ;;  %450 = vst.msk [vmem:[#allocation2 + $0x139] sm:$0xff] %vm351_vm1, %v4420_v50  ;;  %v4493_v2 = vld [vmem:[#allocation2 + $0x120] sm:$0xff] }
  0x5a   : > { %5814 = vst [vmem:[#allocation23_spill] sm:$0xff] %v4433_v52  ;;  %v4495_v3 = vld [vmem:[#allocation2 + $0x68] sm:$0xff] }
  0x5b   : > { %435 = vst.msk [vmem:[#allocation2 + $0x81] sm:$0xff] %vm351_vm1, %v4433_v52  ;;  %v3103_v52 = vld [vmem:[%s5735_s2] sm:$0xf] }
  0x5c   : > { %5815 = vst [vmem:[#allocation24_spill] sm:$0xff] %v4446_v56  ;;  %v4517_v10 = vld [vmem:[#allocation2 + $0x129] sm:$0xff]  ;;  %4024 = vmatpush.msk.msra.mxu1 %vm621_vm0, %v3103_v52 }
  0x5d   : > { %3742 = vmatmul.msk.f32.gmra.mxu2 %vm351_vm1, %v4413_v47  ;;  %451 = vst.msk [vmem:[#allocation2 + $0x141] sm:$0xff] %vm351_vm1, %v4446_v56  ;;  %v4519_v11 = vld [vmem:[#allocation2 + $0x128] sm:$0xff] }
  0x5e   : > { %3775 = vmatmul.msk.f32.gmra.mxu3 %vm351_vm1, %v4415_v48  ;;  %3760 = vmatmul.msk.f32.gmra.mxu1 %vm351_vm1, %v4417_v49  ;;  %5816 = vst [vmem:[#allocation25_spill] sm:$0xff] %v4459_v58  ;;  %v4521_v12 = vld [vmem:[#allocation2 + $0x78] sm:$0xff] }
  0x5f   : > { %436 = vst.msk [vmem:[#allocation2 + $0x91] sm:$0xff] %vm351_vm1, %v4459_v58 }
  0x60   : > { %5817 = vst [vmem:[#allocation26_spill] sm:$0xff] %v4472_v62  ;;  %v4543_v56 = vld [vmem:[#allocation2 + $0x139] sm:$0xff] }
  0x61   : > { %3726 = vmatmul.msk.f32.gmra.mxu0 %vm351_vm1, %v4426_v51  ;;  %452 = vst.msk [vmem:[#allocation2 + $0x151] sm:$0xff] %vm351_vm1, %v4472_v62  ;;  %v4537_v62 = vld [vmem:[%s4162_s14 + $0x68] sm:$0xff]  ;;  %v4545_v50 = vld [vmem:[#allocation2 + $0x138] sm:$0xff] }
  0x62   : > { %5818 = vst [vmem:[#allocation27_spill] sm:$0xff] %v4485_v0  ;;  %v4547_v44 = vld [vmem:[#allocation2 + $0x80] sm:$0xff] }
  0x63   : > { %437 = vst.msk [vmem:[#allocation2 + $0x99] sm:$0xff] %vm351_vm1, %v4485_v0  ;;  %v4574_v19 = vld [vmem:[#allocation2 + $0x81] sm:$0xff] }
  0x64   : > { %5819 = vst [vmem:[#allocation28_spill] sm:$0xff] %v4498_v4  ;;  %v4564_v32 = vld [vmem:[#allocation2 + $0x141] sm:$0xff] }
  0x65   : > { %3743 = vmatmul.msk.f32.gmra.mxu2 %vm351_vm1, %v4439_v53  ;;  %453 = vst.msk [vmem:[#allocation2 + $0x159] sm:$0xff] %vm351_vm1, %v4498_v4  ;;  %v4530_v4 = vld [vmem:[#allocation2 + $0x69] sm:$0xff]  ;;  %v4566_v26 = vld [vmem:[#allocation2 + $0x140] sm:$0xff] }
  0x66   : > { %3776 = vmatmul.msk.f32.gmra.mxu3 %vm351_vm1, %v4441_v54  ;;  %3761 = vmatmul.msk.f32.gmra.mxu1 %vm351_vm1, %v4443_v55  ;;  %5820 = vst [vmem:[#allocation29_spill] sm:$0xff] %v4511_v7  ;;  %v4568_v23 = vld [vmem:[#allocation2 + $0x90] sm:$0xff] }
  0x67   : > { %438 = vst.msk [vmem:[#allocation2 + $0xa9] sm:$0xff] %vm351_vm1, %v4511_v7  ;;  %v4590_v13 = vld [vmem:[#allocation2 + $0x91] sm:$0xff] }
  0x68   : > { %5821 = vst [vmem:[#allocation30_spill] sm:$0xff] %v4524_v27  ;;  %v4582_v17 = vld [vmem:[#allocation2 + $0x150] sm:$0xff] }
  0x69   : > { %3727 = vmatmul.msk.f32.gmra.mxu0 %vm351_vm1, %v4452_v57  ;;  %454 = vst.msk [vmem:[#allocation2 + $0x169] sm:$0xff] %vm351_vm1, %v4524_v27  ;;  %v4556_v27 = vld [vmem:[#allocation2 + $0x79] sm:$0xff] }
  0x6a   : > { %5822 = vst [vmem:[#allocation31_spill] sm:$0xff] %v4537_v62  ;;  %v4584_v15 = vld [vmem:[#allocation2 + $0x98] sm:$0xff] }
  0x6b   : > { %439 = vst.msk [vmem:[#allocation2 + $0xb1] sm:$0xff] %vm351_vm1, %v4537_v62  ;;  %v3956_v62 = vld [vmem:[%s5734_s1 + $0x1c] sm:$0xf] }
  0x6c   : > { %5823 = vst [vmem:[#allocation32_spill] sm:$0xff] %v4550_v38  ;;  %3957 = vmatpush.msk.msra.mxu3 %vm621_vm0, %v3956_v62  ;;  %v4604_v7 = vld [vmem:[#allocation2 + $0x159] sm:$0xff] }
  0x6d   : > { %3744 = vmatmul.msk.f32.gmra.mxu2 %vm351_vm1, %v4465_v59  ;;  %455 = vst.msk [vmem:[#allocation2 + $0x171] sm:$0xff] %vm351_vm1, %v4550_v38  ;;  %v4580_v38 = vld [vmem:[#allocation2 + $0x151] sm:$0xff]  ;;  %v4614_v5 = vld [vmem:[#allocation2 + $0x99] sm:$0xff] }
  0x6e   : > { %3777 = vmatmul.msk.f32.gmra.mxu3 %vm351_vm1, %v4467_v60  ;;  %3762 = vmatmul.msk.f32.gmra.mxu1 %vm351_vm1, %v4469_v61  ;;  %5824 = vst [vmem:[#allocation33_spill] sm:$0xff] %v4564_v32  ;;  %v4606_v0 = vld [vmem:[#allocation2 + $0x158] sm:$0xff]  ;;  %v4608_v58 = vld [vmem:[#allocation2 + $0xa8] sm:$0xff]  ;;  %v3990_v62 = vld [vmem:[%s5734_s1 + $0x20] sm:$0xf] }
  0x6f   : > { %5825 = vst [vmem:[#allocation34_spill] sm:$0xff] %v4580_v38  ;;  %3991 = vmatpush.msk.msra.mxu0 %vm621_vm0, %v3990_v62  ;;  %v4638_v62 = vld [vmem:[#allocation2 + $0xa9] sm:$0xff] }
  0x70   : > { %5826 = vst [vmem:[#allocation35_spill] sm:$0xff] %v4582_v17  ;;  %v4627_v46 = vld [vmem:[#allocation2 + $0x169] sm:$0xff] }
  0x71   : > { %3728 = vmatmul.msk.f32.gmra.mxu0 %vm351_vm1, %v4478_v63  ;;  %5827 = vst [vmem:[#allocation36_spill] sm:$0xff] %v4604_v7  ;;  %v4629_v40 = vld [vmem:[#allocation2 + $0x168] sm:$0xff] }
  0x72   : > { %5828 = vst [vmem:[#allocation37_spill] sm:$0xff] %v4606_v0  ;;  %v4632_v34 = vld [vmem:[#allocation2 + $0xb0] sm:$0xff] }
  0x73   : > { %5829 = vst [vmem:[#allocation38_spill] sm:$0xff] %v4627_v46  ;;  %v4654_v18 = vld [vmem:[#allocation2 + $0xb1] sm:$0xff] }
  0x74   : > { %5830 = vst [vmem:[#allocation39_spill] sm:$0xff] %v4629_v40  ;;  %v4646_v25 = vld [vmem:[#allocation2 + $0x171] sm:$0xff] }
  0x75   : > { %3745 = vmatmul.msk.f32.gmra.mxu2 %vm351_vm1, %v4491_v1  ;;  %5831 = vst [vmem:[#allocation40_spill] sm:$0xff] %v4646_v25  ;;  %v4648_v52 = vld [vmem:[#allocation2 + $0x170] sm:$0xff] }
  0x76   : > { %3778 = vmatmul.msk.f32.gmra.mxu3 %vm351_vm1, %v4493_v2  ;;  %3763 = vmatmul.msk.f32.gmra.mxu1 %vm351_vm1, %v4495_v3  ;;  %5832 = vst [vmem:[#allocation41_spill] sm:$0xff] %v4648_v52 }
  0x79   : > { %3729 = vmatmul.msk.f32.gmra.mxu0 %vm351_vm1, %v4504_v6 }
  0x7d   : > { %3746 = vmatmul.msk.f32.gmra.mxu2 %vm351_vm1, %v4517_v10 }
  0x7e   : > { %3779 = vmatmul.msk.f32.gmra.mxu3 %vm351_vm1, %v4519_v11  ;;  %3764 = vmatmul.msk.f32.gmra.mxu1 %vm351_vm1, %v4521_v12 }
  0x81   : > { %3730 = vmatmul.msk.f32.gmra.mxu0 %vm351_vm1, %v4530_v4 }
  0x85   : > { %3747 = vmatmul.msk.f32.gmra.mxu2 %vm351_vm1, %v4543_v56 }
  0x86   : > { %3780 = vmatmul.msk.f32.gmra.mxu3 %vm351_vm1, %v4545_v50  ;;  %3765 = vmatmul.msk.f32.gmra.mxu1 %vm351_vm1, %v4547_v44 }
  0x89   : > { %3731 = vmatmul.msk.f32.gmra.mxu0 %vm351_vm1, %v4556_v27 }
  0x8d   : > { %3748 = vmatmul.msk.f32.gmra.mxu2 %vm351_vm1, %v4564_v32 }
  0x8e   : > { %3781 = vmatmul.msk.f32.gmra.mxu3 %vm351_vm1, %v4566_v26  ;;  %3766 = vmatmul.msk.f32.gmra.mxu1 %vm351_vm1, %v4568_v23 }
  0x91   : > { %3732 = vmatmul.msk.f32.gmra.mxu0 %vm351_vm1, %v4574_v19  ;;  %v4642_v28 = vpop.f32.mrf.mxu1 }
  0x95   : > { %3749 = vmatmul.msk.f32.gmra.mxu2 %vm351_vm1, %v4580_v38  ;;  %v4675_v38 = vld [vmem:[#allocation2 + $0x32] sm:$0xff] }
  0x96   : > { %3782 = vmatmul.msk.f32.gmra.mxu3 %vm351_vm1, %v4582_v17  ;;  %3767 = vmatmul.msk.f32.gmra.mxu1 %vm351_vm1, %v4584_v15  ;;  %5835 = vst [vmem:[#allocation44_spill] sm:$0xff] %v4675_v38  ;;  %v4690_v17 = vld [vmem:[#allocation2 + $0x3a] sm:$0xff] }
  0x97   : > { %5837 = vst [vmem:[#allocation46_spill] sm:$0xff] %v4690_v17 }
  0x99   : > { %3733 = vmatmul.msk.f32.gmra.mxu0 %vm351_vm1, %v4590_v13  ;;  %v4659_v16 = vpop.f32.mrf.mxu1 }
  0x9d   : > { %3750 = vmatmul.msk.f32.gmra.mxu2 %vm351_vm1, %v4604_v7  ;;  %v951_v7 = vld [vmem:[#allocation2 + $0xa] sm:$0xff] }
  0x9e   : > { %3783 = vmatmul.msk.f32.gmra.mxu3 %vm351_vm1, %v4606_v0  ;;  %3768 = vmatmul.msk.f32.gmra.mxu1 %vm351_vm1, %v4608_v58 }
  0xa1   : > { %3734 = vmatmul.msk.f32.gmra.mxu0 %vm351_vm1, %v4614_v5 }
  0xa5   : > { %3751 = vmatmul.msk.f32.gmra.mxu2 %vm351_vm1, %v4627_v46  ;;  %v1785_v46 = vld [vmem:[#allocation2 + $0x22] sm:$0xff] }
  0xa6   : > { %3784 = vmatmul.msk.f32.gmra.mxu3 %vm351_vm1, %v4629_v40  ;;  %3769 = vmatmul.msk.f32.gmra.mxu1 %vm351_vm1, %v4632_v34  ;;  %v4661_v40 = vpop.f32.mrf.mxu0 }
  0xa9   : > { %3735 = vmatmul.msk.f32.gmra.mxu0 %vm351_vm1, %v4638_v62 }
  0xad   : > { %3752 = vmatmul.msk.f32.gmra.mxu2 %vm351_vm1, %v4646_v25  ;;  %v4667_v25 = vpop.f32.mrf.mxu2 }
  0xae   : > { %3785 = vmatmul.msk.f32.gmra.mxu3 %vm351_vm1, %v4648_v52  ;;  %3890 = vmatmul.msk.f32.vlgmr.msrb.gmra.mxu1 %vm351_vm1, %v1784_v20  ;;  %5833 = vst [vmem:[#allocation42_spill] sm:$0xff] %v4667_v25  ;;  %v4669_v52 = vpop.f32.mrf.mxu3 }
  0xaf   : > { %5834 = vst [vmem:[#allocation43_spill] sm:$0xff] %v4669_v52 }
  0xb1   : > { %3736 = vmatmul.msk.f32.gmra.mxu0 %vm351_vm1, %v4654_v18 }
  0xb5   : > { %3788 = vmatmul.msk.f32.vlgmr.msrb.gmra.mxu2 %vm351_vm1, %v950_v14 }
  0xb6   : > { %3822 = vmatmul.msk.f32.vlgmr.msrb.gmra.mxu3 %vm351_vm1, %v4309_v24  ;;  %3891 = vmatmul.msk.f32.gmra.mxu1 %vm351_vm1, %v1785_v46 }
  0xb9   : > { %3856 = vmatmul.msk.f32.vlgmr.msrb.gmra.mxu0 %vm351_vm1, %v4348_v33 }
  0xbb   : > { %v4673_v0 = vpop.f32.mrf.mxu1 }
  0xbd   : > { %3789 = vmatmul.msk.f32.gmra.mxu2 %vm351_vm1, %v951_v7 }
  0xbe   : > { %3823 = vmatmul.msk.f32.gmra.mxu3 %vm351_vm1, %v4339_v31  ;;  %v4680_v14 = vpop.f32.mrf.mxu0  ;;  %3892 = vmatmul.msk.f32.gmra.mxu1 %vm351_vm1, %v4675_v38 }
  0xc0   : > { %v693_v24 = vpop.f32.mrf.mxu2 }
  0xc1   : > { %v905_v52 = vpop.f32.mrf.mxu3  ;;  %3857 = vmatmul.msk.f32.gmra.mxu0 %vm351_vm1, %v4374_v39 }
  0xc2   : > { %v4686_v33 = vadd.f32 %v905_v52, %v693_v24  ;;  %v4705_v24 = vld [vmem:[#allocation2 + $0x4a] sm:$0xff] }
  0xc3   : > { %v4688_v25 = vpop.f32.mrf.mxu1  ;;  %5839 = vst [vmem:[#allocation48_spill] sm:$0xff] %v4705_v24 }
  0xc4   : > { %5836 = vst [vmem:[#allocation45_spill] sm:$0xff] %v4686_v33 }
  0xc5   : > { %3790 = vmatmul.msk.f32.gmra.mxu2 %vm351_vm1, %v1784_v20 }
  0xc6   : > { %3824 = vmatmul.msk.f32.gmra.mxu3 %vm351_vm1, %v4365_v37  ;;  %v4695_v31 = vpop.f32.mrf.mxu0  ;;  %3893 = vmatmul.msk.f32.gmra.mxu1 %vm351_vm1, %v4690_v17 }
  0xc8   : > { %v696_v7 = vpop.f32.mrf.mxu2 }
  0xc9   : > { %v908_v32 = vpop.f32.mrf.mxu3  ;;  %3858 = vmatmul.msk.f32.gmra.mxu0 %vm351_vm1, %v4400_v45 }
  0xca   : > { %v4701_v39 = vadd.f32 %v908_v32, %v696_v7  ;;  %v4720_v7 = vld [vmem:[#allocation2 + $0x52] sm:$0xff] }
  0xcb   : > { %v4703_v52 = vpop.f32.mrf.mxu1  ;;  %5841 = vst [vmem:[#allocation50_spill] sm:$0xff] %v4720_v7 }
  0xcc   : > { %5838 = vst [vmem:[#allocation47_spill] sm:$0xff] %v4701_v39 }
  0xcd   : > { %3791 = vmatmul.msk.f32.gmra.mxu2 %vm351_vm1, %v1785_v46 }
  0xce   : > { %3825 = vmatmul.msk.f32.gmra.mxu3 %vm351_vm1, %v4391_v43  ;;  %v4710_v20 = vpop.f32.mrf.mxu0  ;;  %3894 = vmatmul.msk.f32.gmra.mxu1 %vm351_vm1, %v4705_v24 }
  0xd0   : > { %v699_v37 = vpop.f32.mrf.mxu2 }
  0xd1   : > { %v911_v33 = vpop.f32.mrf.mxu3  ;;  %3859 = vmatmul.msk.f32.gmra.mxu0 %vm351_vm1, %v4426_v51 }
  0xd2   : > { %v4716_v32 = vadd.f32 %v911_v33, %v699_v37  ;;  %v4736_v37 = vld [vmem:[#allocation2 + $0x62] sm:$0xff] }
  0xd3   : > { %v4718_v45 = vpop.f32.mrf.mxu1  ;;  %5843 = vst [vmem:[#allocation52_spill] sm:$0xff] %v4736_v37 }
  0xd4   : > { %5840 = vst [vmem:[#allocation49_spill] sm:$0xff] %v4716_v32 }
  0xd5   : > { %3792 = vmatmul.msk.f32.gmra.mxu2 %vm351_vm1, %v4675_v38 }
  0xd6   : > { %3826 = vmatmul.msk.f32.gmra.mxu3 %vm351_vm1, %v4417_v49  ;;  %v4726_v43 = vpop.f32.mrf.mxu0  ;;  %3895 = vmatmul.msk.f32.gmra.mxu1 %vm351_vm1, %v4720_v7 }
  0xd8   : > { %v702_v46 = vpop.f32.mrf.mxu2 }
  0xd9   : > { %v914_v39 = vpop.f32.mrf.mxu3  ;;  %3860 = vmatmul.msk.f32.gmra.mxu0 %vm351_vm1, %v4452_v57 }
  0xda   : > { %v4732_v51 = vadd.f32 %v914_v39, %v702_v46  ;;  %v4752_v46 = vld [vmem:[#allocation2 + $0x6a] sm:$0xff] }
  0xdb   : > { %v4734_v33 = vpop.f32.mrf.mxu1  ;;  %5845 = vst [vmem:[#allocation54_spill] sm:$0xff] %v4752_v46 }
  0xdc   : > { %5842 = vst [vmem:[#allocation51_spill] sm:$0xff] %v4732_v51 }
  0xdd   : > { %3793 = vmatmul.msk.f32.gmra.mxu2 %vm351_vm1, %v4690_v17 }
  0xde   : > { %3827 = vmatmul.msk.f32.gmra.mxu3 %vm351_vm1, %v4443_v55  ;;  %v4742_v49 = vpop.f32.mrf.mxu0  ;;  %3896 = vmatmul.msk.f32.gmra.mxu1 %vm351_vm1, %v4736_v37 }
  0xe0   : > { %v705_v32 = vpop.f32.mrf.mxu2 }
  0xe1   : > { %v917_v38 = vpop.f32.mrf.mxu3  ;;  %3861 = vmatmul.msk.f32.gmra.mxu0 %vm351_vm1, %v4478_v63 }
  0xe2   : > { %v4748_v57 = vadd.f32 %v917_v38, %v705_v32  ;;  %v4768_v32 = vld [vmem:[#allocation2 + $0x7a] sm:$0xff] }
  0xe3   : > { %v4750_v39 = vpop.f32.mrf.mxu1  ;;  %5847 = vst [vmem:[#allocation56_spill] sm:$0xff] %v4768_v32 }
  0xe4   : > { %5844 = vst [vmem:[#allocation53_spill] sm:$0xff] %v4748_v57 }
  0xe5   : > { %3794 = vmatmul.msk.f32.gmra.mxu2 %vm351_vm1, %v4705_v24 }
  0xe6   : > { %3828 = vmatmul.msk.f32.gmra.mxu3 %vm351_vm1, %v4469_v61  ;;  %v4758_v55 = vpop.f32.mrf.mxu0  ;;  %3897 = vmatmul.msk.f32.gmra.mxu1 %vm351_vm1, %v4752_v46 }
  0xe8   : > { %v708_v51 = vpop.f32.mrf.mxu2 }
  0xe9   : > { %v920_v17 = vpop.f32.mrf.mxu3  ;;  %3862 = vmatmul.msk.f32.gmra.mxu0 %vm351_vm1, %v4504_v6 }
  0xea   : > { %v4764_v38 = vadd.f32 %v920_v17, %v708_v51  ;;  %v4784_v51 = vld [vmem:[#allocation2 + $0x82] sm:$0xff] }
  0xeb   : > { %v4766_v63 = vpop.f32.mrf.mxu1  ;;  %5849 = vst [vmem:[#allocation58_spill] sm:$0xff] %v4784_v51 }
  0xec   : > { %5846 = vst [vmem:[#allocation55_spill] sm:$0xff] %v4764_v38 }
  0xed   : > { %3795 = vmatmul.msk.f32.gmra.mxu2 %vm351_vm1, %v4720_v7 }
  0xee   : > { %3829 = vmatmul.msk.f32.gmra.mxu3 %vm351_vm1, %v4495_v3  ;;  %v4774_v61 = vpop.f32.mrf.mxu0  ;;  %3898 = vmatmul.msk.f32.gmra.mxu1 %vm351_vm1, %v4768_v32 }
  0xf0   : > { %v711_v57 = vpop.f32.mrf.mxu2 }
  0xf1   : > { %v923_v24 = vpop.f32.mrf.mxu3  ;;  %3863 = vmatmul.msk.f32.gmra.mxu0 %vm351_vm1, %v4530_v4 }
  0xf2   : > { %v4780_v17 = vadd.f32 %v923_v24, %v711_v57  ;;  %v4800_v57 = vld [vmem:[#allocation2 + $0x92] sm:$0xff] }
  0xf3   : > { %v4782_v6 = vpop.f32.mrf.mxu1  ;;  %5851 = vst [vmem:[#allocation60_spill] sm:$0xff] %v4800_v57 }
  0xf4   : > { %5848 = vst [vmem:[#allocation57_spill] sm:$0xff] %v4780_v17 }
  0xf5   : > { %3796 = vmatmul.msk.f32.gmra.mxu2 %vm351_vm1, %v4736_v37 }
  0xf6   : > { %3830 = vmatmul.msk.f32.gmra.mxu3 %vm351_vm1, %v4521_v12  ;;  %v4790_v3 = vpop.f32.mrf.mxu0  ;;  %3899 = vmatmul.msk.f32.gmra.mxu1 %vm351_vm1, %v4784_v51 }
  0xf8   : > { %v714_v38 = vpop.f32.mrf.mxu2 }
  0xf9   : > { %v926_v7 = vpop.f32.mrf.mxu3  ;;  %3864 = vmatmul.msk.f32.gmra.mxu0 %vm351_vm1, %v4556_v27 }
  0xfa   : > { %v4796_v4 = vadd.f32 %v926_v7, %v714_v38  ;;  %v4816_v38 = vld [vmem:[#allocation2 + $0x9a] sm:$0xff] }
  0xfb   : > { %v4798_v24 = vpop.f32.mrf.mxu1  ;;  %5853 = vst [vmem:[#allocation62_spill] sm:$0xff] %v4816_v38 }
  0xfc   : > { %5850 = vst [vmem:[#allocation59_spill] sm:$0xff] %v4796_v4 }
  0xfd   : > { %3797 = vmatmul.msk.f32.gmra.mxu2 %vm351_vm1, %v4752_v46 }
  0xfe   : > { %3831 = vmatmul.msk.f32.gmra.mxu3 %vm351_vm1, %v4547_v44  ;;  %v4806_v12 = vpop.f32.mrf.mxu0  ;;  %3900 = vmatmul.msk.f32.gmra.mxu1 %vm351_vm1, %v4800_v57 }
 0x100   : > { %v717_v17 = vpop.f32.mrf.mxu2 }
 0x101   : > { %v929_v37 = vpop.f32.mrf.mxu3  ;;  %3865 = vmatmul.msk.f32.gmra.mxu0 %vm351_vm1, %v4574_v19 }
 0x102   : > { %v4812_v27 = vadd.f32 %v929_v37, %v717_v17  ;;  %v4832_v17 = vld [vmem:[#allocation2 + $0xaa] sm:$0xff] }
 0x103   : > { %v4814_v7 = vpop.f32.mrf.mxu1  ;;  %5855 = vst [vmem:[#allocation64_spill] sm:$0xff] %v4832_v17 }
 0x104   : > { %5852 = vst [vmem:[#allocation61_spill] sm:$0xff] %v4812_v27 }
 0x105   : > { %3798 = vmatmul.msk.f32.gmra.mxu2 %vm351_vm1, %v4768_v32 }
 0x106   : > { %3832 = vmatmul.msk.f32.gmra.mxu3 %vm351_vm1, %v4568_v23  ;;  %v4822_v44 = vpop.f32.mrf.mxu0  ;;  %3901 = vmatmul.msk.f32.gmra.mxu1 %vm351_vm1, %v4816_v38 }
 0x108   : > { %v720_v4 = vpop.f32.mrf.mxu2 }
 0x109   : > { %v932_v46 = vpop.f32.mrf.mxu3  ;;  %3866 = vmatmul.msk.f32.gmra.mxu0 %vm351_vm1, %v4590_v13 }
 0x10a   : > { %v4828_v19 = vadd.f32 %v932_v46, %v720_v4  ;;  %v4848_v4 = vld [vmem:[#allocation2 + $0xb2] sm:$0xff] }
 0x10b   : > { %v4830_v37 = vpop.f32.mrf.mxu1  ;;  %5857 = vst [vmem:[#allocation66_spill] sm:$0xff] %v4848_v4 }
 0x10c   : > { %5854 = vst [vmem:[#allocation63_spill] sm:$0xff] %v4828_v19 }
 0x10d   : > { %3799 = vmatmul.msk.f32.gmra.mxu2 %vm351_vm1, %v4784_v51 }
 0x10e   : > { %3833 = vmatmul.msk.f32.gmra.mxu3 %vm351_vm1, %v4584_v15  ;;  %v4838_v23 = vpop.f32.mrf.mxu0  ;;  %3902 = vmatmul.msk.f32.gmra.mxu1 %vm351_vm1, %v4832_v17 }
 0x110   : > { %v723_v27 = vpop.f32.mrf.mxu2 }
 0x111   : > { %v935_v32 = vpop.f32.mrf.mxu3  ;;  %3867 = vmatmul.msk.f32.gmra.mxu0 %vm351_vm1, %v4614_v5 }
 0x112   : > { %v4844_v13 = vadd.f32 %v935_v32, %v723_v27  ;;  %v4864_v27 = vld [vmem:[#allocation2 + $0xc2] sm:$0xff] }
 0x113   : > { %v4846_v46 = vpop.f32.mrf.mxu1  ;;  %5859 = vst [vmem:[#allocation68_spill] sm:$0xff] %v4864_v27 }
 0x114   : > { %5856 = vst [vmem:[#allocation65_spill] sm:$0xff] %v4844_v13 }
 0x115   : > { %3800 = vmatmul.msk.f32.gmra.mxu2 %vm351_vm1, %v4800_v57 }
 0x116   : > { %3834 = vmatmul.msk.f32.gmra.mxu3 %vm351_vm1, %v4608_v58  ;;  %v4854_v15 = vpop.f32.mrf.mxu0  ;;  %3903 = vmatmul.msk.f32.gmra.mxu1 %vm351_vm1, %v4848_v4 }
 0x118   : > { %v726_v19 = vpop.f32.mrf.mxu2 }
 0x119   : > { %v938_v51 = vpop.f32.mrf.mxu3  ;;  %3868 = vmatmul.msk.f32.gmra.mxu0 %vm351_vm1, %v4638_v62 }
 0x11a   : > { %v4860_v5 = vadd.f32 %v938_v51, %v726_v19  ;;  %v4880_v19 = vld [vmem:[#allocation2 + $0xca] sm:$0xff] }
 0x11b   : > { %v4862_v32 = vpop.f32.mrf.mxu1 }
 0x11c   : > { %5858 = vst [vmem:[#allocation67_spill] sm:$0xff] %v4860_v5 }
 0x11d   : > { %3801 = vmatmul.msk.f32.gmra.mxu2 %vm351_vm1, %v4816_v38 }
 0x11e   : > { %3835 = vmatmul.msk.f32.gmra.mxu3 %vm351_vm1, %v4632_v34  ;;  %v4870_v58 = vpop.f32.mrf.mxu0  ;;  %3904 = vmatmul.msk.f32.gmra.mxu1 %vm351_vm1, %v4864_v27 }
 0x120   : > { %v729_v13 = vpop.f32.mrf.mxu2 }
 0x121   : > { %v941_v57 = vpop.f32.mrf.mxu3  ;;  %3869 = vmatmul.msk.f32.gmra.mxu0 %vm351_vm1, %v4654_v18 }
 0x122   : > { %v4876_v62 = vadd.f32 %v941_v57, %v729_v13  ;;  %v4894_v13 = vld [vmem:[#allocation2 + $0xda] sm:$0xff] }
 0x123   : > { %v4878_v51 = vpop.f32.mrf.mxu1 }
 0x124   : > { %5860 = vst [vmem:[#allocation69_spill] sm:$0xff] %v4876_v62 }
 0x125   : > { %5861 = vst [vmem:[#allocation70_spill] sm:$0xff] %v4878_v51  ;;  %3802 = vmatmul.msk.f32.gmra.mxu2 %vm351_vm1, %v4832_v17  ;;  %v4920_v51 = vld [vmem:[#allocation2 + $0xf2] sm:$0xff] }
 0x126   : > { %3836 = vmatmul.msk.f32.gmra.mxu3 %vm351_vm1, %v4196_v9  ;;  %v4886_v34 = vpop.f32.mrf.mxu0  ;;  %3905 = vmatmul.msk.f32.gmra.mxu1 %vm351_vm1, %v4880_v19 }
 0x128   : > { %v732_v5 = vpop.f32.mrf.mxu2 }
 0x129   : > { %v944_v38 = vpop.f32.mrf.mxu3  ;;  %3870 = vmatmul.msk.f32.gmra.mxu0 %vm351_vm1, %v4194_v8 }
 0x12a   : > { %v4892_v18 = vadd.f32 %v944_v38, %v732_v5  ;;  %v4908_v5 = vld [vmem:[#allocation2 + $0xe2] sm:$0xff] }
 0x12b   : > { %v1934_v57 = vpop.f32.mrf.mxu1 }
 0x12c   : > { %5862 = vst [vmem:[#allocation71_spill] sm:$0xff] %v4892_v18  ;;  %v855_v18 = vadd.f32 %v4642_v28, %v4661_v40  ;;  %v858_v28 = vadd.f32 %v4659_v16, %v4680_v14  ;;  %v861_v14 = vadd.f32 %v4673_v0, %v4695_v31  ;;  %v864_v31 = vadd.f32 %v4688_v25, %v4710_v20 }
 0x12d   : > { %3803 = vmatmul.msk.f32.gmra.mxu2 %vm351_vm1, %v4848_v4  ;;  %v867_v25 = vadd.f32 %v4703_v52, %v4726_v43  ;;  %v870_v52 = vadd.f32 %v4718_v45, %v4742_v49  ;;  %v873_v45 = vadd.f32 %v4734_v33, %v4758_v55  ;;  %v876_v33 = vadd.f32 %v4750_v39, %v4774_v61  ;;  %v5010_v39 = vld [vmem:[%s4162_s14 + $0xf0] sm:$0xff]  ;;  %v5013_v61 = vld [vmem:[%s4162_s14 + $0xf8] sm:$0xff]  ;;  %s5232_s14 = scalar_lea.vmem %s5737_s4, %s4156_s11 }
 0x12e   : > { %3837 = vmatmul.msk.f32.gmra.mxu3 %vm351_vm1, %v4298_v22  ;;  %v4900_v9 = vpop.f32.mrf.mxu0  ;;  %3906 = vmatmul.msk.f32.gmra.mxu1 %vm351_vm1, %v4894_v13  ;;  %456 = vst.msk [vmem:[#allocation2 + $0x181] sm:$0xff] %vm351_vm1, %v5010_v39 }
 0x12f   : > { %457 = vst.msk [vmem:[#allocation2 + $0x189] sm:$0xff] %vm351_vm1, %v5013_v61 }
 0x130   : > { %v735_v62 = vpop.f32.mrf.mxu2 }
 0x131   : > { %v947_v17 = vpop.f32.mrf.mxu3  ;;  %3871 = vmatmul.msk.f32.gmra.mxu0 %vm351_vm1, %v4296_v21 }
 0x132   : > { %v4906_v8 = vadd.f32 %v947_v17, %v735_v62 }
 0x133   : > { %v1937_v38 = vpop.f32.mrf.mxu1 }
 0x134   : > { %5863 = vst [vmem:[#allocation72_spill] sm:$0xff] %v4906_v8 }
 0x135   : > { %3804 = vmatmul.msk.f32.gmra.mxu2 %vm351_vm1, %v4864_v27 }
 0x136   : > { %3838 = vmatmul.msk.f32.gmra.mxu3 %vm351_vm1, %v4335_v30  ;;  %v1656_v22 = vpop.f32.mrf.mxu0  ;;  %3907 = vmatmul.msk.f32.gmra.mxu1 %vm351_vm1, %v4908_v5 }
 0x138   : > { %v1100_v4 = vpop.f32.mrf.mxu2 }
 0x139   : > { %v1378_v21 = vpop.f32.mrf.mxu3  ;;  %3872 = vmatmul.msk.f32.gmra.mxu0 %vm351_vm1, %v4333_v29  ;;  %v1196_v17 = vadd.f32 %v1100_v4, %v855_v18 }
 0x13b   : > { %v1474_v62 = vadd.f32 %v1378_v21, %v1196_v17  ;;  %v1940_v8 = vpop.f32.mrf.mxu1  ;;  %v4934_v17 = vld [vmem:[#allocation2 + $0xfa] sm:$0xff] }
 0x13d   : > { %v1752_v27 = vadd.f32 %v1656_v22, %v1474_v62  ;;  %3805 = vmatmul.msk.f32.gmra.mxu2 %vm351_vm1, %v4880_v19 }
 0x13e   : > { %3839 = vmatmul.msk.f32.gmra.mxu3 %vm351_vm1, %v4363_v36  ;;  %v1659_v30 = vpop.f32.mrf.mxu0  ;;  %3908 = vmatmul.msk.f32.gmra.mxu1 %vm351_vm1, %v4920_v51 }
 0x13f   : > { %v4930_v29 = vadd.f32 %v1934_v57, %v1752_v27 }
 0x140   : > { %v1103_v40 = vpop.f32.mrf.mxu2 }
 0x141   : > { %v1381_v4 = vpop.f32.mrf.mxu3  ;;  %3873 = vmatmul.msk.f32.gmra.mxu0 %vm351_vm1, %v4361_v35  ;;  %v1197_v18 = vadd.f32 %v1103_v40, %v858_v28  ;;  %v4948_v40 = vld [vmem:[#allocation2 + $0x10a] sm:$0xff] }
 0x143   : > { %v1475_v22 = vadd.f32 %v1381_v4, %v1197_v18  ;;  %v1943_v21 = vpop.f32.mrf.mxu1 }
 0x145   : > { %v1753_v36 = vadd.f32 %v1659_v30, %v1475_v22  ;;  %3806 = vmatmul.msk.f32.gmra.mxu2 %vm351_vm1, %v4894_v13 }
 0x146   : > { %3840 = vmatmul.msk.f32.gmra.mxu3 %vm351_vm1, %v4389_v42  ;;  %v1662_v16 = vpop.f32.mrf.mxu0  ;;  %3909 = vmatmul.msk.f32.gmra.mxu1 %vm351_vm1, %v4934_v17 }
 0x147   : > { %v4944_v35 = vadd.f32 %v1937_v38, %v1753_v36 }
 0x148   : > { %v1106_v27 = vpop.f32.mrf.mxu2 }
 0x149   : > { %v1384_v57 = vpop.f32.mrf.mxu3  ;;  %3874 = vmatmul.msk.f32.gmra.mxu0 %vm351_vm1, %v4387_v41  ;;  %v1198_v62 = vadd.f32 %v1106_v27, %v861_v14 }
 0x14b   : > { %v1476_v30 = vadd.f32 %v1384_v57, %v1198_v62  ;;  %v1946_v28 = vpop.f32.mrf.mxu1 }
 0x14d   : > { %v1754_v42 = vadd.f32 %v1662_v16, %v1476_v30  ;;  %3807 = vmatmul.msk.f32.gmra.mxu2 %vm351_vm1, %v4908_v5  ;;  %v1805_v16 = vld [vmem:[#allocation2 + $0x112] sm:$0xff]  ;;  %v1806_v30 = vld [vmem:[#allocation2 + $0x122] sm:$0xff] }
 0x14e   : > { %3841 = vmatmul.msk.f32.gmra.mxu3 %vm351_vm1, %v4415_v48  ;;  %v1665_v0 = vpop.f32.mrf.mxu0  ;;  %3910 = vmatmul.msk.f32.gmra.mxu1 %vm351_vm1, %v4948_v40 }
 0x14f   : > { %v4958_v41 = vadd.f32 %v1940_v8, %v1754_v42 }
 0x150   : > { %v1109_v38 = vpop.f32.mrf.mxu2 }
 0x151   : > { %v1387_v4 = vpop.f32.mrf.mxu3  ;;  %3875 = vmatmul.msk.f32.gmra.mxu0 %vm351_vm1, %v4413_v47  ;;  %v1199_v18 = vadd.f32 %v1109_v38, %v864_v31 }
 0x153   : > { %v1477_v22 = vadd.f32 %v1387_v4, %v1199_v18  ;;  %v1949_v36 = vpop.f32.mrf.mxu1  ;;  %v1807_v4 = vld [vmem:[#allocation2 + $0x12a] sm:$0xff] }
 0x155   : > { %v1755_v14 = vadd.f32 %v1665_v0, %v1477_v22  ;;  %3808 = vmatmul.msk.f32.gmra.mxu2 %vm351_vm1, %v4920_v51 }
 0x156   : > { %3842 = vmatmul.msk.f32.gmra.mxu3 %vm351_vm1, %v4441_v54  ;;  %v1668_v48 = vpop.f32.mrf.mxu0  ;;  %3911 = vmatmul.msk.f32.gmra.mxu1 %vm351_vm1, %v1805_v16 }
 0x157   : > { %v4969_v20 = vadd.f32 %v1943_v21, %v1755_v14 }
 0x158   : > { %v1112_v47 = vpop.f32.mrf.mxu2 }
 0x159   : > { %v1390_v8 = vpop.f32.mrf.mxu3  ;;  %3876 = vmatmul.msk.f32.gmra.mxu0 %vm351_vm1, %v4439_v53  ;;  %v1200_v27 = vadd.f32 %v1112_v47, %v867_v25  ;;  %v1808_v25 = vld [vmem:[#allocation2 + $0x13a] sm:$0xff] }
 0x15b   : > { %v1478_v57 = vadd.f32 %v1390_v8, %v1200_v27  ;;  %v1952_v62 = vpop.f32.mrf.mxu1 }
 0x15d   : > { %v1756_v42 = vadd.f32 %v1668_v48, %v1478_v57  ;;  %3809 = vmatmul.msk.f32.gmra.mxu2 %vm351_vm1, %v4934_v17  ;;  %v1809_v57 = vld [vmem:[#allocation2 + $0x142] sm:$0xff] }
 0x15e   : > { %3843 = vmatmul.msk.f32.gmra.mxu3 %vm351_vm1, %v4467_v60  ;;  %v1671_v54 = vpop.f32.mrf.mxu0  ;;  %3912 = vmatmul.msk.f32.gmra.mxu1 %vm351_vm1, %v1806_v30 }
 0x15f   : > { %v4980_v43 = vadd.f32 %v1946_v28, %v1756_v42 }
 0x160   : > { %v1115_v53 = vpop.f32.mrf.mxu2 }
 0x161   : > { %v1393_v21 = vpop.f32.mrf.mxu3  ;;  %3877 = vmatmul.msk.f32.gmra.mxu0 %vm351_vm1, %v4465_v59  ;;  %v1201_v0 = vadd.f32 %v1115_v53, %v870_v52 }
 0x163   : > { %v1479_v31 = vadd.f32 %v1393_v21, %v1201_v0  ;;  %v1955_v38 = vpop.f32.mrf.mxu1  ;;  %v1810_v21 = vld [vmem:[#allocation2 + $0x152] sm:$0xff] }
 0x165   : > { %v1757_v18 = vadd.f32 %v1671_v54, %v1479_v31  ;;  %3810 = vmatmul.msk.f32.gmra.mxu2 %vm351_vm1, %v4948_v40 }
 0x166   : > { %3844 = vmatmul.msk.f32.gmra.mxu3 %vm351_vm1, %v4493_v2  ;;  %v1674_v60 = vpop.f32.mrf.mxu0  ;;  %3913 = vmatmul.msk.f32.gmra.mxu1 %vm351_vm1, %v1807_v4 }
 0x167   : > { %v4991_v49 = vadd.f32 %v1949_v36, %v1757_v18  ;;  %v5864_v18 = vld [vmem:[#allocation33_spill] sm:$0xff] }
 0x168   : > { %v1118_v59 = vpop.f32.mrf.mxu2 }
 0x169   : > { %v1396_v28 = vpop.f32.mrf.mxu3  ;;  %3878 = vmatmul.msk.f32.gmra.mxu0 %vm351_vm1, %v4491_v1  ;;  %v1202_v22 = vadd.f32 %v1118_v59, %v873_v45 }
 0x16b   : > { %v1480_v14 = vadd.f32 %v1396_v28, %v1202_v22  ;;  %v1958_v48 = vpop.f32.mrf.mxu1 }
 0x16d   : > { %v1758_v47 = vadd.f32 %v1674_v60, %v1480_v14  ;;  %3811 = vmatmul.msk.f32.gmra.mxu2 %vm351_vm1, %v1805_v16 }
 0x16e   : > { %3845 = vmatmul.msk.f32.gmra.mxu3 %vm351_vm1, %v4519_v11  ;;  %v1677_v2 = vpop.f32.mrf.mxu0  ;;  %3914 = vmatmul.msk.f32.gmra.mxu1 %vm351_vm1, %v1808_v25 }
 0x16f   : > { %v5001_v55 = vadd.f32 %v1952_v62, %v1758_v47  ;;  %v5866_v47 = vld [vmem:[#allocation34_spill] sm:$0xff] }
 0x170   : > { %v1121_v1 = vpop.f32.mrf.mxu2 }
 0x171   : > { %v1399_v36 = vpop.f32.mrf.mxu3  ;;  %3879 = vmatmul.msk.f32.gmra.mxu0 %vm351_vm1, %v4517_v10  ;;  %v1203_v8 = vadd.f32 %v1121_v1, %v876_v33  ;;  %v879_v10 = vadd.f32 %v4766_v63, %v4790_v3  ;;  %v882_v3 = vadd.f32 %v4782_v6, %v4806_v12  ;;  %v885_v6 = vadd.f32 %v4798_v24, %v4822_v44 }
 0x172   : > { %v888_v24 = vadd.f32 %v4814_v7, %v4838_v23  ;;  %v891_v7 = vadd.f32 %v4830_v37, %v4854_v15  ;;  %v894_v37 = vadd.f32 %v4846_v46, %v4870_v58  ;;  %v897_v46 = vadd.f32 %v4862_v32, %v4886_v34  ;;  %v5874_v32 = vld [vmem:[#allocation70_spill] sm:$0xff] }
 0x173   : > { %v1481_v16 = vadd.f32 %v1399_v36, %v1203_v8  ;;  %v1961_v27 = vpop.f32.mrf.mxu1  ;;  %v5867_v8 = vld [vmem:[#allocation37_spill] sm:$0xff]  ;;  %v900_v34 = vadd.f32 %v5874_v32, %v4900_v9  ;;  %v5876_v9 = vld [vmem:[#allocation42_spill] sm:$0xff] }
 0x175   : > { %v1759_v11 = vadd.f32 %v1677_v2, %v1481_v16  ;;  %3812 = vmatmul.msk.f32.gmra.mxu2 %vm351_vm1, %v1806_v30 }
 0x176   : > { %3846 = vmatmul.msk.f32.gmra.mxu3 %vm351_vm1, %v4545_v50  ;;  %v1680_v42 = vpop.f32.mrf.mxu0  ;;  %3915 = vmatmul.msk.f32.gmra.mxu1 %vm351_vm1, %v1809_v57 }
 0x177   : > { %v5019_v62 = vadd.f32 %v1955_v38, %v1759_v11 }
 0x178   : > { %v1124_v54 = vpop.f32.mrf.mxu2 }
 0x179   : > { %v1402_v30 = vpop.f32.mrf.mxu3  ;;  %3880 = vmatmul.msk.f32.gmra.mxu0 %vm351_vm1, %v4543_v56  ;;  %v1204_v50 = vadd.f32 %v1124_v54, %v879_v10 }
 0x17b   : > { %v1482_v52 = vadd.f32 %v1402_v30, %v1204_v50  ;;  %v1964_v53 = vpop.f32.mrf.mxu1 }
 0x17d   : > { %v1760_v0 = vadd.f32 %v1680_v42, %v1482_v52  ;;  %3813 = vmatmul.msk.f32.gmra.mxu2 %vm351_vm1, %v1807_v4  ;;  %v1811_v4 = vld [vmem:[#allocation2 + $0x15a] sm:$0xff]  ;;  %v5869_v52 = vld [vmem:[#allocation39_spill] sm:$0xff] }
 0x17e   : > { %3847 = vmatmul.msk.f32.gmra.mxu3 %vm351_vm1, %v4566_v26  ;;  %v1683_v63 = vpop.f32.mrf.mxu0  ;;  %3916 = vmatmul.msk.f32.gmra.mxu1 %vm351_vm1, %v1810_v21  ;;  %v5865_v26 = vld [vmem:[#allocation35_spill] sm:$0xff]  ;;  %v5868_v42 = vld [vmem:[#allocation36_spill] sm:$0xff] }
 0x17f   : > { %v5031_v56 = vadd.f32 %v1958_v48, %v1760_v0 }
 0x180   : > { %v1127_v31 = vpop.f32.mrf.mxu2 }
 0x181   : > { %v1405_v38 = vpop.f32.mrf.mxu3  ;;  %3881 = vmatmul.msk.f32.gmra.mxu0 %vm351_vm1, %v5864_v18  ;;  %v1205_v60 = vadd.f32 %v1127_v31, %v882_v3  ;;  %v5870_v3 = vld [vmem:[#allocation38_spill] sm:$0xff] }
 0x183   : > { %v1483_v45 = vadd.f32 %v1405_v38, %v1205_v60  ;;  %v1967_v59 = vpop.f32.mrf.mxu1 }
 0x185   : > { %v1761_v28 = vadd.f32 %v1683_v63, %v1483_v45  ;;  %3814 = vmatmul.msk.f32.gmra.mxu2 %vm351_vm1, %v1808_v25  ;;  %v1812_v25 = vld [vmem:[#allocation2 + $0x16a] sm:$0xff]  ;;  %v5871_v45 = vld [vmem:[#allocation41_spill] sm:$0xff] }
 0x186   : > { %3848 = vmatmul.msk.f32.gmra.mxu3 %vm351_vm1, %v5865_v26  ;;  %v1686_v22 = vpop.f32.mrf.mxu0  ;;  %3917 = vmatmul.msk.f32.gmra.mxu1 %vm351_vm1, %v1811_v4 }
 0x187   : > { %v5041_v12 = vadd.f32 %v1961_v27, %v1761_v28 }
 0x188   : > { %v1130_v14 = vpop.f32.mrf.mxu2 }
 0x189   : > { %v1408_v48 = vpop.f32.mrf.mxu3  ;;  %3882 = vmatmul.msk.f32.gmra.mxu0 %vm351_vm1, %v5866_v47  ;;  %v1206_v2 = vadd.f32 %v1130_v14, %v885_v6  ;;  %v1258_v14 = vld [vmem:[#allocation2 + $0x180] sm:$0xff]  ;;  %v1815_v47 = vld [vmem:[#allocation2 + $0x18a] sm:$0xff] }
 0x18b   : > { %v1484_v33 = vadd.f32 %v1408_v48, %v1206_v2  ;;  %v1970_v1 = vpop.f32.mrf.mxu1 }
 0x18d   : > { %v1762_v36 = vadd.f32 %v1686_v22, %v1484_v33  ;;  %3815 = vmatmul.msk.f32.gmra.mxu2 %vm351_vm1, %v1809_v57  ;;  %v1813_v57 = vld [vmem:[#allocation2 + $0x172] sm:$0xff] }
 0x18e   : > { %3849 = vmatmul.msk.f32.gmra.mxu3 %vm351_vm1, %v5867_v8  ;;  %v1689_v16 = vpop.f32.mrf.mxu0  ;;  %3918 = vmatmul.msk.f32.gmra.mxu1 %vm351_vm1, %v1812_v25  ;;  %v5872_v22 = vld [vmem:[#allocation40_spill] sm:$0xff] }
 0x18f   : > { %v5051_v44 = vadd.f32 %v1964_v53, %v1762_v36  ;;  %v1536_v36 = vld [vmem:[#allocation2 + $0x181] sm:$0xff] }
 0x190   : > { %v1133_v27 = vpop.f32.mrf.mxu2 }
 0x191   : > { %v1411_v11 = vpop.f32.mrf.mxu3  ;;  %3883 = vmatmul.msk.f32.gmra.mxu0 %vm351_vm1, %v5868_v42  ;;  %v1207_v10 = vadd.f32 %v1133_v27, %v888_v24  ;;  %v1259_v24 = vld [vmem:[#allocation2 + $0x188] sm:$0xff] }
 0x193   : > { %v1485_v54 = vadd.f32 %v1411_v11, %v1207_v10  ;;  %v1973_v30 = vpop.f32.mrf.mxu1  ;;  %v1537_v10 = vld [vmem:[#allocation2 + $0x189] sm:$0xff] }
 0x195   : > { %v1763_v50 = vadd.f32 %v1689_v16, %v1485_v54  ;;  %3816 = vmatmul.msk.f32.gmra.mxu2 %vm351_vm1, %v1810_v21  ;;  %v1814_v21 = vld [vmem:[#allocation2 + $0x182] sm:$0xff] }
 0x196   : > { %3850 = vmatmul.msk.f32.gmra.mxu3 %vm351_vm1, %v5869_v52  ;;  %v1692_v0 = vpop.f32.mrf.mxu0  ;;  %3919 = vmatmul.msk.f32.gmra.mxu1 %vm351_vm1, %v1813_v57  ;;  %v5873_v54 = vld [vmem:[#allocation5_spill] sm:$0xff] }
 0x197   : > { %v5061_v23 = vadd.f32 %v1967_v59, %v1763_v50 }
 0x198   : > { %v1136_v53 = vpop.f32.mrf.mxu2 }
 0x199   : > { %v1414_v63 = vpop.f32.mrf.mxu3  ;;  %3884 = vmatmul.msk.f32.gmra.mxu0 %vm351_vm1, %v5870_v3  ;;  %v1208_v31 = vadd.f32 %v1136_v53, %v891_v7  ;;  %v2063_v7 = vld [vmem:[#allocation2 + $0x30] sm:$0xff] }
 0x19a   : > { %v2341_v53 = vld [vmem:[#allocation2 + $0x31] sm:$0xff] }
 0x19b   : > { %v1486_v38 = vadd.f32 %v1414_v63, %v1208_v31  ;;  %v1976_v18 = vpop.f32.mrf.mxu1 }
 0x19d   : > { %v1764_v60 = vadd.f32 %v1692_v0, %v1486_v38  ;;  %3817 = vmatmul.msk.f32.gmra.mxu2 %vm351_vm1, %v1811_v4  ;;  %v5875_v38 = vld [vmem:[#allocation7_spill] sm:$0xff] }
 0x19e   : > { %3851 = vmatmul.msk.f32.gmra.mxu3 %vm351_vm1, %v5871_v45  ;;  %v1695_v28 = vpop.f32.mrf.mxu0  ;;  %3920 = vmatmul.msk.f32.gmra.mxu1 %vm351_vm1, %v1814_v21 }
 0x19f   : > { %v5071_v15 = vadd.f32 %v1970_v1, %v1764_v60 }
 0x1a0   : > { %v1139_v59 = vpop.f32.mrf.mxu2 }
 0x1a1   : > { %v1417_v26 = vpop.f32.mrf.mxu3  ;;  %3885 = vmatmul.msk.f32.gmra.mxu0 %vm351_vm1, %v5872_v22  ;;  %v1209_v6 = vadd.f32 %v1139_v59, %v894_v37  ;;  %v5878_v37 = vld [vmem:[#allocation44_spill] sm:$0xff] }
 0x1a2   : > { %v2342_v22 = vld [vmem:[#allocation2 + $0x39] sm:$0xff] }
 0x1a3   : > { %v1487_v48 = vadd.f32 %v1417_v26, %v1209_v6  ;;  %v1979_v4 = vpop.f32.mrf.mxu1  ;;  %v2064_v26 = vld [vmem:[#allocation2 + $0x38] sm:$0xff] }
 0x1a5   : > { %v1765_v2 = vadd.f32 %v1695_v28, %v1487_v48  ;;  %3818 = vmatmul.msk.f32.gmra.mxu2 %vm351_vm1, %v1812_v25 }
 0x1a6   : > { %3852 = vmatmul.msk.f32.gmra.mxu3 %vm351_vm1, %v1258_v14  ;;  %v1698_v33 = vpop.f32.mrf.mxu0  ;;  %3921 = vmatmul.msk.f32.gmra.mxu1 %vm351_vm1, %v1815_v47 }
 0x1a7   : > { %v5080_v58 = vadd.f32 %v1973_v30, %v1765_v2  ;;  %v5879_v2 = vld [vmem:[#allocation9_spill] sm:$0xff] }
 0x1a8   : > { %v1142_v1 = vpop.f32.mrf.mxu2 }
 0x1a9   : > { %v1420_v8 = vpop.f32.mrf.mxu3  ;;  %3886 = vmatmul.msk.f32.gmra.mxu0 %vm351_vm1, %v1536_v36  ;;  %v1210_v16 = vadd.f32 %v1142_v1, %v897_v46  ;;  %v5880_v46 = vld [vmem:[#allocation46_spill] sm:$0xff]  ;;  %v5881_v1 = vld [vmem:[#allocation45_spill] sm:$0xff] }
 0x1ab   : > { %v1488_v27 = vadd.f32 %v1420_v8, %v1210_v16  ;;  %v1982_v11 = vpop.f32.mrf.mxu1  ;;  %v2065_v16 = vld [vmem:[#allocation2 + $0x48] sm:$0xff] }
 0x1ad   : > { %v1766_v25 = vadd.f32 %v1698_v33, %v1488_v27  ;;  %3819 = vmatmul.msk.f32.gmra.mxu2 %vm351_vm1, %v1813_v57 }
 0x1ae   : > { %3853 = vmatmul.msk.f32.gmra.mxu3 %vm351_vm1, %v1259_v24  ;;  %v1701_v42 = vpop.f32.mrf.mxu0  ;;  %4025 = vmatmul.msk.f32.vlgmr.msra.gmra.mxu1 %vm351_vm1, %v5873_v54  ;;  %v2343_v24 = vld [vmem:[#allocation2 + $0x49] sm:$0xff] }
 0x1af   : > { %v5089_v30 = vadd.f32 %v1976_v18, %v1766_v25  ;;  %v5877_v18 = vld [vmem:[#allocation43_spill] sm:$0xff] }
 0x1b0   : > { %v1145_v50 = vpop.f32.mrf.mxu2  ;;  %v903_v21 = vadd.f32 %v5877_v18, %v5876_v9  ;;  %v5882_v54 = vld [vmem:[#allocation11_spill] sm:$0xff]  ;;  %v5885_v9 = vld [vmem:[#allocation13_spill] sm:$0xff] }
 0x1b1   : > { %v1423_v52 = vpop.f32.mrf.mxu3  ;;  %3887 = vmatmul.msk.f32.gmra.mxu0 %vm351_vm1, %v1537_v10  ;;  %v1211_v0 = vadd.f32 %v1145_v50, %v900_v34  ;;  %v5883_v50 = vld [vmem:[#allocation48_spill] sm:$0xff] }
 0x1b3   : > { %v1489_v57 = vadd.f32 %v1423_v52, %v1211_v0  ;;  %v1985_v63 = vpop.f32.mrf.mxu1  ;;  %v5884_v52 = vld [vmem:[#allocation47_spill] sm:$0xff] }
 0x1b5   : > { %v1767_v3 = vadd.f32 %v1701_v42, %v1489_v57  ;;  %3924 = vmatmul.msk.f32.vlgmr.msra.gmra.mxu2 %vm351_vm1, %v2063_v7  ;;  %v2066_v7 = vld [vmem:[#allocation2 + $0x50] sm:$0xff] }
 0x1b6   : > { %3958 = vmatmul.msk.f32.vlgmr.msra.gmra.mxu3 %vm351_vm1, %v2341_v53  ;;  %v1704_v31 = vpop.f32.mrf.mxu0  ;;  %4026 = vmatmul.msk.f32.gmra.mxu1 %vm351_vm1, %v5875_v38  ;;  %v2344_v53 = vld [vmem:[#allocation2 + $0x51] sm:$0xff] }
 0x1b7   : > { %v5098_v60 = vadd.f32 %v1979_v4, %v1767_v3 }
 0x1b8   : > { %v1148_v45 = vpop.f32.mrf.mxu2 }
 0x1b9   : > { %v1426_v28 = vpop.f32.mrf.mxu3  ;;  %3992 = vmatmul.msk.f32.vlgmr.msra.gmra.mxu0 %vm351_vm1, %v5878_v37  ;;  %v1212_v59 = vadd.f32 %v1148_v45, %v903_v21  ;;  %v5886_v45 = vld [vmem:[#allocation50_spill] sm:$0xff] }
 0x1bb   : > { %v1490_v6 = vadd.f32 %v1426_v28, %v1212_v59  ;;  %v1988_v14 = vpop.f32.mrf.mxu1  ;;  %v5887_v28 = vld [vmem:[#allocation49_spill] sm:$0xff] }
 0x1bc   : > { %v2067_v59 = vld [vmem:[#allocation2 + $0x60] sm:$0xff] }
 0x1bd   : > { %v1768_v48 = vadd.f32 %v1704_v31, %v1490_v6  ;;  %3925 = vmatmul.msk.f32.gmra.mxu2 %vm351_vm1, %v2064_v26  ;;  %v2345_v26 = vld [vmem:[#allocation2 + $0x61] sm:$0xff] }
 0x1be   : > { %3959 = vmatmul.msk.f32.gmra.mxu3 %vm351_vm1, %v2342_v22  ;;  %v1707_v47 = vpop.f32.mrf.mxu0  ;;  %4027 = vmatmul.msk.f32.gmra.mxu1 %vm351_vm1, %v5879_v2  ;;  %v5888_v2 = vld [vmem:[#allocation15_spill] sm:$0xff] }
 0x1bf   : > { %v5106_v4 = vadd.f32 %v1982_v11, %v1768_v48 }
 0x1c0   : > { %v1151_v33 = vpop.f32.mrf.mxu2 }
 0x1c1   : > { %v1429_v36 = vpop.f32.mrf.mxu3  ;;  %3993 = vmatmul.msk.f32.gmra.mxu0 %vm351_vm1, %v5880_v46  ;;  %v1213_v8 = vadd.f32 %v1151_v33, %v5881_v1  ;;  %v5889_v46 = vld [vmem:[#allocation52_spill] sm:$0xff]  ;;  %v5890_v1 = vld [vmem:[#allocation51_spill] sm:$0xff] }
 0x1c3   : > { %v1491_v27 = vadd.f32 %v1429_v36, %v1213_v8  ;;  %v1991_v25 = vpop.f32.mrf.mxu1 }
 0x1c5   : > { %v1769_v42 = vadd.f32 %v1707_v47, %v1491_v27  ;;  %3926 = vmatmul.msk.f32.gmra.mxu2 %vm351_vm1, %v2065_v16  ;;  %v2068_v16 = vld [vmem:[#allocation2 + $0x68] sm:$0xff] }
 0x1c6   : > { %3960 = vmatmul.msk.f32.gmra.mxu3 %vm351_vm1, %v2343_v24  ;;  %v1710_v10 = vpop.f32.mrf.mxu0  ;;  %4028 = vmatmul.msk.f32.gmra.mxu1 %vm351_vm1, %v5882_v54  ;;  %v2346_v24 = vld [vmem:[#allocation2 + $0x69] sm:$0xff] }
 0x1c7   : > { %v5115_v11 = vadd.f32 %v1985_v63, %v1769_v42 }
 0x1c8   : > { %v1154_v32 = vpop.f32.mrf.mxu2 }
 0x1c9   : > { %v1432_v34 = vpop.f32.mrf.mxu3  ;;  %3994 = vmatmul.msk.f32.gmra.mxu0 %vm351_vm1, %v5883_v50  ;;  %v1214_v0 = vadd.f32 %v1154_v32, %v5884_v52  ;;  %v5891_v32 = vld [vmem:[#allocation17_spill] sm:$0xff]  ;;  %v5892_v52 = vld [vmem:[#allocation54_spill] sm:$0xff] }
 0x1cb   : > { %v1492_v57 = vadd.f32 %v1432_v34, %v1214_v0  ;;  %v1994_v3 = vpop.f32.mrf.mxu1  ;;  %v5893_v0 = vld [vmem:[#allocation53_spill] sm:$0xff] }
 0x1cd   : > { %v1770_v31 = vadd.f32 %v1710_v10, %v1492_v57  ;;  %3927 = vmatmul.msk.f32.gmra.mxu2 %vm351_vm1, %v2066_v7  ;;  %v2347_v57 = vld [vmem:[#allocation2 + $0x79] sm:$0xff] }
 0x1ce   : > { %3961 = vmatmul.msk.f32.gmra.mxu3 %vm351_vm1, %v2344_v53  ;;  %v1713_v38 = vpop.f32.mrf.mxu0  ;;  %4029 = vmatmul.msk.f32.gmra.mxu1 %vm351_vm1, %v5885_v9  ;;  %v2069_v53 = vld [vmem:[#allocation2 + $0x78] sm:$0xff] }
 0x1cf   : > { %v5124_v63 = vadd.f32 %v1988_v14, %v1770_v31 }
 0x1d0   : > { %v1157_v18 = vpop.f32.mrf.mxu2 }
 0x1d1   : > { %v1435_v21 = vpop.f32.mrf.mxu3  ;;  %3995 = vmatmul.msk.f32.gmra.mxu0 %vm351_vm1, %v5886_v45  ;;  %v1215_v37 = vadd.f32 %v1157_v18, %v5887_v28 }
 0x1d3   : > { %v1493_v22 = vadd.f32 %v1435_v21, %v1215_v37  ;;  %v1997_v6 = vpop.f32.mrf.mxu1  ;;  %v5894_v21 = vld [vmem:[#allocation19_spill] sm:$0xff]  ;;  %v5895_v37 = vld [vmem:[#allocation56_spill] sm:$0xff] }
 0x1d5   : > { %v1771_v48 = vadd.f32 %v1713_v38, %v1493_v22  ;;  %3928 = vmatmul.msk.f32.gmra.mxu2 %vm351_vm1, %v2067_v59  ;;  %v5896_v59 = vld [vmem:[#allocation55_spill] sm:$0xff]  ;;  %v2070_v22 = vld [vmem:[#allocation2 + $0x80] sm:$0xff] }
 0x1d6   : > { %3962 = vmatmul.msk.f32.gmra.mxu3 %vm351_vm1, %v2345_v26  ;;  %v1716_v47 = vpop.f32.mrf.mxu0  ;;  %4030 = vmatmul.msk.f32.gmra.mxu1 %vm351_vm1, %v5888_v2 }
 0x1d7   : > { %v5133_v14 = vadd.f32 %v1991_v25, %v1771_v48  ;;  %v2348_v48 = vld [vmem:[#allocation2 + $0x81] sm:$0xff] }
 0x1d8   : > { %v1160_v33 = vpop.f32.mrf.mxu2 }
 0x1d9   : > { %v1438_v36 = vpop.f32.mrf.mxu3  ;;  %3996 = vmatmul.msk.f32.gmra.mxu0 %vm351_vm1, %v5889_v46  ;;  %v1216_v8 = vadd.f32 %v1160_v33, %v5890_v1  ;;  %v5897_v46 = vld [vmem:[#allocation21_spill] sm:$0xff] }
 0x1db   : > { %v1494_v27 = vadd.f32 %v1438_v36, %v1216_v8  ;;  %v2000_v42 = vpop.f32.mrf.mxu1 }
 0x1dd   : > { %v1772_v10 = vadd.f32 %v1716_v47, %v1494_v27  ;;  %3929 = vmatmul.msk.f32.gmra.mxu2 %vm351_vm1, %v2068_v16  ;;  %v5898_v16 = vld [vmem:[#allocation58_spill] sm:$0xff] }
 0x1de   : > { %3963 = vmatmul.msk.f32.gmra.mxu3 %vm351_vm1, %v2346_v24  ;;  %v1719_v54 = vpop.f32.mrf.mxu0  ;;  %4031 = vmatmul.msk.f32.gmra.mxu1 %vm351_vm1, %v5891_v32  ;;  %v5899_v24 = vld [vmem:[#allocation57_spill] sm:$0xff] }
 0x1df   : > { %v5142_v25 = vadd.f32 %v1994_v3, %v1772_v10  ;;  %v2071_v10 = vld [vmem:[#allocation2 + $0x90] sm:$0xff] }
 0x1e0   : > { %v1163_v34 = vpop.f32.mrf.mxu2 }
 0x1e1   : > { %v1441_v50 = vpop.f32.mrf.mxu3  ;;  %3997 = vmatmul.msk.f32.gmra.mxu0 %vm351_vm1, %v5892_v52  ;;  %v1217_v7 = vadd.f32 %v1163_v34, %v5893_v0  ;;  %v5900_v0 = vld [vmem:[#allocation23_spill] sm:$0xff] }
 0x1e3   : > { %v1495_v31 = vadd.f32 %v1441_v50, %v1217_v7  ;;  %v2003_v38 = vpop.f32.mrf.mxu1 }
 0x1e5   : > { %v1773_v9 = vadd.f32 %v1719_v54, %v1495_v31  ;;  %3930 = vmatmul.msk.f32.gmra.mxu2 %vm351_vm1, %v2069_v53  ;;  %v2349_v54 = vld [vmem:[#allocation2 + $0x91] sm:$0xff] }
 0x1e6   : > { %3964 = vmatmul.msk.f32.gmra.mxu3 %vm351_vm1, %v2347_v57  ;;  %v1722_v18 = vpop.f32.mrf.mxu0  ;;  %4032 = vmatmul.msk.f32.gmra.mxu1 %vm351_vm1, %v5894_v21  ;;  %v5901_v57 = vld [vmem:[#allocation60_spill] sm:$0xff]  ;;  %v5902_v31 = vld [vmem:[#allocation59_spill] sm:$0xff] }
 0x1e7   : > { %v5151_v3 = vadd.f32 %v1997_v6, %v1773_v9  ;;  %v2350_v21 = vld [vmem:[#allocation2 + $0x99] sm:$0xff] }
 0x1e8   : > { %v1166_v45 = vpop.f32.mrf.mxu2 }
 0x1e9   : > { %v1444_v28 = vpop.f32.mrf.mxu3  ;;  %3998 = vmatmul.msk.f32.gmra.mxu0 %vm351_vm1, %v5895_v37  ;;  %v1218_v26 = vadd.f32 %v1166_v45, %v5896_v59 }
 0x1eb   : > { %v1496_v47 = vadd.f32 %v1444_v28, %v1218_v26  ;;  %v2006_v2 = vpop.f32.mrf.mxu1  ;;  %v5903_v26 = vld [vmem:[#allocation25_spill] sm:$0xff] }
 0x1ed   : > { %v1774_v33 = vadd.f32 %v1722_v18, %v1496_v47  ;;  %3931 = vmatmul.msk.f32.gmra.mxu2 %vm351_vm1, %v2070_v22  ;;  %v2072_v18 = vld [vmem:[#allocation2 + $0x98] sm:$0xff]  ;;  %v5904_v47 = vld [vmem:[#allocation62_spill] sm:$0xff] }
 0x1ee   : > { %3965 = vmatmul.msk.f32.gmra.mxu3 %vm351_vm1, %v2348_v48  ;;  %v1725_v36 = vpop.f32.mrf.mxu0  ;;  %4033 = vmatmul.msk.f32.gmra.mxu1 %vm351_vm1, %v5897_v46  ;;  %v2073_v46 = vld [vmem:[#allocation2 + $0xa8] sm:$0xff] }
 0x1ef   : > { %v5160_v6 = vadd.f32 %v2000_v42, %v1774_v33  ;;  %v5905_v33 = vld [vmem:[#allocation61_spill] sm:$0xff] }
 0x1f0   : > { %v1169_v1 = vpop.f32.mrf.mxu2 }
 0x1f1   : > { %v1447_v8 = vpop.f32.mrf.mxu3  ;;  %3999 = vmatmul.msk.f32.gmra.mxu0 %vm351_vm1, %v5898_v16  ;;  %v1219_v27 = vadd.f32 %v1169_v1, %v5899_v24  ;;  %v2351_v1 = vld [vmem:[#allocation2 + $0xa9] sm:$0xff] }
 0x1f3   : > { %v1497_v32 = vadd.f32 %v1447_v8, %v1219_v27  ;;  %v2009_v34 = vpop.f32.mrf.mxu1 }
 0x1f5   : > { %v1775_v50 = vadd.f32 %v1725_v36, %v1497_v32  ;;  %3932 = vmatmul.msk.f32.gmra.mxu2 %vm351_vm1, %v2071_v10  ;;  %v5906_v10 = vld [vmem:[#allocation27_spill] sm:$0xff] }
 0x1f6   : > { %3966 = vmatmul.msk.f32.gmra.mxu3 %vm351_vm1, %v2349_v54  ;;  %v1728_v52 = vpop.f32.mrf.mxu0  ;;  %4034 = vmatmul.msk.f32.gmra.mxu1 %vm351_vm1, %v5900_v0 }
 0x1f7   : > { %v5169_v42 = vadd.f32 %v2003_v38, %v1775_v50  ;;  %v5907_v50 = vld [vmem:[#allocation64_spill] sm:$0xff] }
 0x1f8   : > { %v1172_v7 = vpop.f32.mrf.mxu2 }
 0x1f9   : > { %v1450_v53 = vpop.f32.mrf.mxu3  ;;  %4000 = vmatmul.msk.f32.gmra.mxu0 %vm351_vm1, %v5901_v57  ;;  %v1220_v9 = vadd.f32 %v1172_v7, %v5902_v31  ;;  %v2074_v7 = vld [vmem:[#allocation2 + $0xb0] sm:$0xff] }
 0x1fb   : > { %v1498_v45 = vadd.f32 %v1450_v53, %v1220_v9  ;;  %v2012_v28 = vpop.f32.mrf.mxu1  ;;  %v2352_v53 = vld [vmem:[#allocation2 + $0xb1] sm:$0xff] }
 0x1fd   : > { %v1776_v37 = vadd.f32 %v1728_v52, %v1498_v45  ;;  %3933 = vmatmul.msk.f32.gmra.mxu2 %vm351_vm1, %v2072_v18  ;;  %v5908_v52 = vld [vmem:[#allocation63_spill] sm:$0xff] }
 0x1fe   : > { %3967 = vmatmul.msk.f32.gmra.mxu3 %vm351_vm1, %v2350_v21  ;;  %v1731_v59 = vpop.f32.mrf.mxu0  ;;  %4035 = vmatmul.msk.f32.gmra.mxu1 %vm351_vm1, %v5903_v26  ;;  %v5909_v21 = vld [vmem:[#allocation29_spill] sm:$0xff] }
 0x1ff   : > { %v5178_v38 = vadd.f32 %v2006_v2, %v1776_v37  ;;  %v5911_v26 = vld [vmem:[#allocation65_spill] sm:$0xff] }
 0x200   : > { %v1175_v22 = vpop.f32.mrf.mxu2 }
 0x201   : > { %v1453_v48 = vpop.f32.mrf.mxu3  ;;  %4001 = vmatmul.msk.f32.gmra.mxu0 %vm351_vm1, %v5904_v47  ;;  %v1221_v36 = vadd.f32 %v1175_v22, %v5905_v33  ;;  %v2353_v47 = vld [vmem:[#allocation2 + $0xc1] sm:$0xff] }
 0x203   : > { %v1499_v8 = vadd.f32 %v1453_v48, %v1221_v36  ;;  %v2015_v16 = vpop.f32.mrf.mxu1  ;;  %v2075_v48 = vld [vmem:[#allocation2 + $0xc0] sm:$0xff] }
 0x205   : > { %v1777_v24 = vadd.f32 %v1731_v59, %v1499_v8  ;;  %3934 = vmatmul.msk.f32.gmra.mxu2 %vm351_vm1, %v2073_v46  ;;  %v5910_v59 = vld [vmem:[#allocation66_spill] sm:$0xff]  ;;  %v5912_v8 = vld [vmem:[#allocation31_spill] sm:$0xff] }
 0x206   : > { %3968 = vmatmul.msk.f32.gmra.mxu3 %vm351_vm1, %v2351_v1  ;;  %v1734_v27 = vpop.f32.mrf.mxu0  ;;  %4036 = vmatmul.msk.f32.gmra.mxu1 %vm351_vm1, %v5906_v10  ;;  %v5913_v10 = vld [vmem:[#allocation68_spill] sm:$0xff] }
 0x207   : > { %v5187_v2 = vadd.f32 %v2009_v34, %v1777_v24 }
 0x208   : > { %v1178_v54 = vpop.f32.mrf.mxu2 }
 0x209   : > { %v1456_v32 = vpop.f32.mrf.mxu3  ;;  %4002 = vmatmul.msk.f32.gmra.mxu0 %vm351_vm1, %v5907_v50  ;;  %v1222_v0 = vadd.f32 %v1178_v54, %v5908_v52  ;;  %v5914_v54 = vld [vmem:[#allocation67_spill] sm:$0xff]  ;;  %v2076_v50 = vld [vmem:[#allocation2 + $0xc8] sm:$0xff] }
 0x20a   : > { %v2354_v52 = vld [vmem:[#allocation2 + $0xc9] sm:$0xff] }
 0x20b   : > { %v1500_v57 = vadd.f32 %v1456_v32, %v1222_v0  ;;  %v2018_v31 = vpop.f32.mrf.mxu1 }
 0x20d   : > { %v1778_v9 = vadd.f32 %v1734_v27, %v1500_v57  ;;  %3935 = vmatmul.msk.f32.gmra.mxu2 %vm351_vm1, %v2074_v7 }
 0x20e   : > { %3969 = vmatmul.msk.f32.gmra.mxu3 %vm351_vm1, %v2352_v53  ;;  %v1737_v18 = vpop.f32.mrf.mxu0  ;;  %4037 = vmatmul.msk.f32.gmra.mxu1 %vm351_vm1, %v5909_v21 }
 0x20f   : > { %v5196_v34 = vadd.f32 %v2012_v28, %v1778_v9  ;;  %v5915_v9 = vld [vmem:[#allocation3_spill] sm:$0xff] }
 0x210   : > { %v1181_v45 = vpop.f32.mrf.mxu2 }
 0x211   : > { %v1459_v37 = vpop.f32.mrf.mxu3  ;;  %4003 = vmatmul.msk.f32.gmra.mxu0 %vm351_vm1, %v5910_v59  ;;  %v1223_v22 = vadd.f32 %v1181_v45, %v5911_v26  ;;  %v5916_v45 = vld [vmem:[#allocation69_spill] sm:$0xff]  ;;  %v2077_v59 = vld [vmem:[#allocation2 + $0xd8] sm:$0xff] }
 0x212   : > { %v2355_v26 = vld [vmem:[#allocation2 + $0xd9] sm:$0xff] }
 0x213   : > { %v1501_v33 = vadd.f32 %v1459_v37, %v1223_v22  ;;  %v2021_v36 = vpop.f32.mrf.mxu1 }
 0x215   : > { %v1779_v46 = vadd.f32 %v1737_v18, %v1501_v33  ;;  %3936 = vmatmul.msk.f32.gmra.mxu2 %vm351_vm1, %v2075_v48 }
 0x216   : > { %3970 = vmatmul.msk.f32.gmra.mxu3 %vm351_vm1, %v2353_v47  ;;  %v1740_v1 = vpop.f32.mrf.mxu0  ;;  %4038 = vmatmul.msk.f32.gmra.mxu1 %vm351_vm1, %v5912_v8  ;;  %v5918_v8 = vld [vmem:[#allocation71_spill] sm:$0xff] }
 0x217   : > { %v5205_v28 = vadd.f32 %v2015_v16, %v1779_v46 }
 0x218   : > { %v1184_v24 = vpop.f32.mrf.mxu2 }
 0x219   : > { %v1462_v27 = vpop.f32.mrf.mxu3  ;;  %4004 = vmatmul.msk.f32.gmra.mxu0 %vm351_vm1, %v5913_v10  ;;  %v1224_v32 = vadd.f32 %v1184_v24, %v5914_v54  ;;  %v2356_v10 = vld [vmem:[#allocation2 + $0xe1] sm:$0xff] }
 0x21b   : > { %v1502_v0 = vadd.f32 %v1462_v27, %v1224_v32  ;;  %v2024_v7 = vpop.f32.mrf.mxu1  ;;  %v2078_v27 = vld [vmem:[#allocation2 + $0xe0] sm:$0xff] }
 0x21d   : > { %v1780_v53 = vadd.f32 %v1740_v1, %v1502_v0  ;;  %3937 = vmatmul.msk.f32.gmra.mxu2 %vm351_vm1, %v2076_v50  ;;  %v5919_v50 = vld [vmem:[#allocation6_spill] sm:$0xff] }
 0x21e   : > { %3971 = vmatmul.msk.f32.gmra.mxu3 %vm351_vm1, %v2354_v52  ;;  %v1743_v57 = vpop.f32.mrf.mxu0  ;;  %4039 = vmatmul.msk.f32.gmra.mxu1 %vm351_vm1, %v5915_v9 }
 0x21f   : > { %v5214_v16 = vadd.f32 %v2018_v31, %v1780_v53  ;;  %v5917_v31 = vld [vmem:[#allocation4_spill] sm:$0xff] }
 0x220   : > { %v1187_v18 = vpop.f32.mrf.mxu2 }
 0x221   : > { %v1465_v21 = vpop.f32.mrf.mxu3  ;;  %4005 = vmatmul.msk.f32.gmra.mxu0 %vm351_vm1, %v4880_v19  ;;  %v1225_v37 = vadd.f32 %v1187_v18, %v5916_v45  ;;  %v2079_v18 = vld [vmem:[#allocation2 + $0xf0] sm:$0xff] }
 0x223   : > { %v1503_v22 = vadd.f32 %v1465_v21, %v1225_v37  ;;  %v2027_v48 = vpop.f32.mrf.mxu1  ;;  %v2357_v21 = vld [vmem:[#allocation2 + $0xf1] sm:$0xff] }
 0x225   : > { %v1781_v47 = vadd.f32 %v1743_v57, %v1503_v22  ;;  %3938 = vmatmul.msk.f32.gmra.mxu2 %vm351_vm1, %v2077_v59  ;;  %v5920_v57 = vld [vmem:[#allocation72_spill] sm:$0xff] }
 0x226   : > { %3972 = vmatmul.msk.f32.gmra.mxu3 %vm351_vm1, %v2355_v26  ;;  %v1746_v33 = vpop.f32.mrf.mxu0  ;;  %4040 = vmatmul.msk.f32.gmra.mxu1 %vm351_vm1, %v5917_v31  ;;  %v5921_v26 = vld [vmem:[#allocation8_spill] sm:$0xff] }
 0x227   : > { %v5223_v46 = vadd.f32 %v2021_v36, %v1781_v47  ;;  %v2080_v31 = vld [vmem:[#allocation2 + $0xf8] sm:$0xff] }
 0x228   : > { %v1190_v1 = vpop.f32.mrf.mxu2 }
 0x229   : > { %v1468_v19 = vpop.f32.mrf.mxu3  ;;  %4006 = vmatmul.msk.f32.gmra.mxu0 %vm351_vm1, %v4894_v13  ;;  %v1226_v24 = vadd.f32 %v1190_v1, %v5918_v8  ;;  %v2358_v1 = vld [vmem:[#allocation2 + $0xf9] sm:$0xff] }
 0x22b   : > { %v1504_v54 = vadd.f32 %v1468_v19, %v1226_v24  ;;  %v5234_v32 = vpop.f32.mrf.mxu1 }
 0x22c   : > { %3316 = vst.msk [vmem:[%s5232_s14] sm:$0xff] %vm2897_vm4, %v5234_v32 }
 0x22d   : > { %v1782_v36 = vadd.f32 %v1746_v33, %v1504_v54  ;;  %3939 = vmatmul.msk.f32.gmra.mxu2 %vm351_vm1, %v2078_v27  ;;  %v2081_v54 = vld [vmem:[#allocation2 + $0x108] sm:$0xff] }
 0x22e   : > { %3973 = vmatmul.msk.f32.gmra.mxu3 %vm351_vm1, %v2356_v10  ;;  %v1749_v13 = vpop.f32.mrf.mxu0  ;;  %4041 = vmatmul.msk.f32.gmra.mxu1 %vm351_vm1, %v5919_v50 }
 0x22f   : > { %v5243_v52 = vadd.f32 %v2024_v7, %v1782_v36  ;;  %v2359_v36 = vld [vmem:[#allocation2 + $0x109] sm:$0xff] }
 0x230   : > { %v1193_v0 = vpop.f32.mrf.mxu2 }
 0x231   : > { %v1471_v53 = vpop.f32.mrf.mxu3  ;;  %4007 = vmatmul.msk.f32.gmra.mxu0 %vm351_vm1, %v4908_v5  ;;  %v1227_v9 = vadd.f32 %v1193_v0, %v5920_v57 }
 0x233   : > { %v1505_v45 = vadd.f32 %v1471_v53, %v1227_v9  ;;  %v5248_v37 = vpop.f32.mrf.mxu1  ;;  %v5923_v9 = vld [vmem:[#allocation12_spill] sm:$0xff] }
 0x234   : > { %3317 = vst.msk [vmem:[%s5232_s14 + $0x8] sm:$0xff] %vm2897_vm4, %v5248_v37 }
 0x235   : > { %v1783_v59 = vadd.f32 %v1749_v13, %v1505_v45  ;;  %3940 = vmatmul.msk.f32.gmra.mxu2 %vm351_vm1, %v2079_v18 }
 0x236   : > { %3974 = vmatmul.msk.f32.gmra.mxu3 %vm351_vm1, %v2357_v21  ;;  %v2769_v7 = vpop.f32.mrf.mxu0  ;;  %4042 = vmatmul.msk.f32.gmra.mxu1 %vm351_vm1, %v5921_v26 }
 0x237   : > { %v5257_v5 = vadd.f32 %v2027_v48, %v1783_v59 }
 0x238   : > { %v2213_v22 = vpop.f32.mrf.mxu2 }
 0x239   : > { %v2491_v47 = vpop.f32.mrf.mxu3  ;;  %4008 = vmatmul.msk.f32.gmra.mxu0 %vm351_vm1, %v4920_v51  ;;  %v2309_v33 = vadd.f32 %v2213_v22, %v4930_v29  ;;  %v5922_v29 = vld [vmem:[#allocation10_spill] sm:$0xff] }
 0x23b   : > { %v2587_v19 = vadd.f32 %v2491_v47, %v2309_v33  ;;  %v5262_v8 = vpop.f32.mrf.mxu1  ;;  %v2082_v33 = vld [vmem:[#allocation2 + $0x110] sm:$0xff] }
 0x23c   : > { %3318 = vst.msk [vmem:[%s5232_s14 + $0x10] sm:$0xff] %vm2897_vm4, %v5262_v8 }
 0x23d   : > { %v2865_v48 = vadd.f32 %v2769_v7, %v2587_v19  ;;  %3941 = vmatmul.msk.f32.gmra.mxu2 %vm351_vm1, %v2080_v31  ;;  %v2360_v31 = vld [vmem:[#allocation2 + $0x111] sm:$0xff] }
 0x23e   : > { %3975 = vmatmul.msk.f32.gmra.mxu3 %vm351_vm1, %v2358_v1  ;;  %v2772_v51 = vpop.f32.mrf.mxu0  ;;  %4043 = vmatmul.msk.f32.gmra.mxu1 %vm351_vm1, %v5922_v29  ;;  %v5924_v29 = vld [vmem:[#allocation14_spill] sm:$0xff] }
 0x23f   : > { %2898 = vst.msk [vmem:[%s5268_s17] sm:$0xff] %vm2897_vm4, %v2865_v48  ;;  %v2999_v0 = vmul.f32 %v2865_v48, %v2865_v48 }
 0x240   : > { %v2216_v24 = vpop.f32.mrf.mxu2 }
 0x241   : > { %v2494_v27 = vpop.f32.mrf.mxu3  ;;  %4009 = vmatmul.msk.f32.gmra.mxu0 %vm351_vm1, %v4934_v17  ;;  %v2310_v10 = vadd.f32 %v2216_v24, %v4944_v35  ;;  %v2930_v17 = vsel %vm2897_vm4, %v2865_v48, 0.0  ;;  %v3031_v7 = vsel %vm2897_vm4, %v2999_v0, 0.0 }
 0x243   : > { %v2588_v13 = vadd.f32 %v2494_v27, %v2310_v10  ;;  %v5282_v50 = vpop.f32.mrf.mxu1 }
 0x244   : > { %3319 = vst.msk [vmem:[%s5232_s14 + $0x18] sm:$0xff] %vm2897_vm4, %v5282_v50 }
 0x245   : > { %v2866_v53 = vadd.f32 %v2772_v51, %v2588_v13  ;;  %3942 = vmatmul.msk.f32.gmra.mxu2 %vm351_vm1, %v2081_v54  ;;  %v2638_v51 = vld [vmem:[#allocation2 + $0x112] sm:$0xff] }
 0x246   : > { %3976 = vmatmul.msk.f32.gmra.mxu3 %vm351_vm1, %v2359_v36  ;;  %v2775_v57 = vpop.f32.mrf.mxu0  ;;  %4044 = vmatmul.msk.f32.gmra.mxu1 %vm351_vm1, %v5923_v9 }
 0x247   : > { %2899 = vst.msk [vmem:[%s5268_s17 + $0x8] sm:$0xff] %vm2897_vm4, %v2866_v53  ;;  %v2931_v35 = vsel %vm2897_vm4, %v2866_v53, 0.0  ;;  %v3000_v18 = vmul.f32 %v2866_v53, %v2866_v53  ;;  %v2083_v53 = vld [vmem:[#allocation2 + $0x120] sm:$0xff] }
 0x248   : > { %v2932_v21 = vadd.f32 %v2931_v35, %v2930_v17  ;;  %v2219_v45 = vpop.f32.mrf.mxu2 }
 0x249   : > { %v2497_v59 = vpop.f32.mrf.mxu3  ;;  %4010 = vmatmul.msk.f32.gmra.mxu0 %vm351_vm1, %v4948_v40  ;;  %v3032_v26 = vsel %vm2897_vm4, %v3000_v18, 0.0  ;;  %v2311_v22 = vadd.f32 %v2219_v45, %v4958_v41  ;;  %v5925_v45 = vld [vmem:[#allocation16_spill] sm:$0xff] }
 0x24a   : > { %v3033_v47 = vadd.f32 %v3032_v26, %v3031_v7 }
 0x24b   : > { %v2589_v1 = vadd.f32 %v2497_v59, %v2311_v22  ;;  %v5300_v19 = vpop.f32.mrf.mxu1 }
 0x24c   : > { %3320 = vst.msk [vmem:[%s5232_s14 + $0x20] sm:$0xff] %vm2897_vm4, %v5300_v19 }
 0x24d   : > { %v2867_v48 = vadd.f32 %v2775_v57, %v2589_v1  ;;  %3943 = vmatmul.msk.f32.gmra.mxu2 %vm351_vm1, %v2082_v33  ;;  %v2361_v57 = vld [vmem:[#allocation2 + $0x121] sm:$0xff] }
 0x24e   : > { %3977 = vmatmul.msk.f32.gmra.mxu3 %vm351_vm1, %v2360_v31  ;;  %v2778_v40 = vpop.f32.mrf.mxu0  ;;  %4045 = vmatmul.msk.f32.gmra.mxu1 %vm351_vm1, %v5924_v29  ;;  %v2084_v1 = vld [vmem:[#allocation2 + $0x128] sm:$0xff] }
 0x24f   : > { %2900 = vst.msk [vmem:[%s5268_s17 + $0x10] sm:$0xff] %vm2897_vm4, %v2867_v48  ;;  %v2933_v41 = vsel %vm2897_vm4, %v2867_v48, 0.0  ;;  %v3001_v24 = vmul.f32 %v2867_v48, %v2867_v48  ;;  %v2362_v48 = vld [vmem:[#allocation2 + $0x129] sm:$0xff] }
 0x250   : > { %v2934_v27 = vadd.f32 %v2933_v41, %v2932_v21  ;;  %v2222_v10 = vpop.f32.mrf.mxu2  ;;  %v2639_v21 = vld [vmem:[#allocation2 + $0x122] sm:$0xff] }
 0x251   : > { %v2500_v54 = vpop.f32.mrf.mxu3  ;;  %4011 = vmatmul.msk.f32.gmra.mxu0 %vm351_vm1, %v2638_v51  ;;  %v3034_v36 = vsel %vm2897_vm4, %v3001_v24, 0.0  ;;  %v2312_v13 = vadd.f32 %v2222_v10, %v4969_v20  ;;  %v2640_v24 = vld [vmem:[#allocation2 + $0x12a] sm:$0xff] }
 0x252   : > { %v3035_v0 = vadd.f32 %v3034_v36, %v3033_v47  ;;  %v5926_v10 = vld [vmem:[#allocation18_spill] sm:$0xff] }
 0x253   : > { %v2590_v9 = vadd.f32 %v2500_v54, %v2312_v13  ;;  %v5315_v17 = vpop.f32.mrf.mxu1  ;;  %v3348_v13 = vsel %vm2897_vm4, %v5234_v32, 0.0 }
 0x254   : > { %3321 = vst.msk [vmem:[%s5232_s14 + $0x28] sm:$0xff] %vm2897_vm4, %v5315_v17 }
 0x255   : > { %v2868_v35 = vadd.f32 %v2778_v40, %v2590_v9  ;;  %3944 = vmatmul.msk.f32.gmra.mxu2 %vm351_vm1, %v2083_v53 }
 0x256   : > { %3978 = vmatmul.msk.f32.gmra.mxu3 %vm351_vm1, %v2361_v57  ;;  %v2781_v18 = vpop.f32.mrf.mxu0  ;;  %4046 = vmatmul.msk.f32.gmra.mxu1 %vm351_vm1, %v5925_v45 }
 0x257   : > { %2901 = vst.msk [vmem:[%s5268_s17 + $0x18] sm:$0xff] %vm2897_vm4, %v2868_v35  ;;  %v2935_v20 = vsel %vm2897_vm4, %v2868_v35, 0.0  ;;  %v3002_v59 = vmul.f32 %v2868_v35, %v2868_v35 }
 0x258   : > { %v2936_v7 = vadd.f32 %v2935_v20, %v2934_v27  ;;  %v2225_v26 = vpop.f32.mrf.mxu2  ;;  %v3417_v27 = vmul.f32 %v5234_v32, %v5234_v32  ;;  %v3419_v32 = vmul.f32 %v5262_v8, %v5262_v8 }
 0x259   : > { %v2503_v22 = vpop.f32.mrf.mxu3  ;;  %4012 = vmatmul.msk.f32.gmra.mxu0 %vm351_vm1, %v2639_v21  ;;  %v3036_v47 = vsel %vm2897_vm4, %v3002_v59, 0.0  ;;  %v2313_v33 = vadd.f32 %v2225_v26, %v4980_v43  ;;  %v3418_v43 = vmul.f32 %v5248_v37, %v5248_v37  ;;  %v2085_v59 = vld [vmem:[#allocation2 + $0x138] sm:$0xff] }
 0x25a   : > { %v3037_v31 = vadd.f32 %v3036_v47, %v3035_v0  ;;  %v3349_v0 = vsel %vm2897_vm4, %v5248_v37, 0.0  ;;  %v3449_v21 = vsel %vm2897_vm4, %v3417_v27, 0.0  ;;  %v2363_v37 = vld [vmem:[#allocation2 + $0x139] sm:$0xff]  ;;  %v3351_v47 = vsel %vm2897_vm4, %v5262_v8, 0.0 }
 0x25b   : > { %v2591_v40 = vadd.f32 %v2503_v22, %v2313_v33  ;;  %v5330_v51 = vpop.f32.mrf.mxu1  ;;  %v3450_v45 = vsel %vm2897_vm4, %v3418_v43, 0.0  ;;  %v3421_v8 = vmul.f32 %v5300_v19, %v5300_v19 }
 0x25c   : > { %3322 = vst.msk [vmem:[%s5232_s14 + $0x30] sm:$0xff] %vm2897_vm4, %v5330_v51  ;;  %v3451_v33 = vadd.f32 %v3450_v45, %v3449_v21  ;;  %v3423_v45 = vmul.f32 %v5330_v51, %v5330_v51 }
 0x25d   : > { %v2869_v29 = vadd.f32 %v2781_v18, %v2591_v40  ;;  %3945 = vmatmul.msk.f32.gmra.mxu2 %vm351_vm1, %v2084_v1  ;;  %v3452_v40 = vsel %vm2897_vm4, %v3419_v32, 0.0  ;;  %v3456_v21 = vsel %vm2897_vm4, %v3421_v8, 0.0  ;;  %v2086_v32 = vld [vmem:[#allocation2 + $0x140] sm:$0xff] }
 0x25e   : > { %3979 = vmatmul.msk.f32.gmra.mxu3 %vm351_vm1, %v2362_v48  ;;  %v2784_v41 = vpop.f32.mrf.mxu0  ;;  %4047 = vmatmul.msk.f32.gmra.mxu1 %vm351_vm1, %v5926_v10  ;;  %v2641_v48 = vld [vmem:[#allocation2 + $0x13a] sm:$0xff] }
 0x25f   : > { %2902 = vst.msk [vmem:[%s5268_s17 + $0x20] sm:$0xff] %vm2897_vm4, %v2869_v29  ;;  %v2937_v54 = vsel %vm2897_vm4, %v2869_v29, 0.0  ;;  %v3003_v36 = vmul.f32 %v2869_v29, %v2869_v29  ;;  %v3353_v29 = vsel %vm2897_vm4, %v5282_v50, 0.0 }
 0x260   : > { %v2938_v53 = vadd.f32 %v2937_v54, %v2936_v7  ;;  %v2228_v57 = vpop.f32.mrf.mxu2  ;;  %v3350_v7 = vadd.f32 %v3349_v0, %v3348_v13  ;;  %v3355_v54 = vsel %vm2897_vm4, %v5300_v19, 0.0  ;;  %v3357_v19 = vsel %vm2897_vm4, %v5315_v17, 0.0 }
 0x261   : > { %v2506_v9 = vpop.f32.mrf.mxu3  ;;  %4013 = vmatmul.msk.f32.gmra.mxu0 %vm351_vm1, %v2640_v24  ;;  %v3038_v35 = vsel %vm2897_vm4, %v3003_v36, 0.0  ;;  %v2314_v18 = vadd.f32 %v2228_v57, %v4991_v49  ;;  %v3420_v49 = vmul.f32 %v5282_v50, %v5282_v50  ;;  %v5927_v24 = vld [vmem:[#allocation20_spill] sm:$0xff]  ;;  %v3422_v50 = vmul.f32 %v5315_v17, %v5315_v17 }
 0x262   : > { %v3039_v20 = vadd.f32 %v3038_v35, %v3037_v31  ;;  %v3352_v27 = vadd.f32 %v3351_v47, %v3350_v7  ;;  %v3453_v57 = vadd.f32 %v3452_v40, %v3451_v33  ;;  %v2642_v40 = vld [vmem:[#allocation2 + $0x142] sm:$0xff] }
 0x263   : > { %v2592_v26 = vadd.f32 %v2506_v9, %v2314_v18  ;;  %v3241_v22 = vpop.f32.mrf.mxu1  ;;  %v3454_v10 = vsel %vm2897_vm4, %v3420_v49, 0.0  ;;  %v3458_v49 = vsel %vm2897_vm4, %v3422_v50, 0.0 }
 0x264   : > { %3323 = vst.msk [vmem:[%s5232_s14 + $0x38] sm:$0xff] %vm2897_vm4, %v3241_v22  ;;  %v3354_v9 = vadd.f32 %v3353_v29, %v3352_v27  ;;  %v3424_v33 = vmul.f32 %v3241_v22, %v3241_v22  ;;  %v3460_v29 = vsel %vm2897_vm4, %v3423_v45, 0.0  ;;  %v3361_v8 = vsel %vm2897_vm4, %v3241_v22, 0.0  ;;  %v5928_v27 = vld [vmem:[#allocation22_spill] sm:$0xff]  ;;  %v2365_v45 = vld [vmem:[#allocation2 + $0x151] sm:$0xff] }
 0x265   : > { %v2870_v1 = vadd.f32 %v2784_v41, %v2592_v26  ;;  %3946 = vmatmul.msk.f32.gmra.mxu2 %vm351_vm1, %v2085_v59  ;;  %v2364_v59 = vld [vmem:[#allocation2 + $0x141] sm:$0xff] }
 0x266   : > { %3980 = vmatmul.msk.f32.gmra.mxu3 %vm351_vm1, %v2363_v37  ;;  %v2787_v31 = vpop.f32.mrf.mxu0  ;;  %4048 = vmatmul.msk.f32.gmra.mxu1 %vm351_vm1, %v5927_v24  ;;  %v3455_v37 = vadd.f32 %v3454_v10, %v3453_v57  ;;  %v3356_v7 = vadd.f32 %v3355_v54, %v3354_v9  ;;  %v3462_v10 = vsel %vm2897_vm4, %v3424_v33, 0.0 }
 0x267   : > { %2903 = vst.msk [vmem:[%s5268_s17 + $0x28] sm:$0xff] %vm2897_vm4, %v2870_v1  ;;  %v2939_v41 = vsel %vm2897_vm4, %v2870_v1, 0.0  ;;  %v3004_v43 = vmul.f32 %v2870_v1, %v2870_v1 }
 0x268   : > { %v2940_v36 = vadd.f32 %v2939_v41, %v2938_v53  ;;  %v2231_v13 = vpop.f32.mrf.mxu2  ;;  %v3457_v17 = vadd.f32 %v3456_v21, %v3455_v37  ;;  %v3358_v1 = vadd.f32 %v3357_v19, %v3356_v7  ;;  %v2087_v19 = vld [vmem:[#allocation2 + $0x150] sm:$0xff] }
 0x269   : > { %v2509_v0 = vpop.f32.mrf.mxu3  ;;  %4014 = vmatmul.msk.f32.gmra.mxu0 %vm351_vm1, %v2641_v48  ;;  %v3040_v35 = vsel %vm2897_vm4, %v3004_v43, 0.0  ;;  %v2315_v18 = vadd.f32 %v2231_v13, %v5001_v55  ;;  %v3359_v55 = vsel %vm2897_vm4, %v5330_v51, 0.0 }
 0x26a   : > { %v3041_v53 = vadd.f32 %v3040_v35, %v3039_v20  ;;  %v3459_v51 = vadd.f32 %v3458_v49, %v3457_v17  ;;  %v3360_v41 = vadd.f32 %v3359_v55, %v3358_v1  ;;  %v5929_v17 = vld [vmem:[#allocation24_spill] sm:$0xff] }
 0x26b   : > { %v2593_v26 = vadd.f32 %v2509_v0, %v2315_v18  ;;  %v3244_v47 = vpop.f32.mrf.mxu1 }
 0x26c   : > { %3324 = vst.msk [vmem:[%s5232_s14 + $0x40] sm:$0xff] %vm2897_vm4, %v3244_v47  ;;  %v3425_v24 = vmul.f32 %v3244_v47, %v3244_v47  ;;  %v3363_v50 = vsel %vm2897_vm4, %v3244_v47, 0.0  ;;  %v3461_v22 = vadd.f32 %v3460_v29, %v3459_v51  ;;  %v3362_v9 = vadd.f32 %v3361_v8, %v3360_v41  ;;  %v2088_v41 = vld [vmem:[#allocation2 + $0x158] sm:$0xff] }
 0x26d   : > { %v2871_v48 = vadd.f32 %v2787_v31, %v2593_v26  ;;  %3947 = vmatmul.msk.f32.gmra.mxu2 %vm351_vm1, %v2086_v32 }
 0x26e   : > { %3981 = vmatmul.msk.f32.gmra.mxu3 %vm351_vm1, %v2364_v59  ;;  %v2790_v20 = vpop.f32.mrf.mxu0  ;;  %4049 = vmatmul.msk.f32.gmra.mxu1 %vm351_vm1, %v5928_v27  ;;  %v3464_v21 = vsel %vm2897_vm4, %v3425_v24, 0.0  ;;  %v3364_v32 = vadd.f32 %v3363_v50, %v3362_v9  ;;  %v5930_v9 = vld [vmem:[#allocation26_spill] sm:$0xff] }
 0x26f   : > { %2904 = vst.msk [vmem:[%s5268_s17 + $0x30] sm:$0xff] %vm2897_vm4, %v2871_v48  ;;  %v2941_v31 = vsel %vm2897_vm4, %v2871_v48, 0.0  ;;  %v3005_v43 = vmul.f32 %v2871_v48, %v2871_v48 }
 0x270   : > { %v2942_v54 = vadd.f32 %v2941_v31, %v2940_v36  ;;  %v2234_v13 = vpop.f32.mrf.mxu2  ;;  %v3463_v36 = vadd.f32 %v3462_v10, %v3461_v22  ;;  %v2366_v31 = vld [vmem:[#allocation2 + $0x159] sm:$0xff] }
 0x271   : > { %v2512_v0 = vpop.f32.mrf.mxu3  ;;  %4015 = vmatmul.msk.f32.gmra.mxu0 %vm351_vm1, %v2642_v40  ;;  %v3042_v57 = vsel %vm2897_vm4, %v3005_v43, 0.0  ;;  %v2316_v35 = vadd.f32 %v2234_v13, %v5019_v62 }
 0x272   : > { %v3043_v18 = vadd.f32 %v3042_v57, %v3041_v53  ;;  %v3465_v47 = vadd.f32 %v3464_v21, %v3463_v36  ;;  %v2643_v53 = vld [vmem:[#allocation2 + $0x152] sm:$0xff]  ;;  %v2644_v57 = vld [vmem:[#allocation2 + $0x15a] sm:$0xff] }
 0x273   : > { %v2594_v59 = vadd.f32 %v2512_v0, %v2316_v35  ;;  %v3247_v37 = vpop.f32.mrf.mxu1 }
 0x274   : > { %3325 = vst.msk [vmem:[%s5232_s14 + $0x48] sm:$0xff] %vm2897_vm4, %v3247_v37  ;;  %v3365_v7 = vsel %vm2897_vm4, %v3247_v37, 0.0  ;;  %v3426_v26 = vmul.f32 %v3247_v37, %v3247_v37 }
 0x275   : > { %v2872_v49 = vadd.f32 %v2790_v20, %v2594_v59  ;;  %v3366_v55 = vadd.f32 %v3365_v7, %v3364_v32  ;;  %3948 = vmatmul.msk.f32.gmra.mxu2 %vm351_vm1, %v2087_v19  ;;  %v2089_v7 = vld [vmem:[#allocation2 + $0x168] sm:$0xff] }
 0x276   : > { %3982 = vmatmul.msk.f32.gmra.mxu3 %vm351_vm1, %v2365_v45  ;;  %v2793_v62 = vpop.f32.mrf.mxu0  ;;  %v3466_v33 = vsel %vm2897_vm4, %v3426_v26, 0.0  ;;  %4050 = vmatmul.msk.f32.gmra.mxu1 %vm351_vm1, %v5929_v17  ;;  %v2367_v26 = vld [vmem:[#allocation2 + $0x169] sm:$0xff] }
 0x277   : > { %2905 = vst.msk [vmem:[%s5268_s17 + $0x38] sm:$0xff] %vm2897_vm4, %v2872_v49  ;;  %v2943_v1 = vsel %vm2897_vm4, %v2872_v49, 0.0  ;;  %v3006_v48 = vmul.f32 %v2872_v49, %v2872_v49  ;;  %v3467_v40 = vadd.f32 %v3466_v33, %v3465_v47 }
 0x278   : > { %v2944_v20 = vadd.f32 %v2943_v1, %v2942_v54  ;;  %v2237_v29 = vpop.f32.mrf.mxu2  ;;  %v2645_v1 = vld [vmem:[#allocation2 + $0x16a] sm:$0xff] }
 0x279   : > { %v2515_v8 = vpop.f32.mrf.mxu3  ;;  %4016 = vmatmul.msk.f32.gmra.mxu0 %vm351_vm1, %v2643_v53  ;;  %v3044_v24 = vsel %vm2897_vm4, %v3006_v48, 0.0  ;;  %v2317_v27 = vadd.f32 %v2237_v29, %v5031_v56  ;;  %v5931_v48 = vld [vmem:[#allocation28_spill] sm:$0xff] }
 0x27a   : > { %v3045_v51 = vadd.f32 %v3044_v24, %v3043_v18 }
 0x27b   : > { %v2595_v43 = vadd.f32 %v2515_v8, %v2317_v27  ;;  %v3250_v10 = vpop.f32.mrf.mxu1 }
 0x27c   : > { %3326 = vst.msk [vmem:[%s5232_s14 + $0x50] sm:$0xff] %vm2897_vm4, %v3250_v10  ;;  %v3367_v50 = vsel %vm2897_vm4, %v3250_v10, 0.0  ;;  %v3427_v13 = vmul.f32 %v3250_v10, %v3250_v10  ;;  %v2368_v10 = vld [vmem:[#allocation2 + $0x171] sm:$0xff] }
 0x27d   : > { %v2873_v54 = vadd.f32 %v2793_v62, %v2595_v43  ;;  %v3368_v0 = vadd.f32 %v3367_v50, %v3366_v55  ;;  %3949 = vmatmul.msk.f32.gmra.mxu2 %vm351_vm1, %v2088_v41  ;;  %v2090_v43 = vld [vmem:[#allocation2 + $0x170] sm:$0xff] }
 0x27e   : > { %3983 = vmatmul.msk.f32.gmra.mxu3 %vm351_vm1, %v2366_v31  ;;  %v2796_v22 = vpop.f32.mrf.mxu0  ;;  %v3468_v56 = vsel %vm2897_vm4, %v3427_v13, 0.0  ;;  %4051 = vmatmul.msk.f32.gmra.mxu1 %vm351_vm1, %v5930_v9  ;;  %v2646_v9 = vld [vmem:[#allocation2 + $0x172] sm:$0xff] }
 0x27f   : > { %2906 = vst.msk [vmem:[%s5268_s17 + $0x40] sm:$0xff] %vm2897_vm4, %v2873_v54  ;;  %v2945_v35 = vsel %vm2897_vm4, %v2873_v54, 0.0  ;;  %v3007_v18 = vmul.f32 %v2873_v54, %v2873_v54  ;;  %v3469_v21 = vadd.f32 %v3468_v56, %v3467_v40 }
 0x280   : > { %v2946_v19 = vadd.f32 %v2945_v35, %v2944_v20  ;;  %v2240_v45 = vpop.f32.mrf.mxu2  ;;  %v5932_v35 = vld [vmem:[#allocation30_spill] sm:$0xff] }
 0x281   : > { %v2518_v32 = vpop.f32.mrf.mxu3  ;;  %4017 = vmatmul.msk.f32.gmra.mxu0 %vm351_vm1, %v2644_v57  ;;  %v3046_v36 = vsel %vm2897_vm4, %v3007_v18, 0.0  ;;  %v2318_v59 = vadd.f32 %v2240_v45, %v5041_v12 }
 0x282   : > { %v3047_v37 = vadd.f32 %v3046_v36, %v3045_v51 }
 0x283   : > { %v2596_v47 = vadd.f32 %v2518_v32, %v2318_v59  ;;  %v3253_v49 = vpop.f32.mrf.mxu1 }
 0x284   : > { %3327 = vst.msk [vmem:[%s5232_s14 + $0x58] sm:$0xff] %vm2897_vm4, %v3253_v49  ;;  %v3369_v55 = vsel %vm2897_vm4, %v3253_v49, 0.0  ;;  %v3428_v62 = vmul.f32 %v3253_v49, %v3253_v49 }
 0x285   : > { %v2874_v53 = vadd.f32 %v2796_v22, %v2596_v47  ;;  %v3370_v33 = vadd.f32 %v3369_v55, %v3368_v0  ;;  %3950 = vmatmul.msk.f32.gmra.mxu2 %vm351_vm1, %v2089_v7  ;;  %v2369_v47 = vld [vmem:[#allocation2 + $0x181] sm:$0xff] }
 0x286   : > { %3984 = vmatmul.msk.f32.gmra.mxu3 %vm351_vm1, %v2367_v26  ;;  %v2799_v17 = vpop.f32.mrf.mxu0  ;;  %v3470_v12 = vsel %vm2897_vm4, %v3428_v62, 0.0  ;;  %4052 = vmatmul.msk.f32.gmra.mxu1 %vm351_vm1, %v5931_v48  ;;  %v2091_v26 = vld [vmem:[#allocation2 + $0x180] sm:$0xff]  ;;  %v5933_v48 = vld [vmem:[#allocation32_spill] sm:$0xff] }
 0x287   : > { %2907 = vst.msk [vmem:[%s5268_s17 + $0x48] sm:$0xff] %vm2897_vm4, %v2874_v53  ;;  %v2947_v40 = vsel %vm2897_vm4, %v2874_v53, 0.0  ;;  %v3008_v20 = vmul.f32 %v2874_v53, %v2874_v53  ;;  %v3471_v29 = vadd.f32 %v3470_v12, %v3469_v21  ;;  %v2647_v12 = vld [vmem:[#allocation2 + $0x182] sm:$0xff] }
 0x288   : > { %v2948_v8 = vadd.f32 %v2947_v40, %v2946_v19  ;;  %v2243_v24 = vpop.f32.mrf.mxu2 }
 0x289   : > { %v2521_v27 = vpop.f32.mrf.mxu3  ;;  %4018 = vmatmul.msk.f32.gmra.mxu0 %vm351_vm1, %v2645_v1  ;;  %v3048_v51 = vsel %vm2897_vm4, %v3008_v20, 0.0  ;;  %v2319_v41 = vadd.f32 %v2243_v24, %v5051_v44 }
 0x28a   : > { %v3049_v31 = vadd.f32 %v3048_v51, %v3047_v37 }
 0x28b   : > { %v2597_v50 = vadd.f32 %v2521_v27, %v2319_v41  ;;  %v3256_v13 = vpop.f32.mrf.mxu1 }
 0x28c   : > { %3328 = vst.msk [vmem:[%s5232_s14 + $0x60] sm:$0xff] %vm2897_vm4, %v3256_v13  ;;  %v3371_v54 = vsel %vm2897_vm4, %v3256_v13, 0.0  ;;  %v3429_v0 = vmul.f32 %v3256_v13, %v3256_v13 }
 0x28d   : > { %v2875_v22 = vadd.f32 %v2799_v17, %v2597_v50  ;;  %v3372_v57 = vadd.f32 %v3371_v54, %v3370_v33  ;;  %3951 = vmatmul.msk.f32.gmra.mxu2 %vm351_vm1, %v2090_v43  ;;  %v2092_v43 = vld [vmem:[#allocation2 + $0x188] sm:$0xff] }
 0x28e   : > { %3985 = vmatmul.msk.f32.gmra.mxu3 %vm351_vm1, %v2368_v10  ;;  %v2802_v56 = vpop.f32.mrf.mxu0  ;;  %v3472_v44 = vsel %vm2897_vm4, %v3429_v0, 0.0  ;;  %4053 = vmatmul.msk.f32.gmra.mxu1 %vm351_vm1, %v5932_v35  ;;  %v2370_v10 = vld [vmem:[#allocation2 + $0x189] sm:$0xff] }
 0x28f   : > { %2908 = vst.msk [vmem:[%s5268_s17 + $0x50] sm:$0xff] %vm2897_vm4, %v2875_v22  ;;  %v2949_v18 = vsel %vm2897_vm4, %v2875_v22, 0.0  ;;  %v3009_v21 = vmul.f32 %v2875_v22, %v2875_v22  ;;  %v3473_v19 = vadd.f32 %v3472_v44, %v3471_v29 }
 0x290   : > { %v2950_v45 = vadd.f32 %v2949_v18, %v2948_v8  ;;  %v2246_v32 = vpop.f32.mrf.mxu2 }
 0x291   : > { %v2524_v36 = vpop.f32.mrf.mxu3  ;;  %4019 = vmatmul.msk.f32.gmra.mxu0 %vm351_vm1, %v2646_v9  ;;  %v3050_v59 = vsel %vm2897_vm4, %v3009_v21, 0.0  ;;  %v2320_v37 = vadd.f32 %v2246_v32, %v5061_v23  ;;  %v2648_v9 = vld [vmem:[#allocation2 + $0x18a] sm:$0xff] }
 0x292   : > { %v3051_v7 = vadd.f32 %v3050_v59, %v3049_v31 }
 0x293   : > { %v2598_v49 = vadd.f32 %v2524_v36, %v2320_v37  ;;  %v3259_v55 = vpop.f32.mrf.mxu1  ;;  %v2093_v37 = vld [vmem:[#allocation2 + $0x198] sm:$0xff] }
 0x294   : > { %3329 = vst.msk [vmem:[%s5232_s14 + $0x68] sm:$0xff] %vm2897_vm4, %v3259_v55  ;;  %v3373_v62 = vsel %vm2897_vm4, %v3259_v55, 0.0  ;;  %v3430_v53 = vmul.f32 %v3259_v55, %v3259_v55 }
 0x295   : > { %v2876_v33 = vadd.f32 %v2802_v56, %v2598_v49  ;;  %v3374_v17 = vadd.f32 %v3373_v62, %v3372_v57  ;;  %3952 = vmatmul.msk.f32.gmra.mxu2 %vm351_vm1, %v2091_v26 }
 0x296   : > { %3986 = vmatmul.msk.f32.gmra.mxu3 %vm351_vm1, %v2369_v47  ;;  %v2805_v1 = vpop.f32.mrf.mxu0  ;;  %v3474_v23 = vsel %vm2897_vm4, %v3430_v53, 0.0  ;;  %4054 = vmatmul.msk.f32.gmra.mxu1 %vm351_vm1, %v5933_v48 }
 0x297   : > { %2909 = vst.msk [vmem:[%s5268_s17 + $0x58] sm:$0xff] %vm2897_vm4, %v2876_v33  ;;  %v2951_v40 = vsel %vm2897_vm4, %v2876_v33, 0.0  ;;  %v3010_v20 = vmul.f32 %v2876_v33, %v2876_v33  ;;  %v3475_v29 = vadd.f32 %v3474_v23, %v3473_v19  ;;  %v2649_v33 = vld [vmem:[#allocation2 + $0x19a] sm:$0xff] }
 0x298   : > { %v2952_v8 = vadd.f32 %v2951_v40, %v2950_v45  ;;  %v2249_v24 = vpop.f32.mrf.mxu2 }
 0x299   : > { %v2527_v27 = vpop.f32.mrf.mxu3  ;;  %4020 = vmatmul.msk.f32.gmra.mxu0 %vm351_vm1, %v2647_v12  ;;  %v3052_v51 = vsel %vm2897_vm4, %v3010_v20, 0.0  ;;  %v2321_v41 = vadd.f32 %v2249_v24, %v5071_v15  ;;  %v2094_v24 = vld [vmem:[#allocation2 + $0x1a0] sm:$0xff] }
 0x29a   : > { %v3053_v31 = vadd.f32 %v3052_v51, %v3051_v7 }
 0x29b   : > { %v2599_v50 = vadd.f32 %v2527_v27, %v2321_v41  ;;  %v3262_v13 = vpop.f32.mrf.mxu1 }
 0x29c   : > { %3330 = vst.msk [vmem:[%s5232_s14 + $0x70] sm:$0xff] %vm2897_vm4, %v3262_v13  ;;  %v3375_v54 = vsel %vm2897_vm4, %v3262_v13, 0.0  ;;  %v3431_v0 = vmul.f32 %v3262_v13, %v3262_v13 }
 0x29d   : > { %v2877_v22 = vadd.f32 %v2805_v1, %v2599_v50  ;;  %v3376_v57 = vadd.f32 %v3375_v54, %v3374_v17  ;;  %3953 = vmatmul.msk.f32.gmra.mxu2 %vm351_vm1, %v2092_v43 }
 0x29e   : > { %3987 = vmatmul.msk.f32.gmra.mxu3 %vm351_vm1, %v2370_v10  ;;  %v2808_v56 = vpop.f32.mrf.mxu0  ;;  %v3476_v15 = vsel %vm2897_vm4, %v3431_v0, 0.0  ;;  %4055 = vmatmul.msk.f32.gmra.mxu1 %vm351_vm1, %v5010_v39  ;;  %v2371_v39 = vld [vmem:[#allocation2 + $0x199] sm:$0xff] }
 0x29f   : > { %2910 = vst.msk [vmem:[%s5268_s17 + $0x60] sm:$0xff] %vm2897_vm4, %v2877_v22  ;;  %v2953_v44 = vsel %vm2897_vm4, %v2877_v22, 0.0  ;;  %v3011_v35 = vmul.f32 %v2877_v22, %v2877_v22  ;;  %v3477_v18 = vadd.f32 %v3476_v15, %v3475_v29 }
 0x2a0   : > { %v2954_v21 = vadd.f32 %v2953_v44, %v2952_v8  ;;  %v2252_v19 = vpop.f32.mrf.mxu2 }
 0x2a1   : > { %v2530_v45 = vpop.f32.mrf.mxu3  ;;  %4021 = vmatmul.msk.f32.gmra.mxu0 %vm351_vm1, %v2648_v9  ;;  %v3054_v32 = vsel %vm2897_vm4, %v3011_v35, 0.0  ;;  %v2322_v36 = vadd.f32 %v2252_v19, %v5080_v58 }
 0x2a2   : > { %v3055_v59 = vadd.f32 %v3054_v32, %v3053_v31 }
 0x2a3   : > { %v2600_v7 = vadd.f32 %v2530_v45, %v2322_v36  ;;  %v3265_v26 = vpop.f32.mrf.mxu1 }
 0x2a4   : > { %3331 = vst.msk [vmem:[%s5232_s14 + $0x78] sm:$0xff] %vm2897_vm4, %v3265_v26  ;;  %v3377_v47 = vsel %vm2897_vm4, %v3265_v26, 0.0  ;;  %v3432_v49 = vmul.f32 %v3265_v26, %v3265_v26 }
 0x2a5   : > { %v2878_v55 = vadd.f32 %v2808_v56, %v2600_v7  ;;  %v3378_v62 = vadd.f32 %v3377_v47, %v3376_v57  ;;  %3954 = vmatmul.msk.f32.gmra.mxu2 %vm351_vm1, %v2093_v37 }
 0x2a6   : > { %3988 = vmatmul.msk.f32.gmra.mxu3 %vm351_vm1, %v2371_v39  ;;  %v2811_v53 = vpop.f32.mrf.mxu0  ;;  %v3478_v58 = vsel %vm2897_vm4, %v3432_v49, 0.0  ;;  %4056 = vmatmul.msk.f32.gmra.mxu1 %vm351_vm1, %v5013_v61  ;;  %v2372_v61 = vld [vmem:[#allocation2 + $0x1a1] sm:$0xff] }
 0x2a7   : > { %2911 = vst.msk [vmem:[%s5268_s17 + $0x68] sm:$0xff] %vm2897_vm4, %v2878_v55  ;;  %v2955_v17 = vsel %vm2897_vm4, %v2878_v55, 0.0  ;;  %v3012_v1 = vmul.f32 %v2878_v55, %v2878_v55  ;;  %v3479_v12 = vadd.f32 %v3478_v58, %v3477_v18 }
 0x2a8   : > { %v2956_v23 = vadd.f32 %v2955_v17, %v2954_v21  ;;  %v2255_v48 = vpop.f32.mrf.mxu2 }
 0x2a9   : > { %v2533_v40 = vpop.f32.mrf.mxu3  ;;  %4022 = vmatmul.msk.f32.gmra.mxu0 %vm351_vm1, %v2649_v33  ;;  %v3056_v20 = vsel %vm2897_vm4, %v3012_v1, 0.0  ;;  %v2323_v29 = vadd.f32 %v2255_v48, %v5089_v30  ;;  %v2650_v30 = vld [vmem:[#allocation2 + $0x1a2] sm:$0xff] }
 0x2aa   : > { %v3057_v8 = vadd.f32 %v3056_v20, %v3055_v59 }
 0x2ab   : > { %v2601_v27 = vadd.f32 %v2533_v40, %v2323_v29  ;;  %v3268_v51 = vpop.f32.mrf.mxu1 }
 0x2ac   : > { %3332 = vst.msk [vmem:[%s5232_s14 + $0x80] sm:$0xff] %vm2897_vm4, %v3268_v51  ;;  %v3379_v41 = vsel %vm2897_vm4, %v3268_v51, 0.0  ;;  %v3433_v31 = vmul.f32 %v3268_v51, %v3268_v51 }
 0x2ad   : > { %v2879_v43 = vadd.f32 %v2811_v53, %v2601_v27  ;;  %v3380_v10 = vadd.f32 %v3379_v41, %v3378_v62  ;;  %3955 = vmatmul.msk.f32.gmra.mxu2 %vm351_vm1, %v2094_v24 }
 0x2ae   : > { %3989 = vmatmul.msk.f32.gmra.mxu3 %vm351_vm1, %v2372_v61  ;;  %v2814_v50 = vpop.f32.mrf.mxu0  ;;  %v3480_v13 = vsel %vm2897_vm4, %v3433_v31, 0.0 }
 0x2af   : > { %2912 = vst.msk [vmem:[%s5268_s17 + $0x70] sm:$0xff] %vm2897_vm4, %v2879_v43  ;;  %v2957_v54 = vsel %vm2897_vm4, %v2879_v43, 0.0  ;;  %v3013_v0 = vmul.f32 %v2879_v43, %v2879_v43  ;;  %v3481_v22 = vadd.f32 %v3480_v13, %v3479_v12 }
 0x2b0   : > { %v2958_v57 = vadd.f32 %v2957_v54, %v2956_v23  ;;  %v2258_v56 = vpop.f32.mrf.mxu2 }
 0x2b1   : > { %v2536_v9 = vpop.f32.mrf.mxu3  ;;  %4023 = vmatmul.msk.f32.gmra.mxu0 %vm351_vm1, %v2650_v30  ;;  %v3058_v15 = vsel %vm2897_vm4, %v3013_v0, 0.0  ;;  %v2324_v44 = vadd.f32 %v2258_v56, %v5098_v60 }
 0x2b2   : > { %v3059_v35 = vadd.f32 %v3058_v15, %v3057_v8 }
 0x2b3   : > { %v2602_v18 = vadd.f32 %v2536_v9, %v2324_v44  ;;  %v3271_v21 = vpop.f32.mrf.mxu1 }
 0x2b4   : > { %3333 = vst.msk [vmem:[%s5232_s14 + $0x88] sm:$0xff] %vm2897_vm4, %v3271_v21  ;;  %v3381_v19 = vsel %vm2897_vm4, %v3271_v21, 0.0  ;;  %v3434_v45 = vmul.f32 %v3271_v21, %v3271_v21 }
 0x2b5   : > { %v2880_v32 = vadd.f32 %v2814_v50, %v2602_v18  ;;  %v3382_v36 = vadd.f32 %v3381_v19, %v3380_v10 }
 0x2b6   : > { %v2817_v59 = vpop.f32.mrf.mxu0  ;;  %v3482_v37 = vsel %vm2897_vm4, %v3434_v45, 0.0 }
 0x2b7   : > { %2913 = vst.msk [vmem:[%s5268_s17 + $0x78] sm:$0xff] %vm2897_vm4, %v2880_v32  ;;  %v2959_v39 = vsel %vm2897_vm4, %v2880_v32, 0.0  ;;  %v3014_v7 = vmul.f32 %v2880_v32, %v2880_v32  ;;  %v3483_v60 = vadd.f32 %v3482_v37, %v3481_v22 }
 0x2b8   : > { %v2960_v26 = vadd.f32 %v2959_v39, %v2958_v57  ;;  %v2261_v47 = vpop.f32.mrf.mxu2 }
 0x2b9   : > { %v2539_v49 = vpop.f32.mrf.mxu3  ;;  %v3060_v55 = vsel %vm2897_vm4, %v3014_v7, 0.0  ;;  %v2325_v62 = vadd.f32 %v2261_v47, %v5106_v4 }
 0x2ba   : > { %v3061_v53 = vadd.f32 %v3060_v55, %v3059_v35 }
 0x2bb   : > { %v2603_v33 = vadd.f32 %v2539_v49, %v2325_v62  ;;  %v3274_v58 = vpop.f32.mrf.mxu1 }
 0x2bc   : > { %3334 = vst.msk [vmem:[%s5232_s14 + $0x90] sm:$0xff] %vm2897_vm4, %v3274_v58  ;;  %v3383_v17 = vsel %vm2897_vm4, %v3274_v58, 0.0  ;;  %v3435_v1 = vmul.f32 %v3274_v58, %v3274_v58 }
 0x2bd   : > { %v2881_v12 = vadd.f32 %v2817_v59, %v2603_v33  ;;  %v3384_v23 = vadd.f32 %v3383_v17, %v3382_v36 }
 0x2be   : > { %v2820_v48 = vpop.f32.mrf.mxu0  ;;  %v3484_v40 = vsel %vm2897_vm4, %v3435_v1, 0.0 }
 0x2bf   : > { %2914 = vst.msk [vmem:[%s5268_s17 + $0x80] sm:$0xff] %vm2897_vm4, %v2881_v12  ;;  %v2961_v20 = vsel %vm2897_vm4, %v2881_v12, 0.0  ;;  %v3015_v29 = vmul.f32 %v2881_v12, %v2881_v12  ;;  %v3485_v4 = vadd.f32 %v3484_v40, %v3483_v60 }
 0x2c0   : > { %v2962_v8 = vadd.f32 %v2961_v20, %v2960_v26  ;;  %v2264_v24 = vpop.f32.mrf.mxu2 }
 0x2c1   : > { %v2542_v61 = vpop.f32.mrf.mxu3  ;;  %v3062_v27 = vsel %vm2897_vm4, %v3015_v29, 0.0  ;;  %v2326_v51 = vadd.f32 %v2264_v24, %v5115_v11 }
 0x2c2   : > { %v3063_v41 = vadd.f32 %v3062_v27, %v3061_v53 }
 0x2c3   : > { %v2604_v31 = vadd.f32 %v2542_v61, %v2326_v51  ;;  %v3277_v43 = vpop.f32.mrf.mxu1 }
 0x2c4   : > { %3335 = vst.msk [vmem:[%s5232_s14 + $0x98] sm:$0xff] %vm2897_vm4, %v3277_v43  ;;  %v3385_v10 = vsel %vm2897_vm4, %v3277_v43, 0.0  ;;  %v3436_v50 = vmul.f32 %v3277_v43, %v3277_v43 }
 0x2c5   : > { %v2882_v30 = vadd.f32 %v2820_v48, %v2604_v31  ;;  %v3386_v13 = vadd.f32 %v3385_v10, %v3384_v23 }
 0x2c6   : > { %v2823_v54 = vpop.f32.mrf.mxu0  ;;  %v3486_v0 = vsel %vm2897_vm4, %v3436_v50, 0.0 }
 0x2c7   : > { %2915 = vst.msk [vmem:[%s5268_s17 + $0x88] sm:$0xff] %vm2897_vm4, %v2882_v30  ;;  %v2963_v22 = vsel %vm2897_vm4, %v2882_v30, 0.0  ;;  %v3016_v57 = vmul.f32 %v2882_v30, %v2882_v30  ;;  %v3487_v11 = vadd.f32 %v3486_v0, %v3485_v4 }
 0x2c8   : > { %v2964_v56 = vadd.f32 %v2963_v22, %v2962_v8  ;;  %v2267_v9 = vpop.f32.mrf.mxu2 }
 0x2c9   : > { %v2545_v15 = vpop.f32.mrf.mxu3  ;;  %v3064_v44 = vsel %vm2897_vm4, %v3016_v57, 0.0  ;;  %v2327_v35 = vadd.f32 %v2267_v9, %v5124_v63 }
 0x2ca   : > { %v3065_v18 = vadd.f32 %v3064_v44, %v3063_v41 }
 0x2cb   : > { %v2605_v21 = vadd.f32 %v2545_v15, %v2327_v35  ;;  %v3280_v19 = vpop.f32.mrf.mxu1 }
 0x2cc   : > { %3336 = vst.msk [vmem:[%s5232_s14 + $0xa0] sm:$0xff] %vm2897_vm4, %v3280_v19  ;;  %v3387_v45 = vsel %vm2897_vm4, %v3280_v19, 0.0  ;;  %v3437_v32 = vmul.f32 %v3280_v19, %v3280_v19 }
 0x2cd   : > { %v2883_v36 = vadd.f32 %v2823_v54, %v2605_v21  ;;  %v5548_v59 = vadd.f32 %v3387_v45, %v3386_v13 }
 0x2ce   : > { %v2826_v37 = vpop.f32.mrf.mxu0  ;;  %v3488_v39 = vsel %vm2897_vm4, %v3437_v32, 0.0 }
 0x2cf   : > { %2916 = vst.msk [vmem:[%s5268_s17 + $0x90] sm:$0xff] %vm2897_vm4, %v2883_v36  ;;  %v2965_v63 = vsel %vm2897_vm4, %v2883_v36, 0.0  ;;  %v3017_v7 = vmul.f32 %v2883_v36, %v2883_v36  ;;  %v5554_v60 = vadd.f32 %v3488_v39, %v3487_v11 }
 0x2d0   : > { %v2966_v26 = vadd.f32 %v2965_v63, %v2964_v56  ;;  %v2270_v47 = vpop.f32.mrf.mxu2 }
 0x2d1   : > { %v2548_v49 = vpop.f32.mrf.mxu3  ;;  %v3066_v55 = vsel %vm2897_vm4, %v3017_v7, 0.0  ;;  %v2328_v62 = vadd.f32 %v2270_v47, %v5133_v14 }
 0x2d2   : > { %v3067_v53 = vadd.f32 %v3066_v55, %v3065_v18 }
 0x2d3   : > { %v2606_v33 = vadd.f32 %v2548_v49, %v2328_v62  ;;  %v5558_v58 = vpop.f32.mrf.mxu1 }
 0x2d4   : > { %3337 = vst.msk [vmem:[%s5232_s14 + $0xa8] sm:$0xff] %vm2897_vm4, %v5558_v58 }
 0x2d5   : > { %v2884_v17 = vadd.f32 %v2826_v37, %v2606_v33 }
 0x2d6   : > { %v2829_v1 = vpop.f32.mrf.mxu0 }
 0x2d7   : > { %2917 = vst.msk [vmem:[%s5268_s17 + $0x98] sm:$0xff] %vm2897_vm4, %v2884_v17  ;;  %v2967_v12 = vsel %vm2897_vm4, %v2884_v17, 0.0  ;;  %v3018_v23 = vmul.f32 %v2884_v17, %v2884_v17 }
 0x2d8   : > { %v2968_v48 = vadd.f32 %v2967_v12, %v2966_v26  ;;  %v2273_v40 = vpop.f32.mrf.mxu2 }
 0x2d9   : > { %v2551_v20 = vpop.f32.mrf.mxu3  ;;  %v3068_v14 = vsel %vm2897_vm4, %v3018_v23, 0.0  ;;  %v2329_v29 = vadd.f32 %v2273_v40, %v5142_v25 }
 0x2da   : > { %v3069_v4 = vadd.f32 %v3068_v14, %v3067_v53 }
 0x2db   : > { %v2607_v8 = vadd.f32 %v2551_v20, %v2329_v29  ;;  %v5568_v24 = vpop.f32.mrf.mxu1 }
 0x2dc   : > { %3338 = vst.msk [vmem:[%s5232_s14 + $0xb0] sm:$0xff] %vm2897_vm4, %v5568_v24 }
 0x2dd   : > { %v2885_v61 = vadd.f32 %v2829_v1, %v2607_v8 }
 0x2de   : > { %v2832_v27 = vpop.f32.mrf.mxu0 }
 0x2df   : > { %2918 = vst.msk [vmem:[%s5268_s17 + $0xa0] sm:$0xff] %vm2897_vm4, %v2885_v61  ;;  %v2969_v51 = vsel %vm2897_vm4, %v2885_v61, 0.0  ;;  %v3019_v41 = vmul.f32 %v2885_v61, %v2885_v61 }
 0x2e0   : > { %v2970_v31 = vadd.f32 %v2969_v51, %v2968_v48  ;;  %v2276_v43 = vpop.f32.mrf.mxu2 }
 0x2e1   : > { %v2554_v10 = vpop.f32.mrf.mxu3  ;;  %v3070_v25 = vsel %vm2897_vm4, %v3019_v41, 0.0  ;;  %v2330_v50 = vadd.f32 %v2276_v43, %v5151_v3 }
 0x2e2   : > { %v3071_v30 = vadd.f32 %v3070_v25, %v3069_v4 }
 0x2e3   : > { %v2608_v13 = vadd.f32 %v2554_v10, %v2330_v50  ;;  %v5578_v54 = vpop.f32.mrf.mxu1 }
 0x2e4   : > { %3339 = vst.msk [vmem:[%s5232_s14 + $0xb8] sm:$0xff] %vm2897_vm4, %v5578_v54 }
 0x2e5   : > { %v2886_v0 = vadd.f32 %v2832_v27, %v2608_v13 }
 0x2e6   : > { %v2835_v22 = vpop.f32.mrf.mxu0 }
 0x2e7   : > { %2919 = vst.msk [vmem:[%s5268_s17 + $0xa8] sm:$0xff] %vm2897_vm4, %v2886_v0  ;;  %v2971_v57 = vsel %vm2897_vm4, %v2886_v0, 0.0  ;;  %v3020_v11 = vmul.f32 %v2886_v0, %v2886_v0 }
 0x2e8   : > { %v2972_v56 = vadd.f32 %v2971_v57, %v2970_v31  ;;  %v2279_v9 = vpop.f32.mrf.mxu2 }
 0x2e9   : > { %v2557_v15 = vpop.f32.mrf.mxu3  ;;  %v3072_v3 = vsel %vm2897_vm4, %v3020_v11, 0.0  ;;  %v2331_v44 = vadd.f32 %v2279_v9, %v5160_v6 }
 0x2ea   : > { %v3073_v35 = vadd.f32 %v3072_v3, %v3071_v30  ;;  %v3438_v3 = vmul.f32 %v5558_v58, %v5558_v58 }
 0x2eb   : > { %v2609_v18 = vadd.f32 %v2557_v15, %v2331_v44  ;;  %v5588_v21 = vpop.f32.mrf.mxu1 }
 0x2ec   : > { %3340 = vst.msk [vmem:[%s5232_s14 + $0xc0] sm:$0xff] %vm2897_vm4, %v5588_v21 }
 0x2ed   : > { %v2887_v19 = vadd.f32 %v2835_v22, %v2609_v18  ;;  %v3389_v18 = vsel %vm2897_vm4, %v5558_v58, 0.0 }
 0x2ee   : > { %v2838_v45 = vpop.f32.mrf.mxu0 }
 0x2ef   : > { %2920 = vst.msk [vmem:[%s5268_s17 + $0xb0] sm:$0xff] %vm2897_vm4, %v2887_v19  ;;  %v2973_v32 = vsel %vm2897_vm4, %v2887_v19, 0.0  ;;  %v3021_v36 = vmul.f32 %v2887_v19, %v2887_v19  ;;  %v3439_v19 = vmul.f32 %v5568_v24, %v5568_v24 }
 0x2f0   : > { %v2974_v37 = vadd.f32 %v2973_v32, %v2972_v56  ;;  %v2282_v39 = vpop.f32.mrf.mxu2  ;;  %v3490_v32 = vsel %vm2897_vm4, %v3438_v3, 0.0 }
 0x2f1   : > { %v2560_v63 = vpop.f32.mrf.mxu3  ;;  %v3074_v6 = vsel %vm2897_vm4, %v3021_v36, 0.0  ;;  %v2332_v7 = vadd.f32 %v2282_v39, %v5169_v42  ;;  %v3391_v36 = vsel %vm2897_vm4, %v5568_v24, 0.0  ;;  %v3441_v24 = vmul.f32 %v5588_v21, %v5588_v21 }
 0x2f2   : > { %v3075_v26 = vadd.f32 %v3074_v6, %v3073_v35  ;;  %v3390_v6 = vadd.f32 %v3389_v18, %v5548_v59 }
 0x2f3   : > { %v2610_v47 = vadd.f32 %v2560_v63, %v2332_v7  ;;  %v5598_v49 = vpop.f32.mrf.mxu1 }
 0x2f4   : > { %3341 = vst.msk [vmem:[%s5232_s14 + $0xc8] sm:$0xff] %vm2897_vm4, %v5598_v49 }
 0x2f5   : > { %v2888_v55 = vadd.f32 %v2838_v45, %v2610_v47  ;;  %v3492_v47 = vsel %vm2897_vm4, %v3439_v19, 0.0 }
 0x2f6   : > { %v2841_v62 = vpop.f32.mrf.mxu0 }
 0x2f7   : > { %2921 = vst.msk [vmem:[%s5268_s17 + $0xb8] sm:$0xff] %vm2897_vm4, %v2888_v55  ;;  %v2975_v53 = vsel %vm2897_vm4, %v2888_v55, 0.0  ;;  %v3022_v33 = vmul.f32 %v2888_v55, %v2888_v55  ;;  %v3393_v55 = vsel %vm2897_vm4, %v5578_v54, 0.0 }
 0x2f8   : > { %v2976_v17 = vadd.f32 %v2975_v53, %v2974_v37  ;;  %v2285_v1 = vpop.f32.mrf.mxu2  ;;  %v3440_v37 = vmul.f32 %v5578_v54, %v5578_v54  ;;  %v3491_v53 = vadd.f32 %v3490_v32, %v5554_v60  ;;  %v3496_v60 = vsel %vm2897_vm4, %v3441_v24, 0.0 }
 0x2f9   : > { %v2563_v12 = vpop.f32.mrf.mxu3  ;;  %v3076_v42 = vsel %vm2897_vm4, %v3022_v33, 0.0  ;;  %v2333_v23 = vadd.f32 %v2285_v1, %v5178_v38  ;;  %v3392_v33 = vadd.f32 %v3391_v36, %v3390_v6 }
 0x2fa   : > { %v3077_v48 = vadd.f32 %v3076_v42, %v3075_v26  ;;  %v3494_v59 = vsel %vm2897_vm4, %v3440_v37, 0.0  ;;  %v3493_v54 = vadd.f32 %v3492_v47, %v3491_v53 }
 0x2fb   : > { %v2611_v40 = vadd.f32 %v2563_v12, %v2333_v23  ;;  %v5608_v20 = vpop.f32.mrf.mxu1  ;;  %v3442_v12 = vmul.f32 %v5598_v49, %v5598_v49  ;;  %v3394_v42 = vadd.f32 %v3393_v55, %v3392_v33 }
 0x2fc   : > { %3342 = vst.msk [vmem:[%s5232_s14 + $0xd0] sm:$0xff] %vm2897_vm4, %v5608_v20 }
 0x2fd   : > { %v2889_v14 = vadd.f32 %v2841_v62, %v2611_v40  ;;  %v3397_v40 = vsel %vm2897_vm4, %v5598_v49, 0.0 }
 0x2fe   : > { %v2844_v29 = vpop.f32.mrf.mxu0 }
 0x2ff   : > { %2922 = vst.msk [vmem:[%s5268_s17 + $0xc0] sm:$0xff] %vm2897_vm4, %v2889_v14  ;;  %v2977_v4 = vsel %vm2897_vm4, %v2889_v14, 0.0  ;;  %v3023_v8 = vmul.f32 %v2889_v14, %v2889_v14  ;;  %v3443_v14 = vmul.f32 %v5608_v20, %v5608_v20 }
 0x300   : > { %v2978_v61 = vadd.f32 %v2977_v4, %v2976_v17  ;;  %v2288_v27 = vpop.f32.mrf.mxu2 }
 0x301   : > { %v2566_v51 = vpop.f32.mrf.mxu3  ;;  %v3078_v38 = vsel %vm2897_vm4, %v3023_v8, 0.0  ;;  %v2334_v41 = vadd.f32 %v2288_v27, %v5187_v2  ;;  %v3399_v27 = vsel %vm2897_vm4, %v5608_v20, 0.0 }
 0x302   : > { %v3079_v31 = vadd.f32 %v3078_v38, %v3077_v48 }
 0x303   : > { %v2612_v43 = vadd.f32 %v2566_v51, %v2334_v41  ;;  %v5618_v10 = vpop.f32.mrf.mxu1 }
 0x304   : > { %3343 = vst.msk [vmem:[%s5232_s14 + $0xd8] sm:$0xff] %vm2897_vm4, %v5618_v10  ;;  %v3444_v51 = vmul.f32 %v5618_v10, %v5618_v10 }
 0x305   : > { %v2890_v25 = vadd.f32 %v2844_v29, %v2612_v43  ;;  %v3495_v29 = vadd.f32 %v3494_v59, %v3493_v54 }
 0x306   : > { %v2847_v50 = vpop.f32.mrf.mxu0 }
 0x307   : > { %2923 = vst.msk [vmem:[%s5268_s17 + $0xc8] sm:$0xff] %vm2897_vm4, %v2890_v25  ;;  %v2979_v30 = vsel %vm2897_vm4, %v2890_v25, 0.0  ;;  %v3024_v13 = vmul.f32 %v2890_v25, %v2890_v25 }
 0x308   : > { %v2980_v0 = vadd.f32 %v2979_v30, %v2978_v61  ;;  %v2291_v22 = vpop.f32.mrf.mxu2  ;;  %v3498_v61 = vsel %vm2897_vm4, %v3442_v12, 0.0  ;;  %v3500_v30 = vsel %vm2897_vm4, %v3443_v14, 0.0 }
 0x309   : > { %v2569_v57 = vpop.f32.mrf.mxu3  ;;  %v3080_v2 = vsel %vm2897_vm4, %v3024_v13, 0.0  ;;  %v2335_v11 = vadd.f32 %v2291_v22, %v5196_v34  ;;  %v3401_v13 = vsel %vm2897_vm4, %v5618_v10, 0.0 }
 0x30a   : > { %v3081_v56 = vadd.f32 %v3080_v2, %v3079_v31  ;;  %v3497_v31 = vadd.f32 %v3496_v60, %v3495_v29 }
 0x30b   : > { %v2613_v9 = vadd.f32 %v2569_v57, %v2335_v11  ;;  %v3304_v15 = vpop.f32.mrf.mxu1 }
 0x30c   : > { %3344 = vst.msk [vmem:[%s5232_s14 + $0xe0] sm:$0xff] %vm2897_vm4, %v3304_v15  ;;  %v3499_v22 = vadd.f32 %v3498_v61, %v3497_v31 }
 0x30d   : > { %v2891_v44 = vadd.f32 %v2847_v50, %v2613_v9  ;;  %v3403_v9 = vsel %vm2897_vm4, %v3304_v15, 0.0 }
 0x30e   : > { %v2850_v35 = vpop.f32.mrf.mxu0 }
 0x30f   : > { %2924 = vst.msk [vmem:[%s5268_s17 + $0xd0] sm:$0xff] %vm2897_vm4, %v2891_v44  ;;  %v2981_v34 = vsel %vm2897_vm4, %v2891_v44, 0.0  ;;  %v3025_v45 = vmul.f32 %v2891_v44, %v2891_v44 }
 0x310   : > { %v2982_v39 = vadd.f32 %v2981_v34, %v2980_v0  ;;  %v2294_v63 = vpop.f32.mrf.mxu2  ;;  %v3445_v0 = vmul.f32 %v3304_v15, %v3304_v15 }
 0x311   : > { %v2572_v58 = vpop.f32.mrf.mxu3  ;;  %v3082_v7 = vsel %vm2897_vm4, %v3025_v45, 0.0  ;;  %v2336_v26 = vadd.f32 %v2294_v63, %v5205_v28  ;;  %v3395_v28 = vsel %vm2897_vm4, %v5588_v21, 0.0 }
 0x312   : > { %v3083_v62 = vadd.f32 %v3082_v7, %v3081_v56  ;;  %v3396_v4 = vadd.f32 %v3395_v28, %v3394_v42  ;;  %v3502_v56 = vsel %vm2897_vm4, %v3444_v51, 0.0  ;;  %v3504_v10 = vsel %vm2897_vm4, %v3445_v0, 0.0 }
 0x313   : > { %v2614_v17 = vadd.f32 %v2572_v58, %v2336_v26  ;;  %v3307_v1 = vpop.f32.mrf.mxu1 }
 0x314   : > { %3345 = vst.msk [vmem:[%s5232_s14 + $0xe8] sm:$0xff] %vm2897_vm4, %v3307_v1  ;;  %v3398_v43 = vadd.f32 %v3397_v40, %v3396_v4  ;;  %v3446_v3 = vmul.f32 %v3307_v1, %v3307_v1  ;;  %v3405_v19 = vsel %vm2897_vm4, %v3307_v1, 0.0 }
 0x315   : > { %v2892_v23 = vadd.f32 %v2850_v35, %v2614_v17 }
 0x316   : > { %v2853_v48 = vpop.f32.mrf.mxu0  ;;  %v3400_v57 = vadd.f32 %v3399_v27, %v3398_v43  ;;  %v3506_v15 = vsel %vm2897_vm4, %v3446_v3, 0.0 }
 0x317   : > { %2925 = vst.msk [vmem:[%s5268_s17 + $0xd8] sm:$0xff] %vm2897_vm4, %v2892_v23  ;;  %v2983_v21 = vsel %vm2897_vm4, %v2892_v23, 0.0  ;;  %v3026_v8 = vmul.f32 %v2892_v23, %v2892_v23 }
 0x318   : > { %v2984_v38 = vadd.f32 %v2983_v21, %v2982_v39  ;;  %v2297_v49 = vpop.f32.mrf.mxu2  ;;  %v3402_v44 = vadd.f32 %v3401_v13, %v3400_v57 }
 0x319   : > { %v2575_v41 = vpop.f32.mrf.mxu3  ;;  %v3084_v25 = vsel %vm2897_vm4, %v3026_v8, 0.0  ;;  %v2337_v50 = vadd.f32 %v2297_v49, %v5214_v16  ;;  %v3501_v16 = vadd.f32 %v3500_v30, %v3499_v22 }
 0x31a   : > { %v3085_v20 = vadd.f32 %v3084_v25, %v3083_v62  ;;  %v3404_v32 = vadd.f32 %v3403_v9, %v3402_v44 }
 0x31b   : > { %v2615_v2 = vadd.f32 %v2575_v41, %v2337_v50  ;;  %v3310_v11 = vpop.f32.mrf.mxu1  ;;  %v3503_v45 = vadd.f32 %v3502_v56, %v3501_v16 }
 0x31c   : > { %3346 = vst.msk [vmem:[%s5232_s14 + $0xf0] sm:$0xff] %vm2897_vm4, %v3310_v11  ;;  %v3447_v34 = vmul.f32 %v3310_v11, %v3310_v11  ;;  %v3407_v63 = vsel %vm2897_vm4, %v3310_v11, 0.0  ;;  %v3406_v26 = vadd.f32 %v3405_v19, %v3404_v32 }
 0x31d   : > { %v2893_v35 = vadd.f32 %v2853_v48, %v2615_v2  ;;  %v3505_v7 = vadd.f32 %v3504_v10, %v3503_v45 }
 0x31e   : > { %v2856_v18 = vpop.f32.mrf.mxu0  ;;  %v3508_v62 = vsel %vm2897_vm4, %v3447_v34, 0.0  ;;  %v3408_v33 = vadd.f32 %v3407_v63, %v3406_v26 }
 0x31f   : > { %2926 = vst.msk [vmem:[%s5268_s17 + $0xe0] sm:$0xff] %vm2897_vm4, %v2893_v35  ;;  %v2985_v36 = vsel %vm2897_vm4, %v2893_v35, 0.0  ;;  %v3027_v37 = vmul.f32 %v2893_v35, %v2893_v35  ;;  %v3507_v53 = vadd.f32 %v3506_v15, %v3505_v7 }
 0x320   : > { %v2986_v39 = vadd.f32 %v2985_v36, %v2984_v38  ;;  %v2300_v58 = vpop.f32.mrf.mxu2 }
 0x321   : > { %v2578_v6 = vpop.f32.mrf.mxu3  ;;  %v3086_v47 = vsel %vm2897_vm4, %v3027_v37, 0.0  ;;  %v2338_v55 = vadd.f32 %v2300_v58, %v5223_v46  ;;  %v3509_v12 = vadd.f32 %v3508_v62, %v3507_v53 }
 0x322   : > { %v3087_v24 = vadd.f32 %v3086_v47, %v3085_v20 }
 0x323   : > { %v2616_v17 = vadd.f32 %v2578_v6, %v2338_v55  ;;  %v3313_v1 = vpop.f32.mrf.mxu1 }
 0x324   : > { %3347 = vst.msk [vmem:[%s5232_s14 + $0xf8] sm:$0xff] %vm2897_vm4, %v3313_v1  ;;  %v3409_v59 = vsel %vm2897_vm4, %v3313_v1, 0.0  ;;  %v3448_v28 = vmul.f32 %v3313_v1, %v3313_v1 }
 0x325   : > { %v2894_v54 = vadd.f32 %v2856_v18, %v2616_v17  ;;  %v3410_v42 = vadd.f32 %v3409_v59, %v3408_v33 }
 0x326   : > { %v3510_v23 = vsel %vm2897_vm4, %v3448_v28, 0.0  ;;  %v2859_v14 = vpop.f32.mrf.mxu0 }
 0x327   : > { %2927 = vst.msk [vmem:[%s5268_s17 + $0xe8] sm:$0xff] %vm2897_vm4, %v2894_v54  ;;  %v2987_v46 = vsel %vm2897_vm4, %v2894_v54, 0.0  ;;  %v3028_v48 = vmul.f32 %v2894_v54, %v2894_v54  ;;  %v3411_v60 = vrot.slane %v3410_v42, 4  ;;  %v3511_v40 = vadd.f32 %v3510_v23, %v3509_v12 }
 0x328   : > { %v2988_v29 = vadd.f32 %v2987_v46, %v2986_v39  ;;  %v2303_v4 = vpop.f32.mrf.mxu2 }
 0x329   : > { %v2581_v21 = vpop.f32.mrf.mxu3  ;;  %v3088_v8 = vsel %vm2897_vm4, %v3028_v48, 0.0  ;;  %v3412_v61 = vadd.f32 %v3411_v60, %v3410_v42  ;;  %v3512_v27 = vrot.slane %v3511_v40, 4  ;;  %v2339_v51 = vadd.f32 %v2303_v4, %v5243_v52 }
 0x32a   : > { %v3089_v38 = vadd.f32 %v3088_v8, %v3087_v24 }
 0x32b   : > { %v3413_v49 = vrot.slane %v3412_v61, 2  ;;  %v3513_v41 = vadd.f32 %v3512_v27, %v3511_v40  ;;  %v2617_v31 = vadd.f32 %v2581_v21, %v2339_v51 }
 0x32d   : > { %v3414_v43 = vadd.f32 %v3413_v49, %v3412_v61  ;;  %v3514_v25 = vrot.slane %v3513_v41, 2  ;;  %v2895_v50 = vadd.f32 %v2859_v14, %v2617_v31 }
 0x32e   : > { %v2862_v16 = vpop.f32.mrf.mxu0 }
 0x32f   : > { %v3415_v30 = vrot.slane %v3414_v43, 1  ;;  %v3515_v13 = vadd.f32 %v3514_v25, %v3513_v41  ;;  %2928 = vst.msk [vmem:[%s5268_s17 + $0xf0] sm:$0xff] %vm2897_vm4, %v2895_v50  ;;  %v2989_v0 = vsel %vm2897_vm4, %v2895_v50, 0.0  ;;  %v3029_v20 = vmul.f32 %v2895_v50, %v2895_v50 }
 0x330   : > { %v2990_v52 = vadd.f32 %v2989_v0, %v2988_v29  ;;  %v2306_v22 = vpop.f32.mrf.mxu2 }
 0x331   : > { %v2584_v57 = vpop.f32.mrf.mxu3  ;;  %v3416_v2 = vadd.f32 %v3415_v30, %v3414_v43  ;;  %v3516_v11 = vrot.slane %v3515_v13, 1  ;;  %v3090_v56 = vsel %vm2897_vm4, %v3029_v20, 0.0  ;;  %v2340_v9 = vadd.f32 %v2306_v22, %v5257_v5 }
 0x332   : > { %v3091_v3 = vadd.f32 %v3090_v56, %v3089_v38 }
 0x333   : > { %v3517_v44 = vadd.f32 %v3516_v11, %v3515_v13  ;;  %3518 = vst.msk [vmem:[%s347_s19] sm:$0x1] %vm3100_vm5, %v3416_v2  ;;  %v2618_v35 = vadd.f32 %v2584_v57, %v2340_v9 }
 0x335   : > { %3519 = vst.msk [vmem:[%s350_s22] sm:$0x1] %vm3100_vm5, %v3517_v44  ;;  %v2896_v18 = vadd.f32 %v2862_v16, %v2618_v35 }
 0x337   : > { %2929 = vst.msk [vmem:[%s5268_s17 + $0xf8] sm:$0xff] %vm2897_vm4, %v2896_v18  ;;  %v2991_v10 = vsel %vm2897_vm4, %v2896_v18, 0.0  ;;  %v3030_v19 = vmul.f32 %v2896_v18, %v2896_v18 }
 0x338   : > { %v2992_v5 = vadd.f32 %v2991_v10, %v2990_v52 }
 0x339   : > { %v3092_v34 = vsel %vm2897_vm4, %v3030_v19, 0.0 }
 0x33a   : > { %v2993_v45 = vrot.slane %v2992_v5, 4  ;;  %v3093_v32 = vadd.f32 %v3092_v34, %v3091_v3 }
 0x33c   : > { %v2994_v36 = vadd.f32 %v2993_v45, %v2992_v5  ;;  %v3094_v37 = vrot.slane %v3093_v32, 4 }
 0x33e   : > { %v2995_v15 = vrot.slane %v2994_v36, 2  ;;  %v3095_v39 = vadd.f32 %v3094_v37, %v3093_v32 }
 0x340   : > { %v2996_v63 = vadd.f32 %v2995_v15, %v2994_v36  ;;  %v3096_v58 = vrot.slane %v3095_v39, 2 }
 0x342   : > { %v2997_v6 = vrot.slane %v2996_v63, 1  ;;  %v3097_v7 = vadd.f32 %v3096_v58, %v3095_v39 }
 0x344   : > { %v2998_v26 = vadd.f32 %v2997_v6, %v2996_v63  ;;  %v3098_v47 = vrot.slane %v3097_v7, 1 }
 0x346   : > { %v3099_v55 = vadd.f32 %v3098_v47, %v3097_v7  ;;  %3101 = vst.msk [vmem:[%s341_s25] sm:$0x1] %vm3100_vm5, %v2998_v26 }
 0x348   : > { %3102 = vst.msk [vmem:[%s344_s30] sm:$0x1] %vm3100_vm5, %v3099_v55 }
 0x349 PF: > { %s19_s27 = sadd.s32 1, %s4079_s27  }
 0x34a   : > { %p16_p4 = scmp.ge.s32.totalorder %s19_s27, 4  }
 0x34c   :  { %18 = sbr.rel (!%p16_p4) target bundleno = 1 (0x1), region = 133 }

</bundles_post_ra>
